<compile_context>
chip_gen: v7x
topology: tpu7x:2x2x1
jax: 0.10.0
libtpu: 0.0.40
codegen_flags: <defaults>
</compile_context>

<pallas_src>
import jax
import jax.numpy as jnp
from jax.experimental import pallas as pl
from jax.experimental.pallas import tpu as pltpu


_NEG_INF = -1e30  # finite bias pad for fake classifier columns -> prob 0, no inf-inf


# ----------------------------------------------------------------------------
# Fused head kernel:
#   avgpool (once) -> [Linear1 tile + ReLU -> partial Linear2 accumulate]*  ->
#   (last step) bias + ReLU + Linear3(fp32) + softmax (exact divide)
# ----------------------------------------------------------------------------
def _head_kernel(x_ref, w1_ref, b1_ref, w2_ref, b2_ref, w3_ref, b3_ref,
                 o_ref, pooled_ref, h2_acc_ref):
    j = pl.program_id(0)

    @pl.when(j == 0)
    def _init():
        # resnet.avgpool: global mean over H*W, hoisted out of the tile loop,
        # cast once to bf16 for the MXU.
        pooled_ref[...] = jnp.mean(x_ref[...], axis=1).astype(pooled_ref.dtype)
        h2_acc_ref[...] = jnp.zeros_like(h2_acc_ref)

    # Linear1 column-tile + ReLU: (B, C) x (C, tn) -> (B, tn), f32 accumulate.
    h1 = jnp.dot(pooled_ref[...], w1_ref[...],
                 preferred_element_type=jnp.float32)
    h1 = jnp.maximum(h1 + b1_ref[...], 0.0)

    # This K-tile's contribution to Linear2, accumulated in f32 VMEM scratch.
    h2_acc_ref[...] += jnp.dot(h1.astype(w2_ref.dtype), w2_ref[...],
                               preferred_element_type=jnp.float32)

    @pl.when(j == pl.num_programs(0) - 1)
    def _tail():
        h2 = jnp.maximum(h2_acc_ref[...] + b2_ref[...], 0.0)
        # Classifier kept in fp32 (tiny) for accuracy vs the fp32 PyTorch head.
        logits = jnp.dot(h2, w3_ref[...],
                         preferred_element_type=jnp.float32) + b3_ref[...]
        m = jnp.max(logits, axis=-1, keepdims=True)
        e = jnp.exp(logits - m)
        # Exact divide: head is DMA-bound, exact reciprocal is free and keeps
        # the probabilities summing to 1 to fp32 accuracy.
        o_ref[...] = e / jnp.sum(e, axis=-1, keepdims=True)


def spatial_cnn_head(feature_nhwc, iparams, *, tn=1024):
    """Head forward: NHWC backbone features (B, H, W, 2048) -> (B, n_classes)."""
    B, H, W, C = feature_nhwc.shape
    x = feature_nhwc.reshape(B, H * W, C)   # lane-dense on C; no transpose

    w1, b1 = iparams["w1"], iparams["b1"]
    w2, b2 = iparams["w2"], iparams["b2"]
    w3, b3 = iparams["w3p"], iparams["b3p"]
    N1 = w1.shape[1]
    N2 = w2.shape[1]
    Np = w3.shape[1]
    tn = min(tn, N1)
    assert C == w1.shape[0] and N1 % tn == 0 and w2.shape[0] == N1
    n_tiles = N1 // tn

    b1_2 = b1.reshape(1, N1)
    b2_2 = b2.reshape(1, N2)
    b3_2 = b3.reshape(1, Np)

    probs = pl.pallas_call(
        _head_kernel,
        out_shape=jax.ShapeDtypeStruct((B, Np), jnp.float32),
        grid_spec=pltpu.PrefetchScalarGridSpec(
            num_scalar_prefetch=0,
            grid=(n_tiles,),
            in_specs=[
                pl.BlockSpec((B, H * W, C), lambda j: (0, 0, 0)),  # features (invariant)
                pl.BlockSpec((C, tn), lambda j: (0, j)),           # w1 column tile
                pl.BlockSpec((1, tn), lambda j: (0, j)),           # b1 tile
                pl.BlockSpec((tn, N2), lambda j: (j, 0)),          # w2 row tile
                pl.BlockSpec((1, N2), lambda j: (0, 0)),           # b2 (invariant)
                pl.BlockSpec((N2, Np), lambda j: (0, 0)),          # w3 fp32 (invariant)
                pl.BlockSpec((1, Np), lambda j: (0, 0)),           # b3 (invariant)
            ],
            out_specs=pl.BlockSpec((B, Np), lambda j: (0, 0)),
            scratch_shapes=[
                pltpu.VMEM((B, C), jnp.bfloat16),    # pooled features (hoisted)
                pltpu.VMEM((B, N2), jnp.float32),    # Linear2 accumulator
            ],
        ),
        compiler_params=pltpu.CompilerParams(
            # Single sequential axis: accumulator + softmax tail depend on all
            # tiles (a 'parallel' split on v7x would break the carried scratch).
            dimension_semantics=("arbitrary",),
            vmem_limit_bytes=32 << 20,
        ),
    )(x, w1, b1_2, w2, b2_2, w3, b3_2)

    # Drop the padded (zero-probability) classifier lanes.
    return probs[:, :iparams["n_classes"]]


# ----------------------------------------------------------------------------
# Parameters
# ----------------------------------------------------------------------------
def init_head_params(key, n_classes):
    """Init mimicking torch.nn.Linear default (U[-1/sqrt(in), 1/sqrt(in)])."""
    dims = [(2048, 2048), (2048, 1024), (1024, n_classes)]
    params = {}
    for i, (fin, fout) in enumerate(dims, start=1):
        key, kw, kb = jax.random.split(key, 3)
        bound = 1.0 / jnp.sqrt(float(fin))
        params[f"w{i}"] = jax.random.uniform(
            kw, (fin, fout), jnp.float32, minval=-bound, maxval=bound)
        params[f"b{i}"] = jax.random.uniform(
            kb, (fout,), jnp.float32, minval=-bound, maxval=bound)
    return params


def prepare_inference_params(params, n_classes):
    """bf16-cast the big weights; keep classifier fp32; pad it to 128 lanes."""
    npad = max(128, ((n_classes + 127) // 128) * 128)
    k3 = params["w3"].shape[0]
    w3p = jnp.zeros((k3, npad), jnp.float32).at[:, :n_classes].set(params["w3"])
    b3p = jnp.full((npad,), _NEG_INF, jnp.float32).at[:n_classes].set(params["b3"])
    return {
        "w1": params["w1"].astype(jnp.bfloat16),
        "b1": params["b1"],
        "w2": params["w2"].astype(jnp.bfloat16),
        "b2": params["b2"],
        "w3p": w3p,          # classifier kept fp32 (only ~0.5 MiB of streaming)
        "b3p": b3p,
        "n_classes": n_classes,
    }


def reference_forward(feature_nhwc, iparams):
    """Pure-JAX reference with the same dtype path as the kernel."""
    B, H, W, C = feature_nhwc.shape
    pooled = feature_nhwc.reshape(B, H * W, C).mean(axis=1).astype(jnp.bfloat16)
    h1 = jnp.maximum(
        jnp.dot(pooled, iparams["w1"],
                preferred_element_type=jnp.float32) + iparams["b1"], 0.0)
    h2 = jnp.maximum(
        jnp.dot(h1.astype(jnp.bfloat16), iparams["w2"],
                preferred_element_type=jnp.float32) + iparams["b2"], 0.0)
    logits = jnp.dot(h2, iparams["w3p"],
                     preferred_element_type=jnp.float32) + iparams["b3p"]
    return jax.nn.softmax(logits, axis=1)[:, :iparams["n_classes"]]


if __name__ == "__main__":
    key = jax.random.PRNGKey(0)
    k_feat, k_params = jax.random.split(key)

    B, H, W, C = 2, 4, 4, 2048      # head requires C=2048; small batch/spatial
    N_CLASSES = 10

    # NHWC final-conv features of the (not re-implemented) ResNet-50 backbone.
    feature_map = jax.random.normal(k_feat, (B, H, W, C), jnp.float32)
    params = init_head_params(k_params, N_CLASSES)
    iparams = prepare_inference_params(params, N_CLASSES)

    out = spatial_cnn_head(feature_map, iparams)
    out = jax.block_until_ready(out)
    ref = reference_forward(feature_map, iparams)

    assert out.shape == (B, N_CLASSES)
    # Exact divide + zero-probability padded lanes -> sums to 1 at fp32 accuracy.
    assert bool(jnp.allclose(jnp.sum(out, axis=1), 1.0, atol=1e-3))
    assert bool(jnp.allclose(out, ref, atol=2e-3))

    print("KERNEL_OK")
</pallas_src>

<mosaic_0001>
module attributes {stable_mosaic.version = 11 : i64} {
  func.func @_head_kernel(%arg0: i32, %arg1: memref<2x16x2048xf32, #tpu.memory_space<vmem>>, %arg2: memref<2048x1024xbf16, #tpu.memory_space<vmem>>, %arg3: memref<1x1024xf32, #tpu.memory_space<vmem>>, %arg4: memref<1024x1024xbf16, #tpu.memory_space<vmem>>, %arg5: memref<1x1024xf32, #tpu.memory_space<vmem>>, %arg6: memref<1024x128xf32, #tpu.memory_space<vmem>>, %arg7: memref<1x128xf32, #tpu.memory_space<vmem>>, %arg8: memref<2x128xf32, #tpu.memory_space<vmem>>, %arg9: memref<2x2048xbf16, #tpu.memory_space<vmem>>, %arg10: memref<2x1024xf32, #tpu.memory_space<vmem>>) attributes {dimension_semantics = [#tpu.dimension_semantics<arbitrary>], iteration_bounds = array<i64: 2>, scalar_prefetch = 0 : i64, scratch_operands = 2 : i64, tpu.core_type = #tpu.core_type<tc>, window_params = [{pipeline_mode = #tpu.pipeline_mode<synchronous>, transform_indices = @transform_0, window_bounds = array<i64: 2, 16, 2048>}, {transform_indices = @transform_1, window_bounds = array<i64: 2048, 1024>}, {transform_indices = @transform_2, window_bounds = array<i64: 1, 1024>}, {transform_indices = @transform_3, window_bounds = array<i64: 1024, 1024>}, {pipeline_mode = #tpu.pipeline_mode<synchronous>, transform_indices = @transform_4, window_bounds = array<i64: 1, 1024>}, {pipeline_mode = #tpu.pipeline_mode<synchronous>, transform_indices = @transform_5, window_bounds = array<i64: 1024, 128>}, {pipeline_mode = #tpu.pipeline_mode<synchronous>, transform_indices = @transform_6, window_bounds = array<i64: 1, 128>}, {pipeline_mode = #tpu.pipeline_mode<synchronous>, transform_indices = @transform_7, window_bounds = array<i64: 2, 128>}]} {
    %c0_i32 = arith.constant 0 : i32
    %0 = arith.cmpi eq, %arg0, %c0_i32 : i32
    %1 = arith.extui %0 : i1 to i32
    %c0_i32_0 = arith.constant 0 : i32
    %2 = arith.cmpi ne, %1, %c0_i32_0 : i32
    scf.if %2 {
      %c0_15 = arith.constant 0 : index
      %c0_16 = arith.constant 0 : index
      %c0_17 = arith.constant 0 : index
      %20 = vector.load %arg1[%c0_15, %c0_16, %c0_17] : memref<2x16x2048xf32, #tpu.memory_space<vmem>>, vector<2x16x2048xf32>
      %cst_18 = arith.constant dense<0.000000e+00> : vector<2x2048xf32>
      %21 = vector.multi_reduction <add>, %20, %cst_18 [1] : vector<2x16x2048xf32> to vector<2x2048xf32>
      %cst_19 = arith.constant 1.600000e+01 : f32
      %22 = vector.broadcast %cst_19 : f32 to vector<2x2048xf32>
      %23 = arith.divf %21, %22 : vector<2x2048xf32>
      %24 = arith.truncf %23 : vector<2x2048xf32> to vector<2x2048xbf16>
      %c0_20 = arith.constant 0 : index
      %c0_21 = arith.constant 0 : index
      %25 = vector.load %arg9[%c0_20, %c0_21] : memref<2x2048xbf16, #tpu.memory_space<vmem>>, vector<2x2048xbf16>
      tpu.vector_store %arg9[%c0_20, %c0_21], %24 {strides = array<i32>} : memref<2x2048xbf16, #tpu.memory_space<vmem>>, vector<2x2048xbf16>,
      %cst_22 = arith.constant 0.000000e+00 : f32
      %26 = vector.broadcast %cst_22 : f32 to vector<2x1024xf32>
      %c0_23 = arith.constant 0 : index
      %c0_24 = arith.constant 0 : index
      %27 = vector.load %arg10[%c0_23, %c0_24] : memref<2x1024xf32, #tpu.memory_space<vmem>>, vector<2x1024xf32>
      tpu.vector_store %arg10[%c0_23, %c0_24], %26 {strides = array<i32>} : memref<2x1024xf32, #tpu.memory_space<vmem>>, vector<2x1024xf32>,
    } else {
    }
    %c0 = arith.constant 0 : index
    %c0_1 = arith.constant 0 : index
    %3 = vector.load %arg9[%c0, %c0_1] : memref<2x2048xbf16, #tpu.memory_space<vmem>>, vector<2x2048xbf16>
    %c0_2 = arith.constant 0 : index
    %c0_3 = arith.constant 0 : index
    %4 = vector.load %arg2[%c0_2, %c0_3] : memref<2048x1024xbf16, #tpu.memory_space<vmem>>, vector<2048x1024xbf16>
    %cst = arith.constant dense<0.000000e+00> : vector<2x1024xf32>
    %5 = tpu.matmul %3, %4, %cst {dimension_numbers = #tpu.dot_dimension_numbers<[1], [0], [0], [1], [0, 0, 1, 1], [], []>} : vector<2x2048xbf16>, vector<2048x1024xbf16>, vector<2x1024xf32> -> vector<2x1024xf32>
    %c0_4 = arith.constant 0 : index
    %c0_5 = arith.constant 0 : index
    %6 = vector.load %arg3[%c0_4, %c0_5] : memref<1x1024xf32, #tpu.memory_space<vmem>>, vector<1x1024xf32>
    %7 = vector.broadcast %6 : vector<1x1024xf32> to vector<2x1024xf32>
    %8 = arith.addf %5, %7 : vector<2x1024xf32>
    %cst_6 = arith.constant 0.000000e+00 : f32
    %9 = vector.broadcast %cst_6 : f32 to vector<2x1024xf32>
    %10 = arith.maximumf %8, %9 : vector<2x1024xf32>
    %c0_7 = arith.constant 0 : index
    %c0_8 = arith.constant 0 : index
    %11 = vector.load %arg10[%c0_7, %c0_8] : memref<2x1024xf32, #tpu.memory_space<vmem>>, vector<2x1024xf32>
    %12 = arith.truncf %10 : vector<2x1024xf32> to vector<2x1024xbf16>
    %c0_9 = arith.constant 0 : index
    %c0_10 = arith.constant 0 : index
    %13 = vector.load %arg4[%c0_9, %c0_10] : memref<1024x1024xbf16, #tpu.memory_space<vmem>>, vector<1024x1024xbf16>
    %cst_11 = arith.constant dense<0.000000e+00> : vector<2x1024xf32>
    %14 = tpu.matmul %12, %13, %cst_11 {dimension_numbers = #tpu.dot_dimension_numbers<[1], [0], [0], [1], [0, 0, 1, 1], [], []>} : vector<2x1024xbf16>, vector<1024x1024xbf16>, vector<2x1024xf32> -> vector<2x1024xf32>
    %15 = arith.addf %11, %14 : vector<2x1024xf32>
    %c0_12 = arith.constant 0 : index
    %c0_13 = arith.constant 0 : index
    %16 = vector.load %arg10[%c0_12, %c0_13] : memref<2x1024xf32, #tpu.memory_space<vmem>>, vector<2x1024xf32>
    tpu.vector_store %arg10[%c0_12, %c0_13], %15 {strides = array<i32>} : memref<2x1024xf32, #tpu.memory_space<vmem>>, vector<2x1024xf32>,
    %c1_i32 = arith.constant 1 : i32
    %17 = arith.cmpi eq, %arg0, %c1_i32 : i32
    %18 = arith.extui %17 : i1 to i32
    %c0_i32_14 = arith.constant 0 : i32
    %19 = arith.cmpi ne, %18, %c0_i32_14 : i32
    scf.if %19 {
      %c0_15 = arith.constant 0 : index
      %c0_16 = arith.constant 0 : index
      %20 = vector.load %arg10[%c0_15, %c0_16] : memref<2x1024xf32, #tpu.memory_space<vmem>>, vector<2x1024xf32>
      %c0_17 = arith.constant 0 : index
      %c0_18 = arith.constant 0 : index
      %21 = vector.load %arg5[%c0_17, %c0_18] : memref<1x1024xf32, #tpu.memory_space<vmem>>, vector<1x1024xf32>
      %22 = vector.broadcast %21 : vector<1x1024xf32> to vector<2x1024xf32>
      %23 = arith.addf %20, %22 : vector<2x1024xf32>
      %cst_19 = arith.constant 0.000000e+00 : f32
      %24 = vector.broadcast %cst_19 : f32 to vector<2x1024xf32>
      %25 = arith.maximumf %23, %24 : vector<2x1024xf32>
      %c0_20 = arith.constant 0 : index
      %c0_21 = arith.constant 0 : index
      %26 = vector.load %arg6[%c0_20, %c0_21] : memref<1024x128xf32, #tpu.memory_space<vmem>>, vector<1024x128xf32>
      %cst_22 = arith.constant dense<0.000000e+00> : vector<2x128xf32>
      %27 = tpu.matmul %25, %26, %cst_22 {dimension_numbers = #tpu.dot_dimension_numbers<[1], [0], [0], [1], [0, 0, 1, 1], [], []>} : vector<2x1024xf32>, vector<1024x128xf32>, vector<2x128xf32> -> vector<2x128xf32>
      %c0_23 = arith.constant 0 : index
      %c0_24 = arith.constant 0 : index
      %28 = vector.load %arg7[%c0_23, %c0_24] : memref<1x128xf32, #tpu.memory_space<vmem>>, vector<1x128xf32>
      %29 = vector.broadcast %28 : vector<1x128xf32> to vector<2x128xf32>
      %30 = arith.addf %27, %29 : vector<2x128xf32>
      %cst_25 = arith.constant dense<0xFF800000> : vector<2xf32>
      %31 = vector.multi_reduction <maximumf>, %30, %cst_25 [1] : vector<2x128xf32> to vector<2xf32>
      %32 = vector.shape_cast %31 : vector<2xf32> to vector<2x1xf32>
      %33 = vector.broadcast %32 : vector<2x1xf32> to vector<2x128xf32>
      %34 = arith.subf %30, %33 : vector<2x128xf32>
      %35 = math.exp %34 : vector<2x128xf32>
      %cst_26 = arith.constant dense<0.000000e+00> : vector<2xf32>
      %36 = vector.multi_reduction <add>, %35, %cst_26 [1] : vector<2x128xf32> to vector<2xf32>
      %37 = vector.shape_cast %36 : vector<2xf32> to vector<2x1xf32>
      %38 = vector.broadcast %37 : vector<2x1xf32> to vector<2x128xf32>
      %39 = arith.divf %35, %38 : vector<2x128xf32>
      %c0_27 = arith.constant 0 : index
      %c0_28 = arith.constant 0 : index
      %40 = vector.load %arg8[%c0_27, %c0_28] : memref<2x128xf32, #tpu.memory_space<vmem>>, vector<2x128xf32>
      tpu.vector_store %arg8[%c0_27, %c0_28], %39 {strides = array<i32>} : memref<2x128xf32, #tpu.memory_space<vmem>>, vector<2x128xf32>,
    } else {
    }
    return
  }
  func.func @transform_0(%arg0: i32) -> (i32, i32, i32) {
    %c0_i32 = arith.constant 0 : i32
    %c0_i32_0 = arith.constant 0 : i32
    %c0_i32_1 = arith.constant 0 : i32
    %c0_i32_2 = arith.constant 0 : i32
    return %c0_i32, %c0_i32_0, %c0_i32_1 : i32, i32, i32
  }
  func.func @transform_1(%arg0: i32) -> (i32, i32) {
    %c0_i32 = arith.constant 0 : i32
    %c0_i32_0 = arith.constant 0 : i32
    return %c0_i32, %arg0 : i32, i32
  }
  func.func @transform_2(%arg0: i32) -> (i32, i32) {
    %c0_i32 = arith.constant 0 : i32
    %c0_i32_0 = arith.constant 0 : i32
    return %c0_i32, %arg0 : i32, i32
  }
  func.func @transform_3(%arg0: i32) -> (i32, i32) {
    %c0_i32 = arith.constant 0 : i32
    %c0_i32_0 = arith.constant 0 : i32
    return %arg0, %c0_i32 : i32, i32
  }
  func.func @transform_4(%arg0: i32) -> (i32, i32) {
    %c0_i32 = arith.constant 0 : i32
    %c0_i32_0 = arith.constant 0 : i32
    %c0_i32_1 = arith.constant 0 : i32
    return %c0_i32, %c0_i32_0 : i32, i32
  }
  func.func @transform_5(%arg0: i32) -> (i32, i32) {
    %c0_i32 = arith.constant 0 : i32
    %c0_i32_0 = arith.constant 0 : i32
    %c0_i32_1 = arith.constant 0 : i32
    return %c0_i32, %c0_i32_0 : i32, i32
  }
  func.func @transform_6(%arg0: i32) -> (i32, i32) {
    %c0_i32 = arith.constant 0 : i32
    %c0_i32_0 = arith.constant 0 : i32
    %c0_i32_1 = arith.constant 0 : i32
    return %c0_i32, %c0_i32_0 : i32, i32
  }
  func.func @transform_7(%arg0: i32) -> (i32, i32) {
    %c0_i32 = arith.constant 0 : i32
    %c0_i32_0 = arith.constant 0 : i32
    %c0_i32_1 = arith.constant 0 : i32
    return %c0_i32, %c0_i32_0 : i32, i32
  }
}

</mosaic_0001>

<bundles_post_ra>
// kernel: tpu_custom_call.1
= control target key start
LH: loop header
LB: loop body
LE: loop exit
PB: predicated region body
PF: predicated region fallthrough
CT: control target
= control target key end

     0   :  { %s18289_s0 = inlined_call_operand.hbm [shape: f32[2,16,2048], index: 0, kind: input, shape index: {}]   ;;  %s18290_s1 = inlined_call_operand.hbm [shape: bf16[2048,2048], index: 1, kind: input, shape index: {}]   ;;  %s18291_s2 = inlined_call_operand.hbm [shape: f32[1,2048], index: 2, kind: input, shape index: {}]   ;;  %s18292_s3 = inlined_call_operand.hbm [shape: bf16[2048,1024], index: 3, kind: input, shape index: {}]   ;;  %s18293_s4 = inlined_call_operand.hbm [shape: f32[1,1024], index: 4, kind: input, shape index: {}]   ;;  %s18294_s5 = inlined_call_operand.hbm [shape: f32[1024,128], index: 5, kind: input, shape index: {}]   ;;  %s18295_s6 = inlined_call_operand.hbm [shape: f32[1,128], index: 6, kind: input, shape index: {}]   ;;  %s18296_s7 = inlined_call_operand.hbm [shape: f32[2,128], index: 7, kind: output, shape index: {}]  }
   0x1   :  { %18314 = sst [smem:[#allocation26_spill]] %s18290_s1 }
   0x2   :  { %18315 = sst [smem:[#allocation27_spill]] %s18293_s4 }
   0x3   :  { %18316 = sst [smem:[#allocation28_spill]] %s18294_s5 }
   0x4   :  { %18317 = sst [smem:[#allocation29_spill]] %s18296_s7 }
   0x5   :  { %12 = vsyncpa [#allocation5], 0 }
   0x6   :  { %13 = vsyncpa [#allocation8], 0 }
   0x7   :  { %15 = vsyncpa [#allocation8 + $0x1], 0 }
   0x8   :  { %16 = vsyncpa [#allocation11], 0 }
   0x9   :  { %18 = vsyncpa [#allocation11 + $0x1], 0 }
   0xa   :  { %19 = vsyncpa [#allocation14], 0 }
   0xb   :  { %20 = vsyncpa [#allocation6], 0  ;;  %s15940_s24 = smov 0   ;;  %s15942_s25 = smov 0  }
   0xc   :  { %s15944_s26 = smov 0   ;;  %s15946_s27 = smov 0  }
   0xd LB: > { %18318 = sst [smem:[#allocation23_spill]] %s15875_s26  ;;  %s15959_s28 = sadd.s32 4294967295, %s15879_s27   ;;  %s15879_s27 = sphi %s15946_s27, %s18346_s27   ;;  %s15875_s26 = sphi %s15944_s26, %s18351_s26   ;;  %s15871_s25 = sphi %s15942_s25, %s18350_s25   ;;  %s15867_s24 = sphi %s15940_s24, %s18349_s24  }
   0xe   : > { %p67_p0 = scmp.ne.s32.totalorder %s15871_s25, %s15867_s24  ;;  %p18297_p1 = scmp.eq.s32.totalorder %s15959_s28, 0 }
   0xf   : > { %p13455_p2 = scmp.ge.s32.totalorder %s15879_s27, 1  ;;  %p214_p3 = scmp.lt.s32.totalorder %s15879_s27, 3 }
  0x10   : > { %p15968_p5 = por %p18297_p1, %p67_p0  ;;  %s15881_s8 = smov [#allocation12]  }
  0x11   : > { %p15972_p6 = pnand %p13455_p2, %p214_p3  ;;  %s240_s9 = sshll.u32 %s15881_s8, 4  ;;  %s241_s9 = int_to_ptr.vmem [resolvable:$true] %s240_s9 }
  0x12   : > { %s18319_s29 = scalar_select %p15968_p5, 1, 0 }
  0x13   : > { %s18320_s30 = scalar_select %p15972_p6, 1, 0 }
  0x14   : > { %p15508_p7 = pneg %p15972_p6  ;;  %s15882_s11 = smov [#allocation13]  }
  0x15   : > { %s250_s12 = sshll.u32 %s15882_s11, 4  ;;  %s18322_s4 = sld [smem:[#allocation27_spill]]  ;;  %s15984_s12 = int_to_ptr.vmem [resolvable:$true] %s250_s12 }
  0x16   : > { %p15980_p8 = pnand %p15508_p7, %p18297_p1 }
  0x18   : > { %s18321_s10 = scalar_select %p15980_p8, 1, 0 }
  0x19   : > { %p15994_p10 = pneg %p15980_p8 }
  0x1b   : > { %s15597_s15 = scalar_lea.hbm %s18322_s4, 128 }
  0x1c   : > { %p15598_p9 = scmp.ne.s32.totalorder %s18322_s4, %s15597_s15  ;;  %p15604_p13 = scmp.lt.u32.totalorder %s15597_s15, %s18322_s4 }
  0x1d   : > { %s18323_s18 = scalar_select %p15994_p10, 1, 0 }
  0x1e   : > { %p15600_p11 = pnand %p15994_p10, %p15598_p9 }
  0x20   : > { %p15601_p12 = pneg %p15600_p11 }
  0x22   : > { %p15606_p0 = pnand %p15604_p13, %p15601_p12 }
  0x24   : > { %15609 = shalt.err (!%p15606_p0)
}
  0x25   : > { %s15610_s21 = scalar_lea.vmem %s241_s9, 128  ;;  %p15618_p4 = scmp.lt.s32.totalorder %s241_s9, %s241_s9 }
  0x26   : > { %p15611_p2 = scmp.ne.s32.totalorder %s241_s9, %s15610_s21  ;;  %p15619_p1 = scmp.lt.s32.totalorder %s15610_s21, %s15610_s21 }
  0x28   : > { %p15613_p3 = pnand %p15611_p2, %p15994_p10  ;;  %p15620_p5 = por %p15619_p1, %p15618_p4 }
  0x2a   : > { %p15614_p7 = pneg %p15613_p3 }
  0x2c   : > { %p15621_p6 = pnand %p15620_p5, %p15614_p7 }
  0x2e   : > { %15624 = shalt.err (!%p15621_p6)
}
  0x2f   : > { %15514 = dma.hbm_to_vmem [thread:$0]  (!%p15980_p8), %s18322_s4, 128, %s241_s9, [#allocation11]  }
  0x30   : > { %s18324_s5 = sld [smem:[#allocation28_spill]] }
  0x36   : > { %s15625_s11 = scalar_lea.hbm %s18324_s5, 16384 }
  0x37   : > { %p15626_p9 = scmp.ne.s32.totalorder %s18324_s5, %s15625_s11  ;;  %p15632_p4 = scmp.lt.u32.totalorder %s15625_s11, %s18324_s5 }
  0x39   : > { %p15628_p11 = pnand %p15626_p9, %p15994_p10 }
  0x3b   : > { %p15629_p1 = pneg %p15628_p11 }
  0x3d   : > { %p15634_p5 = pnand %p15632_p4, %p15629_p1 }
  0x3f   : > { %15637 = shalt.err (!%p15634_p5)
}
  0x40   : > { %s15638_s9 = scalar_lea.vmem %s15984_s12, 16384  ;;  %p15646_p0 = scmp.lt.s32.totalorder %s15984_s12, %s15984_s12 }
  0x41   : > { %p15639_p6 = scmp.ne.s32.totalorder %s15984_s12, %s15638_s9  ;;  %p15647_p2 = scmp.lt.s32.totalorder %s15638_s9, %s15638_s9 }
  0x43   : > { %p15641_p12 = pnand %p15639_p6, %p15994_p10  ;;  %p15648_p3 = por %p15647_p2, %p15646_p0 }
  0x45   : > { %p15642_p13 = pneg %p15641_p12 }
  0x47   : > { %p15649_p7 = pnand %p15648_p3, %p15642_p13 }
  0x49   : > { %15652 = shalt.err (!%p15649_p7)
}
  0x4a   : > { %s18300_s17 = smov 128   ;;  %s15884_s19 = smov 8  }
  0x4b   : > { %15517 = dma.hbm_to_vmem [thread:$0]  (!%p15980_p8), %s18324_s5, 16384, %s15984_s12, [#allocation14], %s18300_s17, %s18300_s17, %s15884_s19  }
  0x4c   : > { %s16036_s22 = sadd.s32 1, %s15879_s27   ;;  %s54_s23 = sadd.s32 1, %s15875_s26 }
  0x4d   : > { %18325 = sst [smem:[#allocation24_spill]] %s16036_s22  ;;  %s51_s24 = ssub.s32 %s15879_s27, %s16036_s22 }
  0x4e   : > { %p61_p9 = scmp.ne.s32.totalorder %s15875_s26, %s15871_s25  ;;  %p52_p11 = scmp.eq.s32.totalorder %s51_s24, 0 }
  0x4f   : > { %p62_p1 = scmp.eq.s32.totalorder %s15879_s27, 0  ;;  %p15535_p4 = scmp.lt.s32.totalorder %s15879_s27, 2 }
  0x50   : > { %s18301_s8 = sand.u32 1, %s15879_s27   ;;  %s16050_s13 = sand.u32 1, %s15875_s26  }
  0x51   : > { %s16047_s11 = scalar_select %p52_p11, %s15875_s26, %s54_s23  }
  0x52   : > { %p63_p5 = por %p62_p1, %p61_p9  ;;  %s15042_s14 = sshll.u32 %s15879_s27, 9 }
  0x53   : > { %18326 = sst [smem:[#allocation25_spill]] %s16047_s11  ;;  %s13461_s15 = sshll.u32 %s16050_s13, 13 }
  0x54   : > { %s18327_s1 = sld [smem:[#allocation26_spill]]  ;;  %p16059_p6 = pnand %p15535_p4, %p63_p5 }
  0x55   : > { %s279_s20 = scalar_lea.vmem [#allocation7], %s13461_s15  ;;  %s16067_s23 = scalar_lea.sflag [#allocation8], %s18301_s8 }
  0x56   : > { %s18328_s19 = scalar_select %p16059_p6, 1, 0 }
  0x57   : > { %s286_s21 = sshll.u32 %s279_s20, 4  ;;  %p16073_p13 = pneg %p16059_p6  ;;  %s16063_s21 = int_to_ptr.vmem [resolvable:$true] %s286_s21 }
  0x5a   : > { %s16057_s9 = scalar_lea.hbm %s18327_s1, %s15042_s14  ;;  %s15658_s15 = scalar_lea.hbm %s18327_s1, 262144 }
  0x5b   : > { %s15653_s24 = scalar_lea.hbm %s16057_s9, 131072  ;;  %p15659_p3 = scmp.lt.u32.totalorder %s16057_s9, %s18327_s1 }
  0x5c   : > { %p15654_p12 = scmp.ne.s32.totalorder %s16057_s9, %s15653_s24  ;;  %p15660_p7 = scmp.lt.u32.totalorder %s15658_s15, %s15653_s24 }
  0x5d   : > { %s18329_s14 = scalar_select %p16073_p13, 1, 0 }
  0x5e   : > { %p15656_p0 = pnand %p16073_p13, %p15654_p12  ;;  %p15661_p9 = por %p15660_p7, %p15659_p3 }
  0x5f   : > { %p15662_p11 = scmp.lt.u32.totalorder %s15653_s24, %s16057_s9 }
  0x60   : > { %p15657_p2 = pneg %p15656_p0 }
  0x61   : > { %p15663_p1 = por %p15662_p11, %p15661_p9 }
  0x63   : > { %p15664_p4 = pnand %p15663_p1, %p15657_p2 }
  0x65   : > { %15667 = shalt.err (!%p15664_p4)
}
  0x66   : > { %s15668_s8 = scalar_lea.vmem %s16063_s21, 131072  ;;  %s15885_s12 = smov [#allocation7]  }
  0x67   : > { %p15669_p5 = scmp.ne.s32.totalorder %s16063_s21, %s15668_s8  ;;  %s15673_s16 = sshll.u32 %s15885_s12, 4  ;;  %s15674_s16 = int_to_ptr.vmem [resolvable:$false] %s15673_s16 }
  0x68   : > { %s15675_s17 = scalar_lea.vmem %s15674_s16, 262144  ;;  %p15676_p8 = scmp.lt.s32.totalorder %s16063_s21, %s15674_s16 }
  0x69   : > { %p15671_p12 = pnand %p15669_p5, %p16073_p13  ;;  %p15677_p10 = scmp.lt.s32.totalorder %s15675_s17, %s15668_s8 }
  0x6b   : > { %p15672_p0 = pneg %p15671_p12  ;;  %p15678_p3 = por %p15677_p10, %p15676_p8 }
  0x6d   : > { %p15679_p7 = pnand %p15678_p3, %p15672_p0 }
  0x6f   : > { %15682 = shalt.err (!%p15679_p7)
}
  0x70   : > { %s15886_s24 = smov 1024   ;;  %s15887_s15 = smov 512  }
  0x71   : > { %s15888_s20 = smov 32   ;;  %s15889_s12 = smov [#allocation4]  }
  0x72   : > { %15524 = dma.hbm_to_vmem [thread:$0]  (!%p16059_p6), %s16057_s9, 131072, %s16063_s21, %s16067_s23, %s15886_s24, %s15887_s15, %s15888_s20  }
  0x73   : > { %s226_s1 = sshll.u32 %s15889_s12, 4  ;;  %s15890_s16 = smov [#allocation15]   ;;  %s227_s1 = int_to_ptr.vmem [resolvable:$true] %s226_s1 }
  0x74   : > { %s264_s8 = sshll.u32 %s15890_s16, 4  ;;  %s15683_s5 = scalar_lea.hbm %s18289_s0, 8192  ;;  %s265_s8 = int_to_ptr.vmem [resolvable:$true] %s264_s8 }
  0x75   : > { %p15684_p8 = scmp.ne.s32.totalorder %s18289_s0, %s15683_s5  ;;  %p18330_p10 = scmp.ne.s32.totalorder %s18323_s18, 0 }
  0x76   : > { %p15690_p11 = scmp.lt.u32.totalorder %s15683_s5, %s18289_s0 }
  0x77   : > { %p15686_p2 = pnand %p15684_p8, %p18330_p10 }
  0x79   : > { %p15687_p9 = pneg %p15686_p2 }
  0x7b   : > { %p15692_p1 = pnand %p15690_p11, %p15687_p9 }
  0x7d   : > { %15695 = shalt.err (!%p15692_p1)
}
  0x7e   : > { %s15696_s9 = scalar_lea.vmem %s227_s1, 8192  ;;  %p15704_p0 = scmp.lt.s32.totalorder %s227_s1, %s227_s1 }
  0x7f   : > { %p15697_p4 = scmp.ne.s32.totalorder %s227_s1, %s15696_s9  ;;  %p15705_p3 = scmp.lt.s32.totalorder %s15696_s9, %s15696_s9 }
  0x81   : > { %p15699_p5 = pnand %p15697_p4, %p18330_p10  ;;  %p15706_p7 = por %p15705_p3, %p15704_p0 }
  0x83   : > { %p15700_p12 = pneg %p15699_p5 }
  0x85   : > { %p15707_p6 = pnand %p15706_p7, %p15700_p12 }
  0x87   : > { %15710 = shalt.err (!%p15707_p6)
}
  0x88   : > { %s15891_s4 = smov 2048   ;;  %p18331_p8 = scmp.ne.s32.totalorder %s18321_s10, 0 }
  0x89   : > { %s18332_s26 = smov 128   ;;  %s13464_s5 = sshll.u32 %s16050_s13, 3 }
  0x8a   : > { %15511 = dma.hbm_to_vmem [thread:$0]  (!%p18331_p8), %s18289_s0, 8192, %s227_s1, [#allocation5], %s15891_s4, %s15891_s4, %s18332_s26  }
  0x8b   : > { %s15711_s24 = scalar_lea.hbm %s18295_s6, 16 }
  0x8c   : > { %p15712_p6 = scmp.ne.s32.totalorder %s18295_s6, %s15711_s24  ;;  %p15718_p11 = scmp.lt.u32.totalorder %s15711_s24, %s18295_s6 }
  0x8e   : > { %p15714_p2 = pnand %p15712_p6, %p18330_p10 }
  0x90   : > { %p15715_p9 = pneg %p15714_p2 }
  0x92   : > { %p15720_p1 = pnand %p15718_p11, %p15715_p9 }
  0x94   : > { %15723 = shalt.err (!%p15720_p1)
}
  0x95   : > { %s15724_s1 = scalar_lea.vmem %s265_s8, 16  ;;  %s15731_s4 = scalar_lea.vmem %s265_s8, 32 }
  0x96   : > { %p15725_p4 = scmp.ne.s32.totalorder %s265_s8, %s15724_s1  ;;  %p15732_p0 = scmp.lt.s32.totalorder %s265_s8, %s265_s8 }
  0x97   : > { %p15733_p3 = scmp.lt.s32.totalorder %s15731_s4, %s15724_s1 }
  0x98   : > { %p15727_p5 = pnand %p15725_p4, %p18330_p10 }
  0x99   : > { %p15734_p7 = por %p15733_p3, %p15732_p0 }
  0x9a   : > { %p15728_p12 = pneg %p15727_p5 }
  0x9c   : > { %p15735_p13 = pnand %p15734_p7, %p15728_p12 }
  0x9e   : > { %15738 = shalt.err (!%p15735_p13)
}
  0x9f   : > { %15520 = dma.hbm_to_vmem [thread:$0]  (!%p18331_p8), %s18295_s6, 16, %s265_s8, [#allocation14]  }
  0xa0   : > { %s15043_s7 = sshll.u32 %s15879_s27, 7  ;;  %s300_s24 = scalar_lea.vmem [#allocation9], %s13464_s5 }
  0xa1   : > { %s16141_s18 = scalar_lea.hbm %s18291_s2, %s15043_s7  ;;  %s308_s12 = sshll.u32 %s300_s24, 4  ;;  %s309_s12 = int_to_ptr.vmem [resolvable:$true] %s308_s12 }
  0xa2   : > { %s15739_s10 = scalar_lea.hbm %s16141_s18, 128  ;;  %p18333_p10 = scmp.ne.s32.totalorder %s18329_s14, 0 }
  0xa3   : > { %p15740_p13 = scmp.ne.s32.totalorder %s16141_s18, %s15739_s10  ;;  %s15744_s17 = scalar_lea.hbm %s18291_s2, 256 }
  0xa4   : > { %p15745_p8 = scmp.lt.u32.totalorder %s16141_s18, %s18291_s2  ;;  %p15746_p9 = scmp.lt.u32.totalorder %s15744_s17, %s15739_s10 }
  0xa5   : > { %p15742_p6 = pnand %p15740_p13, %p18333_p10  ;;  %p15748_p1 = scmp.lt.u32.totalorder %s15739_s10, %s16141_s18 }
  0xa6   : > { %p15747_p11 = por %p15746_p9, %p15745_p8 }
  0xa7   : > { %p15743_p2 = pneg %p15742_p6 }
  0xa8   : > { %p15749_p4 = por %p15748_p1, %p15747_p11 }
  0xaa   : > { %p15750_p5 = pnand %p15749_p4, %p15743_p2 }
  0xac   : > { %15753 = shalt.err (!%p15750_p5)
}
  0xad   : > { %s15754_s5 = scalar_lea.vmem %s309_s12, 128  ;;  %s15892_s4 = smov [#allocation9]  }
  0xae   : > { %p15755_p12 = scmp.ne.s32.totalorder %s309_s12, %s15754_s5  ;;  %s15759_s26 = sshll.u32 %s15892_s4, 4  ;;  %s15760_s26 = int_to_ptr.vmem [resolvable:$false] %s15759_s26 }
  0xaf   : > { %s15761_s11 = scalar_lea.vmem %s15760_s26, 256  ;;  %p15762_p7 = scmp.lt.s32.totalorder %s309_s12, %s15760_s26 }
  0xb0   : > { %p15757_p0 = pnand %p15755_p12, %p18333_p10  ;;  %p15763_p13 = scmp.lt.s32.totalorder %s15761_s11, %s15754_s5 }
  0xb2   : > { %p15758_p3 = pneg %p15757_p0  ;;  %p15764_p6 = por %p15763_p13, %p15762_p7 }
  0xb4   : > { %p15765_p8 = pnand %p15764_p6, %p15758_p3 }
  0xb6   : > { %15768 = shalt.err (!%p15765_p8)
}
  0xb7   : > { %p18334_p9 = scmp.ne.s32.totalorder %s18328_s19, 0  ;;  %s13467_s7 = sshll.u32 %s16050_s13, 12 }
  0xb8   : > { %s15045_s22 = sshll.u32 %s15879_s27, 16  ;;  %s319_s16 = scalar_lea.vmem [#allocation10], %s13467_s7 }
  0xb9   : > { %15527 = dma.hbm_to_vmem [thread:$0]  (!%p18334_p9), %s16141_s18, 128, %s309_s12, %s16067_s23  }
  0xba   : > { %s16166_s10 = scalar_lea.hbm %s18292_s3, %s15045_s22  ;;  %s327_s8 = sshll.u32 %s319_s16, 4  ;;  %s16168_s8 = int_to_ptr.vmem [resolvable:$true] %s327_s8 }
  0xbb   : > { %s18335_s17 = sand.u32 1, %s15879_s27   ;;  %s15769_s1 = scalar_lea.hbm %s16166_s10, 65536 }
  0xbc   : > { %s16172_s9 = scalar_lea.sflag [#allocation11], %s18335_s17  ;;  %p15770_p2 = scmp.ne.s32.totalorder %s16166_s10, %s15769_s1 }
  0xbd   : > { %s15774_s18 = scalar_lea.hbm %s18292_s3, 131072  ;;  %p15775_p4 = scmp.lt.u32.totalorder %s16166_s10, %s18292_s3 }
  0xbe   : > { %p15772_p11 = pnand %p15770_p2, %p18333_p10  ;;  %p15776_p5 = scmp.lt.u32.totalorder %s15774_s18, %s15769_s1 }
  0xbf   : > { %p15778_p0 = scmp.lt.u32.totalorder %s15769_s1, %s16166_s10 }
  0xc0   : > { %p15773_p1 = pneg %p15772_p11  ;;  %p15777_p12 = por %p15776_p5, %p15775_p4 }
  0xc2   : > { %p15779_p3 = por %p15778_p0, %p15777_p12 }
  0xc4   : > { %p15780_p7 = pnand %p15779_p3, %p15773_p1 }
  0xc6   : > { %15783 = shalt.err (!%p15780_p7)
}
  0xc7   : > { %s15784_s27 = scalar_lea.vmem %s16168_s8, 65536  ;;  %s15893_s4 = smov [#allocation10]  }
  0xc8   : > { %p15785_p13 = scmp.ne.s32.totalorder %s16168_s8, %s15784_s27  ;;  %s15789_s26 = sshll.u32 %s15893_s4, 4  ;;  %s15790_s26 = int_to_ptr.vmem [resolvable:$false] %s15789_s26 }
  0xc9   : > { %s15791_s11 = scalar_lea.vmem %s15790_s26, 131072  ;;  %p15792_p2 = scmp.lt.s32.totalorder %s16168_s8, %s15790_s26 }
  0xca   : > { %p15787_p6 = pnand %p15785_p13, %p18333_p10  ;;  %p15793_p11 = scmp.lt.s32.totalorder %s15791_s11, %s15784_s27 }
  0xcc   : > { %p15788_p8 = pneg %p15787_p6  ;;  %p15794_p4 = por %p15793_p11, %p15792_p2 }
  0xce   : > { %p15795_p5 = pnand %p15794_p4, %p15788_p8 }
  0xd0   : > { %15798 = shalt.err (!%p15795_p5)
}
  0xd1   : > { %15530 = dma.hbm_to_vmem [thread:$0]  (!%p18334_p9), %s16166_s10, 65536, %s16168_s8, %s16172_s9, %s15887_s15, %s15887_s15, %s15888_s20  }
  0xd2   : > { %p18336_p10 = scmp.ne.s32.totalorder %s18320_s30, 0 }
  0xd3   : > { %p18337_p1 = scmp.eq.s32.totalorder (!%p18336_p10), %s15959_s28, 0 }
  0xd4   : > { %339 = sbr.rel (%p18336_p10) target bundleno = 2761 (0xac9), region = 48 }
  0xdb   : > { %15842 = dma.done.wait (%p18337_p1), [#allocation5], 8192   ;;  %p18338_p12 = pmov %p18337_p1 }
  0xdc   : > { %s345_s19 = sand.u32 1, %s15959_s28   ;;  %s347_s14 = sand.u32 1, %s15871_s25  }
  0xdd   : > { %15844 = vsyncadd (%p18338_p12), [#allocation5], 4294959104  ;;  %s13473_s7 = sshll.u32 %s347_s14, 13  ;;  %s346_s22 = scalar_lea.sflag [#allocation8], %s345_s19 }
  0xde   : > { %s16207_s21 = scalar_lea.vmem [#allocation7], %s13473_s7  ;;  %p18339_p0 = scmp.ne.s32.totalorder %s18319_s29, 0 }
  0xe0   : > { %15846 = dma.done.wait (%p18339_p0), %s346_s22, 131200  }
  0xe1   : > { %15848 = vsyncadd (%p18339_p0), %s346_s22, 4294836096  ;;  %s13474_s30 = sshll.u32 %s347_s14, 3  ;;  %s13475_s15 = sshll.u32 %s347_s14, 12 }
  0xe2   : > { %s16213_s20 = scalar_lea.vmem [#allocation9], %s13474_s30  ;;  %s364_s24 = scalar_lea.sflag [#allocation11], %s345_s19 }
  0xe3   : > { %s16215_s10 = scalar_lea.vmem [#allocation10], %s13475_s15 }
  0xe4   : > { %15850 = dma.done.wait (%p18339_p0), %s364_s24, 65536  }
  0xe5   : > { %15852 = vsyncadd (%p18339_p0), %s364_s24, 4294901760  ;;  %p18340_p9 = pmov %p18337_p1 }
  0xe6   : > { %p18341_p3 = pmov %p18337_p1 }
  0xe7   : > { %15854 = dma.done.wait (%p18340_p9), [#allocation11], 128  }
  0xe8   : > { %15856 = vsyncadd (%p18341_p3), [#allocation11], 4294967168  ;;  %p18342_p7 = pmov %p18337_p1 }
  0xe9   : > { %p18343_p13 = pmov %p18337_p1 }
  0xea   : > { %15858 = dma.done.wait (%p18342_p7), [#allocation14], 16400  }
  0xeb   : > { %15860 = vsyncadd (%p18343_p13), [#allocation14], 4294950896  ;;  %p18344_p6 = scmp.ne.s32.totalorder %s15959_s28, 0 }
  0xec   : > { %v814_v0 = vlaneseq (!%p18344_p6)  ;;  %v15894_v1 = vmov (!%p18344_p6), 1966171168   ;;  %v422_v3 = vld [vmem:[#allocation4] sm:$0xff] (!%p18344_p6)  ;;  %v15895_v5 = vmov (!%p18344_p6), 1935823168   ;;  %v15896_v7 = vmov (!%p18344_p6), 0.0  }
  0xed   : > { %421 = sbr.rel (%p18344_p6) target bundleno = 356 (0x164), region = 80  ;;  %v812_v2 = vunpack.c.l.s4 (!%p18344_p6), %v15894_v1  ;;  %v1005_v6 = vunpack.c.l.s4 (!%p18344_p6), %v15895_v5  ;;  %1350 = vst [vmem:[#allocation3] sm:$0xff] (!%p18344_p6), %v15896_v7  ;;  %1351 = vst [vmem:[#allocation3 + $0x8] sm:$0xff] (!%p18344_p6), %v15896_v7  ;;  %v423_v8 = vld [vmem:[#allocation4 + $0x8] sm:$0xff] (!%p18344_p6)  ;;  %v424_v9 = vld [vmem:[#allocation4 + $0x10] sm:$0xff] (!%p18344_p6)  ;;  %vm1216_vm0 = vcmask (!%p18344_p6), 1041409  }
  0xee   : > { %v815_v4 = vshrl.u32 (!%p18344_p6), %v814_v0, 7  ;;  %v425_v10 = vld [vmem:[#allocation4 + $0x18] sm:$0xff] (!%p18344_p6)  ;;  %v426_v12 = vld [vmem:[#allocation4 + $0x20] sm:$0xff] (!%p18344_p6)  ;;  %v427_v13 = vld [vmem:[#allocation4 + $0x28] sm:$0xff] (!%p18344_p6) }
  0xef   : > { %v813_v11 = vunpack.c.0.s8 (!%p18344_p6), %v812_v2  ;;  %v428_v14 = vld [vmem:[#allocation4 + $0x30] sm:$0xff] (!%p18344_p6)  ;;  %v1006_v15 = vunpack.c.0.s8 (!%p18344_p6), %v1005_v6  ;;  %v429_v16 = vld [vmem:[#allocation4 + $0x38] sm:$0xff] (!%p18344_p6)  ;;  %v438_v17 = vld [vmem:[#allocation4 + $0x80] sm:$0xff] (!%p18344_p6) }
  0xf0   : > { %v439_v18 = vld [vmem:[#allocation4 + $0x88] sm:$0xff] (!%p18344_p6)  ;;  %v440_v19 = vld [vmem:[#allocation4 + $0x90] sm:$0xff] (!%p18344_p6)  ;;  %v441_v20 = vld [vmem:[#allocation4 + $0x98] sm:$0xff] (!%p18344_p6)  ;;  %v486_v22 = vadd.f32 (!%p18344_p6), %v438_v17, %v422_v3 }
  0xf1   : > { %v442_v21 = vld [vmem:[#allocation4 + $0xa0] sm:$0xff] (!%p18344_p6)  ;;  %v493_v23 = vadd.f32 (!%p18344_p6), %v439_v18, %v423_v8  ;;  %v16231_v24 = vsub.s32 (!%p18344_p6), %v813_v11, %v815_v4  ;;  %v443_v25 = vld [vmem:[#allocation4 + $0xa8] sm:$0xff] (!%p18344_p6)  ;;  %v444_v26 = vld [vmem:[#allocation4 + $0xb0] sm:$0xff] (!%p18344_p6)  ;;  %v500_v28 = vadd.f32 (!%p18344_p6), %v440_v19, %v424_v9  ;;  %v507_v29 = vadd.f32 (!%p18344_p6), %v441_v20, %v425_v10 }
  0xf2   : > { %v445_v27 = vld [vmem:[#allocation4 + $0xb8] sm:$0xff] (!%p18344_p6)  ;;  %v514_v30 = vadd.f32 (!%p18344_p6), %v442_v21, %v426_v12  ;;  %v16233_v31 = vsub.s32 (!%p18344_p6), %v1006_v15, %v815_v4  ;;  %v487_v32 = vrot.slane (!%p18344_p6), %v486_v22, 4  ;;  %v521_v34 = vadd.f32 (!%p18344_p6), %v443_v25, %v427_v13  ;;  %v430_v60 = vld [vmem:[#allocation4 + $0x40] sm:$0xff] (!%p18344_p6)  ;;  %v431_v61 = vld [vmem:[#allocation4 + $0x48] sm:$0xff] (!%p18344_p6) }
  0xf3   : > { %v494_v33 = vrot.slane (!%p18344_p6), %v493_v23, 4  ;;  %v528_v35 = vadd.f32 (!%p18344_p6), %v444_v26, %v428_v14  ;;  %v501_v36 = vrot.slane (!%p18344_p6), %v500_v28, 4  ;;  %v508_v37 = vrot.slane (!%p18344_p6), %v507_v29, 4  ;;  %v432_v2 = vld [vmem:[#allocation4 + $0x50] sm:$0xff] (!%p18344_p6)  ;;  %v433_v3 = vld [vmem:[#allocation4 + $0x58] sm:$0xff] (!%p18344_p6)  ;;  %v434_v4 = vld [vmem:[#allocation4 + $0x60] sm:$0xff] (!%p18344_p6) }
  0xf4   : > { %v515_v38 = vrot.slane %v514_v30, 4  ;;  %v535_v39 = vadd.f32 %v445_v27, %v429_v16  ;;  %v488_v40 = vadd.f32 %v487_v32, %v486_v22  ;;  %v522_v42 = vrot.slane %v521_v34, 4  ;;  %v435_v9 = vld [vmem:[#allocation4 + $0x68] sm:$0xff]  ;;  %v446_v10 = vld [vmem:[#allocation4 + $0xc0] sm:$0xff]  ;;  %v448_v16 = vld [vmem:[#allocation4 + $0xd0] sm:$0xff] }
  0xf5   : > { %v495_v41 = vadd.f32 %v494_v33, %v493_v23  ;;  %v529_v43 = vrot.slane %v528_v35, 4  ;;  %v502_v44 = vadd.f32 %v501_v36, %v500_v28  ;;  %v509_v45 = vadd.f32 %v508_v37, %v507_v29  ;;  %v447_v11 = vld [vmem:[#allocation4 + $0xc8] sm:$0xff]  ;;  %v449_v17 = vld [vmem:[#allocation4 + $0xd8] sm:$0xff]  ;;  %v450_v18 = vld [vmem:[#allocation4 + $0xe0] sm:$0xff] }
  0xf6   : > { %v516_v46 = vadd.f32 %v515_v38, %v514_v30  ;;  %v536_v47 = vrot.slane %v535_v39, 4  ;;  %v489_v48 = vrot.slane %v488_v40, 2  ;;  %v523_v50 = vadd.f32 %v522_v42, %v521_v34  ;;  %v436_v23 = vld [vmem:[#allocation4 + $0x70] sm:$0xff]  ;;  %v451_v25 = vld [vmem:[#allocation4 + $0xe8] sm:$0xff]  ;;  %v437_v32 = vld [vmem:[#allocation4 + $0x78] sm:$0xff] }
  0xf7   : > { %v496_v49 = vrot.slane %v495_v41, 2  ;;  %v530_v51 = vadd.f32 %v529_v43, %v528_v35  ;;  %v503_v52 = vrot.slane %v502_v44, 2  ;;  %v510_v53 = vrot.slane %v509_v45, 2  ;;  %v452_v26 = vld [vmem:[#allocation4 + $0xf0] sm:$0xff]  ;;  %v453_v33 = vld [vmem:[#allocation4 + $0xf8] sm:$0xff] }
  0xf8   : > { %v517_v54 = vrot.slane %v516_v46, 2  ;;  %v537_v55 = vadd.f32 %v536_v47, %v535_v39  ;;  %v490_v56 = vadd.f32 %v489_v48, %v488_v40  ;;  %v524_v58 = vrot.slane %v523_v50, 2 }
  0xf9   : > { %v497_v57 = vadd.f32 %v496_v49, %v495_v41  ;;  %v531_v59 = vrot.slane %v530_v51, 2  ;;  %v504_v62 = vadd.f32 %v503_v52, %v502_v44  ;;  %v511_v63 = vadd.f32 %v510_v53, %v509_v45 }
  0xfa   : > { %v518_v0 = vadd.f32 %v517_v54, %v516_v46  ;;  %v538_v1 = vrot.slane %v537_v55, 2  ;;  %v491_v5 = vrot.slane %v490_v56, 1  ;;  %v525_v7 = vadd.f32 %v524_v58, %v523_v50 }
  0xfb   : > { %v498_v6 = vrot.slane %v497_v57, 1  ;;  %v532_v8 = vadd.f32 %v531_v59, %v530_v51  ;;  %v505_v12 = vrot.slane %v504_v62, 1  ;;  %v512_v13 = vrot.slane %v511_v63, 1 }
  0xfc   : > { %v519_v14 = vrot.slane %v518_v0, 1  ;;  %v539_v15 = vadd.f32 %v538_v1, %v537_v55  ;;  %v16235_v19 = vadd.f32 %v491_v5, %v490_v56  ;;  %v526_v21 = vrot.slane %v525_v7, 1 }
  0xfd   : > { %v16237_v20 = vadd.f32 %v498_v6, %v497_v57  ;;  %v533_v22 = vrot.slane %v532_v8, 1  ;;  %v16239_v27 = vadd.f32 %v505_v12, %v504_v62  ;;  %v16241_v28 = vadd.f32 %v512_v13, %v511_v63  ;;  %v454_v6 = vld [vmem:[#allocation4 + $0x100] sm:$0xff]  ;;  %v456_v12 = vld [vmem:[#allocation4 + $0x110] sm:$0xff]  ;;  %v457_v13 = vld [vmem:[#allocation4 + $0x118] sm:$0xff] }
  0xfe   : > { %v16243_v29 = vadd.f32 %v519_v14, %v518_v0  ;;  %v540_v30 = vrot.slane %v539_v15, 1  ;;  %v16245_v34 = vadd.f32 %v526_v21, %v525_v7  ;;  %v542_v36 = vadd.f32 %v446_v10, %v430_v60  ;;  %v455_v7 = vld [vmem:[#allocation4 + $0x108] sm:$0xff]  ;;  %v458_v14 = vld [vmem:[#allocation4 + $0x120] sm:$0xff] }
  0xff   : > { %v16247_v35 = vadd.f32 %v533_v22, %v532_v8  ;;  %v549_v37 = vadd.f32 %v447_v11, %v431_v61  ;;  %v556_v39 = vadd.f32 %v448_v16, %v432_v2  ;;  %v563_v40 = vadd.f32 %v449_v17, %v433_v3  ;;  %v459_v21 = vld [vmem:[#allocation4 + $0x128] sm:$0xff]  ;;  %v470_v22 = vld [vmem:[#allocation4 + $0x180] sm:$0xff] }
 0x100   : > { %v16249_v38 = vadd.f32 %v540_v30, %v539_v15  ;;  %v570_v41 = vadd.f32 %v450_v18, %v434_v4  ;;  %v543_v42 = vrot.slane %v542_v36, 4  ;;  %v577_v44 = vadd.f32 %v451_v25, %v435_v9 }
 0x101   : > { %v550_v43 = vrot.slane %v549_v37, 4  ;;  %v584_v45 = vadd.f32 %v452_v26, %v436_v23  ;;  %v557_v46 = vrot.slane %v556_v39, 4  ;;  %v564_v47 = vrot.slane %v563_v40, 4  ;;  %v471_v23 = vld [vmem:[#allocation4 + $0x188] sm:$0xff] }
 0x102   : > { %v571_v48 = vrot.slane %v570_v41, 4  ;;  %v591_v49 = vadd.f32 %v453_v33, %v437_v32  ;;  %v544_v50 = vadd.f32 %v543_v42, %v542_v36  ;;  %v578_v52 = vrot.slane %v577_v44, 4  ;;  %v472_v33 = vld [vmem:[#allocation4 + $0x190] sm:$0xff]  ;;  %v473_v36 = vld [vmem:[#allocation4 + $0x198] sm:$0xff] }
 0x103   : > { %v551_v51 = vadd.f32 %v550_v43, %v549_v37  ;;  %v585_v53 = vrot.slane %v584_v45, 4  ;;  %v558_v54 = vadd.f32 %v557_v46, %v556_v39  ;;  %v565_v55 = vadd.f32 %v564_v47, %v563_v40  ;;  %v474_v37 = vld [vmem:[#allocation4 + $0x1a0] sm:$0xff]  ;;  %v460_v43 = vld [vmem:[#allocation4 + $0x130] sm:$0xff] }
 0x104   : > { %v572_v56 = vadd.f32 %v571_v48, %v570_v41  ;;  %v592_v57 = vrot.slane %v591_v49, 4  ;;  %v545_v58 = vrot.slane %v544_v50, 2  ;;  %v579_v60 = vadd.f32 %v578_v52, %v577_v44  ;;  %v475_v44 = vld [vmem:[#allocation4 + $0x1a8] sm:$0xff] }
 0x105   : > { %v552_v59 = vrot.slane %v551_v51, 2  ;;  %v586_v61 = vadd.f32 %v585_v53, %v584_v45  ;;  %v559_v62 = vrot.slane %v558_v54, 2  ;;  %v566_v63 = vrot.slane %v565_v55, 2  ;;  %v476_v45 = vld [vmem:[#allocation4 + $0x1b0] sm:$0xff] }
 0x106   : > { %v573_v0 = vrot.slane %v572_v56, 2  ;;  %v593_v1 = vadd.f32 %v592_v57, %v591_v49  ;;  %v546_v2 = vadd.f32 %v545_v58, %v544_v50  ;;  %v580_v4 = vrot.slane %v579_v60, 2  ;;  %v461_v50 = vld [vmem:[#allocation4 + $0x138] sm:$0xff] }
 0x107   : > { %v553_v3 = vadd.f32 %v552_v59, %v551_v51  ;;  %v587_v5 = vrot.slane %v586_v61, 2  ;;  %v560_v8 = vadd.f32 %v559_v62, %v558_v54  ;;  %v567_v9 = vadd.f32 %v566_v63, %v565_v55  ;;  %v477_v51 = vld [vmem:[#allocation4 + $0x1b8] sm:$0xff] }
 0x108   : > { %v574_v10 = vadd.f32 %v573_v0, %v572_v56  ;;  %v594_v11 = vrot.slane %v593_v1, 2  ;;  %v547_v15 = vrot.slane %v546_v2, 1  ;;  %v581_v17 = vadd.f32 %v580_v4, %v579_v60 }
 0x109   : > { %v554_v16 = vrot.slane %v553_v3, 1  ;;  %v588_v18 = vadd.f32 %v587_v5, %v586_v61  ;;  %v561_v25 = vrot.slane %v560_v8, 1  ;;  %v568_v26 = vrot.slane %v567_v9, 1 }
 0x10a   : > { %v575_v30 = vrot.slane %v574_v10, 1  ;;  %v595_v32 = vadd.f32 %v594_v11, %v593_v1  ;;  %v16251_v39 = vadd.f32 %v547_v15, %v546_v2  ;;  %v582_v41 = vrot.slane %v581_v17, 1 }
 0x10b   : > { %v16253_v40 = vadd.f32 %v554_v16, %v553_v3  ;;  %v589_v42 = vrot.slane %v588_v18, 1  ;;  %v16255_v46 = vadd.f32 %v561_v25, %v560_v8  ;;  %v16257_v47 = vadd.f32 %v568_v26, %v567_v9 }
 0x10c   : > { %v16259_v48 = vadd.f32 %v575_v30, %v574_v10  ;;  %v596_v49 = vrot.slane %v595_v32, 1  ;;  %v16261_v52 = vadd.f32 %v582_v41, %v581_v17  ;;  %v598_v54 = vadd.f32 %v470_v22, %v454_v6  ;;  %v462_v30 = vld [vmem:[#allocation4 + $0x140] sm:$0xff] }
 0x10d   : > { %v16263_v53 = vadd.f32 %v589_v42, %v588_v18  ;;  %v605_v55 = vadd.f32 %v471_v23, %v455_v7  ;;  %v612_v57 = vadd.f32 %v472_v33, %v456_v12  ;;  %v619_v58 = vadd.f32 %v473_v36, %v457_v13  ;;  %v464_v42 = vld [vmem:[#allocation4 + $0x150] sm:$0xff] }
 0x10e   : > { %v16265_v56 = vadd.f32 %v596_v49, %v595_v32  ;;  %v626_v59 = vadd.f32 %v474_v37, %v458_v14  ;;  %v599_v60 = vrot.slane %v598_v54, 4  ;;  %v633_v62 = vadd.f32 %v475_v44, %v459_v21  ;;  %v463_v32 = vld [vmem:[#allocation4 + $0x148] sm:$0xff]  ;;  %v466_v44 = vld [vmem:[#allocation4 + $0x160] sm:$0xff] }
 0x10f   : > { %v606_v61 = vrot.slane %v605_v55, 4  ;;  %v640_v63 = vadd.f32 %v476_v45, %v460_v43  ;;  %v613_v0 = vrot.slane %v612_v57, 4  ;;  %v620_v1 = vrot.slane %v619_v58, 4  ;;  %v465_v43 = vld [vmem:[#allocation4 + $0x158] sm:$0xff] }
 0x110   : > { %v627_v2 = vrot.slane %v626_v59, 4  ;;  %v647_v3 = vadd.f32 %v477_v51, %v461_v50  ;;  %v600_v4 = vadd.f32 %v599_v60, %v598_v54  ;;  %v634_v8 = vrot.slane %v633_v62, 4  ;;  %v467_v54 = vld [vmem:[#allocation4 + $0x168] sm:$0xff] }
 0x111   : > { %v607_v5 = vadd.f32 %v606_v61, %v605_v55  ;;  %v641_v9 = vrot.slane %v640_v63, 4  ;;  %v614_v10 = vadd.f32 %v613_v0, %v612_v57  ;;  %v621_v6 = vadd.f32 %v620_v1, %v619_v58  ;;  %v478_v55 = vld [vmem:[#allocation4 + $0x1c0] sm:$0xff]  ;;  %v479_v57 = vld [vmem:[#allocation4 + $0x1c8] sm:$0xff] }
 0x112   : > { %v628_v7 = vadd.f32 %v627_v2, %v626_v59  ;;  %v648_v11 = vrot.slane %v647_v3, 4  ;;  %v601_v15 = vrot.slane %v600_v4, 2  ;;  %v635_v13 = vadd.f32 %v634_v8, %v633_v62  ;;  %v480_v62 = vld [vmem:[#allocation4 + $0x1d0] sm:$0xff]  ;;  %v482_v0 = vld [vmem:[#allocation4 + $0x1e0] sm:$0xff]  ;;  %v483_v8 = vld [vmem:[#allocation4 + $0x1e8] sm:$0xff] }
 0x113   : > { %v608_v12 = vrot.slane %v607_v5, 2  ;;  %v642_v14 = vadd.f32 %v641_v9, %v640_v63  ;;  %v615_v16 = vrot.slane %v614_v10, 2  ;;  %v622_v17 = vrot.slane %v621_v6, 2  ;;  %v481_v63 = vld [vmem:[#allocation4 + $0x1d8] sm:$0xff]  ;;  %v484_v9 = vld [vmem:[#allocation4 + $0x1f0] sm:$0xff] }
 0x114   : > { %v629_v18 = vrot.slane %v628_v7, 2  ;;  %v649_v21 = vadd.f32 %v648_v11, %v647_v3  ;;  %v602_v22 = vadd.f32 %v601_v15, %v600_v4  ;;  %v636_v25 = vrot.slane %v635_v13, 2  ;;  %v469_v15 = vld [vmem:[#allocation4 + $0x178] sm:$0xff] }
 0x115   : > { %v609_v23 = vadd.f32 %v608_v12, %v607_v5  ;;  %v643_v26 = vrot.slane %v642_v14, 2  ;;  %v616_v33 = vadd.f32 %v615_v16, %v614_v10  ;;  %v623_v36 = vadd.f32 %v622_v17, %v621_v6  ;;  %v468_v5 = vld [vmem:[#allocation4 + $0x170] sm:$0xff]  ;;  %v485_v12 = vld [vmem:[#allocation4 + $0x1f8] sm:$0xff] }
 0x116   : > { %v630_v37 = vadd.f32 %v629_v18, %v628_v7  ;;  %v650_v41 = vrot.slane %v649_v21, 2  ;;  %v603_v45 = vrot.slane %v602_v22, 1  ;;  %v637_v50 = vadd.f32 %v636_v25, %v635_v13 }
 0x117   : > { %v610_v49 = vrot.slane %v609_v23, 1  ;;  %v644_v51 = vadd.f32 %v643_v26, %v642_v14  ;;  %v617_v58 = vrot.slane %v616_v33, 1  ;;  %v624_v59 = vrot.slane %v623_v36, 1 }
 0x118   : > { %v631_v60 = vrot.slane %v630_v37, 1  ;;  %v651_v61 = vadd.f32 %v650_v41, %v649_v21  ;;  %v16267_v1 = vadd.f32 %v603_v45, %v602_v22  ;;  %v638_v3 = vrot.slane %v637_v50, 1 }
 0x119   : > { %v16269_v2 = vadd.f32 %v610_v49, %v609_v23  ;;  %v645_v4 = vrot.slane %v644_v51, 1  ;;  %v16271_v10 = vadd.f32 %v617_v58, %v616_v33  ;;  %v16273_v6 = vadd.f32 %v624_v59, %v623_v36 }
 0x11a   : > { %v16275_v7 = vadd.f32 %v631_v60, %v630_v37  ;;  %v652_v11 = vrot.slane %v651_v61, 1  ;;  %v16277_v13 = vadd.f32 %v638_v3, %v637_v50  ;;  %v654_v16 = vadd.f32 %v478_v55, %v462_v30 }
 0x11b   : > { %v16279_v14 = vadd.f32 %v645_v4, %v644_v51  ;;  %v661_v17 = vadd.f32 %v479_v57, %v463_v32  ;;  %v668_v21 = vadd.f32 %v480_v62, %v464_v42  ;;  %v675_v22 = vadd.f32 %v481_v63, %v465_v43 }
 0x11c   : > { %v16281_v18 = vadd.f32 %v652_v11, %v651_v61  ;;  %v682_v23 = vadd.f32 %v482_v0, %v466_v44  ;;  %v655_v25 = vrot.slane %v654_v16, 4  ;;  %v689_v33 = vadd.f32 %v483_v8, %v467_v54 }
 0x11d   : > { %v662_v26 = vrot.slane %v661_v17, 4  ;;  %v696_v36 = vadd.f32 %v484_v9, %v468_v5  ;;  %v669_v37 = vrot.slane %v668_v21, 4  ;;  %v676_v41 = vrot.slane %v675_v22, 4 }
 0x11e   : > { %v683_v45 = vrot.slane %v682_v23, 4  ;;  %v703_v49 = vadd.f32 %v485_v12, %v469_v15  ;;  %v656_v58 = vadd.f32 %v655_v25, %v654_v16  ;;  %v690_v59 = vrot.slane %v689_v33, 4 }
 0x11f   : > { %v663_v50 = vadd.f32 %v662_v26, %v661_v17  ;;  %v697_v51 = vrot.slane %v696_v36, 4  ;;  %v670_v60 = vadd.f32 %v669_v37, %v668_v21  ;;  %v677_v30 = vadd.f32 %v676_v41, %v675_v22 }
 0x120   : > { %v684_v32 = vadd.f32 %v683_v45, %v682_v23  ;;  %v704_v55 = vrot.slane %v703_v49, 4  ;;  %v657_v57 = vrot.slane %v656_v58, 2  ;;  %v691_v43 = vadd.f32 %v690_v59, %v689_v33 }
 0x121   : > { %v664_v42 = vrot.slane %v663_v50, 2  ;;  %v698_v44 = vadd.f32 %v697_v51, %v696_v36  ;;  %v671_v61 = vrot.slane %v670_v60, 2  ;;  %v678_v62 = vrot.slane %v677_v30, 2 }
 0x122   : > { %v685_v54 = vrot.slane %v684_v32, 2  ;;  %v705_v63 = vadd.f32 %v704_v55, %v703_v49  ;;  %v658_v0 = vadd.f32 %v657_v57, %v656_v58  ;;  %v692_v4 = vrot.slane %v691_v43, 2 }
 0x123   : > { %v665_v3 = vadd.f32 %v664_v42, %v663_v50  ;;  %v699_v5 = vrot.slane %v698_v44, 2  ;;  %v672_v8 = vadd.f32 %v671_v61, %v670_v60  ;;  %v679_v9 = vadd.f32 %v678_v62, %v677_v30 }
 0x124   : > { %v686_v11 = vadd.f32 %v685_v54, %v684_v32  ;;  %v706_v15 = vrot.slane %v705_v63, 2  ;;  %v659_v12 = vrot.slane %v658_v0, 1  ;;  %v693_v17 = vadd.f32 %v692_v4, %v691_v43 }
 0x125   : > { %v666_v16 = vrot.slane %v665_v3, 1  ;;  %v700_v21 = vadd.f32 %v699_v5, %v698_v44  ;;  %v673_v22 = vrot.slane %v672_v8, 1  ;;  %v680_v23 = vrot.slane %v679_v9, 1 }
 0x126   : > { %v687_v25 = vrot.slane %v686_v11, 1  ;;  %v707_v26 = vadd.f32 %v706_v15, %v705_v63  ;;  %v660_v33 = vadd.f32 %v659_v12, %v658_v0  ;;  %v694_v37 = vrot.slane %v693_v17, 1 }
 0x127   : > { %v667_v36 = vadd.f32 %v666_v16, %v665_v3  ;;  %v701_v41 = vrot.slane %v700_v21, 1  ;;  %v674_v45 = vadd.f32 %v673_v22, %v672_v8  ;;  %v681_v49 = vadd.f32 %v680_v23, %v679_v9 }
 0x128   : > { %v688_v58 = vadd.f32 %v687_v25, %v686_v11  ;;  %v708_v50 = vrot.slane %v707_v26, 1  ;;  %v695_v59 = vadd.f32 %v694_v37, %v693_v17  ;;  %v711_v60 = vmul.f32 0.0625, %v16235_v19 }
 0x129   : > { %v702_v51 = vadd.f32 %v701_v41, %v700_v21  ;;  %v712_v30 = vmul.f32 0.0625, %v16237_v20  ;;  %v713_v55 = vmul.f32 0.0625, %v16239_v27  ;;  %v714_v57 = vmul.f32 0.0625, %v16241_v28 }
 0x12a   : > { %v709_v32 = vadd.f32 %v708_v50, %v707_v26  ;;  %v715_v42 = vmul.f32 0.0625, %v16243_v29  ;;  %v716_v43 = vmul.f32 0.0625, %v16245_v34  ;;  %v717_v44 = vmul.f32 0.0625, %v16247_v35 }
 0x12b   : > { %v718_v61 = vmul.f32 0.0625, %v16249_v38  ;;  %v719_v62 = vmul.f32 0.0625, %v16251_v39  ;;  %v720_v54 = vmul.f32 0.0625, %v16253_v40  ;;  %v721_v19 = vmul.f32 0.0625, %v16255_v46 }
 0x12c   : > { %v722_v20 = vmul.f32 0.0625, %v16257_v47  ;;  %v723_v27 = vmul.f32 0.0625, %v16259_v48  ;;  %v724_v28 = vmul.f32 0.0625, %v16261_v52  ;;  %v725_v29 = vmul.f32 0.0625, %v16263_v53 }
 0x12d   : > { %v726_v34 = vmul.f32 0.0625, %v16265_v56  ;;  %v727_v35 = vmul.f32 0.0625, %v16267_v1  ;;  %v728_v38 = vmul.f32 0.0625, %v16269_v2  ;;  %v729_v39 = vmul.f32 0.0625, %v16271_v10 }
 0x12e   : > { %v730_v40 = vmul.f32 0.0625, %v16273_v6  ;;  %v731_v46 = vmul.f32 0.0625, %v16275_v7  ;;  %v732_v47 = vmul.f32 0.0625, %v16277_v13  ;;  %v733_v48 = vmul.f32 0.0625, %v16279_v14 }
 0x12f   : > { %v734_v52 = vmul.f32 0.0625, %v16281_v18  ;;  %v735_v63 = vmul.f32 0.0625, %v660_v33  ;;  %v736_v53 = vmul.f32 0.0625, %v667_v36  ;;  %v737_v0 = vmul.f32 0.0625, %v674_v45 }
 0x130   : > { %v738_v56 = vmul.f32 0.0625, %v681_v49  ;;  %v739_v3 = vmul.f32 0.0625, %v688_v58  ;;  %v740_v1 = vmul.f32 0.0625, %v695_v59  ;;  %v741_v4 = vmul.f32 0.0625, %v702_v51 }
 0x131   : > { %v742_v2 = vmul.f32 0.0625, %v709_v32  ;;  %v13480_v5 = vpack.c.bf16 %v712_v30, %v711_v60  ;;  %v13481_v10 = vpack.c.bf16 %v714_v57, %v713_v55  ;;  %v13482_v8 = vpack.c.bf16 %v716_v43, %v715_v42 }
 0x132   : > { %v13483_v6 = vpack.c.bf16 %v718_v61, %v717_v44  ;;  %v13484_v9 = vpack.c.bf16 %v720_v54, %v719_v62  ;;  %v13485_v13 = vpack.c.bf16 %v722_v20, %v721_v19  ;;  %v13486_v11 = vpack.c.bf16 %v724_v28, %v723_v27 }
 0x133   : > { %v817_v7 = vrot.slane %v13480_v5, %v16231_v24  ;;  %v13487_v14 = vpack.c.bf16 %v726_v34, %v725_v29  ;;  %v824_v18 = vrot.slane %v13481_v10, %v16231_v24  ;;  %v831_v15 = vrot.slane %v13482_v8, %v16231_v24 }
 0x134   : > { %v838_v12 = vrot.slane %v13483_v6, %v16231_v24  ;;  %v866_v16 = vrot.slane %v13484_v9, %v16231_v24  ;;  %v873_v17 = vrot.slane %v13485_v13, %v16231_v24  ;;  %v880_v21 = vrot.slane %v13486_v11, %v16231_v24 }
 0x135   : > { %v887_v22 = vrot.slane %v13487_v14, %v16231_v24  ;;  %v13488_v23 = vpack.c.bf16 %v728_v38, %v727_v35  ;;  %v839_v25 = vcombine.low %v817_v7, %v824_v18  ;;  %v13489_v33 = vpack.c.bf16 %v730_v40, %v729_v39 }
 0x136   : > { %v840_v26 = vcombine.low %v831_v15, %v838_v12  ;;  %v13490_v36 = vpack.c.bf16 %v732_v47, %v731_v46  ;;  %v888_v37 = vcombine.low %v866_v16, %v873_v17  ;;  %v13491_v45 = vpack.c.bf16 %v734_v52, %v733_v48 }
 0x137   : > { %v889_v41 = vcombine.low %v880_v21, %v887_v22  ;;  %v915_v49 = vrot.slane %v13488_v23, %v16231_v24  ;;  %v847_v58 = vrot.slane %v839_v25, %v16231_v24  ;;  %v922_v59 = vrot.slane %v13489_v33, %v16231_v24 }
 0x138   : > { %v854_v50 = vrot.slane %v840_v26, %v16231_v24  ;;  %v929_v51 = vrot.slane %v13490_v36, %v16231_v24  ;;  %v896_v60 = vrot.slane %v888_v37, %v16231_v24  ;;  %v936_v32 = vrot.slane %v13491_v45, %v16231_v24 }
 0x139   : > { %v903_v30 = vrot.slane %v889_v41, %v16231_v24  ;;  %v13492_v55 = vpack.c.bf16 %v736_v53, %v735_v63  ;;  %v937_v42 = vcombine.low %v915_v49, %v922_v59  ;;  %v13493_v43 = vpack.c.bf16 %v738_v56, %v737_v0 }
 0x13a   : > { %v855_v57 = vcombine.low %v847_v58, %v854_v50  ;;  %v13494_v44 = vpack.c.bf16 %v740_v1, %v739_v3  ;;  %v938_v62 = vcombine.low %v929_v51, %v936_v32  ;;  %v13495_v54 = vpack.c.bf16 %v742_v2, %v741_v4 }
 0x13b   : > { %v904_v61 = vcombine.low %v896_v60, %v903_v30  ;;  %v964_v19 = vrot.slane %v13492_v55, %v16231_v24  ;;  %v945_v20 = vrot.slane %v937_v42, %v16231_v24  ;;  %v971_v27 = vrot.slane %v13493_v43, %v16231_v24 }
 0x13c   : > { %v978_v28 = vrot.slane %v13494_v44, %v16231_v24  ;;  %v13496_v29 = vcombine.low %v854_v50, %v854_v50  ;;  %v952_v34 = vrot.slane %v938_v62, %v16231_v24  ;;  %v985_v35 = vrot.slane %v13495_v54, %v16231_v24 }
 0x13d   : > { %v1010_v38 = vrot.slane %v855_v57, %v16233_v31  ;;  %v13497_v39 = vcombine.low %v903_v30, %v903_v30  ;;  %v986_v40 = vcombine.low %v964_v19, %v971_v27  ;;  %v1055_v47 = vrot.slane %v904_v61, %v16233_v31 }
 0x13e   : > { %v1017_v46 = vrot.slane %v13496_v29, %v16233_v31  ;;  %v953_v48 = vcombine.low %v945_v20, %v952_v34  ;;  %v987_v52 = vcombine.low %v978_v28, %v985_v35  ;;  %v13498_v7 = vcombine.low %v952_v34, %v952_v34 }
 0x13f   : > { %v1018_v63 = vcombine.high %v1010_v38, %v1010_v38  ;;  %v16333_v53 = vrot.slane %v1010_v38, %v16233_v31  ;;  %v994_v0 = vrot.slane %v986_v40, %v16231_v24  ;;  %v1062_v1 = vrot.slane %v13497_v39, %v16233_v31 }
 0x140   : > { %v1019_v56 = vcombine.high %v1017_v46, %v1017_v46  ;;  %v16337_v3 = vrot.slane %v1017_v46, %v16233_v31  ;;  %v1001_v4 = vrot.slane %v987_v52, %v16231_v24  ;;  %v1063_v5 = vcombine.high %v1055_v47, %v1055_v47 }
 0x141   : > { %v16342_v2 = vrot.slane %v1018_v63, %v16233_v31  ;;  %v16345_v10 = vrot.slane %v1055_v47, %v16233_v31  ;;  %v1064_v6 = vcombine.high %v1062_v1, %v1062_v1  ;;  %v16351_v9 = vrot.slane %v1062_v1, %v16233_v31 }
 0x142   : > { %v16348_v8 = vrot.slane %v1019_v56, %v16233_v31  ;;  %v1002_v13 = vcombine.low %v994_v0, %v1001_v4  ;;  %v16354_v11 = vrot.slane %v1063_v5, %v16233_v31  ;;  %v1100_v14 = vrot.slane %v953_v48, %v16233_v31 }
 0x143   : > { %v13499_v18 = vcombine.low %v1001_v4, %v1001_v4  ;;  %v16358_v15 = vrot.slane %v1064_v6, %v16233_v31  ;;  %v1107_v12 = vrot.slane %v13498_v7, %v16233_v31  ;;  %v1183_v16 = vunpack.c.l.b16 %v16333_v53 }
 0x144   : > { %v1184_v17 = vunpack.c.h.b16 %v16333_v53  ;;  %v1108_v21 = vcombine.high %v1100_v14, %v1100_v14  ;;  %v1116_v22 = vrot.slane %v1100_v14, %v16233_v31  ;;  %v1145_v23 = vrot.slane %v1002_v13, %v16233_v31 }
 0x145   : > { %v1152_v25 = vrot.slane %v13499_v18, %v16233_v31  ;;  %v1109_v26 = vcombine.high %v1107_v12, %v1107_v12  ;;  %v1130_v33 = vrot.slane %v1107_v12, %v16233_v31  ;;  %v1185_v36 = vunpack.c.l.b16 %v16342_v2 }
 0x146   : > { %v1186_v37 = vunpack.c.h.b16 %v16342_v2  ;;  %v1123_v41 = vrot.slane %v1108_v21, %v16233_v31  ;;  %v1153_v45 = vcombine.high %v1145_v23, %v1145_v23  ;;  %v1161_v58 = vrot.slane %v1145_v23, %v16233_v31 }
 0x147   : > { %v1154_v49 = vcombine.high %v1152_v25, %v1152_v25  ;;  %v1137_v50 = vrot.slane %v1109_v26, %v16233_v31  ;;  %v1175_v59 = vrot.slane %v1152_v25, %v16233_v31  ;;  %v1187_v51 = vunpack.c.l.b16 %v16337_v3 }
 0x148   : > { %v1188_v60 = vunpack.c.h.b16 %v16337_v3  ;;  %v1168_v30 = vrot.slane %v1153_v45, %v16233_v31  ;;  %v1189_v55 = vunpack.c.l.b16 %v16348_v8  ;;  %v1190_v57 = vunpack.c.h.b16 %v16348_v8 }
 0x149   : > { %v1182_v32 = vrot.slane %v1154_v49, %v16233_v31  ;;  %v1191_v42 = vunpack.c.l.b16 %v16345_v10  ;;  %v1192_v43 = vunpack.c.h.b16 %v16345_v10  ;;  %v1193_v44 = vunpack.c.l.b16 %v16354_v11 }
 0x14a   : > { %v1194_v61 = vunpack.c.h.b16 %v16354_v11  ;;  %v1195_v62 = vunpack.c.l.b16 %v16351_v9  ;;  %v1196_v54 = vunpack.c.h.b16 %v16351_v9  ;;  %v1197_v19 = vunpack.c.l.b16 %v16358_v15 }
 0x14b   : > { %v1198_v31 = vunpack.c.h.b16 %v16358_v15  ;;  %v1199_v20 = vunpack.c.l.b16 %v1116_v22  ;;  %v1200_v27 = vunpack.c.h.b16 %v1116_v22  ;;  %v1201_v28 = vunpack.c.l.b16 %v1123_v41 }
 0x14c   : > { %v1202_v29 = vunpack.c.h.b16 %v1123_v41  ;;  %v1203_v34 = vunpack.c.l.b16 %v1130_v33  ;;  %v1204_v35 = vunpack.c.h.b16 %v1130_v33  ;;  %v1205_v38 = vunpack.c.l.b16 %v1137_v50 }
 0x14d   : > { %v1206_v39 = vunpack.c.h.b16 %v1137_v50  ;;  %v1207_v40 = vunpack.c.l.b16 %v1161_v58  ;;  %v1208_v46 = vunpack.c.h.b16 %v1161_v58  ;;  %v1209_v47 = vunpack.c.l.b16 %v1168_v30 }
 0x14e   : > { %v1210_v48 = vunpack.c.h.b16 %v1168_v30  ;;  %v1211_v52 = vunpack.c.l.b16 %v1175_v59  ;;  %v1212_v63 = vunpack.c.h.b16 %v1175_v59  ;;  %v1213_v53 = vunpack.c.l.b16 %v1182_v32 }
 0x14f   : > { %v1214_v0 = vunpack.c.h.b16 %v1182_v32  ;;  %v1215_v56 = vrot.slane %v1199_v20, 7  ;;  %v1218_v3 = vrot.slane %v1200_v27, 7  ;;  %v1220_v1 = vrot.slane %v1201_v28, 7 }
 0x150   : > { %v1222_v4 = vrot.slane %v1202_v29, 7  ;;  %v1224_v2 = vrot.slane %v1203_v34, 7  ;;  %v1226_v5 = vrot.slane %v1204_v35, 7  ;;  %v1228_v10 = vrot.slane %v1205_v38, 7 }
 0x151   : > { %v1230_v8 = vrot.slane %v1206_v39, 7  ;;  %v1217_v6 = vsel %vm1216_vm0, %v1215_v56, %v1183_v16  ;;  %v1219_v9 = vsel %vm1216_vm0, %v1218_v3, %v1184_v17  ;;  %v1221_v7 = vsel %vm1216_vm0, %v1220_v1, %v1185_v36 }
 0x152   : > { %v1223_v13 = vsel %vm1216_vm0, %v1222_v4, %v1186_v37  ;;  %v1225_v11 = vsel %vm1216_vm0, %v1224_v2, %v1187_v51  ;;  %v1227_v14 = vsel %vm1216_vm0, %v1226_v5, %v1188_v60  ;;  %v1229_v18 = vsel %vm1216_vm0, %v1228_v10, %v1189_v55 }
 0x153   : > { %v1231_v15 = vsel %vm1216_vm0, %v1230_v8, %v1190_v57  ;;  %v1232_v12 = vrot.slane %v1207_v40, 7  ;;  %v1234_v21 = vrot.slane %v1208_v46, 7  ;;  %v1236_v22 = vrot.slane %v1209_v47, 7 }
 0x154   : > { %v1238_v23 = vrot.slane %v1210_v48, 7  ;;  %v1240_v25 = vrot.slane %v1211_v52, 7  ;;  %v1242_v16 = vrot.slane %v1212_v63, 7  ;;  %v1244_v26 = vrot.slane %v1213_v53, 7 }
 0x155   : > { %v1246_v17 = vrot.slane %v1214_v0, 7  ;;  %v1233_v33 = vsel %vm1216_vm0, %v1232_v12, %v1191_v42  ;;  %v1235_v36 = vsel %vm1216_vm0, %v1234_v21, %v1192_v43  ;;  %v1237_v37 = vsel %vm1216_vm0, %v1236_v22, %v1193_v44 }
 0x156   : > { %v1239_v41 = vsel %vm1216_vm0, %v1238_v23, %v1194_v61  ;;  %v1241_v45 = vsel %vm1216_vm0, %v1240_v25, %v1195_v62  ;;  %v1243_v49 = vsel %vm1216_vm0, %v1242_v16, %v1196_v54  ;;  %v1245_v58 = vsel %vm1216_vm0, %v1244_v26, %v1197_v19 }
 0x157   : > { %v1247_v50 = vsel %vm1216_vm0, %v1246_v17, %v1198_v31  ;;  %v1248_v59 = vpack.c.b16 %v1219_v9, %v1217_v6  ;;  %v1249_v51 = vpack.c.b16 %v1223_v13, %v1221_v7  ;;  %v1250_v60 = vpack.c.b16 %v1227_v14, %v1225_v11 }
 0x158   : > { %v1251_v30 = vpack.c.b16 %v1231_v15, %v1229_v18  ;;  %v1252_v32 = vpack.c.b16 %v1235_v36, %v1233_v33  ;;  %v1253_v55 = vpack.c.b16 %v1239_v41, %v1237_v37  ;;  %v1254_v57 = vpack.c.b16 %v1243_v49, %v1241_v45 }
 0x159   : > { %v1255_v42 = vpack.c.b16 %v1247_v50, %v1245_v58  ;;  %v1262_v43 = vrot.slane %v1248_v59, %v16231_v24  ;;  %v1269_v44 = vrot.slane %v1249_v51, %v16231_v24  ;;  %v1276_v61 = vrot.slane %v1250_v60, %v16231_v24 }
 0x15a   : > { %v1283_v62 = vrot.slane %v1251_v30, %v16231_v24  ;;  %v1307_v54 = vrot.slane %v1252_v32, %v16231_v24  ;;  %v1314_v19 = vrot.slane %v1253_v55, %v16231_v24  ;;  %v1321_v31 = vrot.slane %v1254_v57, %v16231_v24 }
 0x15b   : > { %v1328_v20 = vrot.slane %v1255_v42, %v16231_v24  ;;  %v1284_v27 = vcombine.low %v1262_v43, %v1269_v44 }
 0x15c   : > { %v1285_v28 = vcombine.low %v1276_v61, %v1283_v62  ;;  %v1329_v29 = vcombine.low %v1307_v54, %v1314_v19 }
 0x15d   : > { %v1330_v34 = vcombine.low %v1321_v31, %v1328_v20  ;;  %v1292_v35 = vrot.slane %v1284_v27, %v16231_v24 }
 0x15e   : > { %v1299_v38 = vrot.slane %v1285_v28, %v16231_v24  ;;  %v1337_v39 = vrot.slane %v1329_v29, %v16231_v24 }
 0x15f   : > { %v1344_v40 = vrot.slane %v1330_v34, %v16231_v24 }
 0x160   : > { %v1300_v46 = vcombine.low %v1292_v35, %v1299_v38 }
 0x161   : > { %v1345_v47 = vcombine.low %v1337_v39, %v1344_v40 }
 0x162   : > { %1348 = vst [vmem:[#allocation2] sm:$0xff] %v1300_v46 }
 0x163   : > { %1349 = vst [vmem:[#allocation2 + $0x8] sm:$0xff] %v1345_v47 }
 0x164 PF: > { %v1354_v48 = vld [vmem:[%s16207_s21] sm:$0xff]  ;;  %v1355_v63 = vld [vmem:[%s16207_s21 + $0x8] sm:$0xff]  ;;  %v2380_v37 = vlaneseq  ;;  %v15897_v41 = vmov 1966171168   ;;  %p15036_p8 = scmp.ne.s32.totalorder %s15959_s28, 1 }
 0x165   : > { %v1358_v52 = vld [vmem:[%s16207_s21 + $0x20] sm:$0xff]  ;;  %v1359_v53 = vld [vmem:[%s16207_s21 + $0x28] sm:$0xff]  ;;  %v2424_v45 = vunpack.c.l.s4 %v15897_v41  ;;  %vm13301_vm1 = vcmask (!%p15036_p8), 1041408  }
 0x166   : > { %v13501_v24 = vcombine.high %v1354_v48, %v1358_v52  ;;  %v13500_v0 = vcombine.low %v1354_v48, %v1358_v52  ;;  %v1362_v56 = vld [vmem:[%s16207_s21 + $0x40] sm:$0xff]  ;;  %v13503_v1 = vcombine.high %v1355_v63, %v1359_v53  ;;  %v13502_v4 = vcombine.low %v1355_v63, %v1359_v53  ;;  %v1363_v5 = vld [vmem:[%s16207_s21 + $0x48] sm:$0xff] }
 0x167   : > { %v1366_v3 = vld [vmem:[%s16207_s21 + $0x60] sm:$0xff]  ;;  %v1367_v10 = vld [vmem:[%s16207_s21 + $0x68] sm:$0xff]  ;;  %v16437_v55 = vshrl.u32 %v2380_v37, 7  ;;  %v2425_v57 = vunpack.c.0.s8 %v2424_v45 }
 0x168   : > { %v13509_v2 = vcombine.high %v1362_v56, %v1366_v3  ;;  %v1370_v8 = vld [vmem:[%s16207_s21 + $0x80] sm:$0xff]  ;;  %7656 = vmatprep.subr.bf16.mxu0 %v13501_v24  ;;  %v13511_v6 = vcombine.high %v1363_v5, %v1367_v10  ;;  %v1371_v7 = vld [vmem:[%s16207_s21 + $0x88] sm:$0xff]  ;;  %7984 = vmatprep.subr.bf16.mxu1 %v13503_v1  ;;  %v13508_v11 = vcombine.low %v1362_v56, %v1366_v3 }
 0x169   : > { %v1374_v9 = vld [vmem:[%s16207_s21 + $0xa0] sm:$0xff]  ;;  %v1375_v13 = vld [vmem:[%s16207_s21 + $0xa8] sm:$0xff]  ;;  %7657 = vmatpush1.bf16.msra.mxu0 %v13500_v0  ;;  %7985 = vmatpush1.bf16.msra.mxu1 %v13502_v4  ;;  %v13510_v14 = vcombine.low %v1363_v5, %v1367_v10  ;;  %v16444_v20 = vsub.s32 %v2425_v57, %v16437_v55 }
 0x16a   : > { %7658 = vmatprep.subr.bf16.mxu0 %v13509_v2  ;;  %v13517_v18 = vcombine.high %v1370_v8, %v1374_v9  ;;  %7986 = vmatprep.subr.bf16.mxu1 %v13511_v6  ;;  %v13519_v15 = vcombine.high %v1371_v7, %v1375_v13  ;;  %v1378_v12 = vld [vmem:[%s16207_s21 + $0xc0] sm:$0xff]  ;;  %v1379_v22 = vld [vmem:[%s16207_s21 + $0xc8] sm:$0xff]  ;;  %v13516_v25 = vcombine.low %v1370_v8, %v1374_v9 }
 0x16b   : > { %v1382_v21 = vld [vmem:[%s16207_s21 + $0xe0] sm:$0xff]  ;;  %v1383_v23 = vld [vmem:[%s16207_s21 + $0xe8] sm:$0xff]  ;;  %v13518_v16 = vcombine.low %v1371_v7, %v1375_v13 }
 0x16c   : > { %v13525_v26 = vcombine.high %v1378_v12, %v1382_v21  ;;  %v13527_v17 = vcombine.high %v1379_v22, %v1383_v23  ;;  %v1386_v33 = vld [vmem:[%s16207_s21 + $0x100] sm:$0xff]  ;;  %v1387_v49 = vld [vmem:[%s16207_s21 + $0x108] sm:$0xff]  ;;  %v13524_v50 = vcombine.low %v1378_v12, %v1382_v21  ;;  %v13526_v59 = vcombine.low %v1379_v22, %v1383_v23 }
 0x16d   : > { %7659 = vmatpush1.bf16.msra.mxu0 %v13508_v11  ;;  %7987 = vmatpush1.bf16.msra.mxu1 %v13510_v14  ;;  %v1390_v36 = vld [vmem:[%s16207_s21 + $0x120] sm:$0xff]  ;;  %v1391_v58 = vld [vmem:[%s16207_s21 + $0x128] sm:$0xff] }
 0x16e   : > { %7660 = vmatprep.subr.bf16.mxu0 %v13517_v18  ;;  %7988 = vmatprep.subr.bf16.mxu1 %v13519_v15  ;;  %v13533_v51 = vcombine.high %v1386_v33, %v1390_v36  ;;  %v13535_v60 = vcombine.high %v1387_v49, %v1391_v58  ;;  %v1394_v30 = vld [vmem:[%s16207_s21 + $0x140] sm:$0xff]  ;;  %v1395_v42 = vld [vmem:[%s16207_s21 + $0x148] sm:$0xff]  ;;  %v13532_v44 = vcombine.low %v1386_v33, %v1390_v36 }
 0x16f   : > { %v1398_v32 = vld [vmem:[%s16207_s21 + $0x160] sm:$0xff]  ;;  %v1399_v43 = vld [vmem:[%s16207_s21 + $0x168] sm:$0xff]  ;;  %v13534_v61 = vcombine.low %v1387_v49, %v1391_v58 }
 0x170   : > { %v13541_v62 = vcombine.high %v1394_v30, %v1398_v32  ;;  %v13543_v54 = vcombine.high %v1395_v42, %v1399_v43  ;;  %v1402_v19 = vld [vmem:[%s16207_s21 + $0x180] sm:$0xff]  ;;  %v1403_v27 = vld [vmem:[%s16207_s21 + $0x188] sm:$0xff]  ;;  %v13540_v29 = vcombine.low %v1394_v30, %v1398_v32  ;;  %v13542_v34 = vcombine.low %v1395_v42, %v1399_v43 }
 0x171   : > { %7661 = vmatpush1.bf16.msra.mxu0 %v13516_v25  ;;  %7989 = vmatpush1.bf16.msra.mxu1 %v13518_v16  ;;  %v1406_v31 = vld [vmem:[%s16207_s21 + $0x1a0] sm:$0xff]  ;;  %v1407_v28 = vld [vmem:[%s16207_s21 + $0x1a8] sm:$0xff] }
 0x172   : > { %7662 = vmatprep.subr.bf16.mxu0 %v13525_v26  ;;  %7990 = vmatprep.subr.bf16.mxu1 %v13527_v17  ;;  %v13549_v35 = vcombine.high %v1402_v19, %v1406_v31  ;;  %v16448_v38 = vld [vmem:[#allocation2] sm:$0xff]  ;;  %v13551_v39 = vcombine.high %v1403_v27, %v1407_v28  ;;  %v1411_v48 = vld [vmem:[%s16207_s21 + $0x1c8] sm:$0xff]  ;;  %v13548_v63 = vcombine.low %v1402_v19, %v1406_v31 }
 0x173   : > { %v1410_v40 = vld [vmem:[%s16207_s21 + $0x1c0] sm:$0xff]  ;;  %v16454_v47 = vrot.slane %v16448_v38, %v16444_v20  ;;  %v1415_v52 = vld [vmem:[%s16207_s21 + $0x1e8] sm:$0xff]  ;;  %v13550_v53 = vcombine.low %v1403_v27, %v1407_v28 }
 0x174   : > { %v1414_v46 = vld [vmem:[%s16207_s21 + $0x1e0] sm:$0xff]  ;;  %v13559_v56 = vcombine.high %v1411_v48, %v1415_v52  ;;  %v1419_v2 = vld [vmem:[%s16207_s21 + $0x208] sm:$0xff]  ;;  %v13558_v8 = vcombine.low %v1411_v48, %v1415_v52 }
 0x175   : > { %7663 = vmatpush1.bf16.msra.mxu0 %v13524_v50  ;;  %7991 = vmatpush1.bf16.msra.mxu1 %v13526_v59  ;;  %v2437_v24 = vcombine.high %v16454_v47, %v16454_v47  ;;  %v13557_v0 = vcombine.high %v1410_v40, %v1414_v46  ;;  %v1418_v3 = vld [vmem:[%s16207_s21 + $0x200] sm:$0xff]  ;;  %v1423_v5 = vld [vmem:[%s16207_s21 + $0x228] sm:$0xff]  ;;  %v13556_v10 = vcombine.low %v1410_v40, %v1414_v46 }
 0x176   : > { %7664 = vmatprep.subr.bf16.mxu0 %v13533_v51  ;;  %7992 = vmatprep.subr.bf16.mxu1 %v13535_v60  ;;  %v1422_v1 = vld [vmem:[%s16207_s21 + $0x220] sm:$0xff]  ;;  %v13567_v9 = vcombine.high %v1419_v2, %v1423_v5  ;;  %v1427_v11 = vld [vmem:[%s16207_s21 + $0x248] sm:$0xff]  ;;  %v13566_v15 = vcombine.low %v1419_v2, %v1423_v5 }
 0x177   : > { %v16463_v4 = vrot.slane %v2437_v24, %v16444_v20  ;;  %v13565_v6 = vcombine.high %v1418_v3, %v1422_v1  ;;  %v1426_v7 = vld [vmem:[%s16207_s21 + $0x240] sm:$0xff]  ;;  %v1431_v14 = vld [vmem:[%s16207_s21 + $0x268] sm:$0xff]  ;;  %v13564_v18 = vcombine.low %v1418_v3, %v1422_v1 }
 0x178   : > { %v1430_v13 = vld [vmem:[%s16207_s21 + $0x260] sm:$0xff]  ;;  %v13575_v21 = vcombine.high %v1427_v11, %v1431_v14  ;;  %v1435_v25 = vld [vmem:[%s16207_s21 + $0x288] sm:$0xff]  ;;  %v13574_v17 = vcombine.low %v1427_v11, %v1431_v14 }
 0x179   : > { %7665 = vmatpush1.bf16.msra.mxu0 %v13532_v44  ;;  %7993 = vmatpush1.bf16.msra.mxu1 %v13534_v61  ;;  %v13573_v12 = vcombine.high %v1426_v7, %v1430_v13  ;;  %v1434_v22 = vld [vmem:[%s16207_s21 + $0x280] sm:$0xff]  ;;  %v1439_v16 = vld [vmem:[%s16207_s21 + $0x2a8] sm:$0xff]  ;;  %v13572_v26 = vcombine.low %v1426_v7, %v1430_v13 }
 0x17a   : > { %7666 = vmatprep.subr.bf16.mxu0 %v13541_v62  ;;  %7994 = vmatprep.subr.bf16.mxu1 %v13543_v54  ;;  %v1438_v23 = vld [vmem:[%s16207_s21 + $0x2a0] sm:$0xff]  ;;  %v13583_v36 = vcombine.high %v1435_v25, %v1439_v16  ;;  %v1443_v45 = vld [vmem:[%s16207_s21 + $0x2c8] sm:$0xff]  ;;  %v13582_v50 = vcombine.low %v1435_v25, %v1439_v16 }
 0x17b   : > { %7688 = vmatprep.mubr.bf16.mxu0 %v16463_v4  ;;  %8016 = vmatprep.mubr.bf16.mxu1 %v16463_v4  ;;  %v13581_v33 = vcombine.high %v1434_v22, %v1438_v23  ;;  %v1442_v37 = vld [vmem:[%s16207_s21 + $0x2c0] sm:$0xff]  ;;  %v1447_v49 = vld [vmem:[%s16207_s21 + $0x2e8] sm:$0xff]  ;;  %v13580_v58 = vcombine.low %v1434_v22, %v1438_v23 }
 0x17c   : > { %v1446_v41 = vld [vmem:[%s16207_s21 + $0x2e0] sm:$0xff]  ;;  %v13591_v51 = vcombine.high %v1443_v45, %v1447_v49  ;;  %v1451_v32 = vld [vmem:[%s16207_s21 + $0x308] sm:$0xff]  ;;  %v13590_v43 = vcombine.low %v1443_v45, %v1447_v49 }
 0x17d   : > { %7667 = vmatpush1.bf16.msra.mxu0 %v13540_v29  ;;  %7995 = vmatpush1.bf16.msra.mxu1 %v13542_v34  ;;  %v13589_v59 = vcombine.high %v1442_v37, %v1446_v41  ;;  %v1450_v60 = vld [vmem:[%s16207_s21 + $0x300] sm:$0xff]  ;;  %v1455_v57 = vld [vmem:[%s16207_s21 + $0x328] sm:$0xff]  ;;  %v13588_v42 = vcombine.low %v1442_v37, %v1446_v41  ;;  %v16513_v37 = vcombine.high %v16463_v4, %v16463_v4 }
 0x17e   : > { %7668 = vmatprep.subr.bf16.mxu0 %v13549_v35  ;;  %7996 = vmatprep.subr.bf16.mxu1 %v13551_v39  ;;  %v1454_v30 = vld [vmem:[%s16207_s21 + $0x320] sm:$0xff]  ;;  %v13599_v61 = vcombine.high %v1451_v32, %v1455_v57  ;;  %v1459_v19 = vld [vmem:[%s16207_s21 + $0x348] sm:$0xff]  ;;  %v13598_v28 = vcombine.low %v1451_v32, %v1455_v57 }
 0x17f   : > { %v13597_v44 = vcombine.high %v1450_v60, %v1454_v30  ;;  %v1458_v62 = vld [vmem:[%s16207_s21 + $0x340] sm:$0xff]  ;;  %v1463_v31 = vld [vmem:[%s16207_s21 + $0x368] sm:$0xff]  ;;  %v13596_v27 = vcombine.low %v1450_v60, %v1454_v30 }
 0x180   : > { %v1462_v54 = vld [vmem:[%s16207_s21 + $0x360] sm:$0xff]  ;;  %v13607_v34 = vcombine.high %v1459_v19, %v1463_v31  ;;  %v1467_v40 = vld [vmem:[%s16207_s21 + $0x388] sm:$0xff]  ;;  %v13606_v52 = vcombine.low %v1459_v19, %v1463_v31 }
 0x181   : > { %7669 = vmatpush1.bf16.msra.mxu0 %v13548_v63  ;;  %7997 = vmatpush1.bf16.msra.mxu1 %v13550_v53  ;;  %v13605_v29 = vcombine.high %v1458_v62, %v1462_v54  ;;  %v1466_v35 = vld [vmem:[%s16207_s21 + $0x380] sm:$0xff]  ;;  %v1471_v46 = vld [vmem:[%s16207_s21 + $0x3a8] sm:$0xff]  ;;  %v13604_v48 = vcombine.low %v1458_v62, %v1462_v54 }
 0x182   : > { %7670 = vmatprep.subr.bf16.mxu0 %v13557_v0  ;;  %7998 = vmatprep.subr.bf16.mxu1 %v13559_v56  ;;  %v1470_v39 = vld [vmem:[%s16207_s21 + $0x3a0] sm:$0xff]  ;;  %v13615_v24 = vcombine.high %v1467_v40, %v1471_v46  ;;  %v1475_v56 = vld [vmem:[%s16207_s21 + $0x3c8] sm:$0xff]  ;;  %v13614_v2 = vcombine.low %v1467_v40, %v1471_v46 }
 0x183   : > { %v13613_v63 = vcombine.high %v1466_v35, %v1470_v39  ;;  %v1474_v53 = vld [vmem:[%s16207_s21 + $0x3c0] sm:$0xff]  ;;  %v1479_v3 = vld [vmem:[%s16207_s21 + $0x3e8] sm:$0xff]  ;;  %v13612_v1 = vcombine.low %v1466_v35, %v1470_v39 }
 0x184   : > { %v1478_v0 = vld [vmem:[%s16207_s21 + $0x3e0] sm:$0xff]  ;;  %v1487_v7 = vld [vmem:[%s16207_s21 + $0x428] sm:$0xff]  ;;  %v13622_v11 = vcombine.low %v1475_v56, %v1479_v3 }
 0x185   : > { %7671 = vmatpush1.bf16.msra.mxu0 %v13556_v10  ;;  %7999 = vmatpush1.bf16.msra.mxu1 %v13558_v8  ;;  %v13621_v5 = vcombine.high %v1474_v53, %v1478_v0  ;;  %v13623_v10 = vcombine.high %v1475_v56, %v1479_v3  ;;  %v1482_v8 = vld [vmem:[%s16207_s21 + $0x400] sm:$0xff]  ;;  %v13620_v13 = vcombine.low %v1474_v53, %v1478_v0  ;;  %v1491_v22 = vld [vmem:[%s16207_s21 + $0x448] sm:$0xff] }
 0x186   : > { %7672 = vmatprep.subr.bf16.mxu0 %v13565_v6  ;;  %8000 = vmatprep.subr.bf16.mxu1 %v13567_v9  ;;  %v1486_v6 = vld [vmem:[%s16207_s21 + $0x420] sm:$0xff]  ;;  %v1483_v9 = vld [vmem:[%s16207_s21 + $0x408] sm:$0xff] }
 0x187   : > { %v13629_v14 = vcombine.high %v1482_v8, %v1486_v6  ;;  %v1495_v23 = vld [vmem:[%s16207_s21 + $0x468] sm:$0xff]  ;;  %v13628_v25 = vcombine.low %v1482_v8, %v1486_v6  ;;  %v13630_v16 = vcombine.low %v1483_v9, %v1487_v7 }
 0x188   : > { %v1503_v41 = vld [vmem:[%s16207_s21 + $0x4a8] sm:$0xff]  ;;  %v13638_v49 = vcombine.low %v1491_v22, %v1495_v23 }
 0x189   : > { %7673 = vmatpush1.bf16.msra.mxu0 %v13564_v18  ;;  %8001 = vmatpush1.bf16.msra.mxu1 %v13566_v15  ;;  %v13631_v18 = vcombine.high %v1483_v9, %v1487_v7  ;;  %v1490_v15 = vld [vmem:[%s16207_s21 + $0x440] sm:$0xff]  ;;  %v1507_v60 = vld [vmem:[%s16207_s21 + $0x4c8] sm:$0xff] }
 0x18a   : > { %7674 = vmatprep.subr.bf16.mxu0 %v13573_v12  ;;  %8002 = vmatprep.subr.bf16.mxu1 %v13575_v21  ;;  %v1494_v12 = vld [vmem:[%s16207_s21 + $0x460] sm:$0xff]  ;;  %v16505_v21 = vrot.slane %v16454_v47, %v16444_v20  ;;  %v1499_v47 = vld [vmem:[%s16207_s21 + $0x488] sm:$0xff] }
 0x18b   : > { %v13636_v45 = vcombine.low %v1490_v15, %v1494_v12  ;;  %v1511_v30 = vld [vmem:[%s16207_s21 + $0x4e8] sm:$0xff]  ;;  %v13646_v57 = vcombine.low %v1499_v47, %v1503_v41 }
 0x18c   : > { %v1515_v62 = vld [vmem:[%s16207_s21 + $0x508] sm:$0xff]  ;;  %v13654_v31 = vcombine.low %v1507_v60, %v1511_v30 }
 0x18d   : > { %7675 = vmatpush1.bf16.msra.mxu0 %v13572_v26  ;;  %8003 = vmatpush1.bf16.msra.mxu1 %v13574_v17  ;;  %v13637_v26 = vcombine.high %v1490_v15, %v1494_v12  ;;  %v13639_v17 = vcombine.high %v1491_v22, %v1495_v23  ;;  %v1519_v54 = vld [vmem:[%s16207_s21 + $0x528] sm:$0xff] }
 0x18e   : > { %7676 = vmatprep.subr.bf16.mxu0 %v13581_v33  ;;  %8004 = vmatprep.subr.bf16.mxu1 %v13583_v36  ;;  %v1498_v33 = vld [vmem:[%s16207_s21 + $0x480] sm:$0xff]  ;;  %v1523_v35 = vld [vmem:[%s16207_s21 + $0x548] sm:$0xff]  ;;  %v13662_v46 = vcombine.low %v1515_v62, %v1519_v54 }
 0x18f   : > { %v1502_v36 = vld [vmem:[%s16207_s21 + $0x4a0] sm:$0xff]  ;;  %v1527_v39 = vld [vmem:[%s16207_s21 + $0x568] sm:$0xff] }
 0x190   : > { %v13644_v32 = vcombine.low %v1498_v33, %v1502_v36  ;;  %v1531_v53 = vld [vmem:[%s16207_s21 + $0x588] sm:$0xff]  ;;  %v13670_v3 = vcombine.low %v1523_v35, %v1527_v39 }
 0x191   : > { %7677 = vmatpush1.bf16.msra.mxu0 %v13580_v58  ;;  %8005 = vmatpush1.bf16.msra.mxu1 %v13582_v50  ;;  %v13645_v58 = vcombine.high %v1498_v33, %v1502_v36  ;;  %v13647_v50 = vcombine.high %v1499_v47, %v1503_v41  ;;  %v1535_v0 = vld [vmem:[%s16207_s21 + $0x5a8] sm:$0xff] }
 0x192   : > { %7678 = vmatprep.subr.bf16.mxu0 %v13589_v59  ;;  %8006 = vmatprep.subr.bf16.mxu1 %v13591_v51  ;;  %v1506_v59 = vld [vmem:[%s16207_s21 + $0x4c0] sm:$0xff]  ;;  %v1539_v8 = vld [vmem:[%s16207_s21 + $0x5c8] sm:$0xff]  ;;  %v13678_v7 = vcombine.low %v1531_v53, %v1535_v0 }
 0x193   : > { %v1510_v51 = vld [vmem:[%s16207_s21 + $0x4e0] sm:$0xff]  ;;  %v1543_v6 = vld [vmem:[%s16207_s21 + $0x5e8] sm:$0xff] }
 0x194   : > { %v13652_v19 = vcombine.low %v1506_v59, %v1510_v51  ;;  %v1547_v15 = vld [vmem:[%s16207_s21 + $0x608] sm:$0xff]  ;;  %v13686_v23 = vcombine.low %v1539_v8, %v1543_v6 }
 0x195   : > { %7679 = vmatpush1.bf16.msra.mxu0 %v13588_v42  ;;  %8007 = vmatpush1.bf16.msra.mxu1 %v13590_v43  ;;  %v13653_v42 = vcombine.high %v1506_v59, %v1510_v51  ;;  %v13655_v43 = vcombine.high %v1507_v60, %v1511_v30  ;;  %v1551_v12 = vld [vmem:[%s16207_s21 + $0x628] sm:$0xff] }
 0x196   : > { %7680 = vmatprep.subr.bf16.mxu0 %v13597_v44  ;;  %8008 = vmatprep.subr.bf16.mxu1 %v13599_v61  ;;  %v1514_v44 = vld [vmem:[%s16207_s21 + $0x500] sm:$0xff]  ;;  %v1555_v33 = vld [vmem:[%s16207_s21 + $0x648] sm:$0xff]  ;;  %v13694_v41 = vcombine.low %v1547_v15, %v1551_v12 }
 0x197   : > { %v1518_v61 = vld [vmem:[%s16207_s21 + $0x520] sm:$0xff]  ;;  %v1559_v36 = vld [vmem:[%s16207_s21 + $0x668] sm:$0xff] }
 0x198   : > { %v13660_v40 = vcombine.low %v1514_v44, %v1518_v61  ;;  %v1563_v59 = vld [vmem:[%s16207_s21 + $0x688] sm:$0xff]  ;;  %v13702_v30 = vcombine.low %v1555_v33, %v1559_v36 }
 0x199   : > { %7681 = vmatpush1.bf16.msra.mxu0 %v13596_v27  ;;  %8009 = vmatpush1.bf16.msra.mxu1 %v13598_v28  ;;  %v13661_v27 = vcombine.high %v1514_v44, %v1518_v61  ;;  %v13663_v28 = vcombine.high %v1515_v62, %v1519_v54  ;;  %v1567_v51 = vld [vmem:[%s16207_s21 + $0x6a8] sm:$0xff] }
 0x19a   : > { %7682 = vmatprep.subr.bf16.mxu0 %v13605_v29  ;;  %8010 = vmatprep.subr.bf16.mxu1 %v13607_v34  ;;  %v1522_v29 = vld [vmem:[%s16207_s21 + $0x540] sm:$0xff]  ;;  %v1571_v44 = vld [vmem:[%s16207_s21 + $0x6c8] sm:$0xff]  ;;  %v13710_v54 = vcombine.low %v1563_v59, %v1567_v51 }
 0x19b   : > { %v1526_v34 = vld [vmem:[%s16207_s21 + $0x560] sm:$0xff]  ;;  %v1575_v61 = vld [vmem:[%s16207_s21 + $0x6e8] sm:$0xff] }
 0x19c   : > { %v13668_v56 = vcombine.low %v1522_v29, %v1526_v34 }
 0x19d   : > { %7683 = vmatpush1.bf16.msra.mxu0 %v13604_v48  ;;  %8011 = vmatpush1.bf16.msra.mxu1 %v13606_v52  ;;  %v13669_v48 = vcombine.high %v1522_v29, %v1526_v34  ;;  %v13671_v52 = vcombine.high %v1523_v35, %v1527_v39  ;;  %v1579_v29 = vld [vmem:[%s16207_s21 + $0x708] sm:$0xff]  ;;  %v13718_v39 = vcombine.low %v1571_v44, %v1575_v61 }
 0x19e   : > { %7684 = vmatprep.subr.bf16.mxu0 %v13613_v63  ;;  %8012 = vmatprep.subr.bf16.mxu1 %v13615_v24  ;;  %v1530_v63 = vld [vmem:[%s16207_s21 + $0x580] sm:$0xff]  ;;  %v1583_v34 = vld [vmem:[%s16207_s21 + $0x728] sm:$0xff] }
 0x19f   : > { %v1534_v24 = vld [vmem:[%s16207_s21 + $0x5a0] sm:$0xff] }
 0x1a0   : > { %v13676_v9 = vcombine.low %v1530_v63, %v1534_v24 }
 0x1a1   : > { %7685 = vmatpush1.bf16.msra.mxu0 %v13612_v1  ;;  %8013 = vmatpush1.bf16.msra.mxu1 %v13614_v2  ;;  %v13677_v1 = vcombine.high %v1530_v63, %v1534_v24  ;;  %v13679_v2 = vcombine.high %v1531_v53, %v1535_v0  ;;  %v1587_v63 = vld [vmem:[%s16207_s21 + $0x748] sm:$0xff]  ;;  %v13726_v0 = vcombine.low %v1579_v29, %v1583_v34 }
 0x1a2   : > { %7686 = vmatprep.subr.bf16.mxu0 %v13621_v5  ;;  %8014 = vmatprep.subr.bf16.mxu1 %v13623_v10  ;;  %v1538_v5 = vld [vmem:[%s16207_s21 + $0x5c0] sm:$0xff]  ;;  %v1591_v24 = vld [vmem:[%s16207_s21 + $0x768] sm:$0xff] }
 0x1a3   : > { %v1542_v10 = vld [vmem:[%s16207_s21 + $0x5e0] sm:$0xff] }
 0x1a4   : > { %v13684_v22 = vcombine.low %v1538_v5, %v1542_v10 }
 0x1a5   : > { %7687 = vmatpush1.bf16.msra.mxu0 %v13620_v13  ;;  %8015 = vmatpush1.bf16.msra.mxu1 %v13622_v11  ;;  %v13685_v13 = vcombine.high %v1538_v5, %v1542_v10  ;;  %v13687_v11 = vcombine.high %v1539_v8, %v1543_v6  ;;  %v1595_v5 = vld [vmem:[%s16207_s21 + $0x788] sm:$0xff]  ;;  %v13734_v6 = vcombine.low %v1587_v63, %v1591_v24 }
 0x1a6   : > { %7697 = vmatprep.subr.bf16.mxu0 %v13629_v14  ;;  %8025 = vmatprep.subr.bf16.mxu1 %v13631_v18  ;;  %v1546_v14 = vld [vmem:[%s16207_s21 + $0x600] sm:$0xff]  ;;  %v1599_v10 = vld [vmem:[%s16207_s21 + $0x7a8] sm:$0xff] }
 0x1a7   : > { %v1550_v18 = vld [vmem:[%s16207_s21 + $0x620] sm:$0xff] }
 0x1a8   : > { %7689 = vmatmul.mubr.bf16.vlgmr.msra.gmra.mrb[0].mxu0 %v16505_v21  ;;  %8017 = vmatmul.mubr.bf16.vlgmr.msra.gmra.mrb[0].mxu1 %v16505_v21  ;;  %v13692_v47 = vcombine.low %v1546_v14, %v1550_v18 }
 0x1a9   : > { %7698 = vmatpush1.bf16.msra.mxu0 %v13628_v25  ;;  %8026 = vmatpush1.bf16.msra.mxu1 %v13630_v16  ;;  %v13693_v25 = vcombine.high %v1546_v14, %v1550_v18  ;;  %v13695_v16 = vcombine.high %v1547_v15, %v1551_v12  ;;  %v2422_v14 = vcombine.high %v16448_v38, %v16448_v38  ;;  %v1603_v18 = vld [vmem:[%s16207_s21 + $0x7c8] sm:$0xff] }
 0x1aa   : > { %7699 = vmatprep.subr.bf16.mxu0 %v13637_v26  ;;  %8027 = vmatprep.subr.bf16.mxu1 %v13639_v17  ;;  %v1554_v26 = vld [vmem:[%s16207_s21 + $0x640] sm:$0xff]  ;;  %v1607_v15 = vld [vmem:[%s16207_s21 + $0x7e8] sm:$0xff] }
 0x1ab   : > { %7729 = vmatprep.mubr.bf16.mxu0 %v16513_v37  ;;  %8057 = vmatprep.mubr.bf16.mxu1 %v16513_v37  ;;  %v1558_v17 = vld [vmem:[%s16207_s21 + $0x660] sm:$0xff]  ;;  %v1611_v38 = vld [vmem:[%s16207_s21 + $0x808] sm:$0xff] }
 0x1ac   : > { %v13700_v60 = vcombine.low %v1554_v26, %v1558_v17 }
 0x1ad   : > { %7700 = vmatpush1.bf16.msra.mxu0 %v13636_v45  ;;  %8028 = vmatpush1.bf16.msra.mxu1 %v13638_v49  ;;  %v13701_v45 = vcombine.high %v1554_v26, %v1558_v17  ;;  %v13703_v49 = vcombine.high %v1555_v33, %v1559_v36  ;;  %v1614_v26 = vld [vmem:[%s16207_s21 + $0x820] sm:$0xff]  ;;  %v16578_v17 = vrot.slane %v2422_v14, %v16444_v20  ;;  %v1615_v33 = vld [vmem:[%s16207_s21 + $0x828] sm:$0xff] }
 0x1ae   : > { %7701 = vmatprep.subr.bf16.mxu0 %v13645_v58  ;;  %8029 = vmatprep.subr.bf16.mxu1 %v13647_v50  ;;  %v1562_v58 = vld [vmem:[%s16207_s21 + $0x680] sm:$0xff] }
 0x1af   : > { %v1566_v50 = vld [vmem:[%s16207_s21 + $0x6a0] sm:$0xff] }
 0x1b0   : > { %v13708_v62 = vcombine.low %v1562_v58, %v1566_v50  ;;  %v1658_v14 = vld [vmem:[%s16207_s21 + $0x980] sm:$0xff] }
 0x1b1   : > { %7702 = vmatpush1.bf16.msra.mxu0 %v13644_v32  ;;  %8030 = vmatpush1.bf16.msra.mxu1 %v13646_v57  ;;  %v13709_v32 = vcombine.high %v1562_v58, %v1566_v50  ;;  %v13711_v57 = vcombine.high %v1563_v59, %v1567_v51  ;;  %v1622_v58 = vld [vmem:[%s16207_s21 + $0x860] sm:$0xff]  ;;  %v2438_v50 = vcombine.high %v16578_v17, %v16578_v17  ;;  %v1619_v51 = vld [vmem:[%s16207_s21 + $0x848] sm:$0xff] }
 0x1b2   : > { %7703 = vmatprep.subr.bf16.mxu0 %v13653_v42  ;;  %8031 = vmatprep.subr.bf16.mxu1 %v13655_v43  ;;  %v1570_v42 = vld [vmem:[%s16207_s21 + $0x6c0] sm:$0xff]  ;;  %v16588_v59 = vcombine.high %v16505_v21, %v16505_v21 }
 0x1b3   : > { %v1574_v43 = vld [vmem:[%s16207_s21 + $0x6e0] sm:$0xff] }
 0x1b4   : > { %v13716_v35 = vcombine.low %v1570_v42, %v1574_v43 }
 0x1b5   : > { %7704 = vmatpush1.bf16.msra.mxu0 %v13652_v19  ;;  %8032 = vmatpush1.bf16.msra.mxu1 %v13654_v31  ;;  %v13717_v19 = vcombine.high %v1570_v42, %v1574_v43  ;;  %v13719_v31 = vcombine.high %v1571_v44, %v1575_v61  ;;  %v1626_v43 = vld [vmem:[%s16207_s21 + $0x880] sm:$0xff]  ;;  %v16595_v61 = vrot.slane %v2438_v50, %v16444_v20 }
 0x1b6   : > { %7705 = vmatprep.subr.bf16.mxu0 %v13661_v27  ;;  %8033 = vmatprep.subr.bf16.mxu1 %v13663_v28  ;;  %v1578_v27 = vld [vmem:[%s16207_s21 + $0x700] sm:$0xff] }
 0x1b7   : > { %v1582_v28 = vld [vmem:[%s16207_s21 + $0x720] sm:$0xff] }
 0x1b8   : > { %v13724_v53 = vcombine.low %v1578_v27, %v1582_v28  ;;  %v1630_v44 = vld [vmem:[%s16207_s21 + $0x8a0] sm:$0xff] }
 0x1b9   : > { %7706 = vmatpush1.bf16.msra.mxu0 %v13660_v40  ;;  %8034 = vmatpush1.bf16.msra.mxu1 %v13662_v46  ;;  %v13725_v40 = vcombine.high %v1578_v27, %v1582_v28  ;;  %v13727_v46 = vcombine.high %v1579_v29, %v1583_v34  ;;  %v13773_v27 = vcombine.high %v1626_v43, %v1630_v44  ;;  %v1634_v29 = vld [vmem:[%s16207_s21 + $0x8c0] sm:$0xff] }
 0x1ba   : > { %7707 = vmatprep.subr.bf16.mxu0 %v13669_v48  ;;  %8035 = vmatprep.subr.bf16.mxu1 %v13671_v52  ;;  %v1586_v48 = vld [vmem:[%s16207_s21 + $0x740] sm:$0xff] }
 0x1bb   : > { %v1590_v52 = vld [vmem:[%s16207_s21 + $0x760] sm:$0xff] }
 0x1bc   : > { %v13732_v8 = vcombine.low %v1586_v48, %v1590_v52  ;;  %v1638_v34 = vld [vmem:[%s16207_s21 + $0x8e0] sm:$0xff] }
 0x1bd   : > { %7708 = vmatpush1.bf16.msra.mxu0 %v13668_v56  ;;  %8036 = vmatpush1.bf16.msra.mxu1 %v13670_v3  ;;  %v13733_v56 = vcombine.high %v1586_v48, %v1590_v52  ;;  %v13735_v3 = vcombine.high %v1587_v63, %v1591_v24  ;;  %v13781_v48 = vcombine.high %v1634_v29, %v1638_v34  ;;  %v1642_v63 = vld [vmem:[%s16207_s21 + $0x900] sm:$0xff] }
 0x1be   : > { %7709 = vmatprep.subr.bf16.mxu0 %v13677_v1  ;;  %8037 = vmatprep.subr.bf16.mxu1 %v13679_v2  ;;  %v1594_v1 = vld [vmem:[%s16207_s21 + $0x780] sm:$0xff] }
 0x1bf   : > { %v1598_v2 = vld [vmem:[%s16207_s21 + $0x7a0] sm:$0xff] }
 0x1c0   : > { %v13740_v12 = vcombine.low %v1594_v1, %v1598_v2  ;;  %v1646_v24 = vld [vmem:[%s16207_s21 + $0x920] sm:$0xff] }
 0x1c1   : > { %7710 = vmatpush1.bf16.msra.mxu0 %v13676_v9  ;;  %8038 = vmatpush1.bf16.msra.mxu1 %v13678_v7  ;;  %v13741_v9 = vcombine.high %v1594_v1, %v1598_v2  ;;  %v13743_v7 = vcombine.high %v1595_v5, %v1599_v10  ;;  %v13789_v1 = vcombine.high %v1642_v63, %v1646_v24  ;;  %v1678_v50 = vld [vmem:[%s16207_s21 + $0xa20] sm:$0xff] }
 0x1c2   : > { %7711 = vmatprep.subr.bf16.mxu0 %v13685_v13  ;;  %8039 = vmatprep.subr.bf16.mxu1 %v13687_v11  ;;  %v1602_v13 = vld [vmem:[%s16207_s21 + $0x7c0] sm:$0xff] }
 0x1c3   : > { %v1606_v11 = vld [vmem:[%s16207_s21 + $0x7e0] sm:$0xff] }
 0x1c4   : > { %v13748_v36 = vcombine.low %v1602_v13, %v1606_v11 }
 0x1c5   : > { %7712 = vmatpush1.bf16.msra.mxu0 %v13684_v22  ;;  %8040 = vmatpush1.bf16.msra.mxu1 %v13686_v23  ;;  %v13742_v22 = vcombine.low %v1595_v5, %v1599_v10  ;;  %v13749_v23 = vcombine.high %v1602_v13, %v1606_v11  ;;  %v1650_v5 = vld [vmem:[%s16207_s21 + $0x940] sm:$0xff] }
 0x1c6   : > { %7713 = vmatprep.subr.bf16.mxu0 %v13693_v25  ;;  %8041 = vmatprep.subr.bf16.mxu1 %v13695_v16  ;;  %v13751_v25 = vcombine.high %v1603_v18, %v1607_v15  ;;  %v1610_v16 = vld [vmem:[%s16207_s21 + $0x800] sm:$0xff] }
 0x1c7   : > { %v1654_v10 = vld [vmem:[%s16207_s21 + $0x960] sm:$0xff] }
 0x1c8   : > { %v13797_v13 = vcombine.high %v1650_v5, %v1654_v10 }
 0x1c9   : > { %7714 = vmatpush1.bf16.msra.mxu0 %v13692_v47  ;;  %8042 = vmatpush1.bf16.msra.mxu1 %v13694_v41  ;;  %v13750_v47 = vcombine.low %v1603_v18, %v1607_v15  ;;  %v13757_v41 = vcombine.high %v1610_v16, %v1614_v26  ;;  %v1662_v18 = vld [vmem:[%s16207_s21 + $0x9a0] sm:$0xff]  ;;  %v1659_v15 = vld [vmem:[%s16207_s21 + $0x988] sm:$0xff] }
 0x1ca   : > { %7715 = vmatprep.subr.bf16.mxu0 %v13701_v45  ;;  %8043 = vmatprep.subr.bf16.mxu1 %v13703_v49  ;;  %v13759_v45 = vcombine.high %v1611_v38, %v1615_v33  ;;  %v1618_v49 = vld [vmem:[%s16207_s21 + $0x840] sm:$0xff] }
 0x1cd   : > { %7716 = vmatpush1.bf16.msra.mxu0 %v13700_v60  ;;  %8044 = vmatpush1.bf16.msra.mxu1 %v13702_v30  ;;  %v1623_v60 = vld [vmem:[%s16207_s21 + $0x868] sm:$0xff]  ;;  %v13756_v30 = vcombine.low %v1610_v16, %v1614_v26  ;;  %v1666_v26 = vld [vmem:[%s16207_s21 + $0x9c0] sm:$0xff] }
 0x1ce   : > { %7717 = vmatprep.subr.bf16.mxu0 %v13709_v32  ;;  %8045 = vmatprep.subr.bf16.mxu1 %v13711_v57  ;;  %v13758_v32 = vcombine.low %v1611_v38, %v1615_v33  ;;  %v13765_v57 = vcombine.high %v1618_v49, %v1622_v58  ;;  %v13767_v42 = vcombine.high %v1619_v51, %v1623_v60  ;;  %v1670_v38 = vld [vmem:[%s16207_s21 + $0x9e0] sm:$0xff]  ;;  %v1667_v33 = vld [vmem:[%s16207_s21 + $0x9c8] sm:$0xff] }
 0x1d1   : > { %7718 = vmatpush1.bf16.msra.mxu0 %v13708_v62  ;;  %8046 = vmatpush1.bf16.msra.mxu1 %v13710_v54  ;;  %v1627_v62 = vld [vmem:[%s16207_s21 + $0x888] sm:$0xff] }
 0x1d2   : > { %7719 = vmatprep.subr.bf16.mxu0 %v13717_v19  ;;  %8047 = vmatprep.subr.bf16.mxu1 %v13719_v31  ;;  %v1631_v54 = vld [vmem:[%s16207_s21 + $0x8a8] sm:$0xff]  ;;  %v13764_v19 = vcombine.low %v1618_v49, %v1622_v58  ;;  %v13766_v31 = vcombine.low %v1619_v51, %v1623_v60  ;;  %v1674_v58 = vld [vmem:[%s16207_s21 + $0xa00] sm:$0xff] }
 0x1d3   : > { %v13775_v28 = vcombine.high %v1627_v62, %v1631_v54  ;;  %v1675_v51 = vld [vmem:[%s16207_s21 + $0xa08] sm:$0xff] }
 0x1d4   : > { %v1679_v60 = vld [vmem:[%s16207_s21 + $0xa28] sm:$0xff] }
 0x1d5   : > { %7720 = vmatpush1.bf16.msra.mxu0 %v13716_v35  ;;  %8048 = vmatpush1.bf16.msra.mxu1 %v13718_v39  ;;  %v1635_v35 = vld [vmem:[%s16207_s21 + $0x8c8] sm:$0xff] }
 0x1d6   : > { %7721 = vmatprep.subr.bf16.mxu0 %v13725_v40  ;;  %8049 = vmatprep.subr.bf16.mxu1 %v13727_v46  ;;  %v1639_v39 = vld [vmem:[%s16207_s21 + $0x8e8] sm:$0xff]  ;;  %v13772_v40 = vcombine.low %v1626_v43, %v1630_v44  ;;  %v13774_v46 = vcombine.low %v1627_v62, %v1631_v54  ;;  %v1682_v43 = vld [vmem:[%s16207_s21 + $0xa40] sm:$0xff] }
 0x1d7   : > { %v13783_v52 = vcombine.high %v1635_v35, %v1639_v39  ;;  %v1686_v44 = vld [vmem:[%s16207_s21 + $0xa60] sm:$0xff]  ;;  %v1683_v62 = vld [vmem:[%s16207_s21 + $0xa48] sm:$0xff] }
 0x1d8   : > { %v1687_v54 = vld [vmem:[%s16207_s21 + $0xa68] sm:$0xff] }
 0x1d9   : > { %7722 = vmatpush1.bf16.msra.mxu0 %v13724_v53  ;;  %8050 = vmatpush1.bf16.msra.mxu1 %v13726_v0  ;;  %v1643_v53 = vld [vmem:[%s16207_s21 + $0x908] sm:$0xff] }
 0x1da   : > { %7723 = vmatprep.subr.bf16.mxu0 %v13733_v56  ;;  %8051 = vmatprep.subr.bf16.mxu1 %v13735_v3  ;;  %v1647_v0 = vld [vmem:[%s16207_s21 + $0x928] sm:$0xff]  ;;  %v13780_v56 = vcombine.low %v1634_v29, %v1638_v34  ;;  %v13782_v3 = vcombine.low %v1635_v35, %v1639_v39  ;;  %v1690_v29 = vld [vmem:[%s16207_s21 + $0xa80] sm:$0xff] }
 0x1db   : > { %v13791_v2 = vcombine.high %v1643_v53, %v1647_v0  ;;  %v1694_v34 = vld [vmem:[%s16207_s21 + $0xaa0] sm:$0xff]  ;;  %v1691_v35 = vld [vmem:[%s16207_s21 + $0xa88] sm:$0xff] }
 0x1dc   : > { %v1695_v39 = vld [vmem:[%s16207_s21 + $0xaa8] sm:$0xff] }
 0x1dd   : > { %7724 = vmatpush1.bf16.msra.mxu0 %v13732_v8  ;;  %8052 = vmatpush1.bf16.msra.mxu1 %v13734_v6  ;;  %v1651_v8 = vld [vmem:[%s16207_s21 + $0x948] sm:$0xff] }
 0x1de   : > { %7725 = vmatprep.subr.bf16.mxu0 %v13741_v9  ;;  %8053 = vmatprep.subr.bf16.mxu1 %v13743_v7  ;;  %v1655_v6 = vld [vmem:[%s16207_s21 + $0x968] sm:$0xff]  ;;  %v13788_v9 = vcombine.low %v1642_v63, %v1646_v24  ;;  %v13790_v7 = vcombine.low %v1643_v53, %v1647_v0  ;;  %v1698_v63 = vld [vmem:[%s16207_s21 + $0xac0] sm:$0xff] }
 0x1df   : > { %v13799_v11 = vcombine.high %v1651_v8, %v1655_v6  ;;  %v1702_v24 = vld [vmem:[%s16207_s21 + $0xae0] sm:$0xff]  ;;  %v1699_v53 = vld [vmem:[%s16207_s21 + $0xac8] sm:$0xff] }
 0x1e0   : > { %v1703_v0 = vld [vmem:[%s16207_s21 + $0xae8] sm:$0xff] }
 0x1e1   : > { %7726 = vmatpush1.bf16.msra.mxu0 %v13740_v12  ;;  %8054 = vmatpush1.bf16.msra.mxu1 %v13742_v22  ;;  %v1663_v12 = vld [vmem:[%s16207_s21 + $0x9a8] sm:$0xff]  ;;  %v13796_v22 = vcombine.low %v1650_v5, %v1654_v10  ;;  %v1706_v5 = vld [vmem:[%s16207_s21 + $0xb00] sm:$0xff] }
 0x1e2   : > { %7727 = vmatprep.subr.bf16.mxu0 %v13749_v23  ;;  %8055 = vmatprep.subr.bf16.mxu1 %v13751_v25  ;;  %v13798_v23 = vcombine.low %v1651_v8, %v1655_v6  ;;  %v13805_v25 = vcombine.high %v1658_v14, %v1662_v18  ;;  %v13807_v16 = vcombine.high %v1659_v15, %v1663_v12  ;;  %v1710_v10 = vld [vmem:[%s16207_s21 + $0xb20] sm:$0xff]  ;;  %v1707_v8 = vld [vmem:[%s16207_s21 + $0xb08] sm:$0xff] }
 0x1e3   : > { %v1711_v6 = vld [vmem:[%s16207_s21 + $0xb28] sm:$0xff] }
 0x1e5   : > { %7728 = vmatpush1.bf16.msra.mxu0 %v13748_v36  ;;  %8056 = vmatpush1.bf16.msra.mxu1 %v13750_v47  ;;  %v1671_v36 = vld [vmem:[%s16207_s21 + $0x9e8] sm:$0xff]  ;;  %v13804_v47 = vcombine.low %v1658_v14, %v1662_v18  ;;  %v1714_v14 = vld [vmem:[%s16207_s21 + $0xb40] sm:$0xff] }
 0x1e6   : > { %7738 = vmatprep.subr.bf16.mxu0 %v13757_v41  ;;  %8066 = vmatprep.subr.bf16.mxu1 %v13759_v45  ;;  %v13806_v41 = vcombine.low %v1659_v15, %v1663_v12  ;;  %v13813_v45 = vcombine.high %v1666_v26, %v1670_v38  ;;  %v13815_v49 = vcombine.high %v1667_v33, %v1671_v36  ;;  %v1718_v18 = vld [vmem:[%s16207_s21 + $0xb60] sm:$0xff]  ;;  %v1715_v15 = vld [vmem:[%s16207_s21 + $0xb48] sm:$0xff] }
 0x1e7   : > { %v1719_v12 = vld [vmem:[%s16207_s21 + $0xb68] sm:$0xff] }
 0x1e8   : > { %7730 = vmatmul.mubr.bf16.vlgmr.msra.gmra.mrb[0].mxu0 %v16588_v59  ;;  %8058 = vmatmul.mubr.bf16.vlgmr.msra.gmra.mrb[0].mxu1 %v16588_v59 }
 0x1e9   : > { %7739 = vmatpush1.bf16.msra.mxu0 %v13756_v30  ;;  %8067 = vmatpush1.bf16.msra.mxu1 %v13758_v32  ;;  %v13812_v30 = vcombine.low %v1666_v26, %v1670_v38  ;;  %v13814_v32 = vcombine.low %v1667_v33, %v1671_v36  ;;  %v1722_v26 = vld [vmem:[%s16207_s21 + $0xb80] sm:$0xff]  ;;  %v1723_v33 = vld [vmem:[%s16207_s21 + $0xb88] sm:$0xff] }
 0x1ea   : > { %7740 = vmatprep.subr.bf16.mxu0 %v13765_v57  ;;  %8068 = vmatprep.subr.bf16.mxu1 %v13767_v42  ;;  %v13821_v57 = vcombine.high %v1674_v58, %v1678_v50  ;;  %v13823_v42 = vcombine.high %v1675_v51, %v1679_v60  ;;  %v1726_v38 = vld [vmem:[%s16207_s21 + $0xba0] sm:$0xff]  ;;  %v1727_v36 = vld [vmem:[%s16207_s21 + $0xba8] sm:$0xff] }
 0x1eb   : > { %7770 = vmatprep.mubr.bf16.mxu0 %v16595_v61  ;;  %8098 = vmatprep.mubr.bf16.mxu1 %v16595_v61 }
 0x1ed   : > { %7741 = vmatpush1.bf16.msra.mxu0 %v13764_v19  ;;  %8069 = vmatpush1.bf16.msra.mxu1 %v13766_v31  ;;  %v13820_v19 = vcombine.low %v1674_v58, %v1678_v50  ;;  %v13822_v31 = vcombine.low %v1675_v51, %v1679_v60  ;;  %v1730_v58 = vld [vmem:[%s16207_s21 + $0xbc0] sm:$0xff]  ;;  %v1731_v51 = vld [vmem:[%s16207_s21 + $0xbc8] sm:$0xff] }
 0x1ee   : > { %7742 = vmatprep.subr.bf16.mxu0 %v13773_v27  ;;  %8070 = vmatprep.subr.bf16.mxu1 %v13775_v28  ;;  %v13829_v27 = vcombine.high %v1682_v43, %v1686_v44  ;;  %v13831_v28 = vcombine.high %v1683_v62, %v1687_v54  ;;  %v1734_v50 = vld [vmem:[%s16207_s21 + $0xbe0] sm:$0xff]  ;;  %v1735_v60 = vld [vmem:[%s16207_s21 + $0xbe8] sm:$0xff] }
 0x1f1   : > { %7743 = vmatpush1.bf16.msra.mxu0 %v13772_v40  ;;  %8071 = vmatpush1.bf16.msra.mxu1 %v13774_v46  ;;  %v13828_v40 = vcombine.low %v1682_v43, %v1686_v44  ;;  %v13830_v46 = vcombine.low %v1683_v62, %v1687_v54  ;;  %v1738_v43 = vld [vmem:[%s16207_s21 + $0xc00] sm:$0xff]  ;;  %v1739_v62 = vld [vmem:[%s16207_s21 + $0xc08] sm:$0xff] }
 0x1f2   : > { %7744 = vmatprep.subr.bf16.mxu0 %v13781_v48  ;;  %8072 = vmatprep.subr.bf16.mxu1 %v13783_v52  ;;  %v13837_v48 = vcombine.high %v1690_v29, %v1694_v34  ;;  %v13839_v52 = vcombine.high %v1691_v35, %v1695_v39  ;;  %v1742_v44 = vld [vmem:[%s16207_s21 + $0xc20] sm:$0xff]  ;;  %v1743_v54 = vld [vmem:[%s16207_s21 + $0xc28] sm:$0xff] }
 0x1f5   : > { %7745 = vmatpush1.bf16.msra.mxu0 %v13780_v56  ;;  %8073 = vmatpush1.bf16.msra.mxu1 %v13782_v3  ;;  %v13836_v56 = vcombine.low %v1690_v29, %v1694_v34  ;;  %v13838_v3 = vcombine.low %v1691_v35, %v1695_v39  ;;  %v1746_v29 = vld [vmem:[%s16207_s21 + $0xc40] sm:$0xff]  ;;  %v16663_v35 = vrot.slane %v16578_v17, %v16444_v20  ;;  %v1747_v39 = vld [vmem:[%s16207_s21 + $0xc48] sm:$0xff] }
 0x1f6   : > { %7746 = vmatprep.subr.bf16.mxu0 %v13789_v1  ;;  %8074 = vmatprep.subr.bf16.mxu1 %v13791_v2  ;;  %v13845_v1 = vcombine.high %v1698_v63, %v1702_v24  ;;  %v13847_v2 = vcombine.high %v1699_v53, %v1703_v0  ;;  %v1750_v34 = vld [vmem:[%s16207_s21 + $0xc60] sm:$0xff]  ;;  %v1755_v17 = vld [vmem:[%s16207_s21 + $0xc88] sm:$0xff] }
 0x1f9   : > { %7747 = vmatpush1.bf16.msra.mxu0 %v13788_v9  ;;  %8075 = vmatpush1.bf16.msra.mxu1 %v13790_v7  ;;  %v13844_v9 = vcombine.low %v1698_v63, %v1702_v24  ;;  %v13846_v7 = vcombine.low %v1699_v53, %v1703_v0  ;;  %v1754_v24 = vld [vmem:[%s16207_s21 + $0xc80] sm:$0xff]  ;;  %v16671_v0 = vcombine.high %v16595_v61, %v16595_v61 }
 0x1fa   : > { %7748 = vmatprep.subr.bf16.mxu0 %v13797_v13  ;;  %8076 = vmatprep.subr.bf16.mxu1 %v13799_v11  ;;  %v13853_v13 = vcombine.high %v1706_v5, %v1710_v10  ;;  %v13855_v11 = vcombine.high %v1707_v8, %v1711_v6  ;;  %v1758_v53 = vld [vmem:[%s16207_s21 + $0xca0] sm:$0xff] }
 0x1fd   : > { %7749 = vmatpush1.bf16.msra.mxu0 %v13796_v22  ;;  %8077 = vmatpush1.bf16.msra.mxu1 %v13798_v23  ;;  %v13852_v22 = vcombine.low %v1706_v5, %v1710_v10  ;;  %v13854_v23 = vcombine.low %v1707_v8, %v1711_v6  ;;  %v1762_v10 = vld [vmem:[%s16207_s21 + $0xcc0] sm:$0xff]  ;;  %v1763_v6 = vld [vmem:[%s16207_s21 + $0xcc8] sm:$0xff] }
 0x1fe   : > { %7750 = vmatprep.subr.bf16.mxu0 %v13805_v25  ;;  %8078 = vmatprep.subr.bf16.mxu1 %v13807_v16  ;;  %v13861_v25 = vcombine.high %v1714_v14, %v1718_v18  ;;  %v13863_v16 = vcombine.high %v1715_v15, %v1719_v12  ;;  %v1766_v8 = vld [vmem:[%s16207_s21 + $0xce0] sm:$0xff] }
 0x201   : > { %7751 = vmatpush1.bf16.msra.mxu0 %v13804_v47  ;;  %8079 = vmatpush1.bf16.msra.mxu1 %v13806_v41  ;;  %v13860_v47 = vcombine.low %v1714_v14, %v1718_v18  ;;  %v13862_v41 = vcombine.low %v1715_v15, %v1719_v12  ;;  %v1770_v18 = vld [vmem:[%s16207_s21 + $0xd00] sm:$0xff]  ;;  %v1771_v12 = vld [vmem:[%s16207_s21 + $0xd08] sm:$0xff] }
 0x202   : > { %7752 = vmatprep.subr.bf16.mxu0 %v13813_v45  ;;  %8080 = vmatprep.subr.bf16.mxu1 %v13815_v49  ;;  %v13869_v45 = vcombine.high %v1722_v26, %v1726_v38  ;;  %v13871_v49 = vcombine.high %v1723_v33, %v1727_v36  ;;  %v1774_v15 = vld [vmem:[%s16207_s21 + $0xd20] sm:$0xff] }
 0x205   : > { %7753 = vmatpush1.bf16.msra.mxu0 %v13812_v30  ;;  %8081 = vmatpush1.bf16.msra.mxu1 %v13814_v32  ;;  %v13868_v30 = vcombine.low %v1722_v26, %v1726_v38  ;;  %v13870_v32 = vcombine.low %v1723_v33, %v1727_v36  ;;  %v1778_v38 = vld [vmem:[%s16207_s21 + $0xd40] sm:$0xff]  ;;  %v1779_v36 = vld [vmem:[%s16207_s21 + $0xd48] sm:$0xff] }
 0x206   : > { %7754 = vmatprep.subr.bf16.mxu0 %v13821_v57  ;;  %8082 = vmatprep.subr.bf16.mxu1 %v13823_v42  ;;  %v13877_v57 = vcombine.high %v1730_v58, %v1734_v50  ;;  %v13879_v42 = vcombine.high %v1731_v51, %v1735_v60  ;;  %v1782_v33 = vld [vmem:[%s16207_s21 + $0xd60] sm:$0xff] }
 0x209   : > { %7755 = vmatpush1.bf16.msra.mxu0 %v13820_v19  ;;  %8083 = vmatpush1.bf16.msra.mxu1 %v13822_v31  ;;  %v13876_v19 = vcombine.low %v1730_v58, %v1734_v50  ;;  %v13878_v31 = vcombine.low %v1731_v51, %v1735_v60  ;;  %v1786_v50 = vld [vmem:[%s16207_s21 + $0xd80] sm:$0xff]  ;;  %v1787_v60 = vld [vmem:[%s16207_s21 + $0xd88] sm:$0xff] }
 0x20a   : > { %7756 = vmatprep.subr.bf16.mxu0 %v13829_v27  ;;  %8084 = vmatprep.subr.bf16.mxu1 %v13831_v28  ;;  %v13885_v27 = vcombine.high %v1738_v43, %v1742_v44  ;;  %v13887_v28 = vcombine.high %v1739_v62, %v1743_v54  ;;  %v1790_v51 = vld [vmem:[%s16207_s21 + $0xda0] sm:$0xff] }
 0x20d   : > { %7757 = vmatpush1.bf16.msra.mxu0 %v13828_v40  ;;  %8085 = vmatpush1.bf16.msra.mxu1 %v13830_v46  ;;  %v1751_v40 = vld [vmem:[%s16207_s21 + $0xc68] sm:$0xff]  ;;  %v13884_v46 = vcombine.low %v1738_v43, %v1742_v44  ;;  %v1794_v44 = vld [vmem:[%s16207_s21 + $0xdc0] sm:$0xff] }
 0x20e   : > { %7758 = vmatprep.subr.bf16.mxu0 %v13837_v48  ;;  %8086 = vmatprep.subr.bf16.mxu1 %v13839_v52  ;;  %v13886_v48 = vcombine.low %v1739_v62, %v1743_v54  ;;  %v13893_v52 = vcombine.high %v1746_v29, %v1750_v34  ;;  %v13895_v63 = vcombine.high %v1747_v39, %v1751_v40  ;;  %v1798_v62 = vld [vmem:[%s16207_s21 + $0xde0] sm:$0xff]  ;;  %v1795_v54 = vld [vmem:[%s16207_s21 + $0xdc8] sm:$0xff] }
 0x211   : > { %7759 = vmatpush1.bf16.msra.mxu0 %v13836_v56  ;;  %8087 = vmatpush1.bf16.msra.mxu1 %v13838_v3  ;;  %v1759_v56 = vld [vmem:[%s16207_s21 + $0xca8] sm:$0xff]  ;;  %v13892_v3 = vcombine.low %v1746_v29, %v1750_v34  ;;  %v1802_v34 = vld [vmem:[%s16207_s21 + $0xe00] sm:$0xff] }
 0x212   : > { %7760 = vmatprep.subr.bf16.mxu0 %v13845_v1  ;;  %8088 = vmatprep.subr.bf16.mxu1 %v13847_v2  ;;  %v13894_v1 = vcombine.low %v1747_v39, %v1751_v40  ;;  %v13901_v2 = vcombine.high %v1754_v24, %v1758_v53  ;;  %v13903_v5 = vcombine.high %v1755_v17, %v1759_v56  ;;  %v1806_v39 = vld [vmem:[%s16207_s21 + $0xe20] sm:$0xff]  ;;  %v1803_v40 = vld [vmem:[%s16207_s21 + $0xe08] sm:$0xff] }
 0x215   : > { %7761 = vmatpush1.bf16.msra.mxu0 %v13844_v9  ;;  %8089 = vmatpush1.bf16.msra.mxu1 %v13846_v7  ;;  %v1767_v9 = vld [vmem:[%s16207_s21 + $0xce8] sm:$0xff]  ;;  %v13900_v7 = vcombine.low %v1754_v24, %v1758_v53  ;;  %v1810_v53 = vld [vmem:[%s16207_s21 + $0xe40] sm:$0xff] }
 0x216   : > { %7762 = vmatprep.subr.bf16.mxu0 %v13853_v13  ;;  %8090 = vmatprep.subr.bf16.mxu1 %v13855_v11  ;;  %v13902_v13 = vcombine.low %v1755_v17, %v1759_v56  ;;  %v13909_v11 = vcombine.high %v1762_v10, %v1766_v8  ;;  %v13911_v14 = vcombine.high %v1763_v6, %v1767_v9  ;;  %v1814_v17 = vld [vmem:[%s16207_s21 + $0xe60] sm:$0xff]  ;;  %v1811_v56 = vld [vmem:[%s16207_s21 + $0xe48] sm:$0xff] }
 0x219   : > { %7763 = vmatpush1.bf16.msra.mxu0 %v13852_v22  ;;  %8091 = vmatpush1.bf16.msra.mxu1 %v13854_v23  ;;  %v1775_v22 = vld [vmem:[%s16207_s21 + $0xd28] sm:$0xff]  ;;  %v13908_v23 = vcombine.low %v1762_v10, %v1766_v8  ;;  %v1818_v8 = vld [vmem:[%s16207_s21 + $0xe80] sm:$0xff] }
 0x21a   : > { %7764 = vmatprep.subr.bf16.mxu0 %v13861_v25  ;;  %8092 = vmatprep.subr.bf16.mxu1 %v13863_v16  ;;  %v13910_v25 = vcombine.low %v1763_v6, %v1767_v9  ;;  %v13917_v16 = vcombine.high %v1770_v18, %v1774_v15  ;;  %v13919_v26 = vcombine.high %v1771_v12, %v1775_v22  ;;  %v1822_v6 = vld [vmem:[%s16207_s21 + $0xea0] sm:$0xff]  ;;  %v1819_v9 = vld [vmem:[%s16207_s21 + $0xe88] sm:$0xff] }
 0x21d   : > { %7765 = vmatpush1.bf16.msra.mxu0 %v13860_v47  ;;  %8093 = vmatpush1.bf16.msra.mxu1 %v13862_v41  ;;  %v1783_v47 = vld [vmem:[%s16207_s21 + $0xd68] sm:$0xff]  ;;  %v13916_v41 = vcombine.low %v1770_v18, %v1774_v15  ;;  %v1826_v15 = vld [vmem:[%s16207_s21 + $0xec0] sm:$0xff] }
 0x21e   : > { %7766 = vmatprep.subr.bf16.mxu0 %v13869_v45  ;;  %8094 = vmatprep.subr.bf16.mxu1 %v13871_v49  ;;  %v13918_v45 = vcombine.low %v1771_v12, %v1775_v22  ;;  %v13925_v49 = vcombine.high %v1778_v38, %v1782_v33  ;;  %v13927_v58 = vcombine.high %v1779_v36, %v1783_v47  ;;  %v1830_v12 = vld [vmem:[%s16207_s21 + $0xee0] sm:$0xff]  ;;  %v1827_v22 = vld [vmem:[%s16207_s21 + $0xec8] sm:$0xff] }
 0x221   : > { %7767 = vmatpush1.bf16.msra.mxu0 %v13868_v30  ;;  %8095 = vmatpush1.bf16.msra.mxu1 %v13870_v32  ;;  %v1791_v30 = vld [vmem:[%s16207_s21 + $0xda8] sm:$0xff]  ;;  %v13924_v32 = vcombine.low %v1778_v38, %v1782_v33  ;;  %v1834_v33 = vld [vmem:[%s16207_s21 + $0xf00] sm:$0xff] }
 0x222   : > { %7768 = vmatprep.subr.bf16.mxu0 %v13877_v57  ;;  %8096 = vmatprep.subr.bf16.mxu1 %v13879_v42  ;;  %v13926_v57 = vcombine.low %v1779_v36, %v1783_v47  ;;  %v13933_v42 = vcombine.high %v1786_v50, %v1790_v51  ;;  %v13935_v43 = vcombine.high %v1787_v60, %v1791_v30  ;;  %v1838_v36 = vld [vmem:[%s16207_s21 + $0xf20] sm:$0xff]  ;;  %v1835_v47 = vld [vmem:[%s16207_s21 + $0xf08] sm:$0xff] }
 0x225   : > { %7769 = vmatpush1.bf16.msra.mxu0 %v13876_v19  ;;  %8097 = vmatpush1.bf16.msra.mxu1 %v13878_v31  ;;  %v1799_v19 = vld [vmem:[%s16207_s21 + $0xde8] sm:$0xff]  ;;  %v13932_v31 = vcombine.low %v1786_v50, %v1790_v51  ;;  %v1842_v51 = vld [vmem:[%s16207_s21 + $0xf40] sm:$0xff] }
 0x226   : > { %7779 = vmatprep.subr.bf16.mxu0 %v13885_v27  ;;  %8107 = vmatprep.subr.bf16.mxu1 %v13887_v28  ;;  %v13934_v27 = vcombine.low %v1787_v60, %v1791_v30  ;;  %v13941_v28 = vcombine.high %v1794_v44, %v1798_v62  ;;  %v13943_v29 = vcombine.high %v1795_v54, %v1799_v19  ;;  %v1846_v60 = vld [vmem:[%s16207_s21 + $0xf60] sm:$0xff]  ;;  %v1843_v30 = vld [vmem:[%s16207_s21 + $0xf48] sm:$0xff] }
 0x228   : > { %7771 = vmatmul.mubr.bf16.vlgmr.msra.gmra.mrb[0].mxu0 %v16663_v35  ;;  %8099 = vmatmul.mubr.bf16.vlgmr.msra.gmra.mrb[0].mxu1 %v16663_v35 }
 0x229   : > { %7780 = vmatpush1.bf16.msra.mxu0 %v13884_v46  ;;  %8108 = vmatpush1.bf16.msra.mxu1 %v13886_v48  ;;  %v1807_v46 = vld [vmem:[%s16207_s21 + $0xe28] sm:$0xff]  ;;  %v13940_v48 = vcombine.low %v1794_v44, %v1798_v62  ;;  %v1850_v62 = vld [vmem:[%s16207_s21 + $0xf80] sm:$0xff] }
 0x22a   : > { %7781 = vmatprep.subr.bf16.mxu0 %v13893_v52  ;;  %8109 = vmatprep.subr.bf16.mxu1 %v13895_v63  ;;  %v13942_v52 = vcombine.low %v1795_v54, %v1799_v19  ;;  %v13949_v63 = vcombine.high %v1802_v34, %v1806_v39  ;;  %v13951_v24 = vcombine.high %v1803_v40, %v1807_v46  ;;  %v1854_v54 = vld [vmem:[%s16207_s21 + $0xfa0] sm:$0xff]  ;;  %v1851_v19 = vld [vmem:[%s16207_s21 + $0xf88] sm:$0xff] }
 0x22b   : > { %7811 = vmatprep.mubr.bf16.mxu0 %v16671_v0  ;;  %8139 = vmatprep.mubr.bf16.mxu1 %v16671_v0 }
 0x22d   : > { %7782 = vmatpush1.bf16.msra.mxu0 %v13892_v3  ;;  %8110 = vmatpush1.bf16.msra.mxu1 %v13894_v1  ;;  %v1815_v3 = vld [vmem:[%s16207_s21 + $0xe68] sm:$0xff]  ;;  %v13948_v1 = vcombine.low %v1802_v34, %v1806_v39  ;;  %v1858_v39 = vld [vmem:[%s16207_s21 + $0xfc0] sm:$0xff] }
 0x22e   : > { %7783 = vmatprep.subr.bf16.mxu0 %v13901_v2  ;;  %8111 = vmatprep.subr.bf16.mxu1 %v13903_v5  ;;  %v13950_v2 = vcombine.low %v1803_v40, %v1807_v46  ;;  %v13957_v5 = vcombine.high %v1810_v53, %v1814_v17  ;;  %v13959_v10 = vcombine.high %v1811_v56, %v1815_v3  ;;  %v1862_v40 = vld [vmem:[%s16207_s21 + $0xfe0] sm:$0xff]  ;;  %v1859_v46 = vld [vmem:[%s16207_s21 + $0xfc8] sm:$0xff] }
 0x231   : > { %7784 = vmatpush1.bf16.msra.mxu0 %v13900_v7  ;;  %8112 = vmatpush1.bf16.msra.mxu1 %v13902_v13  ;;  %v1823_v7 = vld [vmem:[%s16207_s21 + $0xea8] sm:$0xff]  ;;  %v13956_v13 = vcombine.low %v1810_v53, %v1814_v17  ;;  %v14005_v53 = vcombine.high %v1858_v39, %v1862_v40 }
 0x232   : > { %7785 = vmatprep.subr.bf16.mxu0 %v13909_v11  ;;  %8113 = vmatprep.subr.bf16.mxu1 %v13911_v14  ;;  %v13958_v11 = vcombine.low %v1811_v56, %v1815_v3  ;;  %v13965_v14 = vcombine.high %v1818_v8, %v1822_v6  ;;  %v13967_v18 = vcombine.high %v1819_v9, %v1823_v7  ;;  %v1866_v56 = vld [vmem:[%s16207_s21 + $0x1000] sm:$0xff] }
 0x233   : > { %v1870_v3 = vld [vmem:[%s16207_s21 + $0x1020] sm:$0xff] }
 0x235   : > { %7786 = vmatpush1.bf16.msra.mxu0 %v13908_v23  ;;  %8114 = vmatpush1.bf16.msra.mxu1 %v13910_v25  ;;  %v1831_v23 = vld [vmem:[%s16207_s21 + $0xee8] sm:$0xff]  ;;  %v13964_v25 = vcombine.low %v1818_v8, %v1822_v6  ;;  %v14013_v6 = vcombine.high %v1866_v56, %v1870_v3 }
 0x236   : > { %7787 = vmatprep.subr.bf16.mxu0 %v13917_v16  ;;  %8115 = vmatprep.subr.bf16.mxu1 %v13919_v26  ;;  %v13966_v16 = vcombine.low %v1819_v9, %v1823_v7  ;;  %v13973_v26 = vcombine.high %v1826_v15, %v1830_v12  ;;  %v13975_v38 = vcombine.high %v1827_v22, %v1831_v23  ;;  %v1874_v7 = vld [vmem:[%s16207_s21 + $0x1040] sm:$0xff] }
 0x239   : > { %7788 = vmatpush1.bf16.msra.mxu0 %v13916_v41  ;;  %8116 = vmatpush1.bf16.msra.mxu1 %v13918_v45  ;;  %v1839_v41 = vld [vmem:[%s16207_s21 + $0xf28] sm:$0xff]  ;;  %v13972_v45 = vcombine.low %v1826_v15, %v1830_v12  ;;  %v14012_v12 = vcombine.low %v1866_v56, %v1870_v3 }
 0x23a   : > { %7789 = vmatprep.subr.bf16.mxu0 %v13925_v49  ;;  %8117 = vmatprep.subr.bf16.mxu1 %v13927_v58  ;;  %v13974_v49 = vcombine.low %v1827_v22, %v1831_v23  ;;  %v13981_v58 = vcombine.high %v1834_v33, %v1838_v36  ;;  %v13983_v50 = vcombine.high %v1835_v47, %v1839_v41  ;;  %v1879_v15 = vld [vmem:[%s16207_s21 + $0x1068] sm:$0xff] }
 0x23b   : > { %v1915_v56 = vld [vmem:[%s16207_s21 + $0x1188] sm:$0xff] }
 0x23c   : > { %v1919_v3 = vld [vmem:[%s16207_s21 + $0x11a8] sm:$0xff] }
 0x23d   : > { %7790 = vmatpush1.bf16.msra.mxu0 %v13924_v32  ;;  %8118 = vmatpush1.bf16.msra.mxu1 %v13926_v57  ;;  %v1847_v32 = vld [vmem:[%s16207_s21 + $0xf68] sm:$0xff]  ;;  %v13980_v57 = vcombine.low %v1834_v33, %v1838_v36 }
 0x23e   : > { %7791 = vmatprep.subr.bf16.mxu0 %v13933_v42  ;;  %8119 = vmatprep.subr.bf16.mxu1 %v13935_v43  ;;  %v13982_v42 = vcombine.low %v1835_v47, %v1839_v41  ;;  %v13989_v43 = vcombine.high %v1842_v51, %v1846_v60  ;;  %v13991_v44 = vcombine.high %v1843_v30, %v1847_v32  ;;  %v1883_v33 = vld [vmem:[%s16207_s21 + $0x1088] sm:$0xff] }
 0x23f   : > { %v1887_v36 = vld [vmem:[%s16207_s21 + $0x10a8] sm:$0xff] }
 0x241   : > { %7792 = vmatpush1.bf16.msra.mxu0 %v13932_v31  ;;  %8120 = vmatpush1.bf16.msra.mxu1 %v13934_v27  ;;  %v1855_v31 = vld [vmem:[%s16207_s21 + $0xfa8] sm:$0xff]  ;;  %v13988_v27 = vcombine.low %v1842_v51, %v1846_v60 }
 0x242   : > { %7793 = vmatprep.subr.bf16.mxu0 %v13941_v28  ;;  %8121 = vmatprep.subr.bf16.mxu1 %v13943_v29  ;;  %v13990_v28 = vcombine.low %v1843_v30, %v1847_v32  ;;  %v13997_v29 = vcombine.high %v1850_v62, %v1854_v54  ;;  %v13999_v34 = vcombine.high %v1851_v19, %v1855_v31  ;;  %v1891_v51 = vld [vmem:[%s16207_s21 + $0x10c8] sm:$0xff] }
 0x243   : > { %v1895_v60 = vld [vmem:[%s16207_s21 + $0x10e8] sm:$0xff]  ;;  %v14030_v32 = vcombine.low %v1883_v33, %v1887_v36 }
 0x245   : > { %7794 = vmatpush1.bf16.msra.mxu0 %v13940_v48  ;;  %8122 = vmatpush1.bf16.msra.mxu1 %v13942_v52  ;;  %v1863_v48 = vld [vmem:[%s16207_s21 + $0xfe8] sm:$0xff] }
 0x246   : > { %7795 = vmatprep.subr.bf16.mxu0 %v13949_v63  ;;  %8123 = vmatprep.subr.bf16.mxu1 %v13951_v24  ;;  %v16731_v52 = vld [vmem:[#allocation2 + $0x8] sm:$0xff]  ;;  %v13996_v63 = vcombine.low %v1850_v62, %v1854_v54  ;;  %v13998_v24 = vcombine.low %v1851_v19, %v1855_v31  ;;  %v14007_v17 = vcombine.high %v1859_v46, %v1863_v48 }
 0x247   : > { %v14006_v8 = vcombine.low %v1859_v46, %v1863_v48  ;;  %v1899_v62 = vld [vmem:[%s16207_s21 + $0x1108] sm:$0xff]  ;;  %v14038_v31 = vcombine.low %v1891_v51, %v1895_v60 }
 0x248   : > { %v1903_v54 = vld [vmem:[%s16207_s21 + $0x1128] sm:$0xff] }
 0x249   : > { %7796 = vmatpush1.bf16.msra.mxu0 %v13948_v1  ;;  %8124 = vmatpush1.bf16.msra.mxu1 %v13950_v2  ;;  %v16737_v1 = vrot.slane %v16731_v52, %v16444_v20  ;;  %v1867_v2 = vld [vmem:[%s16207_s21 + $0x1008] sm:$0xff]  ;;  %v14046_v48 = vcombine.low %v1899_v62, %v1903_v54 }
 0x24a   : > { %7797 = vmatprep.subr.bf16.mxu0 %v13957_v5  ;;  %8125 = vmatprep.subr.bf16.mxu1 %v13959_v10  ;;  %v1871_v5 = vld [vmem:[%s16207_s21 + $0x1028] sm:$0xff]  ;;  %v14004_v10 = vcombine.low %v1858_v39, %v1862_v40 }
 0x24b   : > { %v14015_v9 = vcombine.high %v1867_v2, %v1871_v5  ;;  %v14014_v22 = vcombine.low %v1867_v2, %v1871_v5  ;;  %v1907_v39 = vld [vmem:[%s16207_s21 + $0x1148] sm:$0xff] }
 0x24c   : > { %v1911_v40 = vld [vmem:[%s16207_s21 + $0x1168] sm:$0xff] }
 0x24d   : > { %7798 = vmatpush1.bf16.msra.mxu0 %v13956_v13  ;;  %8126 = vmatpush1.bf16.msra.mxu1 %v13958_v11  ;;  %v1878_v13 = vld [vmem:[%s16207_s21 + $0x1060] sm:$0xff]  ;;  %v2486_v11 = vcombine.high %v16737_v1, %v16737_v1  ;;  %v14054_v5 = vcombine.low %v1907_v39, %v1911_v40 }
 0x24e   : > { %7799 = vmatprep.subr.bf16.mxu0 %v13965_v14  ;;  %8127 = vmatprep.subr.bf16.mxu1 %v13967_v18  ;;  %v16747_v14 = vcombine.high %v16663_v35, %v16663_v35  ;;  %v1875_v18 = vld [vmem:[%s16207_s21 + $0x1048] sm:$0xff]  ;;  %v14021_v23 = vcombine.high %v1874_v7, %v1878_v13  ;;  %v14020_v47 = vcombine.low %v1874_v7, %v1878_v13 }
 0x24f   : > { %v14022_v41 = vcombine.low %v1875_v18, %v1879_v15  ;;  %v1923_v7 = vld [vmem:[%s16207_s21 + $0x11c8] sm:$0xff] }
 0x250   : > { %v1927_v13 = vld [vmem:[%s16207_s21 + $0x11e8] sm:$0xff] }
 0x251   : > { %7800 = vmatpush1.bf16.msra.mxu0 %v13964_v25  ;;  %8128 = vmatpush1.bf16.msra.mxu1 %v13966_v16  ;;  %v14023_v25 = vcombine.high %v1875_v18, %v1879_v15  ;;  %v1882_v16 = vld [vmem:[%s16207_s21 + $0x1080] sm:$0xff]  ;;  %v14062_v18 = vcombine.low %v1915_v56, %v1919_v3 }
 0x252   : > { %7801 = vmatprep.subr.bf16.mxu0 %v13973_v26  ;;  %8129 = vmatprep.subr.bf16.mxu1 %v13975_v38  ;;  %v1886_v26 = vld [vmem:[%s16207_s21 + $0x10a0] sm:$0xff]  ;;  %v16754_v38 = vrot.slane %v2486_v11, %v16444_v20 }
 0x253   : > { %v14028_v30 = vcombine.low %v1882_v16, %v1886_v26 }
 0x255   : > { %7802 = vmatpush1.bf16.msra.mxu0 %v13972_v45  ;;  %8130 = vmatpush1.bf16.msra.mxu1 %v13974_v49  ;;  %v14029_v45 = vcombine.high %v1882_v16, %v1886_v26  ;;  %v14031_v49 = vcombine.high %v1883_v33, %v1887_v36  ;;  %v1935_v16 = vld [vmem:[%s16207_s21 + $0x1228] sm:$0xff]  ;;  %v14070_v33 = vcombine.low %v1923_v7, %v1927_v13 }
 0x256   : > { %7803 = vmatprep.subr.bf16.mxu0 %v13981_v58  ;;  %8131 = vmatprep.subr.bf16.mxu1 %v13983_v50  ;;  %v1890_v58 = vld [vmem:[%s16207_s21 + $0x10c0] sm:$0xff] }
 0x257   : > { %v1894_v50 = vld [vmem:[%s16207_s21 + $0x10e0] sm:$0xff] }
 0x258   : > { %v14036_v19 = vcombine.low %v1890_v58, %v1894_v50 }
 0x259   : > { %7804 = vmatpush1.bf16.msra.mxu0 %v13980_v57  ;;  %8132 = vmatpush1.bf16.msra.mxu1 %v13982_v42  ;;  %v14037_v57 = vcombine.high %v1890_v58, %v1894_v50  ;;  %v14039_v42 = vcombine.high %v1891_v51, %v1895_v60  ;;  %v1943_v58 = vld [vmem:[%s16207_s21 + $0x1268] sm:$0xff] }
 0x25a   : > { %7805 = vmatprep.subr.bf16.mxu0 %v13989_v43  ;;  %8133 = vmatprep.subr.bf16.mxu1 %v13991_v44  ;;  %v1898_v43 = vld [vmem:[%s16207_s21 + $0x1100] sm:$0xff] }
 0x25b   : > { %v1902_v44 = vld [vmem:[%s16207_s21 + $0x1120] sm:$0xff] }
 0x25c   : > { %v14044_v46 = vcombine.low %v1898_v43, %v1902_v44 }
 0x25d   : > { %7806 = vmatpush1.bf16.msra.mxu0 %v13988_v27  ;;  %8134 = vmatpush1.bf16.msra.mxu1 %v13990_v28  ;;  %v14045_v27 = vcombine.high %v1898_v43, %v1902_v44  ;;  %v14047_v28 = vcombine.high %v1899_v62, %v1903_v54  ;;  %v1951_v43 = vld [vmem:[%s16207_s21 + $0x12a8] sm:$0xff] }
 0x25e   : > { %7807 = vmatprep.subr.bf16.mxu0 %v13997_v29  ;;  %8135 = vmatprep.subr.bf16.mxu1 %v13999_v34  ;;  %v1906_v29 = vld [vmem:[%s16207_s21 + $0x1140] sm:$0xff] }
 0x25f   : > { %v1910_v34 = vld [vmem:[%s16207_s21 + $0x1160] sm:$0xff] }
 0x260   : > { %v14052_v2 = vcombine.low %v1906_v29, %v1910_v34 }
 0x261   : > { %7808 = vmatpush1.bf16.msra.mxu0 %v13996_v63  ;;  %8136 = vmatpush1.bf16.msra.mxu1 %v13998_v24  ;;  %v14053_v63 = vcombine.high %v1906_v29, %v1910_v34  ;;  %v14055_v24 = vcombine.high %v1907_v39, %v1911_v40  ;;  %v1959_v29 = vld [vmem:[%s16207_s21 + $0x12e8] sm:$0xff] }
 0x262   : > { %7809 = vmatprep.subr.bf16.mxu0 %v14005_v53  ;;  %8137 = vmatprep.subr.bf16.mxu1 %v14007_v17  ;;  %v1914_v53 = vld [vmem:[%s16207_s21 + $0x1180] sm:$0xff] }
 0x263   : > { %v1918_v17 = vld [vmem:[%s16207_s21 + $0x11a0] sm:$0xff] }
 0x264   : > { %v14060_v11 = vcombine.low %v1914_v53, %v1918_v17 }
 0x265   : > { %7810 = vmatpush1.bf16.msra.mxu0 %v14004_v10  ;;  %8138 = vmatpush1.bf16.msra.mxu1 %v14006_v8  ;;  %v14061_v10 = vcombine.high %v1914_v53, %v1918_v17  ;;  %v14063_v8 = vcombine.high %v1915_v56, %v1919_v3  ;;  %v1967_v53 = vld [vmem:[%s16207_s21 + $0x1328] sm:$0xff] }
 0x266   : > { %7820 = vmatprep.subr.bf16.mxu0 %v14013_v6  ;;  %8148 = vmatprep.subr.bf16.mxu1 %v14015_v9  ;;  %v1922_v6 = vld [vmem:[%s16207_s21 + $0x11c0] sm:$0xff] }
 0x267   : > { %v1926_v9 = vld [vmem:[%s16207_s21 + $0x11e0] sm:$0xff] }
 0x268   : > { %7812 = vmatmul.mubr.bf16.vlgmr.msra.gmra.mrb[0].mxu0 %v16747_v14  ;;  %8140 = vmatmul.mubr.bf16.vlgmr.msra.gmra.mrb[0].mxu1 %v16747_v14  ;;  %v14069_v15 = vcombine.high %v1922_v6, %v1926_v9  ;;  %v14068_v26 = vcombine.low %v1922_v6, %v1926_v9  ;;  %v1975_v6 = vld [vmem:[%s16207_s21 + $0x1368] sm:$0xff] }
 0x269   : > { %7821 = vmatpush1.bf16.msra.mxu0 %v14012_v12  ;;  %8149 = vmatpush1.bf16.msra.mxu1 %v14014_v22  ;;  %v14071_v12 = vcombine.high %v1923_v7, %v1927_v13  ;;  %v1930_v22 = vld [vmem:[%s16207_s21 + $0x1200] sm:$0xff] }
 0x26a   : > { %7822 = vmatprep.subr.bf16.mxu0 %v14021_v23  ;;  %8150 = vmatprep.subr.bf16.mxu1 %v14023_v25  ;;  %v1934_v23 = vld [vmem:[%s16207_s21 + $0x1220] sm:$0xff]  ;;  %v1931_v25 = vld [vmem:[%s16207_s21 + $0x1208] sm:$0xff] }
 0x26b   : > { %7852 = vmatprep.mubr.bf16.mxu0 %v16754_v38  ;;  %8180 = vmatprep.mubr.bf16.mxu1 %v16754_v38  ;;  %v14077_v36 = vcombine.high %v1930_v22, %v1934_v23  ;;  %v14076_v50 = vcombine.low %v1930_v22, %v1934_v23  ;;  %v14078_v51 = vcombine.low %v1931_v25, %v1935_v16  ;;  %v1983_v22 = vld [vmem:[%s16207_s21 + $0x13a8] sm:$0xff] }
 0x26d   : > { %7823 = vmatpush1.bf16.msra.mxu0 %v14020_v47  ;;  %8151 = vmatpush1.bf16.msra.mxu1 %v14022_v41  ;;  %v14079_v47 = vcombine.high %v1931_v25, %v1935_v16  ;;  %v1938_v41 = vld [vmem:[%s16207_s21 + $0x1240] sm:$0xff] }
 0x26e   : > { %7824 = vmatprep.subr.bf16.mxu0 %v14029_v45  ;;  %8152 = vmatprep.subr.bf16.mxu1 %v14031_v49  ;;  %v1942_v45 = vld [vmem:[%s16207_s21 + $0x1260] sm:$0xff]  ;;  %v1939_v49 = vld [vmem:[%s16207_s21 + $0x1248] sm:$0xff] }
 0x26f   : > { %v14085_v60 = vcombine.high %v1938_v41, %v1942_v45  ;;  %v14084_v44 = vcombine.low %v1938_v41, %v1942_v45  ;;  %v14086_v62 = vcombine.low %v1939_v49, %v1943_v58  ;;  %v1991_v41 = vld [vmem:[%s16207_s21 + $0x13e8] sm:$0xff] }
 0x271   : > { %7825 = vmatpush1.bf16.msra.mxu0 %v14028_v30  ;;  %8153 = vmatpush1.bf16.msra.mxu1 %v14030_v32  ;;  %v14087_v30 = vcombine.high %v1939_v49, %v1943_v58  ;;  %v1946_v32 = vld [vmem:[%s16207_s21 + $0x1280] sm:$0xff] }
 0x272   : > { %7826 = vmatprep.subr.bf16.mxu0 %v14037_v57  ;;  %8154 = vmatprep.subr.bf16.mxu1 %v14039_v42  ;;  %v1950_v57 = vld [vmem:[%s16207_s21 + $0x12a0] sm:$0xff]  ;;  %v1947_v42 = vld [vmem:[%s16207_s21 + $0x1288] sm:$0xff] }
 0x273   : > { %v14093_v54 = vcombine.high %v1946_v32, %v1950_v57  ;;  %v14092_v34 = vcombine.low %v1946_v32, %v1950_v57  ;;  %v14094_v39 = vcombine.low %v1947_v42, %v1951_v43  ;;  %v1999_v32 = vld [vmem:[%s16207_s21 + $0x1428] sm:$0xff] }
 0x275   : > { %7827 = vmatpush1.bf16.msra.mxu0 %v14036_v19  ;;  %8155 = vmatpush1.bf16.msra.mxu1 %v14038_v31  ;;  %v14095_v19 = vcombine.high %v1947_v42, %v1951_v43  ;;  %v1954_v31 = vld [vmem:[%s16207_s21 + $0x12c0] sm:$0xff] }
 0x276   : > { %7828 = vmatprep.subr.bf16.mxu0 %v14045_v27  ;;  %8156 = vmatprep.subr.bf16.mxu1 %v14047_v28  ;;  %v1958_v27 = vld [vmem:[%s16207_s21 + $0x12e0] sm:$0xff]  ;;  %v1955_v28 = vld [vmem:[%s16207_s21 + $0x12c8] sm:$0xff] }
 0x277   : > { %v14101_v40 = vcombine.high %v1954_v31, %v1958_v27  ;;  %v14100_v17 = vcombine.low %v1954_v31, %v1958_v27  ;;  %v14102_v56 = vcombine.low %v1955_v28, %v1959_v29  ;;  %v2003_v31 = vld [vmem:[%s16207_s21 + $0x1448] sm:$0xff] }
 0x278   : > { %v2007_v27 = vld [vmem:[%s16207_s21 + $0x1468] sm:$0xff] }
 0x279   : > { %7829 = vmatpush1.bf16.msra.mxu0 %v14044_v46  ;;  %8157 = vmatpush1.bf16.msra.mxu1 %v14046_v48  ;;  %v14103_v46 = vcombine.high %v1955_v28, %v1959_v29  ;;  %v1962_v48 = vld [vmem:[%s16207_s21 + $0x1300] sm:$0xff] }
 0x27a   : > { %7830 = vmatprep.subr.bf16.mxu0 %v14053_v63  ;;  %8158 = vmatprep.subr.bf16.mxu1 %v14055_v24  ;;  %v1966_v63 = vld [vmem:[%s16207_s21 + $0x1320] sm:$0xff]  ;;  %v1963_v24 = vld [vmem:[%s16207_s21 + $0x1308] sm:$0xff] }
 0x27b   : > { %v14109_v3 = vcombine.high %v1962_v48, %v1966_v63  ;;  %v14108_v9 = vcombine.low %v1962_v48, %v1966_v63  ;;  %v14110_v7 = vcombine.low %v1963_v24, %v1967_v53  ;;  %v16830_v48 = vcombine.high %v16754_v38, %v16754_v38  ;;  %v2015_v63 = vld [vmem:[%s16207_s21 + $0x14a8] sm:$0xff] }
 0x27d   : > { %7831 = vmatpush1.bf16.msra.mxu0 %v14052_v2  ;;  %8159 = vmatpush1.bf16.msra.mxu1 %v14054_v5  ;;  %v14111_v2 = vcombine.high %v1963_v24, %v1967_v53  ;;  %v1970_v5 = vld [vmem:[%s16207_s21 + $0x1340] sm:$0xff]  ;;  %v14150_v53 = vcombine.low %v2003_v31, %v2007_v27 }
 0x27e   : > { %7832 = vmatprep.subr.bf16.mxu0 %v14061_v10  ;;  %8160 = vmatprep.subr.bf16.mxu1 %v14063_v8  ;;  %v1974_v10 = vld [vmem:[%s16207_s21 + $0x1360] sm:$0xff]  ;;  %v1971_v8 = vld [vmem:[%s16207_s21 + $0x1348] sm:$0xff] }
 0x27f   : > { %v14117_v13 = vcombine.high %v1970_v5, %v1974_v10  ;;  %v14116_v23 = vcombine.low %v1970_v5, %v1974_v10  ;;  %v14118_v25 = vcombine.low %v1971_v8, %v1975_v6  ;;  %v2019_v5 = vld [vmem:[%s16207_s21 + $0x14c8] sm:$0xff] }
 0x280   : > { %v2023_v10 = vld [vmem:[%s16207_s21 + $0x14e8] sm:$0xff] }
 0x281   : > { %7833 = vmatpush1.bf16.msra.mxu0 %v14060_v11  ;;  %8161 = vmatpush1.bf16.msra.mxu1 %v14062_v18  ;;  %v14119_v11 = vcombine.high %v1971_v8, %v1975_v6  ;;  %v1978_v18 = vld [vmem:[%s16207_s21 + $0x1380] sm:$0xff] }
 0x282   : > { %7834 = vmatprep.subr.bf16.mxu0 %v14069_v15  ;;  %8162 = vmatprep.subr.bf16.mxu1 %v14071_v12  ;;  %v1982_v15 = vld [vmem:[%s16207_s21 + $0x13a0] sm:$0xff]  ;;  %v1979_v12 = vld [vmem:[%s16207_s21 + $0x1388] sm:$0xff] }
 0x283   : > { %v14125_v16 = vcombine.high %v1978_v18, %v1982_v15  ;;  %v14124_v45 = vcombine.low %v1978_v18, %v1982_v15  ;;  %v14126_v49 = vcombine.low %v1979_v12, %v1983_v22  ;;  %v2027_v18 = vld [vmem:[%s16207_s21 + $0x1508] sm:$0xff] }
 0x284   : > { %v2031_v15 = vld [vmem:[%s16207_s21 + $0x1528] sm:$0xff] }
 0x285   : > { %7835 = vmatpush1.bf16.msra.mxu0 %v14068_v26  ;;  %8163 = vmatpush1.bf16.msra.mxu1 %v14070_v33  ;;  %v14127_v26 = vcombine.high %v1979_v12, %v1983_v22  ;;  %v1986_v33 = vld [vmem:[%s16207_s21 + $0x13c0] sm:$0xff]  ;;  %v14166_v22 = vcombine.low %v2019_v5, %v2023_v10 }
 0x286   : > { %7836 = vmatprep.subr.bf16.mxu0 %v14077_v36  ;;  %8164 = vmatprep.subr.bf16.mxu1 %v14079_v47  ;;  %v1990_v36 = vld [vmem:[%s16207_s21 + $0x13e0] sm:$0xff]  ;;  %v1987_v47 = vld [vmem:[%s16207_s21 + $0x13c8] sm:$0xff] }
 0x287   : > { %v14133_v58 = vcombine.high %v1986_v33, %v1990_v36  ;;  %v14132_v57 = vcombine.low %v1986_v33, %v1990_v36  ;;  %v14134_v42 = vcombine.low %v1987_v47, %v1991_v41  ;;  %v2035_v33 = vld [vmem:[%s16207_s21 + $0x1548] sm:$0xff] }
 0x288   : > { %v2039_v36 = vld [vmem:[%s16207_s21 + $0x1568] sm:$0xff] }
 0x289   : > { %7837 = vmatpush1.bf16.msra.mxu0 %v14076_v50  ;;  %8165 = vmatpush1.bf16.msra.mxu1 %v14078_v51  ;;  %v14135_v50 = vcombine.high %v1987_v47, %v1991_v41  ;;  %v1994_v51 = vld [vmem:[%s16207_s21 + $0x1400] sm:$0xff]  ;;  %v14174_v41 = vcombine.low %v2027_v18, %v2031_v15 }
 0x28a   : > { %7838 = vmatprep.subr.bf16.mxu0 %v14085_v60  ;;  %8166 = vmatprep.subr.bf16.mxu1 %v14087_v30  ;;  %v1998_v60 = vld [vmem:[%s16207_s21 + $0x1420] sm:$0xff]  ;;  %v1995_v30 = vld [vmem:[%s16207_s21 + $0x1408] sm:$0xff] }
 0x28b   : > { %v14141_v43 = vcombine.high %v1994_v51, %v1998_v60  ;;  %v14140_v28 = vcombine.low %v1994_v51, %v1998_v60  ;;  %v14142_v29 = vcombine.low %v1995_v30, %v1999_v32  ;;  %v2043_v51 = vld [vmem:[%s16207_s21 + $0x1588] sm:$0xff] }
 0x28c   : > { %v2047_v60 = vld [vmem:[%s16207_s21 + $0x15a8] sm:$0xff] }
 0x28d   : > { %7839 = vmatpush1.bf16.msra.mxu0 %v14084_v44  ;;  %8167 = vmatpush1.bf16.msra.mxu1 %v14086_v62  ;;  %v14143_v44 = vcombine.high %v1995_v30, %v1999_v32  ;;  %v2002_v62 = vld [vmem:[%s16207_s21 + $0x1440] sm:$0xff]  ;;  %v14182_v32 = vcombine.low %v2035_v33, %v2039_v36 }
 0x28e   : > { %7840 = vmatprep.subr.bf16.mxu0 %v14093_v54  ;;  %8168 = vmatprep.subr.bf16.mxu1 %v14095_v19  ;;  %v2006_v54 = vld [vmem:[%s16207_s21 + $0x1460] sm:$0xff]  ;;  %v16822_v19 = vrot.slane %v16737_v1, %v16444_v20  ;;  %v2011_v1 = vld [vmem:[%s16207_s21 + $0x1488] sm:$0xff] }
 0x28f   : > { %v14148_v24 = vcombine.low %v2002_v62, %v2006_v54  ;;  %v14158_v6 = vcombine.low %v2011_v1, %v2015_v63 }
 0x291   : > { %7841 = vmatpush1.bf16.msra.mxu0 %v14092_v34  ;;  %8169 = vmatpush1.bf16.msra.mxu1 %v14094_v39  ;;  %v14149_v34 = vcombine.high %v2002_v62, %v2006_v54  ;;  %v14151_v39 = vcombine.high %v2003_v31, %v2007_v27  ;;  %v2051_v62 = vld [vmem:[%s16207_s21 + $0x15c8] sm:$0xff]  ;;  %v14190_v27 = vcombine.low %v2043_v51, %v2047_v60 }
 0x292   : > { %7842 = vmatprep.subr.bf16.mxu0 %v14101_v40  ;;  %8170 = vmatprep.subr.bf16.mxu1 %v14103_v46  ;;  %v2010_v40 = vld [vmem:[%s16207_s21 + $0x1480] sm:$0xff]  ;;  %v2055_v54 = vld [vmem:[%s16207_s21 + $0x15e8] sm:$0xff] }
 0x293   : > { %v2014_v46 = vld [vmem:[%s16207_s21 + $0x14a0] sm:$0xff] }
 0x294   : > { %v14156_v8 = vcombine.low %v2010_v40, %v2014_v46 }
 0x295   : > { %7843 = vmatpush1.bf16.msra.mxu0 %v14100_v17  ;;  %8171 = vmatpush1.bf16.msra.mxu1 %v14102_v56  ;;  %v14157_v17 = vcombine.high %v2010_v40, %v2014_v46  ;;  %v14159_v56 = vcombine.high %v2011_v1, %v2015_v63  ;;  %v2059_v40 = vld [vmem:[%s16207_s21 + $0x1608] sm:$0xff]  ;;  %v14198_v63 = vcombine.low %v2051_v62, %v2055_v54 }
 0x296   : > { %7844 = vmatprep.subr.bf16.mxu0 %v14109_v3  ;;  %8172 = vmatprep.subr.bf16.mxu1 %v14111_v2  ;;  %v2018_v3 = vld [vmem:[%s16207_s21 + $0x14c0] sm:$0xff]  ;;  %v2063_v46 = vld [vmem:[%s16207_s21 + $0x1628] sm:$0xff] }
 0x297   : > { %v2022_v2 = vld [vmem:[%s16207_s21 + $0x14e0] sm:$0xff] }
 0x298   : > { %v14164_v12 = vcombine.low %v2018_v3, %v2022_v2 }
 0x299   : > { %7845 = vmatpush1.bf16.msra.mxu0 %v14108_v9  ;;  %8173 = vmatpush1.bf16.msra.mxu1 %v14110_v7  ;;  %v14165_v9 = vcombine.high %v2018_v3, %v2022_v2  ;;  %v14167_v7 = vcombine.high %v2019_v5, %v2023_v10  ;;  %v2067_v3 = vld [vmem:[%s16207_s21 + $0x1648] sm:$0xff]  ;;  %v14206_v10 = vcombine.low %v2059_v40, %v2063_v46 }
 0x29a   : > { %7846 = vmatprep.subr.bf16.mxu0 %v14117_v13  ;;  %8174 = vmatprep.subr.bf16.mxu1 %v14119_v11  ;;  %v2026_v13 = vld [vmem:[%s16207_s21 + $0x1500] sm:$0xff]  ;;  %v2071_v2 = vld [vmem:[%s16207_s21 + $0x1668] sm:$0xff] }
 0x29b   : > { %v2030_v11 = vld [vmem:[%s16207_s21 + $0x1520] sm:$0xff] }
 0x29c   : > { %v14172_v47 = vcombine.low %v2026_v13, %v2030_v11 }
 0x29d   : > { %7847 = vmatpush1.bf16.msra.mxu0 %v14116_v23  ;;  %8175 = vmatpush1.bf16.msra.mxu1 %v14118_v25  ;;  %v14173_v23 = vcombine.high %v2026_v13, %v2030_v11  ;;  %v14175_v25 = vcombine.high %v2027_v18, %v2031_v15  ;;  %v2075_v13 = vld [vmem:[%s16207_s21 + $0x1688] sm:$0xff]  ;;  %v14214_v15 = vcombine.low %v2067_v3, %v2071_v2 }
 0x29e   : > { %7848 = vmatprep.subr.bf16.mxu0 %v14125_v16  ;;  %8176 = vmatprep.subr.bf16.mxu1 %v14127_v26  ;;  %v2034_v16 = vld [vmem:[%s16207_s21 + $0x1540] sm:$0xff]  ;;  %v2079_v11 = vld [vmem:[%s16207_s21 + $0x16a8] sm:$0xff] }
 0x29f   : > { %v2038_v26 = vld [vmem:[%s16207_s21 + $0x1560] sm:$0xff] }
 0x2a0   : > { %v14180_v30 = vcombine.low %v2034_v16, %v2038_v26 }
 0x2a1   : > { %7849 = vmatpush1.bf16.msra.mxu0 %v14124_v45  ;;  %8177 = vmatpush1.bf16.msra.mxu1 %v14126_v49  ;;  %v14181_v45 = vcombine.high %v2034_v16, %v2038_v26  ;;  %v14183_v49 = vcombine.high %v2035_v33, %v2039_v36  ;;  %v2083_v16 = vld [vmem:[%s16207_s21 + $0x16c8] sm:$0xff]  ;;  %v14222_v36 = vcombine.low %v2075_v13, %v2079_v11 }
 0x2a2   : > { %7850 = vmatprep.subr.bf16.mxu0 %v14133_v58  ;;  %8178 = vmatprep.subr.bf16.mxu1 %v14135_v50  ;;  %v2042_v58 = vld [vmem:[%s16207_s21 + $0x1580] sm:$0xff]  ;;  %v2087_v26 = vld [vmem:[%s16207_s21 + $0x16e8] sm:$0xff] }
 0x2a3   : > { %v2046_v50 = vld [vmem:[%s16207_s21 + $0x15a0] sm:$0xff] }
 0x2a4   : > { %v14188_v31 = vcombine.low %v2042_v58, %v2046_v50 }
 0x2a5   : > { %7851 = vmatpush1.bf16.msra.mxu0 %v14132_v57  ;;  %8179 = vmatpush1.bf16.msra.mxu1 %v14134_v42  ;;  %v14189_v57 = vcombine.high %v2042_v58, %v2046_v50  ;;  %v14191_v42 = vcombine.high %v2043_v51, %v2047_v60  ;;  %v2091_v58 = vld [vmem:[%s16207_s21 + $0x1708] sm:$0xff]  ;;  %v14230_v60 = vcombine.low %v2083_v16, %v2087_v26 }
 0x2a6   : > { %7861 = vmatprep.subr.bf16.mxu0 %v14141_v43  ;;  %8189 = vmatprep.subr.bf16.mxu1 %v14143_v44  ;;  %v2050_v43 = vld [vmem:[%s16207_s21 + $0x15c0] sm:$0xff]  ;;  %v2095_v50 = vld [vmem:[%s16207_s21 + $0x1728] sm:$0xff] }
 0x2a7   : > { %v2054_v44 = vld [vmem:[%s16207_s21 + $0x15e0] sm:$0xff] }
 0x2a8   : > { %7853 = vmatmul.mubr.bf16.vlgmr.msra.gmra.mrb[0].mxu0 %v16822_v19  ;;  %8181 = vmatmul.mubr.bf16.vlgmr.msra.gmra.mrb[0].mxu1 %v16822_v19  ;;  %v14196_v1 = vcombine.low %v2050_v43, %v2054_v44 }
 0x2a9   : > { %7862 = vmatpush1.bf16.msra.mxu0 %v14140_v28  ;;  %8190 = vmatpush1.bf16.msra.mxu1 %v14142_v29  ;;  %v14197_v28 = vcombine.high %v2050_v43, %v2054_v44  ;;  %v14199_v29 = vcombine.high %v2051_v62, %v2055_v54  ;;  %v2099_v43 = vld [vmem:[%s16207_s21 + $0x1748] sm:$0xff]  ;;  %v14238_v54 = vcombine.low %v2091_v58, %v2095_v50 }
 0x2aa   : > { %7863 = vmatprep.subr.bf16.mxu0 %v14149_v34  ;;  %8191 = vmatprep.subr.bf16.mxu1 %v14151_v39  ;;  %v2058_v34 = vld [vmem:[%s16207_s21 + $0x1600] sm:$0xff]  ;;  %v2103_v44 = vld [vmem:[%s16207_s21 + $0x1768] sm:$0xff] }
 0x2ab   : > { %7893 = vmatprep.mubr.bf16.mxu0 %v16830_v48  ;;  %8221 = vmatprep.mubr.bf16.mxu1 %v16830_v48  ;;  %v2062_v39 = vld [vmem:[%s16207_s21 + $0x1620] sm:$0xff] }
 0x2ac   : > { %v14204_v5 = vcombine.low %v2058_v34, %v2062_v39 }
 0x2ad   : > { %7864 = vmatpush1.bf16.msra.mxu0 %v14148_v24  ;;  %8192 = vmatpush1.bf16.msra.mxu1 %v14150_v53  ;;  %v14205_v24 = vcombine.high %v2058_v34, %v2062_v39  ;;  %v14207_v53 = vcombine.high %v2059_v40, %v2063_v46  ;;  %v2107_v34 = vld [vmem:[%s16207_s21 + $0x1788] sm:$0xff]  ;;  %v14246_v46 = vcombine.low %v2099_v43, %v2103_v44 }
 0x2ae   : > { %7865 = vmatprep.subr.bf16.mxu0 %v14157_v17  ;;  %8193 = vmatprep.subr.bf16.mxu1 %v14159_v56  ;;  %v2066_v17 = vld [vmem:[%s16207_s21 + $0x1640] sm:$0xff]  ;;  %v2111_v39 = vld [vmem:[%s16207_s21 + $0x17a8] sm:$0xff] }
 0x2af   : > { %v2070_v56 = vld [vmem:[%s16207_s21 + $0x1660] sm:$0xff] }
 0x2b0   : > { %v14212_v18 = vcombine.low %v2066_v17, %v2070_v56 }
 0x2b1   : > { %7866 = vmatpush1.bf16.msra.mxu0 %v14156_v8  ;;  %8194 = vmatpush1.bf16.msra.mxu1 %v14158_v6  ;;  %v14213_v8 = vcombine.high %v2066_v17, %v2070_v56  ;;  %v14215_v6 = vcombine.high %v2067_v3, %v2071_v2  ;;  %v2471_v17 = vcombine.high %v16731_v52, %v16731_v52  ;;  %v2115_v56 = vld [vmem:[%s16207_s21 + $0x17c8] sm:$0xff] }
 0x2b2   : > { %7867 = vmatprep.subr.bf16.mxu0 %v14165_v9  ;;  %8195 = vmatprep.subr.bf16.mxu1 %v14167_v7  ;;  %v2074_v9 = vld [vmem:[%s16207_s21 + $0x1680] sm:$0xff]  ;;  %v2119_v3 = vld [vmem:[%s16207_s21 + $0x17e8] sm:$0xff] }
 0x2b3   : > { %v2078_v7 = vld [vmem:[%s16207_s21 + $0x16a0] sm:$0xff]  ;;  %v2123_v52 = vld [vmem:[%s16207_s21 + $0x1808] sm:$0xff] }
 0x2b4   : > { %v14220_v33 = vcombine.low %v2074_v9, %v2078_v7 }
 0x2b5   : > { %7868 = vmatpush1.bf16.msra.mxu0 %v14164_v12  ;;  %8196 = vmatpush1.bf16.msra.mxu1 %v14166_v22  ;;  %v14221_v12 = vcombine.high %v2074_v9, %v2078_v7  ;;  %v14223_v22 = vcombine.high %v2075_v13, %v2079_v11  ;;  %v2126_v9 = vld [vmem:[%s16207_s21 + $0x1820] sm:$0xff]  ;;  %v16895_v7 = vrot.slane %v2471_v17, %v16444_v20  ;;  %v2127_v13 = vld [vmem:[%s16207_s21 + $0x1828] sm:$0xff] }
 0x2b6   : > { %7869 = vmatprep.subr.bf16.mxu0 %v14173_v23  ;;  %8197 = vmatprep.subr.bf16.mxu1 %v14175_v25  ;;  %v2082_v23 = vld [vmem:[%s16207_s21 + $0x16c0] sm:$0xff] }
 0x2b7   : > { %v2086_v25 = vld [vmem:[%s16207_s21 + $0x16e0] sm:$0xff] }
 0x2b8   : > { %v14228_v51 = vcombine.low %v2082_v23, %v2086_v25  ;;  %v2162_v17 = vld [vmem:[%s16207_s21 + $0x1940] sm:$0xff] }
 0x2b9   : > { %7870 = vmatpush1.bf16.msra.mxu0 %v14172_v47  ;;  %8198 = vmatpush1.bf16.msra.mxu1 %v14174_v41  ;;  %v14229_v47 = vcombine.high %v2082_v23, %v2086_v25  ;;  %v14231_v41 = vcombine.high %v2083_v16, %v2087_v26  ;;  %v2134_v23 = vld [vmem:[%s16207_s21 + $0x1860] sm:$0xff]  ;;  %v2487_v25 = vcombine.high %v16895_v7, %v16895_v7  ;;  %v2131_v26 = vld [vmem:[%s16207_s21 + $0x1848] sm:$0xff] }
 0x2ba   : > { %7871 = vmatprep.subr.bf16.mxu0 %v14181_v45  ;;  %8199 = vmatprep.subr.bf16.mxu1 %v14183_v49  ;;  %v2090_v45 = vld [vmem:[%s16207_s21 + $0x1700] sm:$0xff]  ;;  %v16905_v16 = vcombine.high %v16822_v19, %v16822_v19 }
 0x2bb   : > { %v2094_v49 = vld [vmem:[%s16207_s21 + $0x1720] sm:$0xff] }
 0x2bc   : > { %v14236_v62 = vcombine.low %v2090_v45, %v2094_v49 }
 0x2bd   : > { %7872 = vmatpush1.bf16.msra.mxu0 %v14180_v30  ;;  %8200 = vmatpush1.bf16.msra.mxu1 %v14182_v32  ;;  %v14237_v30 = vcombine.high %v2090_v45, %v2094_v49  ;;  %v14239_v32 = vcombine.high %v2091_v58, %v2095_v50  ;;  %v2138_v49 = vld [vmem:[%s16207_s21 + $0x1880] sm:$0xff]  ;;  %v16912_v50 = vrot.slane %v2487_v25, %v16444_v20 }
 0x2be   : > { %7873 = vmatprep.subr.bf16.mxu0 %v14189_v57  ;;  %8201 = vmatprep.subr.bf16.mxu1 %v14191_v42  ;;  %v2098_v57 = vld [vmem:[%s16207_s21 + $0x1740] sm:$0xff] }
 0x2bf   : > { %v2102_v42 = vld [vmem:[%s16207_s21 + $0x1760] sm:$0xff] }
 0x2c0   : > { %v14244_v40 = vcombine.low %v2098_v57, %v2102_v42  ;;  %v2142_v58 = vld [vmem:[%s16207_s21 + $0x18a0] sm:$0xff] }
 0x2c1   : > { %7874 = vmatpush1.bf16.msra.mxu0 %v14188_v31  ;;  %8202 = vmatpush1.bf16.msra.mxu1 %v14190_v27  ;;  %v14245_v31 = vcombine.high %v2098_v57, %v2102_v42  ;;  %v14247_v27 = vcombine.high %v2099_v43, %v2103_v44  ;;  %v14285_v57 = vcombine.high %v2138_v49, %v2142_v58  ;;  %v2146_v43 = vld [vmem:[%s16207_s21 + $0x18c0] sm:$0xff] }
 0x2c2   : > { %7875 = vmatprep.subr.bf16.mxu0 %v14197_v28  ;;  %8203 = vmatprep.subr.bf16.mxu1 %v14199_v29  ;;  %v2106_v28 = vld [vmem:[%s16207_s21 + $0x1780] sm:$0xff] }
 0x2c3   : > { %v2110_v29 = vld [vmem:[%s16207_s21 + $0x17a0] sm:$0xff] }
 0x2c4   : > { %v14252_v2 = vcombine.low %v2106_v28, %v2110_v29  ;;  %v2150_v44 = vld [vmem:[%s16207_s21 + $0x18e0] sm:$0xff] }
 0x2c5   : > { %7876 = vmatpush1.bf16.msra.mxu0 %v14196_v1  ;;  %8204 = vmatpush1.bf16.msra.mxu1 %v14198_v63  ;;  %v14253_v1 = vcombine.high %v2106_v28, %v2110_v29  ;;  %v14255_v63 = vcombine.high %v2107_v34, %v2111_v39  ;;  %v14293_v28 = vcombine.high %v2146_v43, %v2150_v44  ;;  %v2182_v25 = vld [vmem:[%s16207_s21 + $0x19e0] sm:$0xff] }
 0x2c6   : > { %7877 = vmatprep.subr.bf16.mxu0 %v14205_v24  ;;  %8205 = vmatprep.subr.bf16.mxu1 %v14207_v53  ;;  %v2114_v24 = vld [vmem:[%s16207_s21 + $0x17c0] sm:$0xff] }
 0x2c7   : > { %v2118_v53 = vld [vmem:[%s16207_s21 + $0x17e0] sm:$0xff] }
 0x2c8   : > { %v14260_v11 = vcombine.low %v2114_v24, %v2118_v53 }
 0x2c9   : > { %7878 = vmatpush1.bf16.msra.mxu0 %v14204_v5  ;;  %8206 = vmatpush1.bf16.msra.mxu1 %v14206_v10  ;;  %v14254_v5 = vcombine.low %v2107_v34, %v2111_v39  ;;  %v14261_v10 = vcombine.high %v2114_v24, %v2118_v53  ;;  %v2154_v34 = vld [vmem:[%s16207_s21 + $0x1900] sm:$0xff] }
 0x2ca   : > { %7879 = vmatprep.subr.bf16.mxu0 %v14213_v8  ;;  %8207 = vmatprep.subr.bf16.mxu1 %v14215_v6  ;;  %v14263_v8 = vcombine.high %v2115_v56, %v2119_v3  ;;  %v2122_v6 = vld [vmem:[%s16207_s21 + $0x1800] sm:$0xff] }
 0x2cb   : > { %v2158_v39 = vld [vmem:[%s16207_s21 + $0x1920] sm:$0xff] }
 0x2cc   : > { %v14301_v24 = vcombine.high %v2154_v34, %v2158_v39 }
 0x2cd   : > { %7880 = vmatpush1.bf16.msra.mxu0 %v14212_v18  ;;  %8208 = vmatpush1.bf16.msra.mxu1 %v14214_v15  ;;  %v14262_v18 = vcombine.low %v2115_v56, %v2119_v3  ;;  %v14269_v15 = vcombine.high %v2122_v6, %v2126_v9  ;;  %v2166_v56 = vld [vmem:[%s16207_s21 + $0x1960] sm:$0xff]  ;;  %v2163_v3 = vld [vmem:[%s16207_s21 + $0x1948] sm:$0xff] }
 0x2ce   : > { %7881 = vmatprep.subr.bf16.mxu0 %v14221_v12  ;;  %8209 = vmatprep.subr.bf16.mxu1 %v14223_v22  ;;  %v14271_v12 = vcombine.high %v2123_v52, %v2127_v13  ;;  %v2130_v22 = vld [vmem:[%s16207_s21 + $0x1840] sm:$0xff] }
 0x2d1   : > { %7882 = vmatpush1.bf16.msra.mxu0 %v14220_v33  ;;  %8210 = vmatpush1.bf16.msra.mxu1 %v14222_v36  ;;  %v2135_v33 = vld [vmem:[%s16207_s21 + $0x1868] sm:$0xff]  ;;  %v14268_v36 = vcombine.low %v2122_v6, %v2126_v9  ;;  %v2170_v9 = vld [vmem:[%s16207_s21 + $0x1980] sm:$0xff] }
 0x2d2   : > { %7883 = vmatprep.subr.bf16.mxu0 %v14229_v47  ;;  %8211 = vmatprep.subr.bf16.mxu1 %v14231_v41  ;;  %v14270_v47 = vcombine.low %v2123_v52, %v2127_v13  ;;  %v14277_v41 = vcombine.high %v2130_v22, %v2134_v23  ;;  %v14279_v45 = vcombine.high %v2131_v26, %v2135_v33  ;;  %v2174_v52 = vld [vmem:[%s16207_s21 + $0x19a0] sm:$0xff]  ;;  %v2171_v13 = vld [vmem:[%s16207_s21 + $0x1988] sm:$0xff] }
 0x2d5   : > { %7884 = vmatpush1.bf16.msra.mxu0 %v14228_v51  ;;  %8212 = vmatpush1.bf16.msra.mxu1 %v14230_v60  ;;  %v2139_v51 = vld [vmem:[%s16207_s21 + $0x1888] sm:$0xff] }
 0x2d6   : > { %7885 = vmatprep.subr.bf16.mxu0 %v14237_v30  ;;  %8213 = vmatprep.subr.bf16.mxu1 %v14239_v32  ;;  %v2143_v60 = vld [vmem:[%s16207_s21 + $0x18a8] sm:$0xff]  ;;  %v14276_v30 = vcombine.low %v2130_v22, %v2134_v23  ;;  %v14278_v32 = vcombine.low %v2131_v26, %v2135_v33  ;;  %v2178_v23 = vld [vmem:[%s16207_s21 + $0x19c0] sm:$0xff] }
 0x2d7   : > { %v14287_v42 = vcombine.high %v2139_v51, %v2143_v60  ;;  %v2179_v26 = vld [vmem:[%s16207_s21 + $0x19c8] sm:$0xff] }
 0x2d8   : > { %v2183_v33 = vld [vmem:[%s16207_s21 + $0x19e8] sm:$0xff] }
 0x2d9   : > { %7886 = vmatpush1.bf16.msra.mxu0 %v14236_v62  ;;  %8214 = vmatpush1.bf16.msra.mxu1 %v14238_v54  ;;  %v2147_v62 = vld [vmem:[%s16207_s21 + $0x18c8] sm:$0xff] }
 0x2da   : > { %7887 = vmatprep.subr.bf16.mxu0 %v14245_v31  ;;  %8215 = vmatprep.subr.bf16.mxu1 %v14247_v27  ;;  %v2151_v54 = vld [vmem:[%s16207_s21 + $0x18e8] sm:$0xff]  ;;  %v14284_v31 = vcombine.low %v2138_v49, %v2142_v58  ;;  %v14286_v27 = vcombine.low %v2139_v51, %v2143_v60  ;;  %v2186_v49 = vld [vmem:[%s16207_s21 + $0x1a00] sm:$0xff] }
 0x2db   : > { %v14295_v29 = vcombine.high %v2147_v62, %v2151_v54  ;;  %v2190_v58 = vld [vmem:[%s16207_s21 + $0x1a20] sm:$0xff]  ;;  %v2187_v51 = vld [vmem:[%s16207_s21 + $0x1a08] sm:$0xff] }
 0x2dc   : > { %v2191_v60 = vld [vmem:[%s16207_s21 + $0x1a28] sm:$0xff] }
 0x2dd   : > { %7888 = vmatpush1.bf16.msra.mxu0 %v14244_v40  ;;  %8216 = vmatpush1.bf16.msra.mxu1 %v14246_v46  ;;  %v2155_v40 = vld [vmem:[%s16207_s21 + $0x1908] sm:$0xff] }
 0x2de   : > { %7889 = vmatprep.subr.bf16.mxu0 %v14253_v1  ;;  %8217 = vmatprep.subr.bf16.mxu1 %v14255_v63  ;;  %v2159_v46 = vld [vmem:[%s16207_s21 + $0x1928] sm:$0xff]  ;;  %v14292_v1 = vcombine.low %v2146_v43, %v2150_v44  ;;  %v14294_v63 = vcombine.low %v2147_v62, %v2151_v54  ;;  %v2194_v43 = vld [vmem:[%s16207_s21 + $0x1a40] sm:$0xff] }
 0x2df   : > { %v14303_v53 = vcombine.high %v2155_v40, %v2159_v46  ;;  %v2198_v44 = vld [vmem:[%s16207_s21 + $0x1a60] sm:$0xff]  ;;  %v2195_v62 = vld [vmem:[%s16207_s21 + $0x1a48] sm:$0xff] }
 0x2e0   : > { %v2199_v54 = vld [vmem:[%s16207_s21 + $0x1a68] sm:$0xff] }
 0x2e1   : > { %7890 = vmatpush1.bf16.msra.mxu0 %v14252_v2  ;;  %8218 = vmatpush1.bf16.msra.mxu1 %v14254_v5  ;;  %v2167_v2 = vld [vmem:[%s16207_s21 + $0x1968] sm:$0xff]  ;;  %v14300_v5 = vcombine.low %v2154_v34, %v2158_v39  ;;  %v2202_v34 = vld [vmem:[%s16207_s21 + $0x1a80] sm:$0xff] }
 0x2e2   : > { %7891 = vmatprep.subr.bf16.mxu0 %v14261_v10  ;;  %8219 = vmatprep.subr.bf16.mxu1 %v14263_v8  ;;  %v14302_v10 = vcombine.low %v2155_v40, %v2159_v46  ;;  %v14309_v8 = vcombine.high %v2162_v17, %v2166_v56  ;;  %v14311_v6 = vcombine.high %v2163_v3, %v2167_v2  ;;  %v2206_v39 = vld [vmem:[%s16207_s21 + $0x1aa0] sm:$0xff]  ;;  %v2203_v40 = vld [vmem:[%s16207_s21 + $0x1a88] sm:$0xff] }
 0x2e3   : > { %v2207_v46 = vld [vmem:[%s16207_s21 + $0x1aa8] sm:$0xff] }
 0x2e5   : > { %7892 = vmatpush1.bf16.msra.mxu0 %v14260_v11  ;;  %8220 = vmatpush1.bf16.msra.mxu1 %v14262_v18  ;;  %v2175_v11 = vld [vmem:[%s16207_s21 + $0x19a8] sm:$0xff]  ;;  %v14308_v18 = vcombine.low %v2162_v17, %v2166_v56  ;;  %v2210_v17 = vld [vmem:[%s16207_s21 + $0x1ac0] sm:$0xff] }
 0x2e6   : > { %7902 = vmatprep.subr.bf16.mxu0 %v14269_v15  ;;  %8230 = vmatprep.subr.bf16.mxu1 %v14271_v12  ;;  %v14310_v15 = vcombine.low %v2163_v3, %v2167_v2  ;;  %v14317_v12 = vcombine.high %v2170_v9, %v2174_v52  ;;  %v14319_v22 = vcombine.high %v2171_v13, %v2175_v11  ;;  %v2214_v56 = vld [vmem:[%s16207_s21 + $0x1ae0] sm:$0xff]  ;;  %v2211_v3 = vld [vmem:[%s16207_s21 + $0x1ac8] sm:$0xff] }
 0x2e7   : > { %v2215_v2 = vld [vmem:[%s16207_s21 + $0x1ae8] sm:$0xff] }
 0x2e8   : > { %7894 = vmatmul.mubr.bf16.vlgmr.msra.gmra.mrb[0].mxu0 %v16905_v16  ;;  %8222 = vmatmul.mubr.bf16.vlgmr.msra.gmra.mrb[0].mxu1 %v16905_v16 }
 0x2e9   : > { %7903 = vmatpush1.bf16.msra.mxu0 %v14268_v36  ;;  %8231 = vmatpush1.bf16.msra.mxu1 %v14270_v47  ;;  %v14316_v36 = vcombine.low %v2170_v9, %v2174_v52  ;;  %v14318_v47 = vcombine.low %v2171_v13, %v2175_v11  ;;  %v2218_v9 = vld [vmem:[%s16207_s21 + $0x1b00] sm:$0xff]  ;;  %v2219_v13 = vld [vmem:[%s16207_s21 + $0x1b08] sm:$0xff] }
 0x2ea   : > { %7904 = vmatprep.subr.bf16.mxu0 %v14277_v41  ;;  %8232 = vmatprep.subr.bf16.mxu1 %v14279_v45  ;;  %v14325_v41 = vcombine.high %v2178_v23, %v2182_v25  ;;  %v14327_v45 = vcombine.high %v2179_v26, %v2183_v33  ;;  %v2222_v52 = vld [vmem:[%s16207_s21 + $0x1b20] sm:$0xff]  ;;  %v2223_v11 = vld [vmem:[%s16207_s21 + $0x1b28] sm:$0xff] }
 0x2eb   : > { %7934 = vmatprep.mubr.bf16.mxu0 %v16912_v50  ;;  %8262 = vmatprep.mubr.bf16.mxu1 %v16912_v50 }
 0x2ed   : > { %7905 = vmatpush1.bf16.msra.mxu0 %v14276_v30  ;;  %8233 = vmatpush1.bf16.msra.mxu1 %v14278_v32  ;;  %v14324_v30 = vcombine.low %v2178_v23, %v2182_v25  ;;  %v14326_v32 = vcombine.low %v2179_v26, %v2183_v33  ;;  %v2226_v23 = vld [vmem:[%s16207_s21 + $0x1b40] sm:$0xff]  ;;  %v2227_v26 = vld [vmem:[%s16207_s21 + $0x1b48] sm:$0xff] }
 0x2ee   : > { %7906 = vmatprep.subr.bf16.mxu0 %v14285_v57  ;;  %8234 = vmatprep.subr.bf16.mxu1 %v14287_v42  ;;  %v14333_v57 = vcombine.high %v2186_v49, %v2190_v58  ;;  %v14335_v42 = vcombine.high %v2187_v51, %v2191_v60  ;;  %v2230_v25 = vld [vmem:[%s16207_s21 + $0x1b60] sm:$0xff]  ;;  %v2231_v33 = vld [vmem:[%s16207_s21 + $0x1b68] sm:$0xff] }
 0x2f1   : > { %7907 = vmatpush1.bf16.msra.mxu0 %v14284_v31  ;;  %8235 = vmatpush1.bf16.msra.mxu1 %v14286_v27  ;;  %v14332_v31 = vcombine.low %v2186_v49, %v2190_v58  ;;  %v14334_v27 = vcombine.low %v2187_v51, %v2191_v60  ;;  %v2234_v49 = vld [vmem:[%s16207_s21 + $0x1b80] sm:$0xff]  ;;  %v2235_v51 = vld [vmem:[%s16207_s21 + $0x1b88] sm:$0xff] }
 0x2f2   : > { %7908 = vmatprep.subr.bf16.mxu0 %v14293_v28  ;;  %8236 = vmatprep.subr.bf16.mxu1 %v14295_v29  ;;  %v14341_v28 = vcombine.high %v2194_v43, %v2198_v44  ;;  %v14343_v29 = vcombine.high %v2195_v62, %v2199_v54  ;;  %v2238_v58 = vld [vmem:[%s16207_s21 + $0x1ba0] sm:$0xff]  ;;  %v2239_v60 = vld [vmem:[%s16207_s21 + $0x1ba8] sm:$0xff] }
 0x2f5   : > { %7909 = vmatpush1.bf16.msra.mxu0 %v14292_v1  ;;  %8237 = vmatpush1.bf16.msra.mxu1 %v14294_v63  ;;  %v14340_v1 = vcombine.low %v2194_v43, %v2198_v44  ;;  %v14342_v63 = vcombine.low %v2195_v62, %v2199_v54  ;;  %v2242_v43 = vld [vmem:[%s16207_s21 + $0x1bc0] sm:$0xff]  ;;  %v2243_v62 = vld [vmem:[%s16207_s21 + $0x1bc8] sm:$0xff] }
 0x2f6   : > { %7910 = vmatprep.subr.bf16.mxu0 %v14301_v24  ;;  %8238 = vmatprep.subr.bf16.mxu1 %v14303_v53  ;;  %v14349_v24 = vcombine.high %v2202_v34, %v2206_v39  ;;  %v14351_v53 = vcombine.high %v2203_v40, %v2207_v46  ;;  %v2246_v44 = vld [vmem:[%s16207_s21 + $0x1be0] sm:$0xff]  ;;  %v2247_v54 = vld [vmem:[%s16207_s21 + $0x1be8] sm:$0xff] }
 0x2f9   : > { %7911 = vmatpush1.bf16.msra.mxu0 %v14300_v5  ;;  %8239 = vmatpush1.bf16.msra.mxu1 %v14302_v10  ;;  %v14348_v5 = vcombine.low %v2202_v34, %v2206_v39  ;;  %v14350_v10 = vcombine.low %v2203_v40, %v2207_v46  ;;  %v2250_v34 = vld [vmem:[%s16207_s21 + $0x1c00] sm:$0xff]  ;;  %v2251_v40 = vld [vmem:[%s16207_s21 + $0x1c08] sm:$0xff] }
 0x2fa   : > { %7912 = vmatprep.subr.bf16.mxu0 %v14309_v8  ;;  %8240 = vmatprep.subr.bf16.mxu1 %v14311_v6  ;;  %v14357_v8 = vcombine.high %v2210_v17, %v2214_v56  ;;  %v14359_v6 = vcombine.high %v2211_v3, %v2215_v2  ;;  %v2254_v39 = vld [vmem:[%s16207_s21 + $0x1c20] sm:$0xff]  ;;  %v2255_v46 = vld [vmem:[%s16207_s21 + $0x1c28] sm:$0xff] }
 0x2fd   : > { %7913 = vmatpush1.bf16.msra.mxu0 %v14308_v18  ;;  %8241 = vmatpush1.bf16.msra.mxu1 %v14310_v15  ;;  %v14356_v18 = vcombine.low %v2210_v17, %v2214_v56  ;;  %v14358_v15 = vcombine.low %v2211_v3, %v2215_v2  ;;  %v2258_v17 = vld [vmem:[%s16207_s21 + $0x1c40] sm:$0xff]  ;;  %v16980_v3 = vrot.slane %v16895_v7, %v16444_v20  ;;  %v2259_v2 = vld [vmem:[%s16207_s21 + $0x1c48] sm:$0xff] }
 0x2fe   : > { %7914 = vmatprep.subr.bf16.mxu0 %v14317_v12  ;;  %8242 = vmatprep.subr.bf16.mxu1 %v14319_v22  ;;  %v14365_v12 = vcombine.high %v2218_v9, %v2222_v52  ;;  %v14367_v22 = vcombine.high %v2219_v13, %v2223_v11  ;;  %v2262_v56 = vld [vmem:[%s16207_s21 + $0x1c60] sm:$0xff]  ;;  %v2267_v20 = vld [vmem:[%s16207_s21 + $0x1c88] sm:$0xff] }
 0x2ff   : > { %v2271_v7 = vld [vmem:[%s16207_s21 + $0x1ca8] sm:$0xff] }
 0x301   : > { %7915 = vmatpush1.bf16.msra.mxu0 %v14316_v36  ;;  %8243 = vmatpush1.bf16.msra.mxu1 %v14318_v47  ;;  %v14364_v36 = vcombine.low %v2218_v9, %v2222_v52  ;;  %v14366_v47 = vcombine.low %v2219_v13, %v2223_v11  ;;  %v2266_v52 = vld [vmem:[%s16207_s21 + $0x1c80] sm:$0xff]  ;;  %v16988_v11 = vcombine.high %v16912_v50, %v16912_v50 }
 0x302   : > { %7916 = vmatprep.subr.bf16.mxu0 %v14325_v41  ;;  %8244 = vmatprep.subr.bf16.mxu1 %v14327_v45  ;;  %v14373_v41 = vcombine.high %v2226_v23, %v2230_v25  ;;  %v14375_v45 = vcombine.high %v2227_v26, %v2231_v33  ;;  %v2270_v13 = vld [vmem:[%s16207_s21 + $0x1ca0] sm:$0xff] }
 0x305   : > { %7917 = vmatpush1.bf16.msra.mxu0 %v14324_v30  ;;  %8245 = vmatpush1.bf16.msra.mxu1 %v14326_v32  ;;  %v14372_v30 = vcombine.low %v2226_v23, %v2230_v25  ;;  %v14374_v32 = vcombine.low %v2227_v26, %v2231_v33  ;;  %v2274_v23 = vld [vmem:[%s16207_s21 + $0x1cc0] sm:$0xff]  ;;  %v2275_v26 = vld [vmem:[%s16207_s21 + $0x1cc8] sm:$0xff] }
 0x306   : > { %7918 = vmatprep.subr.bf16.mxu0 %v14333_v57  ;;  %8246 = vmatprep.subr.bf16.mxu1 %v14335_v42  ;;  %v14381_v57 = vcombine.high %v2234_v49, %v2238_v58  ;;  %v14383_v42 = vcombine.high %v2235_v51, %v2239_v60  ;;  %v2278_v25 = vld [vmem:[%s16207_s21 + $0x1ce0] sm:$0xff]  ;;  %v2279_v33 = vld [vmem:[%s16207_s21 + $0x1ce8] sm:$0xff] }
 0x309   : > { %7919 = vmatpush1.bf16.msra.mxu0 %v14332_v31  ;;  %8247 = vmatpush1.bf16.msra.mxu1 %v14334_v27  ;;  %v14380_v31 = vcombine.low %v2234_v49, %v2238_v58  ;;  %v14382_v27 = vcombine.low %v2235_v51, %v2239_v60  ;;  %v2282_v49 = vld [vmem:[%s16207_s21 + $0x1d00] sm:$0xff]  ;;  %v2283_v51 = vld [vmem:[%s16207_s21 + $0x1d08] sm:$0xff] }
 0x30a   : > { %7920 = vmatprep.subr.bf16.mxu0 %v14341_v28  ;;  %8248 = vmatprep.subr.bf16.mxu1 %v14343_v29  ;;  %v14389_v28 = vcombine.high %v2242_v43, %v2246_v44  ;;  %v14391_v29 = vcombine.high %v2243_v62, %v2247_v54  ;;  %v2286_v58 = vld [vmem:[%s16207_s21 + $0x1d20] sm:$0xff]  ;;  %v2287_v60 = vld [vmem:[%s16207_s21 + $0x1d28] sm:$0xff] }
 0x30d   : > { %7921 = vmatpush1.bf16.msra.mxu0 %v14340_v1  ;;  %8249 = vmatpush1.bf16.msra.mxu1 %v14342_v63  ;;  %v14388_v1 = vcombine.low %v2242_v43, %v2246_v44  ;;  %v14390_v63 = vcombine.low %v2243_v62, %v2247_v54  ;;  %v2290_v43 = vld [vmem:[%s16207_s21 + $0x1d40] sm:$0xff]  ;;  %v2291_v62 = vld [vmem:[%s16207_s21 + $0x1d48] sm:$0xff] }
 0x30e   : > { %7922 = vmatprep.subr.bf16.mxu0 %v14349_v24  ;;  %8250 = vmatprep.subr.bf16.mxu1 %v14351_v53  ;;  %v14397_v24 = vcombine.high %v2250_v34, %v2254_v39  ;;  %v14399_v53 = vcombine.high %v2251_v40, %v2255_v46  ;;  %v2294_v44 = vld [vmem:[%s16207_s21 + $0x1d60] sm:$0xff]  ;;  %v2295_v54 = vld [vmem:[%s16207_s21 + $0x1d68] sm:$0xff] }
 0x311   : > { %7923 = vmatpush1.bf16.msra.mxu0 %v14348_v5  ;;  %8251 = vmatpush1.bf16.msra.mxu1 %v14350_v10  ;;  %v2263_v5 = vld [vmem:[%s16207_s21 + $0x1c68] sm:$0xff]  ;;  %v14396_v10 = vcombine.low %v2250_v34, %v2254_v39  ;;  %v2298_v34 = vld [vmem:[%s16207_s21 + $0x1d80] sm:$0xff] }
 0x312   : > { %7924 = vmatprep.subr.bf16.mxu0 %v14357_v8  ;;  %8252 = vmatprep.subr.bf16.mxu1 %v14359_v6  ;;  %v14398_v8 = vcombine.low %v2251_v40, %v2255_v46  ;;  %v14405_v6 = vcombine.high %v2258_v17, %v2262_v56  ;;  %v14407_v9 = vcombine.high %v2259_v2, %v2263_v5  ;;  %v2302_v39 = vld [vmem:[%s16207_s21 + $0x1da0] sm:$0xff]  ;;  %v2299_v40 = vld [vmem:[%s16207_s21 + $0x1d88] sm:$0xff] }
 0x313   : > { %v2303_v46 = vld [vmem:[%s16207_s21 + $0x1da8] sm:$0xff] }
 0x315   : > { %7925 = vmatpush1.bf16.msra.mxu0 %v14356_v18  ;;  %8253 = vmatpush1.bf16.msra.mxu1 %v14358_v15  ;;  %v14404_v18 = vcombine.low %v2258_v17, %v2262_v56  ;;  %v14406_v15 = vcombine.low %v2259_v2, %v2263_v5  ;;  %v2306_v17 = vld [vmem:[%s16207_s21 + $0x1dc0] sm:$0xff]  ;;  %v2307_v2 = vld [vmem:[%s16207_s21 + $0x1dc8] sm:$0xff] }
 0x316   : > { %7926 = vmatprep.subr.bf16.mxu0 %v14365_v12  ;;  %8254 = vmatprep.subr.bf16.mxu1 %v14367_v22  ;;  %v14413_v12 = vcombine.high %v2266_v52, %v2270_v13  ;;  %v14415_v22 = vcombine.high %v2267_v20, %v2271_v7  ;;  %v2310_v56 = vld [vmem:[%s16207_s21 + $0x1de0] sm:$0xff]  ;;  %v2311_v5 = vld [vmem:[%s16207_s21 + $0x1de8] sm:$0xff] }
 0x319   : > { %7927 = vmatpush1.bf16.msra.mxu0 %v14364_v36  ;;  %8255 = vmatpush1.bf16.msra.mxu1 %v14366_v47  ;;  %v14412_v36 = vcombine.low %v2266_v52, %v2270_v13  ;;  %v14414_v47 = vcombine.low %v2267_v20, %v2271_v7  ;;  %v2314_v52 = vld [vmem:[%s16207_s21 + $0x1e00] sm:$0xff]  ;;  %v2315_v20 = vld [vmem:[%s16207_s21 + $0x1e08] sm:$0xff] }
 0x31a   : > { %7928 = vmatprep.subr.bf16.mxu0 %v14373_v41  ;;  %8256 = vmatprep.subr.bf16.mxu1 %v14375_v45  ;;  %v14421_v41 = vcombine.high %v2274_v23, %v2278_v25  ;;  %v14423_v45 = vcombine.high %v2275_v26, %v2279_v33  ;;  %v2318_v13 = vld [vmem:[%s16207_s21 + $0x1e20] sm:$0xff]  ;;  %v2319_v7 = vld [vmem:[%s16207_s21 + $0x1e28] sm:$0xff] }
 0x31d   : > { %7929 = vmatpush1.bf16.msra.mxu0 %v14372_v30  ;;  %8257 = vmatpush1.bf16.msra.mxu1 %v14374_v32  ;;  %v14420_v30 = vcombine.low %v2274_v23, %v2278_v25  ;;  %v14422_v32 = vcombine.low %v2275_v26, %v2279_v33  ;;  %v2322_v23 = vld [vmem:[%s16207_s21 + $0x1e40] sm:$0xff]  ;;  %v2323_v26 = vld [vmem:[%s16207_s21 + $0x1e48] sm:$0xff] }
 0x31e   : > { %7930 = vmatprep.subr.bf16.mxu0 %v14381_v57  ;;  %8258 = vmatprep.subr.bf16.mxu1 %v14383_v42  ;;  %v14429_v57 = vcombine.high %v2282_v49, %v2286_v58  ;;  %v14431_v42 = vcombine.high %v2283_v51, %v2287_v60  ;;  %v2326_v25 = vld [vmem:[%s16207_s21 + $0x1e60] sm:$0xff]  ;;  %v2327_v33 = vld [vmem:[%s16207_s21 + $0x1e68] sm:$0xff] }
 0x321   : > { %7931 = vmatpush1.bf16.msra.mxu0 %v14380_v31  ;;  %8259 = vmatpush1.bf16.msra.mxu1 %v14382_v27  ;;  %v14428_v31 = vcombine.low %v2282_v49, %v2286_v58  ;;  %v14430_v27 = vcombine.low %v2283_v51, %v2287_v60  ;;  %v2330_v49 = vld [vmem:[%s16207_s21 + $0x1e80] sm:$0xff]  ;;  %v2331_v51 = vld [vmem:[%s16207_s21 + $0x1e88] sm:$0xff] }
 0x322   : > { %7932 = vmatprep.subr.bf16.mxu0 %v14389_v28  ;;  %8260 = vmatprep.subr.bf16.mxu1 %v14391_v29  ;;  %v14437_v28 = vcombine.high %v2290_v43, %v2294_v44  ;;  %v14439_v29 = vcombine.high %v2291_v62, %v2295_v54  ;;  %v2334_v58 = vld [vmem:[%s16207_s21 + $0x1ea0] sm:$0xff]  ;;  %v2335_v60 = vld [vmem:[%s16207_s21 + $0x1ea8] sm:$0xff] }
 0x325   : > { %7933 = vmatpush1.bf16.msra.mxu0 %v14388_v1  ;;  %8261 = vmatpush1.bf16.msra.mxu1 %v14390_v63  ;;  %v14436_v1 = vcombine.low %v2290_v43, %v2294_v44  ;;  %v14438_v63 = vcombine.low %v2291_v62, %v2295_v54  ;;  %v2338_v43 = vld [vmem:[%s16207_s21 + $0x1ec0] sm:$0xff]  ;;  %v2339_v62 = vld [vmem:[%s16207_s21 + $0x1ec8] sm:$0xff] }
 0x326   : > { %7943 = vmatprep.subr.bf16.mxu0 %v14397_v24  ;;  %8271 = vmatprep.subr.bf16.mxu1 %v14399_v53  ;;  %v14445_v24 = vcombine.high %v2298_v34, %v2302_v39  ;;  %v14447_v53 = vcombine.high %v2299_v40, %v2303_v46  ;;  %v2342_v44 = vld [vmem:[%s16207_s21 + $0x1ee0] sm:$0xff]  ;;  %v2343_v54 = vld [vmem:[%s16207_s21 + $0x1ee8] sm:$0xff] }
 0x328   : > { %7935 = vmatmul.mubr.bf16.vlgmr.msra.gmra.mrb[0].mxu0 %v16980_v3  ;;  %8263 = vmatmul.mubr.bf16.vlgmr.msra.gmra.mrb[0].mxu1 %v16980_v3 }
 0x329   : > { %7944 = vmatpush1.bf16.msra.mxu0 %v14396_v10  ;;  %8272 = vmatpush1.bf16.msra.mxu1 %v14398_v8  ;;  %v14444_v10 = vcombine.low %v2298_v34, %v2302_v39  ;;  %v14446_v8 = vcombine.low %v2299_v40, %v2303_v46  ;;  %v2346_v34 = vld [vmem:[%s16207_s21 + $0x1f00] sm:$0xff]  ;;  %v2347_v40 = vld [vmem:[%s16207_s21 + $0x1f08] sm:$0xff] }
 0x32a   : > { %7945 = vmatprep.subr.bf16.mxu0 %v14405_v6  ;;  %8273 = vmatprep.subr.bf16.mxu1 %v14407_v9  ;;  %v14453_v6 = vcombine.high %v2306_v17, %v2310_v56  ;;  %v14455_v9 = vcombine.high %v2307_v2, %v2311_v5  ;;  %v2350_v39 = vld [vmem:[%s16207_s21 + $0x1f20] sm:$0xff]  ;;  %v2351_v46 = vld [vmem:[%s16207_s21 + $0x1f28] sm:$0xff] }
 0x32b   : > { %7975 = vmatprep.mubr.bf16.mxu0 %v16988_v11  ;;  %8303 = vmatprep.mubr.bf16.mxu1 %v16988_v11 }
 0x32d   : > { %7946 = vmatpush1.bf16.msra.mxu0 %v14404_v18  ;;  %8274 = vmatpush1.bf16.msra.mxu1 %v14406_v15  ;;  %v14452_v18 = vcombine.low %v2306_v17, %v2310_v56  ;;  %v14454_v15 = vcombine.low %v2307_v2, %v2311_v5  ;;  %v2354_v17 = vld [vmem:[%s16207_s21 + $0x1f40] sm:$0xff]  ;;  %v2355_v2 = vld [vmem:[%s16207_s21 + $0x1f48] sm:$0xff] }
 0x32e   : > { %7947 = vmatprep.subr.bf16.mxu0 %v14413_v12  ;;  %8275 = vmatprep.subr.bf16.mxu1 %v14415_v22  ;;  %v14461_v12 = vcombine.high %v2314_v52, %v2318_v13  ;;  %v14463_v22 = vcombine.high %v2315_v20, %v2319_v7  ;;  %v2358_v56 = vld [vmem:[%s16207_s21 + $0x1f60] sm:$0xff]  ;;  %v2359_v5 = vld [vmem:[%s16207_s21 + $0x1f68] sm:$0xff] }
 0x331   : > { %7948 = vmatpush1.bf16.msra.mxu0 %v14412_v36  ;;  %8276 = vmatpush1.bf16.msra.mxu1 %v14414_v47  ;;  %v14460_v36 = vcombine.low %v2314_v52, %v2318_v13  ;;  %v14462_v47 = vcombine.low %v2315_v20, %v2319_v7  ;;  %v2362_v52 = vld [vmem:[%s16207_s21 + $0x1f80] sm:$0xff]  ;;  %v2363_v20 = vld [vmem:[%s16207_s21 + $0x1f88] sm:$0xff] }
 0x332   : > { %7949 = vmatprep.subr.bf16.mxu0 %v14421_v41  ;;  %8277 = vmatprep.subr.bf16.mxu1 %v14423_v45  ;;  %v14469_v41 = vcombine.high %v2322_v23, %v2326_v25  ;;  %v14471_v45 = vcombine.high %v2323_v26, %v2327_v33  ;;  %v2366_v13 = vld [vmem:[%s16207_s21 + $0x1fa0] sm:$0xff]  ;;  %v2367_v7 = vld [vmem:[%s16207_s21 + $0x1fa8] sm:$0xff] }
 0x335   : > { %7950 = vmatpush1.bf16.msra.mxu0 %v14420_v30  ;;  %8278 = vmatpush1.bf16.msra.mxu1 %v14422_v32  ;;  %v14468_v30 = vcombine.low %v2322_v23, %v2326_v25  ;;  %v14470_v32 = vcombine.low %v2323_v26, %v2327_v33  ;;  %v2370_v23 = vld [vmem:[%s16207_s21 + $0x1fc0] sm:$0xff]  ;;  %v2371_v26 = vld [vmem:[%s16207_s21 + $0x1fc8] sm:$0xff] }
 0x336   : > { %7951 = vmatprep.subr.bf16.mxu0 %v14429_v57  ;;  %8279 = vmatprep.subr.bf16.mxu1 %v14431_v42  ;;  %v14477_v57 = vcombine.high %v2330_v49, %v2334_v58  ;;  %v14479_v42 = vcombine.high %v2331_v51, %v2335_v60  ;;  %v2374_v25 = vld [vmem:[%s16207_s21 + $0x1fe0] sm:$0xff]  ;;  %v2375_v33 = vld [vmem:[%s16207_s21 + $0x1fe8] sm:$0xff] }
 0x339   : > { %7952 = vmatpush1.bf16.msra.mxu0 %v14428_v31  ;;  %8280 = vmatpush1.bf16.msra.mxu1 %v14430_v27  ;;  %v14476_v31 = vcombine.low %v2330_v49, %v2334_v58  ;;  %v14478_v27 = vcombine.low %v2331_v51, %v2335_v60  ;;  %v1356_v49 = vld [vmem:[%s16207_s21 + $0x10] sm:$0xff]  ;;  %v1357_v51 = vld [vmem:[%s16207_s21 + $0x18] sm:$0xff] }
 0x33a   : > { %7953 = vmatprep.subr.bf16.mxu0 %v14437_v28  ;;  %8281 = vmatprep.subr.bf16.mxu1 %v14439_v29  ;;  %v14485_v28 = vcombine.high %v2338_v43, %v2342_v44  ;;  %v14487_v29 = vcombine.high %v2339_v62, %v2343_v54  ;;  %v1360_v58 = vld [vmem:[%s16207_s21 + $0x30] sm:$0xff]  ;;  %v1361_v60 = vld [vmem:[%s16207_s21 + $0x38] sm:$0xff] }
 0x33d   : > { %7954 = vmatpush1.bf16.msra.mxu0 %v14436_v1  ;;  %8282 = vmatpush1.bf16.msra.mxu1 %v14438_v63  ;;  %v14484_v1 = vcombine.low %v2338_v43, %v2342_v44  ;;  %v14486_v63 = vcombine.low %v2339_v62, %v2343_v54  ;;  %v1364_v43 = vld [vmem:[%s16207_s21 + $0x50] sm:$0xff]  ;;  %v17056_v62 = vcombine.high %v16980_v3, %v16980_v3  ;;  %v1365_v54 = vld [vmem:[%s16207_s21 + $0x58] sm:$0xff] }
 0x33e   : > { %7955 = vmatprep.subr.bf16.mxu0 %v14445_v24  ;;  %8283 = vmatprep.subr.bf16.mxu1 %v14447_v53  ;;  %v14493_v24 = vcombine.high %v2346_v34, %v2350_v39  ;;  %v14495_v53 = vcombine.high %v2347_v40, %v2351_v46  ;;  %v1368_v44 = vld [vmem:[%s16207_s21 + $0x70] sm:$0xff] }
 0x341   : > { %7956 = vmatpush1.bf16.msra.mxu0 %v14444_v10  ;;  %8284 = vmatpush1.bf16.msra.mxu1 %v14446_v8  ;;  %v14492_v10 = vcombine.low %v2346_v34, %v2350_v39  ;;  %v14494_v8 = vcombine.low %v2347_v40, %v2351_v46  ;;  %v1372_v39 = vld [vmem:[%s16207_s21 + $0x90] sm:$0xff]  ;;  %v1373_v46 = vld [vmem:[%s16207_s21 + $0x98] sm:$0xff] }
 0x342   : > { %7957 = vmatprep.subr.bf16.mxu0 %v14453_v6  ;;  %8285 = vmatprep.subr.bf16.mxu1 %v14455_v9  ;;  %v14501_v6 = vcombine.high %v2354_v17, %v2358_v56  ;;  %v14503_v9 = vcombine.high %v2355_v2, %v2359_v5  ;;  %v1376_v40 = vld [vmem:[%s16207_s21 + $0xb0] sm:$0xff] }
 0x345   : > { %7958 = vmatpush1.bf16.msra.mxu0 %v14452_v18  ;;  %8286 = vmatpush1.bf16.msra.mxu1 %v14454_v15  ;;  %v14500_v18 = vcombine.low %v2354_v17, %v2358_v56  ;;  %v14502_v15 = vcombine.low %v2355_v2, %v2359_v5  ;;  %v1380_v56 = vld [vmem:[%s16207_s21 + $0xd0] sm:$0xff]  ;;  %v1381_v5 = vld [vmem:[%s16207_s21 + $0xd8] sm:$0xff] }
 0x346   : > { %7959 = vmatprep.subr.bf16.mxu0 %v14461_v12  ;;  %8287 = vmatprep.subr.bf16.mxu1 %v14463_v22  ;;  %v14509_v12 = vcombine.high %v2362_v52, %v2366_v13  ;;  %v14511_v22 = vcombine.high %v2363_v20, %v2367_v7  ;;  %v1384_v2 = vld [vmem:[%s16207_s21 + $0xf0] sm:$0xff] }
 0x349   : > { %7960 = vmatpush1.bf16.msra.mxu0 %v14460_v36  ;;  %8288 = vmatpush1.bf16.msra.mxu1 %v14462_v47  ;;  %v14508_v36 = vcombine.low %v2362_v52, %v2366_v13  ;;  %v14510_v47 = vcombine.low %v2363_v20, %v2367_v7  ;;  %v1388_v13 = vld [vmem:[%s16207_s21 + $0x110] sm:$0xff]  ;;  %v1389_v7 = vld [vmem:[%s16207_s21 + $0x118] sm:$0xff] }
 0x34a   : > { %7961 = vmatprep.subr.bf16.mxu0 %v14469_v41  ;;  %8289 = vmatprep.subr.bf16.mxu1 %v14471_v45  ;;  %v14517_v41 = vcombine.high %v2370_v23, %v2374_v25  ;;  %v14519_v45 = vcombine.high %v2371_v26, %v2375_v33  ;;  %v1392_v20 = vld [vmem:[%s16207_s21 + $0x130] sm:$0xff] }
 0x34d   : > { %7962 = vmatpush1.bf16.msra.mxu0 %v14468_v30  ;;  %8290 = vmatpush1.bf16.msra.mxu1 %v14470_v32  ;;  %v14516_v30 = vcombine.low %v2370_v23, %v2374_v25  ;;  %v14518_v32 = vcombine.low %v2371_v26, %v2375_v33  ;;  %v1396_v23 = vld [vmem:[%s16207_s21 + $0x150] sm:$0xff]  ;;  %v1397_v26 = vld [vmem:[%s16207_s21 + $0x158] sm:$0xff] }
 0x34e   : > { %7963 = vmatprep.subr.bf16.mxu0 %v14477_v57  ;;  %8291 = vmatprep.subr.bf16.mxu1 %v14479_v42  ;;  %v13505_v57 = vcombine.high %v1356_v49, %v1360_v58  ;;  %v13507_v42 = vcombine.high %v1357_v51, %v1361_v60  ;;  %v1400_v25 = vld [vmem:[%s16207_s21 + $0x170] sm:$0xff]  ;;  %v1401_v33 = vld [vmem:[%s16207_s21 + $0x178] sm:$0xff] }
 0x351   : > { %7964 = vmatpush1.bf16.msra.mxu0 %v14476_v31  ;;  %8292 = vmatpush1.bf16.msra.mxu1 %v14478_v27  ;;  %v1369_v31 = vld [vmem:[%s16207_s21 + $0x78] sm:$0xff]  ;;  %v13504_v27 = vcombine.low %v1356_v49, %v1360_v58  ;;  %v1404_v49 = vld [vmem:[%s16207_s21 + $0x190] sm:$0xff] }
 0x352   : > { %7965 = vmatprep.subr.bf16.mxu0 %v14485_v28  ;;  %8293 = vmatprep.subr.bf16.mxu1 %v14487_v29  ;;  %v13506_v28 = vcombine.low %v1357_v51, %v1361_v60  ;;  %v13513_v29 = vcombine.high %v1364_v43, %v1368_v44  ;;  %v13515_v34 = vcombine.high %v1365_v54, %v1369_v31  ;;  %v1408_v58 = vld [vmem:[%s16207_s21 + $0x1b0] sm:$0xff]  ;;  %v1405_v51 = vld [vmem:[%s16207_s21 + $0x198] sm:$0xff] }
 0x353   : > { %v1409_v60 = vld [vmem:[%s16207_s21 + $0x1b8] sm:$0xff] }
 0x355   : > { %7966 = vmatpush1.bf16.msra.mxu0 %v14484_v1  ;;  %8294 = vmatpush1.bf16.msra.mxu1 %v14486_v63  ;;  %v1377_v1 = vld [vmem:[%s16207_s21 + $0xb8] sm:$0xff]  ;;  %v13512_v63 = vcombine.low %v1364_v43, %v1368_v44  ;;  %v1412_v43 = vld [vmem:[%s16207_s21 + $0x1d0] sm:$0xff] }
 0x356   : > { %7967 = vmatprep.subr.bf16.mxu0 %v14493_v24  ;;  %8295 = vmatprep.subr.bf16.mxu1 %v14495_v53  ;;  %v13514_v24 = vcombine.low %v1365_v54, %v1369_v31  ;;  %v13521_v53 = vcombine.high %v1372_v39, %v1376_v40  ;;  %v13523_v17 = vcombine.high %v1373_v46, %v1377_v1  ;;  %v1416_v44 = vld [vmem:[%s16207_s21 + $0x1f0] sm:$0xff]  ;;  %v1413_v54 = vld [vmem:[%s16207_s21 + $0x1d8] sm:$0xff] }
 0x357   : > { %v1417_v31 = vld [vmem:[%s16207_s21 + $0x1f8] sm:$0xff] }
 0x359   : > { %7968 = vmatpush1.bf16.msra.mxu0 %v14492_v10  ;;  %8296 = vmatpush1.bf16.msra.mxu1 %v14494_v8  ;;  %v1385_v10 = vld [vmem:[%s16207_s21 + $0xf8] sm:$0xff]  ;;  %v13520_v8 = vcombine.low %v1372_v39, %v1376_v40  ;;  %v1420_v39 = vld [vmem:[%s16207_s21 + $0x210] sm:$0xff] }
 0x35a   : > { %7969 = vmatprep.subr.bf16.mxu0 %v14501_v6  ;;  %8297 = vmatprep.subr.bf16.mxu1 %v14503_v9  ;;  %v13522_v6 = vcombine.low %v1373_v46, %v1377_v1  ;;  %v13529_v9 = vcombine.high %v1380_v56, %v1384_v2  ;;  %v13531_v52 = vcombine.high %v1381_v5, %v1385_v10  ;;  %v1424_v40 = vld [vmem:[%s16207_s21 + $0x230] sm:$0xff]  ;;  %v1421_v46 = vld [vmem:[%s16207_s21 + $0x218] sm:$0xff] }
 0x35b   : > { %v1425_v1 = vld [vmem:[%s16207_s21 + $0x238] sm:$0xff] }
 0x35d   : > { %7970 = vmatpush1.bf16.msra.mxu0 %v14500_v18  ;;  %8298 = vmatpush1.bf16.msra.mxu1 %v14502_v15  ;;  %v1393_v18 = vld [vmem:[%s16207_s21 + $0x138] sm:$0xff]  ;;  %v13528_v15 = vcombine.low %v1380_v56, %v1384_v2  ;;  %v1428_v56 = vld [vmem:[%s16207_s21 + $0x250] sm:$0xff] }
 0x35e   : > { %7971 = vmatprep.subr.bf16.mxu0 %v14509_v12  ;;  %8299 = vmatprep.subr.bf16.mxu1 %v14511_v22  ;;  %v13537_v12 = vcombine.high %v1388_v13, %v1392_v20  ;;  %v13539_v22 = vcombine.high %v1389_v7, %v1393_v18  ;;  %v1432_v2 = vld [vmem:[%s16207_s21 + $0x270] sm:$0xff] }
 0x361   : > { %7972 = vmatpush1.bf16.msra.mxu0 %v14508_v36  ;;  %8300 = vmatpush1.bf16.msra.mxu1 %v14510_v47  ;;  %v13536_v36 = vcombine.low %v1388_v13, %v1392_v20  ;;  %v13538_v47 = vcombine.low %v1389_v7, %v1393_v18  ;;  %v1436_v13 = vld [vmem:[%s16207_s21 + $0x290] sm:$0xff]  ;;  %v1437_v7 = vld [vmem:[%s16207_s21 + $0x298] sm:$0xff] }
 0x362   : > { %7973 = vmatprep.subr.bf16.mxu0 %v14517_v41  ;;  %8301 = vmatprep.subr.bf16.mxu1 %v14519_v45  ;;  %v13545_v41 = vcombine.high %v1396_v23, %v1400_v25  ;;  %v13547_v45 = vcombine.high %v1397_v26, %v1401_v33  ;;  %v1440_v20 = vld [vmem:[%s16207_s21 + $0x2b0] sm:$0xff]  ;;  %v1441_v18 = vld [vmem:[%s16207_s21 + $0x2b8] sm:$0xff] }
 0x365   : > { %7974 = vmatpush1.bf16.msra.mxu0 %v14516_v30  ;;  %8302 = vmatpush1.bf16.msra.mxu1 %v14518_v32  ;;  %v13544_v30 = vcombine.low %v1396_v23, %v1400_v25  ;;  %v13546_v32 = vcombine.low %v1397_v26, %v1401_v33  ;;  %v1444_v23 = vld [vmem:[%s16207_s21 + $0x2d0] sm:$0xff]  ;;  %v1445_v26 = vld [vmem:[%s16207_s21 + $0x2d8] sm:$0xff] }
 0x366   : > { %8312 = vmatprep.subr.bf16.mxu0 %v13505_v57  ;;  %8640 = vmatprep.subr.bf16.mxu1 %v13507_v42  ;;  %v13553_v57 = vcombine.high %v1404_v49, %v1408_v58  ;;  %v13555_v42 = vcombine.high %v1405_v51, %v1409_v60  ;;  %v1448_v25 = vld [vmem:[%s16207_s21 + $0x2f0] sm:$0xff]  ;;  %v1449_v33 = vld [vmem:[%s16207_s21 + $0x2f8] sm:$0xff] }
 0x368   : > { %7976 = vmatmul.mubr.bf16.vlgmr.msra.gmra.mrb[0].mxu0 %v17056_v62  ;;  %8304 = vmatmul.mubr.bf16.vlgmr.msra.gmra.mrb[0].mxu1 %v17056_v62 }
 0x369   : > { %8313 = vmatpush1.bf16.msra.mxu0 %v13504_v27  ;;  %8641 = vmatpush1.bf16.msra.mxu1 %v13506_v28  ;;  %v13552_v27 = vcombine.low %v1404_v49, %v1408_v58  ;;  %v13554_v28 = vcombine.low %v1405_v51, %v1409_v60  ;;  %v1452_v49 = vld [vmem:[%s16207_s21 + $0x310] sm:$0xff]  ;;  %v1453_v51 = vld [vmem:[%s16207_s21 + $0x318] sm:$0xff] }
 0x36a   : > { %8314 = vmatprep.subr.bf16.mxu0 %v13513_v29  ;;  %8642 = vmatprep.subr.bf16.mxu1 %v13515_v34  ;;  %v13561_v29 = vcombine.high %v1412_v43, %v1416_v44  ;;  %v13563_v34 = vcombine.high %v1413_v54, %v1417_v31  ;;  %v1456_v58 = vld [vmem:[%s16207_s21 + $0x330] sm:$0xff]  ;;  %v1457_v60 = vld [vmem:[%s16207_s21 + $0x338] sm:$0xff] }
 0x36b   : > { %8344 = vmatprep.mubr.bf16.mxu0 %v16463_v4  ;;  %8672 = vmatprep.mubr.bf16.mxu1 %v16463_v4  ;;  %v13530_v4 = vcombine.low %v1381_v5, %v1385_v10  ;;  %v1429_v5 = vld [vmem:[%s16207_s21 + $0x258] sm:$0xff] }
 0x36c   : > { %v1433_v10 = vld [vmem:[%s16207_s21 + $0x278] sm:$0xff] }
 0x36d   : > { %8315 = vmatpush1.bf16.msra.mxu0 %v13512_v63  ;;  %8643 = vmatpush1.bf16.msra.mxu1 %v13514_v24  ;;  %v13560_v63 = vcombine.low %v1412_v43, %v1416_v44  ;;  %v13562_v24 = vcombine.low %v1413_v54, %v1417_v31  ;;  %v1460_v43 = vld [vmem:[%s16207_s21 + $0x350] sm:$0xff]  ;;  %v1461_v54 = vld [vmem:[%s16207_s21 + $0x358] sm:$0xff] }
 0x36e   : > { %8316 = vmatprep.subr.bf16.mxu0 %v13521_v53  ;;  %8644 = vmatprep.subr.bf16.mxu1 %v13523_v17  ;;  %v13569_v53 = vcombine.high %v1420_v39, %v1424_v40  ;;  %v13571_v17 = vcombine.high %v1421_v46, %v1425_v1  ;;  %v1464_v44 = vld [vmem:[%s16207_s21 + $0x370] sm:$0xff]  ;;  %v1465_v31 = vld [vmem:[%s16207_s21 + $0x378] sm:$0xff] }
 0x371   : > { %8317 = vmatpush1.bf16.msra.mxu0 %v13520_v8  ;;  %8645 = vmatpush1.bf16.msra.mxu1 %v13522_v6  ;;  %v13568_v8 = vcombine.low %v1420_v39, %v1424_v40  ;;  %v13570_v6 = vcombine.low %v1421_v46, %v1425_v1  ;;  %v1468_v39 = vld [vmem:[%s16207_s21 + $0x390] sm:$0xff]  ;;  %v1469_v46 = vld [vmem:[%s16207_s21 + $0x398] sm:$0xff] }
 0x372   : > { %8318 = vmatprep.subr.bf16.mxu0 %v13529_v9  ;;  %8646 = vmatprep.subr.bf16.mxu1 %v13531_v52  ;;  %v13577_v9 = vcombine.high %v1428_v56, %v1432_v2  ;;  %v13579_v52 = vcombine.high %v1429_v5, %v1433_v10  ;;  %v1472_v40 = vld [vmem:[%s16207_s21 + $0x3b0] sm:$0xff]  ;;  %v1473_v1 = vld [vmem:[%s16207_s21 + $0x3b8] sm:$0xff] }
 0x375   : > { %8319 = vmatpush1.bf16.msra.mxu0 %v13528_v15  ;;  %8647 = vmatpush1.bf16.msra.mxu1 %v13530_v4  ;;  %v13576_v15 = vcombine.low %v1428_v56, %v1432_v2  ;;  %v13578_v4 = vcombine.low %v1429_v5, %v1433_v10  ;;  %v1476_v56 = vld [vmem:[%s16207_s21 + $0x3d0] sm:$0xff]  ;;  %v1477_v5 = vld [vmem:[%s16207_s21 + $0x3d8] sm:$0xff] }
 0x376   : > { %8320 = vmatprep.subr.bf16.mxu0 %v13537_v12  ;;  %8648 = vmatprep.subr.bf16.mxu1 %v13539_v22  ;;  %v13585_v12 = vcombine.high %v1436_v13, %v1440_v20  ;;  %v13587_v22 = vcombine.high %v1437_v7, %v1441_v18  ;;  %v1480_v2 = vld [vmem:[%s16207_s21 + $0x3f0] sm:$0xff]  ;;  %v1481_v10 = vld [vmem:[%s16207_s21 + $0x3f8] sm:$0xff] }
 0x379   : > { %8321 = vmatpush1.bf16.msra.mxu0 %v13536_v36  ;;  %8649 = vmatpush1.bf16.msra.mxu1 %v13538_v47  ;;  %v13584_v36 = vcombine.low %v1436_v13, %v1440_v20  ;;  %v13586_v47 = vcombine.low %v1437_v7, %v1441_v18  ;;  %v1484_v13 = vld [vmem:[%s16207_s21 + $0x410] sm:$0xff]  ;;  %v1485_v7 = vld [vmem:[%s16207_s21 + $0x418] sm:$0xff] }
 0x37a   : > { %8322 = vmatprep.subr.bf16.mxu0 %v13545_v41  ;;  %8650 = vmatprep.subr.bf16.mxu1 %v13547_v45  ;;  %v13593_v41 = vcombine.high %v1444_v23, %v1448_v25  ;;  %v13595_v45 = vcombine.high %v1445_v26, %v1449_v33  ;;  %v1488_v20 = vld [vmem:[%s16207_s21 + $0x430] sm:$0xff]  ;;  %v1489_v18 = vld [vmem:[%s16207_s21 + $0x438] sm:$0xff] }
 0x37d   : > { %8323 = vmatpush1.bf16.msra.mxu0 %v13544_v30  ;;  %8651 = vmatpush1.bf16.msra.mxu1 %v13546_v32  ;;  %v13592_v30 = vcombine.low %v1444_v23, %v1448_v25  ;;  %v13594_v32 = vcombine.low %v1445_v26, %v1449_v33  ;;  %v1492_v23 = vld [vmem:[%s16207_s21 + $0x450] sm:$0xff]  ;;  %v1493_v26 = vld [vmem:[%s16207_s21 + $0x458] sm:$0xff] }
 0x37e   : > { %8324 = vmatprep.subr.bf16.mxu0 %v13553_v57  ;;  %8652 = vmatprep.subr.bf16.mxu1 %v13555_v42  ;;  %v13601_v57 = vcombine.high %v1452_v49, %v1456_v58  ;;  %v13603_v42 = vcombine.high %v1453_v51, %v1457_v60  ;;  %v1496_v25 = vld [vmem:[%s16207_s21 + $0x470] sm:$0xff]  ;;  %v1497_v33 = vld [vmem:[%s16207_s21 + $0x478] sm:$0xff] }
 0x381   : > { %8325 = vmatpush1.bf16.msra.mxu0 %v13552_v27  ;;  %8653 = vmatpush1.bf16.msra.mxu1 %v13554_v28  ;;  %v13600_v27 = vcombine.low %v1452_v49, %v1456_v58  ;;  %v13602_v28 = vcombine.low %v1453_v51, %v1457_v60  ;;  %v1500_v49 = vld [vmem:[%s16207_s21 + $0x490] sm:$0xff]  ;;  %v1501_v51 = vld [vmem:[%s16207_s21 + $0x498] sm:$0xff] }
 0x382   : > { %8326 = vmatprep.subr.bf16.mxu0 %v13561_v29  ;;  %8654 = vmatprep.subr.bf16.mxu1 %v13563_v34  ;;  %v13609_v29 = vcombine.high %v1460_v43, %v1464_v44  ;;  %v13611_v34 = vcombine.high %v1461_v54, %v1465_v31  ;;  %v1504_v58 = vld [vmem:[%s16207_s21 + $0x4b0] sm:$0xff]  ;;  %v1505_v60 = vld [vmem:[%s16207_s21 + $0x4b8] sm:$0xff] }
 0x385   : > { %8327 = vmatpush1.bf16.msra.mxu0 %v13560_v63  ;;  %8655 = vmatpush1.bf16.msra.mxu1 %v13562_v24  ;;  %v13608_v63 = vcombine.low %v1460_v43, %v1464_v44  ;;  %v13610_v24 = vcombine.low %v1461_v54, %v1465_v31  ;;  %v1508_v43 = vld [vmem:[%s16207_s21 + $0x4d0] sm:$0xff]  ;;  %v1509_v54 = vld [vmem:[%s16207_s21 + $0x4d8] sm:$0xff] }
 0x386   : > { %8328 = vmatprep.subr.bf16.mxu0 %v13569_v53  ;;  %8656 = vmatprep.subr.bf16.mxu1 %v13571_v17  ;;  %v13617_v53 = vcombine.high %v1468_v39, %v1472_v40  ;;  %v13619_v17 = vcombine.high %v1469_v46, %v1473_v1  ;;  %v1512_v44 = vld [vmem:[%s16207_s21 + $0x4f0] sm:$0xff]  ;;  %v1513_v31 = vld [vmem:[%s16207_s21 + $0x4f8] sm:$0xff] }
 0x389   : > { %8329 = vmatpush1.bf16.msra.mxu0 %v13568_v8  ;;  %8657 = vmatpush1.bf16.msra.mxu1 %v13570_v6  ;;  %v13616_v8 = vcombine.low %v1468_v39, %v1472_v40  ;;  %v13618_v6 = vcombine.low %v1469_v46, %v1473_v1  ;;  %v1520_v39 = vld [vmem:[%s16207_s21 + $0x530] sm:$0xff]  ;;  %v1517_v40 = vld [vmem:[%s16207_s21 + $0x518] sm:$0xff]  ;;  %v13656_v1 = vcombine.low %v1508_v43, %v1512_v44 }
 0x38a   : > { %8330 = vmatprep.subr.bf16.mxu0 %v13577_v9  ;;  %8658 = vmatprep.subr.bf16.mxu1 %v13579_v52  ;;  %v13625_v9 = vcombine.high %v1476_v56, %v1480_v2  ;;  %v13627_v52 = vcombine.high %v1477_v5, %v1481_v10  ;;  %v1521_v46 = vld [vmem:[%s16207_s21 + $0x538] sm:$0xff] }
 0x38d   : > { %8331 = vmatpush1.bf16.msra.mxu0 %v13576_v15  ;;  %8659 = vmatpush1.bf16.msra.mxu1 %v13578_v4  ;;  %v13624_v15 = vcombine.low %v1476_v56, %v1480_v2  ;;  %v13626_v4 = vcombine.low %v1477_v5, %v1481_v10  ;;  %v1525_v56 = vld [vmem:[%s16207_s21 + $0x558] sm:$0xff]  ;;  %v13666_v10 = vcombine.low %v1517_v40, %v1521_v46 }
 0x38e   : > { %8332 = vmatprep.subr.bf16.mxu0 %v13585_v12  ;;  %8660 = vmatprep.subr.bf16.mxu1 %v13587_v22  ;;  %v13633_v12 = vcombine.high %v1484_v13, %v1488_v20  ;;  %v13635_v22 = vcombine.high %v1485_v7, %v1489_v18  ;;  %v1529_v2 = vld [vmem:[%s16207_s21 + $0x578] sm:$0xff] }
 0x391   : > { %8333 = vmatpush1.bf16.msra.mxu0 %v13584_v36  ;;  %8661 = vmatpush1.bf16.msra.mxu1 %v13586_v47  ;;  %v13632_v36 = vcombine.low %v1484_v13, %v1488_v20  ;;  %v13634_v47 = vcombine.low %v1485_v7, %v1489_v18  ;;  %v1533_v13 = vld [vmem:[%s16207_s21 + $0x598] sm:$0xff]  ;;  %v13674_v18 = vcombine.low %v1525_v56, %v1529_v2 }
 0x392   : > { %8334 = vmatprep.subr.bf16.mxu0 %v13593_v41  ;;  %8662 = vmatprep.subr.bf16.mxu1 %v13595_v45  ;;  %v13641_v41 = vcombine.high %v1492_v23, %v1496_v25  ;;  %v13643_v45 = vcombine.high %v1493_v26, %v1497_v33  ;;  %v1537_v20 = vld [vmem:[%s16207_s21 + $0x5b8] sm:$0xff] }
 0x395   : > { %8335 = vmatpush1.bf16.msra.mxu0 %v13592_v30  ;;  %8663 = vmatpush1.bf16.msra.mxu1 %v13594_v32  ;;  %v13640_v30 = vcombine.low %v1492_v23, %v1496_v25  ;;  %v13642_v32 = vcombine.low %v1493_v26, %v1497_v33  ;;  %v1541_v23 = vld [vmem:[%s16207_s21 + $0x5d8] sm:$0xff]  ;;  %v13682_v33 = vcombine.low %v1533_v13, %v1537_v20 }
 0x396   : > { %8336 = vmatprep.subr.bf16.mxu0 %v13601_v57  ;;  %8664 = vmatprep.subr.bf16.mxu1 %v13603_v42  ;;  %v13649_v57 = vcombine.high %v1500_v49, %v1504_v58  ;;  %v13651_v42 = vcombine.high %v1501_v51, %v1505_v60  ;;  %v1545_v25 = vld [vmem:[%s16207_s21 + $0x5f8] sm:$0xff] }
 0x399   : > { %8337 = vmatpush1.bf16.msra.mxu0 %v13600_v27  ;;  %8665 = vmatpush1.bf16.msra.mxu1 %v13602_v28  ;;  %v13650_v27 = vcombine.low %v1501_v51, %v1505_v60  ;;  %v13657_v28 = vcombine.high %v1508_v43, %v1512_v44  ;;  %v13690_v60 = vcombine.low %v1541_v23, %v1545_v25  ;;  %v1557_v43 = vld [vmem:[%s16207_s21 + $0x658] sm:$0xff] }
 0x39a   : > { %8338 = vmatprep.subr.bf16.mxu0 %v13609_v29  ;;  %8666 = vmatprep.subr.bf16.mxu1 %v13611_v34  ;;  %v13659_v29 = vcombine.high %v1509_v54, %v1513_v31  ;;  %v1516_v34 = vld [vmem:[%s16207_s21 + $0x510] sm:$0xff]  ;;  %v1561_v44 = vld [vmem:[%s16207_s21 + $0x678] sm:$0xff] }
 0x39b   : > { %v13664_v5 = vcombine.low %v1516_v34, %v1520_v39 }
 0x39d   : > { %8339 = vmatpush1.bf16.msra.mxu0 %v13608_v63  ;;  %8667 = vmatpush1.bf16.msra.mxu1 %v13610_v24  ;;  %v13665_v63 = vcombine.high %v1516_v34, %v1520_v39  ;;  %v13667_v24 = vcombine.high %v1517_v40, %v1521_v46  ;;  %v1565_v34 = vld [vmem:[%s16207_s21 + $0x698] sm:$0xff]  ;;  %v13706_v46 = vcombine.low %v1557_v43, %v1561_v44 }
 0x39e   : > { %8340 = vmatprep.subr.bf16.mxu0 %v13617_v53  ;;  %8668 = vmatprep.subr.bf16.mxu1 %v13619_v17  ;;  %v1524_v53 = vld [vmem:[%s16207_s21 + $0x550] sm:$0xff]  ;;  %v1569_v39 = vld [vmem:[%s16207_s21 + $0x6b8] sm:$0xff] }
 0x39f   : > { %v1528_v17 = vld [vmem:[%s16207_s21 + $0x570] sm:$0xff] }
 0x3a0   : > { %v13672_v7 = vcombine.low %v1524_v53, %v1528_v17 }
 0x3a1   : > { %8341 = vmatpush1.bf16.msra.mxu0 %v13616_v8  ;;  %8669 = vmatpush1.bf16.msra.mxu1 %v13618_v6  ;;  %v13673_v8 = vcombine.high %v1524_v53, %v1528_v17  ;;  %v13675_v6 = vcombine.high %v1525_v56, %v1529_v2  ;;  %v1573_v53 = vld [vmem:[%s16207_s21 + $0x6d8] sm:$0xff]  ;;  %v13714_v2 = vcombine.low %v1565_v34, %v1569_v39 }
 0x3a2   : > { %8342 = vmatprep.subr.bf16.mxu0 %v13625_v9  ;;  %8670 = vmatprep.subr.bf16.mxu1 %v13627_v52  ;;  %v1532_v9 = vld [vmem:[%s16207_s21 + $0x590] sm:$0xff]  ;;  %v1577_v17 = vld [vmem:[%s16207_s21 + $0x6f8] sm:$0xff] }
 0x3a3   : > { %v1536_v52 = vld [vmem:[%s16207_s21 + $0x5b0] sm:$0xff] }
 0x3a4   : > { %v13680_v26 = vcombine.low %v1532_v9, %v1536_v52 }
 0x3a5   : > { %8343 = vmatpush1.bf16.msra.mxu0 %v13624_v15  ;;  %8671 = vmatpush1.bf16.msra.mxu1 %v13626_v4  ;;  %v13681_v15 = vcombine.high %v1532_v9, %v1536_v52  ;;  %v13683_v4 = vcombine.high %v1533_v13, %v1537_v20  ;;  %v1581_v9 = vld [vmem:[%s16207_s21 + $0x718] sm:$0xff]  ;;  %v13722_v20 = vcombine.low %v1573_v53, %v1577_v17 }
 0x3a6   : > { %8353 = vmatprep.subr.bf16.mxu0 %v13633_v12  ;;  %8681 = vmatprep.subr.bf16.mxu1 %v13635_v22  ;;  %v1540_v12 = vld [vmem:[%s16207_s21 + $0x5d0] sm:$0xff]  ;;  %v1585_v52 = vld [vmem:[%s16207_s21 + $0x738] sm:$0xff] }
 0x3a7   : > { %v1544_v22 = vld [vmem:[%s16207_s21 + $0x5f0] sm:$0xff] }
 0x3a8   : > { %8345 = vmatmul.mubr.bf16.vlgmr.msra.gmra.mrb[4].mxu0 %v16505_v21  ;;  %8673 = vmatmul.mubr.bf16.vlgmr.msra.gmra.mrb[4].mxu1 %v16505_v21  ;;  %v13648_v21 = vcombine.low %v1500_v49, %v1504_v58  ;;  %v1549_v49 = vld [vmem:[%s16207_s21 + $0x618] sm:$0xff]  ;;  %v13688_v51 = vcombine.low %v1540_v12, %v1544_v22 }
 0x3a9   : > { %8354 = vmatpush1.bf16.msra.mxu0 %v13632_v36  ;;  %8682 = vmatpush1.bf16.msra.mxu1 %v13634_v47  ;;  %v13689_v36 = vcombine.high %v1540_v12, %v1544_v22  ;;  %v13691_v47 = vcombine.high %v1541_v23, %v1545_v25  ;;  %v1553_v58 = vld [vmem:[%s16207_s21 + $0x638] sm:$0xff]  ;;  %v13730_v25 = vcombine.low %v1581_v9, %v1585_v52 }
 0x3aa   : > { %8355 = vmatprep.subr.bf16.mxu0 %v13641_v41  ;;  %8683 = vmatprep.subr.bf16.mxu1 %v13643_v45  ;;  %v1548_v41 = vld [vmem:[%s16207_s21 + $0x610] sm:$0xff]  ;;  %v1589_v12 = vld [vmem:[%s16207_s21 + $0x758] sm:$0xff] }
 0x3ab   : > { %8385 = vmatprep.mubr.bf16.mxu0 %v16513_v37  ;;  %8713 = vmatprep.mubr.bf16.mxu1 %v16513_v37  ;;  %v13658_v37 = vcombine.low %v1509_v54, %v1513_v31  ;;  %v1552_v45 = vld [vmem:[%s16207_s21 + $0x630] sm:$0xff]  ;;  %v13698_v31 = vcombine.low %v1549_v49, %v1553_v58  ;;  %v1593_v22 = vld [vmem:[%s16207_s21 + $0x778] sm:$0xff] }
 0x3ac   : > { %v13696_v54 = vcombine.low %v1548_v41, %v1552_v45 }
 0x3ad   : > { %8356 = vmatpush1.bf16.msra.mxu0 %v13640_v30  ;;  %8684 = vmatpush1.bf16.msra.mxu1 %v13642_v32  ;;  %v13697_v30 = vcombine.high %v1548_v41, %v1552_v45  ;;  %v13699_v32 = vcombine.high %v1549_v49, %v1553_v58  ;;  %v1597_v41 = vld [vmem:[%s16207_s21 + $0x798] sm:$0xff]  ;;  %v13738_v58 = vcombine.low %v1589_v12, %v1593_v22 }
 0x3ae   : > { %8357 = vmatprep.subr.bf16.mxu0 %v13649_v57  ;;  %8685 = vmatprep.subr.bf16.mxu1 %v13651_v42  ;;  %v1556_v57 = vld [vmem:[%s16207_s21 + $0x650] sm:$0xff]  ;;  %v1601_v45 = vld [vmem:[%s16207_s21 + $0x7b8] sm:$0xff] }
 0x3af   : > { %v1560_v42 = vld [vmem:[%s16207_s21 + $0x670] sm:$0xff] }
 0x3b0   : > { %v13704_v40 = vcombine.low %v1556_v57, %v1560_v42 }
 0x3b1   : > { %8358 = vmatpush1.bf16.msra.mxu0 %v13648_v21  ;;  %8686 = vmatpush1.bf16.msra.mxu1 %v13650_v27  ;;  %v13705_v21 = vcombine.high %v1556_v57, %v1560_v42  ;;  %v13707_v27 = vcombine.high %v1557_v43, %v1561_v44  ;;  %v1605_v57 = vld [vmem:[%s16207_s21 + $0x7d8] sm:$0xff]  ;;  %v13746_v44 = vcombine.low %v1597_v41, %v1601_v45 }
 0x3b2   : > { %8359 = vmatprep.subr.bf16.mxu0 %v13657_v28  ;;  %8687 = vmatprep.subr.bf16.mxu1 %v13659_v29  ;;  %v1564_v28 = vld [vmem:[%s16207_s21 + $0x690] sm:$0xff]  ;;  %v1609_v42 = vld [vmem:[%s16207_s21 + $0x7f8] sm:$0xff] }
 0x3b3   : > { %v1568_v29 = vld [vmem:[%s16207_s21 + $0x6b0] sm:$0xff] }
 0x3b4   : > { %v13712_v56 = vcombine.low %v1564_v28, %v1568_v29 }
 0x3b5   : > { %8360 = vmatpush1.bf16.msra.mxu0 %v13656_v1  ;;  %8688 = vmatpush1.bf16.msra.mxu1 %v13658_v37  ;;  %v13713_v1 = vcombine.high %v1564_v28, %v1568_v29  ;;  %v13715_v37 = vcombine.high %v1565_v34, %v1569_v39  ;;  %v1613_v28 = vld [vmem:[%s16207_s21 + $0x818] sm:$0xff]  ;;  %v13754_v39 = vcombine.low %v1605_v57, %v1609_v42 }
 0x3b6   : > { %8361 = vmatprep.subr.bf16.mxu0 %v13665_v63  ;;  %8689 = vmatprep.subr.bf16.mxu1 %v13667_v24  ;;  %v1572_v63 = vld [vmem:[%s16207_s21 + $0x6d0] sm:$0xff]  ;;  %v1617_v29 = vld [vmem:[%s16207_s21 + $0x838] sm:$0xff] }
 0x3b7   : > { %v1576_v24 = vld [vmem:[%s16207_s21 + $0x6f0] sm:$0xff] }
 0x3b8   : > { %v13720_v13 = vcombine.low %v1572_v63, %v1576_v24 }
 0x3b9   : > { %8362 = vmatpush1.bf16.msra.mxu0 %v13664_v5  ;;  %8690 = vmatpush1.bf16.msra.mxu1 %v13666_v10  ;;  %v13721_v5 = vcombine.high %v1572_v63, %v1576_v24  ;;  %v13723_v10 = vcombine.high %v1573_v53, %v1577_v17  ;;  %v1621_v63 = vld [vmem:[%s16207_s21 + $0x858] sm:$0xff]  ;;  %v13762_v17 = vcombine.low %v1613_v28, %v1617_v29 }
 0x3ba   : > { %8363 = vmatprep.subr.bf16.mxu0 %v13673_v8  ;;  %8691 = vmatprep.subr.bf16.mxu1 %v13675_v6  ;;  %v1580_v8 = vld [vmem:[%s16207_s21 + $0x710] sm:$0xff]  ;;  %v1625_v24 = vld [vmem:[%s16207_s21 + $0x878] sm:$0xff] }
 0x3bb   : > { %v1584_v6 = vld [vmem:[%s16207_s21 + $0x730] sm:$0xff] }
 0x3bc   : > { %v13728_v23 = vcombine.low %v1580_v8, %v1584_v6 }
 0x3bd   : > { %8364 = vmatpush1.bf16.msra.mxu0 %v13672_v7  ;;  %8692 = vmatpush1.bf16.msra.mxu1 %v13674_v18  ;;  %v13729_v7 = vcombine.high %v1580_v8, %v1584_v6  ;;  %v13731_v18 = vcombine.high %v1581_v9, %v1585_v52  ;;  %v1629_v8 = vld [vmem:[%s16207_s21 + $0x898] sm:$0xff]  ;;  %v13770_v52 = vcombine.low %v1621_v63, %v1625_v24 }
 0x3be   : > { %8365 = vmatprep.subr.bf16.mxu0 %v13681_v15  ;;  %8693 = vmatprep.subr.bf16.mxu1 %v13683_v4  ;;  %v1588_v15 = vld [vmem:[%s16207_s21 + $0x750] sm:$0xff]  ;;  %v1633_v6 = vld [vmem:[%s16207_s21 + $0x8b8] sm:$0xff] }
 0x3bf   : > { %v1592_v4 = vld [vmem:[%s16207_s21 + $0x770] sm:$0xff] }
 0x3c0   : > { %v13736_v49 = vcombine.low %v1588_v15, %v1592_v4 }
 0x3c1   : > { %8366 = vmatpush1.bf16.msra.mxu0 %v13680_v26  ;;  %8694 = vmatpush1.bf16.msra.mxu1 %v13682_v33  ;;  %v13737_v26 = vcombine.high %v1588_v15, %v1592_v4  ;;  %v13739_v33 = vcombine.high %v1589_v12, %v1593_v22  ;;  %v1637_v15 = vld [vmem:[%s16207_s21 + $0x8d8] sm:$0xff]  ;;  %v13778_v12 = vcombine.low %v1629_v8, %v1633_v6 }
 0x3c2   : > { %8367 = vmatprep.subr.bf16.mxu0 %v13689_v36  ;;  %8695 = vmatprep.subr.bf16.mxu1 %v13691_v47  ;;  %v1596_v36 = vld [vmem:[%s16207_s21 + $0x790] sm:$0xff]  ;;  %v1641_v4 = vld [vmem:[%s16207_s21 + $0x8f8] sm:$0xff] }
 0x3c3   : > { %v1600_v47 = vld [vmem:[%s16207_s21 + $0x7b0] sm:$0xff] }
 0x3c4   : > { %v13744_v43 = vcombine.low %v1596_v36, %v1600_v47 }
 0x3c5   : > { %8368 = vmatpush1.bf16.msra.mxu0 %v13688_v51  ;;  %8696 = vmatpush1.bf16.msra.mxu1 %v13690_v60  ;;  %v13745_v51 = vcombine.high %v1596_v36, %v1600_v47  ;;  %v13747_v60 = vcombine.high %v1597_v41, %v1601_v45  ;;  %v1649_v36 = vld [vmem:[%s16207_s21 + $0x938] sm:$0xff] }
 0x3c6   : > { %8369 = vmatprep.subr.bf16.mxu0 %v13697_v30  ;;  %8697 = vmatprep.subr.bf16.mxu1 %v13699_v32  ;;  %v1604_v30 = vld [vmem:[%s16207_s21 + $0x7d0] sm:$0xff] }
 0x3c7   : > { %v1608_v32 = vld [vmem:[%s16207_s21 + $0x7f0] sm:$0xff] }
 0x3c8   : > { %v13752_v34 = vcombine.low %v1604_v30, %v1608_v32 }
 0x3c9   : > { %8370 = vmatpush1.bf16.msra.mxu0 %v13696_v54  ;;  %8698 = vmatpush1.bf16.msra.mxu1 %v13698_v31  ;;  %v13753_v54 = vcombine.high %v1604_v30, %v1608_v32  ;;  %v13755_v31 = vcombine.high %v1605_v57, %v1609_v42 }
 0x3ca   : > { %8371 = vmatprep.subr.bf16.mxu0 %v13705_v21  ;;  %8699 = vmatprep.subr.bf16.mxu1 %v13707_v27  ;;  %v1612_v21 = vld [vmem:[%s16207_s21 + $0x810] sm:$0xff] }
 0x3cb   : > { %v1616_v27 = vld [vmem:[%s16207_s21 + $0x830] sm:$0xff] }
 0x3cc   : > { %v13760_v53 = vcombine.low %v1612_v21, %v1616_v27 }
 0x3cd   : > { %8372 = vmatpush1.bf16.msra.mxu0 %v13704_v40  ;;  %8700 = vmatpush1.bf16.msra.mxu1 %v13706_v46  ;;  %v13761_v40 = vcombine.high %v1612_v21, %v1616_v27  ;;  %v13763_v46 = vcombine.high %v1613_v28, %v1617_v29 }
 0x3ce   : > { %8373 = vmatprep.subr.bf16.mxu0 %v13713_v1  ;;  %8701 = vmatprep.subr.bf16.mxu1 %v13715_v37  ;;  %v1620_v1 = vld [vmem:[%s16207_s21 + $0x850] sm:$0xff] }
 0x3cf   : > { %v1624_v37 = vld [vmem:[%s16207_s21 + $0x870] sm:$0xff] }
 0x3d0   : > { %v13768_v9 = vcombine.low %v1620_v1, %v1624_v37 }
 0x3d1   : > { %8374 = vmatpush1.bf16.msra.mxu0 %v13712_v56  ;;  %8702 = vmatpush1.bf16.msra.mxu1 %v13714_v2  ;;  %v13769_v56 = vcombine.high %v1620_v1, %v1624_v37  ;;  %v13771_v2 = vcombine.high %v1621_v63, %v1625_v24 }
 0x3d2   : > { %8375 = vmatprep.subr.bf16.mxu0 %v13721_v5  ;;  %8703 = vmatprep.subr.bf16.mxu1 %v13723_v10  ;;  %v1628_v5 = vld [vmem:[%s16207_s21 + $0x890] sm:$0xff] }
 0x3d3   : > { %v1632_v10 = vld [vmem:[%s16207_s21 + $0x8b0] sm:$0xff] }
 0x3d5   : > { %8376 = vmatpush1.bf16.msra.mxu0 %v13720_v13  ;;  %8704 = vmatpush1.bf16.msra.mxu1 %v13722_v20  ;;  %v13777_v13 = vcombine.high %v1628_v5, %v1632_v10  ;;  %v13779_v20 = vcombine.high %v1629_v8, %v1633_v6 }
 0x3d6   : > { %8377 = vmatprep.subr.bf16.mxu0 %v13729_v7  ;;  %8705 = vmatprep.subr.bf16.mxu1 %v13731_v18  ;;  %v1636_v7 = vld [vmem:[%s16207_s21 + $0x8d0] sm:$0xff] }
 0x3d7   : > { %v1640_v18 = vld [vmem:[%s16207_s21 + $0x8f0] sm:$0xff] }
 0x3d8   : > { %v13785_v22 = vcombine.high %v1636_v7, %v1640_v18  ;;  %v13784_v47 = vcombine.low %v1636_v7, %v1640_v18 }
 0x3d9   : > { %8378 = vmatpush1.bf16.msra.mxu0 %v13728_v23  ;;  %8706 = vmatpush1.bf16.msra.mxu1 %v13730_v25  ;;  %v13787_v23 = vcombine.high %v1637_v15, %v1641_v4  ;;  %v1644_v25 = vld [vmem:[%s16207_s21 + $0x910] sm:$0xff] }
 0x3da   : > { %8379 = vmatprep.subr.bf16.mxu0 %v13737_v26  ;;  %8707 = vmatprep.subr.bf16.mxu1 %v13739_v33  ;;  %v1648_v26 = vld [vmem:[%s16207_s21 + $0x930] sm:$0xff]  ;;  %v1645_v33 = vld [vmem:[%s16207_s21 + $0x918] sm:$0xff] }
 0x3db   : > { %v13793_v41 = vcombine.high %v1644_v25, %v1648_v26  ;;  %v13795_v45 = vcombine.high %v1645_v33, %v1649_v36  ;;  %v13792_v30 = vcombine.low %v1644_v25, %v1648_v26  ;;  %v13794_v32 = vcombine.low %v1645_v33, %v1649_v36 }
 0x3dd   : > { %8380 = vmatpush1.bf16.msra.mxu0 %v13736_v49  ;;  %8708 = vmatpush1.bf16.msra.mxu1 %v13738_v58  ;;  %v1652_v49 = vld [vmem:[%s16207_s21 + $0x950] sm:$0xff] }
 0x3de   : > { %8381 = vmatprep.subr.bf16.mxu0 %v13745_v51  ;;  %8709 = vmatprep.subr.bf16.mxu1 %v13747_v60  ;;  %v1656_v58 = vld [vmem:[%s16207_s21 + $0x970] sm:$0xff]  ;;  %v1653_v51 = vld [vmem:[%s16207_s21 + $0x958] sm:$0xff] }
 0x3df   : > { %v1657_v60 = vld [vmem:[%s16207_s21 + $0x978] sm:$0xff]  ;;  %v13801_v57 = vcombine.high %v1652_v49, %v1656_v58  ;;  %v13800_v21 = vcombine.low %v1652_v49, %v1656_v58 }
 0x3e0   : > { %v13803_v42 = vcombine.high %v1653_v51, %v1657_v60  ;;  %v13802_v27 = vcombine.low %v1653_v51, %v1657_v60 }
 0x3e1   : > { %8382 = vmatpush1.bf16.msra.mxu0 %v13744_v43  ;;  %8710 = vmatpush1.bf16.msra.mxu1 %v13746_v44  ;;  %v1660_v43 = vld [vmem:[%s16207_s21 + $0x990] sm:$0xff] }
 0x3e2   : > { %8383 = vmatprep.subr.bf16.mxu0 %v13753_v54  ;;  %8711 = vmatprep.subr.bf16.mxu1 %v13755_v31  ;;  %v1664_v44 = vld [vmem:[%s16207_s21 + $0x9b0] sm:$0xff]  ;;  %v1661_v54 = vld [vmem:[%s16207_s21 + $0x998] sm:$0xff] }
 0x3e3   : > { %v1665_v31 = vld [vmem:[%s16207_s21 + $0x9b8] sm:$0xff]  ;;  %v13809_v28 = vcombine.high %v1660_v43, %v1664_v44  ;;  %v13808_v1 = vcombine.low %v1660_v43, %v1664_v44 }
 0x3e4   : > { %v13811_v29 = vcombine.high %v1661_v54, %v1665_v31  ;;  %v13810_v37 = vcombine.low %v1661_v54, %v1665_v31 }
 0x3e5   : > { %8384 = vmatpush1.bf16.msra.mxu0 %v13752_v34  ;;  %8712 = vmatpush1.bf16.msra.mxu1 %v13754_v39  ;;  %v1668_v34 = vld [vmem:[%s16207_s21 + $0x9d0] sm:$0xff] }
 0x3e6   : > { %8394 = vmatprep.subr.bf16.mxu0 %v13761_v40  ;;  %8722 = vmatprep.subr.bf16.mxu1 %v13763_v46  ;;  %v1672_v39 = vld [vmem:[%s16207_s21 + $0x9f0] sm:$0xff]  ;;  %v1669_v40 = vld [vmem:[%s16207_s21 + $0x9d8] sm:$0xff] }
 0x3e7   : > { %v1673_v46 = vld [vmem:[%s16207_s21 + $0x9f8] sm:$0xff]  ;;  %v13817_v63 = vcombine.high %v1668_v34, %v1672_v39 }
 0x3e8   : > { %8386 = vmatmul.mubr.bf16.vlgmr.msra.gmra.mrb[4].mxu0 %v16588_v59  ;;  %8714 = vmatmul.mubr.bf16.vlgmr.msra.gmra.mrb[4].mxu1 %v16588_v59  ;;  %v13776_v59 = vcombine.low %v1628_v5, %v1632_v10  ;;  %v13819_v24 = vcombine.high %v1669_v40, %v1673_v46  ;;  %v13816_v5 = vcombine.low %v1668_v34, %v1672_v39 }
 0x3e9   : > { %8395 = vmatpush1.bf16.msra.mxu0 %v13760_v53  ;;  %8723 = vmatpush1.bf16.msra.mxu1 %v13762_v17  ;;  %v1676_v53 = vld [vmem:[%s16207_s21 + $0xa10] sm:$0xff]  ;;  %v13818_v10 = vcombine.low %v1669_v40, %v1673_v46 }
 0x3ea   : > { %8396 = vmatprep.subr.bf16.mxu0 %v13769_v56  ;;  %8724 = vmatprep.subr.bf16.mxu1 %v13771_v2  ;;  %v1680_v17 = vld [vmem:[%s16207_s21 + $0xa30] sm:$0xff]  ;;  %v1677_v56 = vld [vmem:[%s16207_s21 + $0xa18] sm:$0xff] }
 0x3eb   : > { %8426 = vmatprep.mubr.bf16.mxu0 %v16595_v61  ;;  %8754 = vmatprep.mubr.bf16.mxu1 %v16595_v61  ;;  %v13786_v61 = vcombine.low %v1637_v15, %v1641_v4  ;;  %v1681_v2 = vld [vmem:[%s16207_s21 + $0xa38] sm:$0xff]  ;;  %v13825_v8 = vcombine.high %v1676_v53, %v1680_v17  ;;  %v13824_v7 = vcombine.low %v1676_v53, %v1680_v17 }
 0x3ec   : > { %v13827_v6 = vcombine.high %v1677_v56, %v1681_v2  ;;  %v13826_v18 = vcombine.low %v1677_v56, %v1681_v2 }
 0x3ed   : > { %8397 = vmatpush1.bf16.msra.mxu0 %v13768_v9  ;;  %8725 = vmatpush1.bf16.msra.mxu1 %v13770_v52  ;;  %v1684_v9 = vld [vmem:[%s16207_s21 + $0xa50] sm:$0xff] }
 0x3ee   : > { %8398 = vmatprep.subr.bf16.mxu0 %v13777_v13  ;;  %8726 = vmatprep.subr.bf16.mxu1 %v13779_v20  ;;  %v1688_v52 = vld [vmem:[%s16207_s21 + $0xa70] sm:$0xff]  ;;  %v1685_v13 = vld [vmem:[%s16207_s21 + $0xa58] sm:$0xff] }
 0x3ef   : > { %v1689_v20 = vld [vmem:[%s16207_s21 + $0xa78] sm:$0xff]  ;;  %v13833_v15 = vcombine.high %v1684_v9, %v1688_v52  ;;  %v13832_v25 = vcombine.low %v1684_v9, %v1688_v52 }
 0x3f0   : > { %v13835_v4 = vcombine.high %v1685_v13, %v1689_v20  ;;  %v13834_v26 = vcombine.low %v1685_v13, %v1689_v20 }
 0x3f1   : > { %8399 = vmatpush1.bf16.msra.mxu0 %v13776_v59  ;;  %8727 = vmatpush1.bf16.msra.mxu1 %v13778_v12  ;;  %v1692_v59 = vld [vmem:[%s16207_s21 + $0xa90] sm:$0xff] }
 0x3f2   : > { %8400 = vmatprep.subr.bf16.mxu0 %v13785_v22  ;;  %8728 = vmatprep.subr.bf16.mxu1 %v13787_v23  ;;  %v1696_v12 = vld [vmem:[%s16207_s21 + $0xab0] sm:$0xff]  ;;  %v1693_v22 = vld [vmem:[%s16207_s21 + $0xa98] sm:$0xff] }
 0x3f3   : > { %v1697_v23 = vld [vmem:[%s16207_s21 + $0xab8] sm:$0xff]  ;;  %v13841_v33 = vcombine.high %v1692_v59, %v1696_v12  ;;  %v13840_v49 = vcombine.low %v1692_v59, %v1696_v12 }
 0x3f4   : > { %v13843_v36 = vcombine.high %v1693_v22, %v1697_v23  ;;  %v13842_v58 = vcombine.low %v1693_v22, %v1697_v23 }
 0x3f5   : > { %8401 = vmatpush1.bf16.msra.mxu0 %v13784_v47  ;;  %8729 = vmatpush1.bf16.msra.mxu1 %v13786_v61  ;;  %v1700_v47 = vld [vmem:[%s16207_s21 + $0xad0] sm:$0xff] }
 0x3f6   : > { %8402 = vmatprep.subr.bf16.mxu0 %v13793_v41  ;;  %8730 = vmatprep.subr.bf16.mxu1 %v13795_v45  ;;  %v1704_v61 = vld [vmem:[%s16207_s21 + $0xaf0] sm:$0xff]  ;;  %v1701_v41 = vld [vmem:[%s16207_s21 + $0xad8] sm:$0xff] }
 0x3f7   : > { %v1705_v45 = vld [vmem:[%s16207_s21 + $0xaf8] sm:$0xff]  ;;  %v13849_v51 = vcombine.high %v1700_v47, %v1704_v61  ;;  %v13848_v43 = vcombine.low %v1700_v47, %v1704_v61 }
 0x3f8   : > { %v13851_v60 = vcombine.high %v1701_v41, %v1705_v45  ;;  %v13850_v44 = vcombine.low %v1701_v41, %v1705_v45 }
 0x3f9   : > { %8403 = vmatpush1.bf16.msra.mxu0 %v13792_v30  ;;  %8731 = vmatpush1.bf16.msra.mxu1 %v13794_v32  ;;  %v1708_v30 = vld [vmem:[%s16207_s21 + $0xb10] sm:$0xff] }
 0x3fa   : > { %8404 = vmatprep.subr.bf16.mxu0 %v13801_v57  ;;  %8732 = vmatprep.subr.bf16.mxu1 %v13803_v42  ;;  %v1712_v32 = vld [vmem:[%s16207_s21 + $0xb30] sm:$0xff]  ;;  %v1709_v57 = vld [vmem:[%s16207_s21 + $0xb18] sm:$0xff] }
 0x3fb   : > { %v1713_v42 = vld [vmem:[%s16207_s21 + $0xb38] sm:$0xff]  ;;  %v13857_v54 = vcombine.high %v1708_v30, %v1712_v32  ;;  %v13856_v34 = vcombine.low %v1708_v30, %v1712_v32 }
 0x3fc   : > { %v13859_v31 = vcombine.high %v1709_v57, %v1713_v42  ;;  %v13858_v39 = vcombine.low %v1709_v57, %v1713_v42 }
 0x3fd   : > { %8405 = vmatpush1.bf16.msra.mxu0 %v13800_v21  ;;  %8733 = vmatpush1.bf16.msra.mxu1 %v13802_v27  ;;  %v1716_v21 = vld [vmem:[%s16207_s21 + $0xb50] sm:$0xff] }
 0x3fe   : > { %8406 = vmatprep.subr.bf16.mxu0 %v13809_v28  ;;  %8734 = vmatprep.subr.bf16.mxu1 %v13811_v29  ;;  %v1720_v27 = vld [vmem:[%s16207_s21 + $0xb70] sm:$0xff]  ;;  %v1717_v28 = vld [vmem:[%s16207_s21 + $0xb58] sm:$0xff] }
 0x3ff   : > { %v1721_v29 = vld [vmem:[%s16207_s21 + $0xb78] sm:$0xff]  ;;  %v13865_v40 = vcombine.high %v1716_v21, %v1720_v27  ;;  %v13864_v53 = vcombine.low %v1716_v21, %v1720_v27 }
 0x400   : > { %v13867_v46 = vcombine.high %v1717_v28, %v1721_v29  ;;  %v13866_v17 = vcombine.low %v1717_v28, %v1721_v29  ;;  %v1772_v29 = vld [vmem:[%s16207_s21 + $0xd10] sm:$0xff] }
 0x401   : > { %8407 = vmatpush1.bf16.msra.mxu0 %v13808_v1  ;;  %8735 = vmatpush1.bf16.msra.mxu1 %v13810_v37  ;;  %v1724_v1 = vld [vmem:[%s16207_s21 + $0xb90] sm:$0xff] }
 0x402   : > { %8408 = vmatprep.subr.bf16.mxu0 %v13817_v63  ;;  %8736 = vmatprep.subr.bf16.mxu1 %v13819_v24  ;;  %v1728_v37 = vld [vmem:[%s16207_s21 + $0xbb0] sm:$0xff]  ;;  %v1725_v63 = vld [vmem:[%s16207_s21 + $0xb98] sm:$0xff] }
 0x403   : > { %v1729_v24 = vld [vmem:[%s16207_s21 + $0xbb8] sm:$0xff]  ;;  %v13873_v56 = vcombine.high %v1724_v1, %v1728_v37  ;;  %v13872_v9 = vcombine.low %v1724_v1, %v1728_v37 }
 0x404   : > { %v13875_v2 = vcombine.high %v1725_v63, %v1729_v24  ;;  %v13874_v52 = vcombine.low %v1725_v63, %v1729_v24  ;;  %v1780_v63 = vld [vmem:[%s16207_s21 + $0xd50] sm:$0xff] }
 0x405   : > { %8409 = vmatpush1.bf16.msra.mxu0 %v13816_v5  ;;  %8737 = vmatpush1.bf16.msra.mxu1 %v13818_v10  ;;  %v1732_v5 = vld [vmem:[%s16207_s21 + $0xbd0] sm:$0xff] }
 0x406   : > { %8410 = vmatprep.subr.bf16.mxu0 %v13825_v8  ;;  %8738 = vmatprep.subr.bf16.mxu1 %v13827_v6  ;;  %v1736_v10 = vld [vmem:[%s16207_s21 + $0xbf0] sm:$0xff]  ;;  %v1733_v8 = vld [vmem:[%s16207_s21 + $0xbd8] sm:$0xff] }
 0x407   : > { %v1737_v6 = vld [vmem:[%s16207_s21 + $0xbf8] sm:$0xff]  ;;  %v13881_v13 = vcombine.high %v1732_v5, %v1736_v10  ;;  %v13880_v59 = vcombine.low %v1732_v5, %v1736_v10  ;;  %v1784_v24 = vld [vmem:[%s16207_s21 + $0xd70] sm:$0xff] }
 0x408   : > { %v13883_v20 = vcombine.high %v1733_v8, %v1737_v6  ;;  %v13882_v12 = vcombine.low %v1733_v8, %v1737_v6  ;;  %v13929_v5 = vcombine.high %v1780_v63, %v1784_v24  ;;  %v1788_v8 = vld [vmem:[%s16207_s21 + $0xd90] sm:$0xff] }
 0x409   : > { %8411 = vmatpush1.bf16.msra.mxu0 %v13824_v7  ;;  %8739 = vmatpush1.bf16.msra.mxu1 %v13826_v18  ;;  %v1740_v7 = vld [vmem:[%s16207_s21 + $0xc10] sm:$0xff] }
 0x40a   : > { %8412 = vmatprep.subr.bf16.mxu0 %v13833_v15  ;;  %8740 = vmatprep.subr.bf16.mxu1 %v13835_v4  ;;  %v1744_v18 = vld [vmem:[%s16207_s21 + $0xc30] sm:$0xff]  ;;  %v1741_v15 = vld [vmem:[%s16207_s21 + $0xc18] sm:$0xff] }
 0x40b   : > { %v1745_v4 = vld [vmem:[%s16207_s21 + $0xc38] sm:$0xff]  ;;  %v13889_v22 = vcombine.high %v1740_v7, %v1744_v18  ;;  %v13888_v47 = vcombine.low %v1740_v7, %v1744_v18  ;;  %v1792_v6 = vld [vmem:[%s16207_s21 + $0xdb0] sm:$0xff] }
 0x40c   : > { %v13891_v23 = vcombine.high %v1741_v15, %v1745_v4  ;;  %v13890_v61 = vcombine.low %v1741_v15, %v1745_v4  ;;  %v13937_v7 = vcombine.high %v1788_v8, %v1792_v6  ;;  %v1796_v4 = vld [vmem:[%s16207_s21 + $0xdd0] sm:$0xff] }
 0x40d   : > { %8413 = vmatpush1.bf16.msra.mxu0 %v13832_v25  ;;  %8741 = vmatpush1.bf16.msra.mxu1 %v13834_v26  ;;  %v1748_v25 = vld [vmem:[%s16207_s21 + $0xc50] sm:$0xff] }
 0x40e   : > { %8414 = vmatprep.subr.bf16.mxu0 %v13841_v33  ;;  %8742 = vmatprep.subr.bf16.mxu1 %v13843_v36  ;;  %v1752_v26 = vld [vmem:[%s16207_s21 + $0xc70] sm:$0xff]  ;;  %v1749_v33 = vld [vmem:[%s16207_s21 + $0xc58] sm:$0xff] }
 0x40f   : > { %v1753_v36 = vld [vmem:[%s16207_s21 + $0xc78] sm:$0xff]  ;;  %v13897_v41 = vcombine.high %v1748_v25, %v1752_v26  ;;  %v13896_v30 = vcombine.low %v1748_v25, %v1752_v26 }
 0x410   : > { %v13899_v45 = vcombine.high %v1749_v33, %v1753_v36  ;;  %v13898_v32 = vcombine.low %v1749_v33, %v1753_v36  ;;  %v1801_v25 = vld [vmem:[%s16207_s21 + $0xdf8] sm:$0xff]  ;;  %v13936_v36 = vcombine.low %v1788_v8, %v1792_v6 }
 0x411   : > { %8415 = vmatpush1.bf16.msra.mxu0 %v13840_v49  ;;  %8743 = vmatpush1.bf16.msra.mxu1 %v13842_v58  ;;  %v1756_v49 = vld [vmem:[%s16207_s21 + $0xc90] sm:$0xff] }
 0x412   : > { %8416 = vmatprep.subr.bf16.mxu0 %v13849_v51  ;;  %8744 = vmatprep.subr.bf16.mxu1 %v13851_v60  ;;  %v1760_v58 = vld [vmem:[%s16207_s21 + $0xcb0] sm:$0xff]  ;;  %v1757_v51 = vld [vmem:[%s16207_s21 + $0xc98] sm:$0xff] }
 0x413   : > { %v1761_v60 = vld [vmem:[%s16207_s21 + $0xcb8] sm:$0xff]  ;;  %v13905_v57 = vcombine.high %v1756_v49, %v1760_v58 }
 0x414   : > { %v13907_v42 = vcombine.high %v1757_v51, %v1761_v60  ;;  %v13906_v21 = vcombine.low %v1757_v51, %v1761_v60  ;;  %v1804_v51 = vld [vmem:[%s16207_s21 + $0xe10] sm:$0xff] }
 0x415   : > { %8417 = vmatpush1.bf16.msra.mxu0 %v13848_v43  ;;  %8745 = vmatpush1.bf16.msra.mxu1 %v13850_v44  ;;  %v1764_v43 = vld [vmem:[%s16207_s21 + $0xcd0] sm:$0xff] }
 0x416   : > { %8418 = vmatprep.subr.bf16.mxu0 %v13857_v54  ;;  %8746 = vmatprep.subr.bf16.mxu1 %v13859_v31  ;;  %v1768_v44 = vld [vmem:[%s16207_s21 + $0xcf0] sm:$0xff]  ;;  %v1765_v54 = vld [vmem:[%s16207_s21 + $0xcd8] sm:$0xff] }
 0x417   : > { %v1769_v31 = vld [vmem:[%s16207_s21 + $0xcf8] sm:$0xff]  ;;  %v13913_v27 = vcombine.high %v1764_v43, %v1768_v44  ;;  %v1808_v60 = vld [vmem:[%s16207_s21 + $0xe30] sm:$0xff] }
 0x418   : > { %v13915_v28 = vcombine.high %v1765_v54, %v1769_v31 }
 0x419   : > { %8419 = vmatpush1.bf16.msra.mxu0 %v13856_v34  ;;  %8747 = vmatpush1.bf16.msra.mxu1 %v13858_v39  ;;  %v1776_v34 = vld [vmem:[%s16207_s21 + $0xd30] sm:$0xff]  ;;  %v1773_v39 = vld [vmem:[%s16207_s21 + $0xd18] sm:$0xff] }
 0x41a   : > { %8420 = vmatprep.subr.bf16.mxu0 %v13865_v40  ;;  %8748 = vmatprep.subr.bf16.mxu1 %v13867_v46  ;;  %v1777_v40 = vld [vmem:[%s16207_s21 + $0xd38] sm:$0xff]  ;;  %v13912_v46 = vcombine.low %v1764_v43, %v1768_v44  ;;  %v13921_v1 = vcombine.high %v1772_v29, %v1776_v34  ;;  %v13953_v43 = vcombine.high %v1804_v51, %v1808_v60 }
 0x41b   : > { %v13923_v37 = vcombine.high %v1773_v39, %v1777_v40 }
 0x41d   : > { %8421 = vmatpush1.bf16.msra.mxu0 %v13864_v53  ;;  %8749 = vmatpush1.bf16.msra.mxu1 %v13866_v17  ;;  %v1781_v53 = vld [vmem:[%s16207_s21 + $0xd58] sm:$0xff] }
 0x41e   : > { %8422 = vmatprep.subr.bf16.mxu0 %v13873_v56  ;;  %8750 = vmatprep.subr.bf16.mxu1 %v13875_v2  ;;  %v1785_v17 = vld [vmem:[%s16207_s21 + $0xd78] sm:$0xff]  ;;  %v13920_v56 = vcombine.low %v1772_v29, %v1776_v34  ;;  %v13922_v2 = vcombine.low %v1773_v39, %v1777_v40  ;;  %v1820_v39 = vld [vmem:[%s16207_s21 + $0xe90] sm:$0xff] }
 0x41f   : > { %v13931_v10 = vcombine.high %v1781_v53, %v1785_v17  ;;  %v1824_v40 = vld [vmem:[%s16207_s21 + $0xeb0] sm:$0xff] }
 0x421   : > { %8423 = vmatpush1.bf16.msra.mxu0 %v13872_v9  ;;  %8751 = vmatpush1.bf16.msra.mxu1 %v13874_v52  ;;  %v1789_v9 = vld [vmem:[%s16207_s21 + $0xd98] sm:$0xff] }
 0x422   : > { %8424 = vmatprep.subr.bf16.mxu0 %v13881_v13  ;;  %8752 = vmatprep.subr.bf16.mxu1 %v13883_v20  ;;  %v1793_v52 = vld [vmem:[%s16207_s21 + $0xdb8] sm:$0xff]  ;;  %v13928_v13 = vcombine.low %v1780_v63, %v1784_v24  ;;  %v13930_v20 = vcombine.low %v1781_v53, %v1785_v17  ;;  %v13969_v63 = vcombine.high %v1820_v39, %v1824_v40  ;;  %v1828_v53 = vld [vmem:[%s16207_s21 + $0xed0] sm:$0xff] }
 0x423   : > { %v13939_v15 = vcombine.high %v1789_v9, %v1793_v52  ;;  %v1832_v17 = vld [vmem:[%s16207_s21 + $0xef0] sm:$0xff] }
 0x424   : > { %v13977_v8 = vcombine.high %v1828_v53, %v1832_v17 }
 0x425   : > { %8425 = vmatpush1.bf16.msra.mxu0 %v13880_v59  ;;  %8753 = vmatpush1.bf16.msra.mxu1 %v13882_v12  ;;  %v1800_v59 = vld [vmem:[%s16207_s21 + $0xdf0] sm:$0xff] }
 0x426   : > { %8435 = vmatprep.subr.bf16.mxu0 %v13889_v22  ;;  %8763 = vmatprep.subr.bf16.mxu1 %v13891_v23  ;;  %v1797_v23 = vld [vmem:[%s16207_s21 + $0xdd8] sm:$0xff] }
 0x428   : > { %8427 = vmatmul.mubr.bf16.vlgmr.msra.gmra.mrb[4].mxu0 %v16663_v35  ;;  %8755 = vmatmul.mubr.bf16.vlgmr.msra.gmra.mrb[4].mxu1 %v16663_v35  ;;  %v13904_v35 = vcombine.low %v1756_v49, %v1760_v58  ;;  %v13947_v58 = vcombine.high %v1797_v23, %v1801_v25 }
 0x429   : > { %8436 = vmatpush1.bf16.msra.mxu0 %v13888_v47  ;;  %8764 = vmatpush1.bf16.msra.mxu1 %v13890_v61 }
 0x42a   : > { %8437 = vmatprep.subr.bf16.mxu0 %v13897_v41  ;;  %8765 = vmatprep.subr.bf16.mxu1 %v13899_v45  ;;  %v13938_v41 = vcombine.low %v1789_v9, %v1793_v52  ;;  %v13945_v45 = vcombine.high %v1796_v4, %v1800_v59  ;;  %v1836_v9 = vld [vmem:[%s16207_s21 + $0xf10] sm:$0xff] }
 0x42b   : > { %8467 = vmatprep.mubr.bf16.mxu0 %v16671_v0  ;;  %8795 = vmatprep.mubr.bf16.mxu1 %v16671_v0  ;;  %v13914_v0 = vcombine.low %v1765_v54, %v1769_v31  ;;  %v1812_v54 = vld [vmem:[%s16207_s21 + $0xe50] sm:$0xff] }
 0x42c   : > { %v1816_v31 = vld [vmem:[%s16207_s21 + $0xe70] sm:$0xff] }
 0x42d   : > { %8438 = vmatpush1.bf16.msra.mxu0 %v13896_v30  ;;  %8766 = vmatpush1.bf16.msra.mxu1 %v13898_v32  ;;  %v1805_v30 = vld [vmem:[%s16207_s21 + $0xe18] sm:$0xff]  ;;  %v13961_v29 = vcombine.high %v1812_v54, %v1816_v31  ;;  %v1840_v52 = vld [vmem:[%s16207_s21 + $0xf30] sm:$0xff] }
 0x42e   : > { %8439 = vmatprep.subr.bf16.mxu0 %v13905_v57  ;;  %8767 = vmatprep.subr.bf16.mxu1 %v13907_v42  ;;  %v1809_v32 = vld [vmem:[%s16207_s21 + $0xe38] sm:$0xff]  ;;  %v13944_v57 = vcombine.low %v1796_v4, %v1800_v59  ;;  %v13946_v42 = vcombine.low %v1797_v23, %v1801_v25  ;;  %v13985_v4 = vcombine.high %v1836_v9, %v1840_v52  ;;  %v1844_v23 = vld [vmem:[%s16207_s21 + $0xf50] sm:$0xff] }
 0x42f   : > { %v13955_v44 = vcombine.high %v1805_v30, %v1809_v32  ;;  %v1848_v25 = vld [vmem:[%s16207_s21 + $0xf70] sm:$0xff] }
 0x431   : > { %8440 = vmatpush1.bf16.msra.mxu0 %v13904_v35  ;;  %8768 = vmatpush1.bf16.msra.mxu1 %v13906_v21  ;;  %v1813_v35 = vld [vmem:[%s16207_s21 + $0xe58] sm:$0xff] }
 0x432   : > { %8441 = vmatprep.subr.bf16.mxu0 %v13913_v27  ;;  %8769 = vmatprep.subr.bf16.mxu1 %v13915_v28  ;;  %v1817_v21 = vld [vmem:[%s16207_s21 + $0xe78] sm:$0xff]  ;;  %v13952_v27 = vcombine.low %v1804_v51, %v1808_v60  ;;  %v13954_v28 = vcombine.low %v1805_v30, %v1809_v32  ;;  %v13992_v30 = vcombine.low %v1844_v23, %v1848_v25 }
 0x433   : > { %v13963_v34 = vcombine.high %v1813_v35, %v1817_v21  ;;  %v1853_v51 = vld [vmem:[%s16207_s21 + $0xf98] sm:$0xff] }
 0x434   : > { %v1857_v60 = vld [vmem:[%s16207_s21 + $0xfb8] sm:$0xff] }
 0x435   : > { %8442 = vmatpush1.bf16.msra.mxu0 %v13912_v46  ;;  %8770 = vmatpush1.bf16.msra.mxu1 %v13914_v0  ;;  %v1821_v46 = vld [vmem:[%s16207_s21 + $0xe98] sm:$0xff] }
 0x436   : > { %8443 = vmatprep.subr.bf16.mxu0 %v13921_v1  ;;  %8771 = vmatprep.subr.bf16.mxu1 %v13923_v37  ;;  %v1825_v0 = vld [vmem:[%s16207_s21 + $0xeb8] sm:$0xff]  ;;  %v13960_v1 = vcombine.low %v1812_v54, %v1816_v31  ;;  %v13962_v37 = vcombine.low %v1813_v35, %v1817_v21  ;;  %v14002_v21 = vcombine.low %v1853_v51, %v1857_v60 }
 0x437   : > { %v13971_v24 = vcombine.high %v1821_v46, %v1825_v0  ;;  %v1861_v54 = vld [vmem:[%s16207_s21 + $0xfd8] sm:$0xff] }
 0x438   : > { %v1865_v31 = vld [vmem:[%s16207_s21 + $0xff8] sm:$0xff] }
 0x439   : > { %8444 = vmatpush1.bf16.msra.mxu0 %v13920_v56  ;;  %8772 = vmatpush1.bf16.msra.mxu1 %v13922_v2  ;;  %v1829_v56 = vld [vmem:[%s16207_s21 + $0xed8] sm:$0xff] }
 0x43a   : > { %8445 = vmatprep.subr.bf16.mxu0 %v13929_v5  ;;  %8773 = vmatprep.subr.bf16.mxu1 %v13931_v10  ;;  %v1833_v2 = vld [vmem:[%s16207_s21 + $0xef8] sm:$0xff]  ;;  %v13968_v5 = vcombine.low %v1820_v39, %v1824_v40  ;;  %v13970_v10 = vcombine.low %v1821_v46, %v1825_v0  ;;  %v14010_v0 = vcombine.low %v1861_v54, %v1865_v31 }
 0x43b   : > { %v17288_v18 = vpop.f32.mrb[0].mxu0  ;;  %v17292_v12 = vpop.f32.mrb[0].mxu1  ;;  %v13979_v6 = vcombine.high %v1829_v56, %v1833_v2  ;;  %v1869_v39 = vld [vmem:[%s16207_s21 + $0x1018] sm:$0xff] }
 0x43c   : > { %v17294_v22 = vpop.f32.mrb[1].mxu0  ;;  %v17298_v26 = vpop.f32.mrb[1].mxu1  ;;  %v1873_v40 = vld [vmem:[%s16207_s21 + $0x1038] sm:$0xff] }
 0x43d   : > { %v7981_v33 = vpop.f32.mrb[2].mxu0  ;;  %8446 = vmatpush1.bf16.msra.mxu0 %v13928_v13  ;;  %v8309_v47 = vpop.f32.mrb[2].mxu1  ;;  %8774 = vmatpush1.bf16.msra.mxu1 %v13930_v20  ;;  %v1837_v13 = vld [vmem:[%s16207_s21 + $0xf18] sm:$0xff] }
 0x43e   : > { %v7982_v61 = vpop.f32.mrb[3].mxu0  ;;  %8447 = vmatprep.subr.bf16.mxu0 %v13937_v7  ;;  %v8310_v49 = vpop.f32.mrb[3].mxu1  ;;  %8775 = vmatprep.subr.bf16.mxu1 %v13939_v15  ;;  %v1841_v20 = vld [vmem:[%s16207_s21 + $0xf38] sm:$0xff]  ;;  %v13976_v7 = vcombine.low %v1828_v53, %v1832_v17  ;;  %v13978_v15 = vcombine.low %v1829_v56, %v1833_v2  ;;  %v13984_v47 = vcombine.low %v1836_v9, %v1840_v52 }
 0x43f   : > { %v13987_v59 = vcombine.high %v1837_v13, %v1841_v20  ;;  %v1845_v33 = vld [vmem:[%s16207_s21 + $0xf58] sm:$0xff]  ;;  %v13986_v61 = vcombine.low %v1837_v13, %v1841_v20  ;;  %v1852_v49 = vld [vmem:[%s16207_s21 + $0xf90] sm:$0xff]  ;;  %v14018_v2 = vcombine.low %v1869_v39, %v1873_v40 }
 0x440   : > { %v1877_v53 = vld [vmem:[%s16207_s21 + $0x1058] sm:$0xff] }
 0x441   : > { %8448 = vmatpush1.bf16.msra.mxu0 %v13936_v36  ;;  %8776 = vmatpush1.bf16.msra.mxu1 %v13938_v41  ;;  %v1849_v36 = vld [vmem:[%s16207_s21 + $0xf78] sm:$0xff]  ;;  %v13993_v41 = vcombine.high %v1844_v23, %v1848_v25 }
 0x442   : > { %8449 = vmatprep.subr.bf16.mxu0 %v13945_v45  ;;  %8777 = vmatprep.subr.bf16.mxu1 %v13947_v58  ;;  %v13995_v45 = vcombine.high %v1845_v33, %v1849_v36  ;;  %v1856_v58 = vld [vmem:[%s16207_s21 + $0xfb0] sm:$0xff]  ;;  %v13994_v32 = vcombine.low %v1845_v33, %v1849_v36  ;;  %v1881_v17 = vld [vmem:[%s16207_s21 + $0x1078] sm:$0xff] }
 0x443   : > { %v14000_v35 = vcombine.low %v1852_v49, %v1856_v58  ;;  %v1885_v9 = vld [vmem:[%s16207_s21 + $0x1098] sm:$0xff]  ;;  %v14026_v20 = vcombine.low %v1877_v53, %v1881_v17 }
 0x444   : > { %v1889_v52 = vld [vmem:[%s16207_s21 + $0x10b8] sm:$0xff] }
 0x445   : > { %8450 = vmatpush1.bf16.msra.mxu0 %v13944_v57  ;;  %8778 = vmatpush1.bf16.msra.mxu1 %v13946_v42  ;;  %v14001_v57 = vcombine.high %v1852_v49, %v1856_v58  ;;  %v14003_v42 = vcombine.high %v1853_v51, %v1857_v60  ;;  %v1893_v23 = vld [vmem:[%s16207_s21 + $0x10d8] sm:$0xff]  ;;  %v14034_v33 = vcombine.low %v1885_v9, %v1889_v52 }
 0x446   : > { %8451 = vmatprep.subr.bf16.mxu0 %v13953_v43  ;;  %8779 = vmatprep.subr.bf16.mxu1 %v13955_v44  ;;  %v1860_v43 = vld [vmem:[%s16207_s21 + $0xfd0] sm:$0xff]  ;;  %v1897_v25 = vld [vmem:[%s16207_s21 + $0x10f8] sm:$0xff] }
 0x447   : > { %v1864_v44 = vld [vmem:[%s16207_s21 + $0xff0] sm:$0xff]  ;;  %v1905_v49 = vld [vmem:[%s16207_s21 + $0x1138] sm:$0xff] }
 0x448   : > { %v14008_v46 = vcombine.low %v1860_v43, %v1864_v44 }
 0x449   : > { %8452 = vmatpush1.bf16.msra.mxu0 %v13952_v27  ;;  %8780 = vmatpush1.bf16.msra.mxu1 %v13954_v28  ;;  %v14009_v27 = vcombine.high %v1860_v43, %v1864_v44  ;;  %v14011_v28 = vcombine.high %v1861_v54, %v1865_v31 }
 0x44a   : > { %8453 = vmatprep.subr.bf16.mxu0 %v13961_v29  ;;  %8781 = vmatprep.subr.bf16.mxu1 %v13963_v34  ;;  %v1868_v29 = vld [vmem:[%s16207_s21 + $0x1010] sm:$0xff] }
 0x44b   : > { %v1872_v34 = vld [vmem:[%s16207_s21 + $0x1030] sm:$0xff] }
 0x44c   : > { %v14016_v56 = vcombine.low %v1868_v29, %v1872_v34 }
 0x44d   : > { %8454 = vmatpush1.bf16.msra.mxu0 %v13960_v1  ;;  %8782 = vmatpush1.bf16.msra.mxu1 %v13962_v37  ;;  %v14017_v1 = vcombine.high %v1868_v29, %v1872_v34  ;;  %v14019_v37 = vcombine.high %v1869_v39, %v1873_v40 }
 0x44e   : > { %8455 = vmatprep.subr.bf16.mxu0 %v13969_v63  ;;  %8783 = vmatprep.subr.bf16.mxu1 %v13971_v24  ;;  %v1876_v63 = vld [vmem:[%s16207_s21 + $0x1050] sm:$0xff] }
 0x44f   : > { %v1880_v24 = vld [vmem:[%s16207_s21 + $0x1070] sm:$0xff] }
 0x450   : > { %v14024_v13 = vcombine.low %v1876_v63, %v1880_v24 }
 0x451   : > { %8456 = vmatpush1.bf16.msra.mxu0 %v13968_v5  ;;  %8784 = vmatpush1.bf16.msra.mxu1 %v13970_v10  ;;  %v14025_v5 = vcombine.high %v1876_v63, %v1880_v24  ;;  %v14027_v10 = vcombine.high %v1877_v53, %v1881_v17 }
 0x452   : > { %8457 = vmatprep.subr.bf16.mxu0 %v13977_v8  ;;  %8785 = vmatprep.subr.bf16.mxu1 %v13979_v6  ;;  %v1884_v8 = vld [vmem:[%s16207_s21 + $0x1090] sm:$0xff] }
 0x453   : > { %v1888_v6 = vld [vmem:[%s16207_s21 + $0x10b0] sm:$0xff] }
 0x455   : > { %8458 = vmatpush1.bf16.msra.mxu0 %v13976_v7  ;;  %8786 = vmatpush1.bf16.msra.mxu1 %v13978_v15  ;;  %v14033_v7 = vcombine.high %v1884_v8, %v1888_v6  ;;  %v14035_v15 = vcombine.high %v1885_v9, %v1889_v52 }
 0x456   : > { %8459 = vmatprep.subr.bf16.mxu0 %v13985_v4  ;;  %8787 = vmatprep.subr.bf16.mxu1 %v13987_v59  ;;  %v1892_v4 = vld [vmem:[%s16207_s21 + $0x10d0] sm:$0xff] }
 0x457   : > { %v1896_v59 = vld [vmem:[%s16207_s21 + $0x10f0] sm:$0xff] }
 0x458   : > { %v14041_v36 = vcombine.high %v1892_v4, %v1896_v59  ;;  %v14040_v58 = vcombine.low %v1892_v4, %v1896_v59 }
 0x459   : > { %8460 = vmatpush1.bf16.msra.mxu0 %v13984_v47  ;;  %8788 = vmatpush1.bf16.msra.mxu1 %v13986_v61  ;;  %v14043_v47 = vcombine.high %v1893_v23, %v1897_v25  ;;  %v1900_v61 = vld [vmem:[%s16207_s21 + $0x1110] sm:$0xff] }
 0x45a   : > { %8461 = vmatprep.subr.bf16.mxu0 %v13993_v41  ;;  %8789 = vmatprep.subr.bf16.mxu1 %v13995_v45  ;;  %v1904_v41 = vld [vmem:[%s16207_s21 + $0x1130] sm:$0xff]  ;;  %v1901_v45 = vld [vmem:[%s16207_s21 + $0x1118] sm:$0xff] }
 0x45b   : > { %v14049_v51 = vcombine.high %v1900_v61, %v1904_v41  ;;  %v14051_v60 = vcombine.high %v1901_v45, %v1905_v49  ;;  %v14048_v43 = vcombine.low %v1900_v61, %v1904_v41  ;;  %v14050_v44 = vcombine.low %v1901_v45, %v1905_v49 }
 0x45d   : > { %8462 = vmatpush1.bf16.msra.mxu0 %v13992_v30  ;;  %8790 = vmatpush1.bf16.msra.mxu1 %v13994_v32  ;;  %v1908_v30 = vld [vmem:[%s16207_s21 + $0x1150] sm:$0xff] }
 0x45e   : > { %8463 = vmatprep.subr.bf16.mxu0 %v14001_v57  ;;  %8791 = vmatprep.subr.bf16.mxu1 %v14003_v42  ;;  %v1912_v32 = vld [vmem:[%s16207_s21 + $0x1170] sm:$0xff]  ;;  %v1909_v57 = vld [vmem:[%s16207_s21 + $0x1158] sm:$0xff] }
 0x45f   : > { %v1913_v42 = vld [vmem:[%s16207_s21 + $0x1178] sm:$0xff]  ;;  %v14057_v54 = vcombine.high %v1908_v30, %v1912_v32  ;;  %v14056_v29 = vcombine.low %v1908_v30, %v1912_v32 }
 0x460   : > { %v14059_v31 = vcombine.high %v1909_v57, %v1913_v42  ;;  %v14058_v34 = vcombine.low %v1909_v57, %v1913_v42 }
 0x461   : > { %8464 = vmatpush1.bf16.msra.mxu0 %v14000_v35  ;;  %8792 = vmatpush1.bf16.msra.mxu1 %v14002_v21  ;;  %v1916_v35 = vld [vmem:[%s16207_s21 + $0x1190] sm:$0xff] }
 0x462   : > { %8465 = vmatprep.subr.bf16.mxu0 %v14009_v27  ;;  %8793 = vmatprep.subr.bf16.mxu1 %v14011_v28  ;;  %v1920_v21 = vld [vmem:[%s16207_s21 + $0x11b0] sm:$0xff]  ;;  %v1917_v27 = vld [vmem:[%s16207_s21 + $0x1198] sm:$0xff] }
 0x463   : > { %v1921_v28 = vld [vmem:[%s16207_s21 + $0x11b8] sm:$0xff]  ;;  %v14065_v39 = vcombine.high %v1916_v35, %v1920_v21  ;;  %v14064_v63 = vcombine.low %v1916_v35, %v1920_v21 }
 0x464   : > { %v14067_v40 = vcombine.high %v1917_v27, %v1921_v28  ;;  %v14066_v24 = vcombine.low %v1917_v27, %v1921_v28 }
 0x465   : > { %8466 = vmatpush1.bf16.msra.mxu0 %v14008_v46  ;;  %8794 = vmatpush1.bf16.msra.mxu1 %v14010_v0  ;;  %v1924_v46 = vld [vmem:[%s16207_s21 + $0x11d0] sm:$0xff] }
 0x466   : > { %8476 = vmatprep.subr.bf16.mxu0 %v14017_v1  ;;  %8804 = vmatprep.subr.bf16.mxu1 %v14019_v37  ;;  %v1928_v0 = vld [vmem:[%s16207_s21 + $0x11f0] sm:$0xff]  ;;  %v1925_v1 = vld [vmem:[%s16207_s21 + $0x11d8] sm:$0xff] }
 0x467   : > { %v1929_v37 = vld [vmem:[%s16207_s21 + $0x11f8] sm:$0xff]  ;;  %v14073_v53 = vcombine.high %v1924_v46, %v1928_v0 }
 0x468   : > { %8468 = vmatmul.mubr.bf16.vlgmr.msra.gmra.mrb[4].mxu0 %v16747_v14  ;;  %8796 = vmatmul.mubr.bf16.vlgmr.msra.gmra.mrb[4].mxu1 %v16747_v14  ;;  %v14032_v14 = vcombine.low %v1884_v8, %v1888_v6  ;;  %v14075_v17 = vcombine.high %v1925_v1, %v1929_v37  ;;  %v14072_v8 = vcombine.low %v1924_v46, %v1928_v0 }
 0x469   : > { %8477 = vmatpush1.bf16.msra.mxu0 %v14016_v56  ;;  %8805 = vmatpush1.bf16.msra.mxu1 %v14018_v2  ;;  %v1932_v56 = vld [vmem:[%s16207_s21 + $0x1210] sm:$0xff]  ;;  %v14074_v6 = vcombine.low %v1925_v1, %v1929_v37 }
 0x46a   : > { %8478 = vmatprep.subr.bf16.mxu0 %v14025_v5  ;;  %8806 = vmatprep.subr.bf16.mxu1 %v14027_v10  ;;  %v1936_v2 = vld [vmem:[%s16207_s21 + $0x1230] sm:$0xff]  ;;  %v1933_v5 = vld [vmem:[%s16207_s21 + $0x1218] sm:$0xff] }
 0x46b   : > { %8508 = vmatprep.mubr.bf16.mxu0 %v16754_v38  ;;  %8836 = vmatprep.mubr.bf16.mxu1 %v16754_v38  ;;  %v14042_v38 = vcombine.low %v1893_v23, %v1897_v25  ;;  %v1937_v10 = vld [vmem:[%s16207_s21 + $0x1238] sm:$0xff]  ;;  %v14081_v9 = vcombine.high %v1932_v56, %v1936_v2  ;;  %v14080_v4 = vcombine.low %v1932_v56, %v1936_v2 }
 0x46c   : > { %v14083_v52 = vcombine.high %v1933_v5, %v1937_v10  ;;  %v14082_v59 = vcombine.low %v1933_v5, %v1937_v10 }
 0x46d   : > { %8479 = vmatpush1.bf16.msra.mxu0 %v14024_v13  ;;  %8807 = vmatpush1.bf16.msra.mxu1 %v14026_v20  ;;  %v1940_v13 = vld [vmem:[%s16207_s21 + $0x1250] sm:$0xff] }
 0x46e   : > { %8480 = vmatprep.subr.bf16.mxu0 %v14033_v7  ;;  %8808 = vmatprep.subr.bf16.mxu1 %v14035_v15  ;;  %v1944_v20 = vld [vmem:[%s16207_s21 + $0x1270] sm:$0xff]  ;;  %v1941_v7 = vld [vmem:[%s16207_s21 + $0x1258] sm:$0xff] }
 0x46f   : > { %v1945_v15 = vld [vmem:[%s16207_s21 + $0x1278] sm:$0xff]  ;;  %v14089_v23 = vcombine.high %v1940_v13, %v1944_v20  ;;  %v14088_v61 = vcombine.low %v1940_v13, %v1944_v20 }
 0x470   : > { %v14091_v25 = vcombine.high %v1941_v7, %v1945_v15  ;;  %v14090_v41 = vcombine.low %v1941_v7, %v1945_v15 }
 0x471   : > { %8481 = vmatpush1.bf16.msra.mxu0 %v14032_v14  ;;  %8809 = vmatpush1.bf16.msra.mxu1 %v14034_v33  ;;  %v1948_v14 = vld [vmem:[%s16207_s21 + $0x1290] sm:$0xff] }
 0x472   : > { %8482 = vmatprep.subr.bf16.mxu0 %v14041_v36  ;;  %8810 = vmatprep.subr.bf16.mxu1 %v14043_v47  ;;  %v1952_v33 = vld [vmem:[%s16207_s21 + $0x12b0] sm:$0xff]  ;;  %v1949_v36 = vld [vmem:[%s16207_s21 + $0x1298] sm:$0xff] }
 0x473   : > { %v1953_v47 = vld [vmem:[%s16207_s21 + $0x12b8] sm:$0xff]  ;;  %v14097_v45 = vcombine.high %v1948_v14, %v1952_v33  ;;  %v14096_v30 = vcombine.low %v1948_v14, %v1952_v33 }
 0x474   : > { %v14099_v49 = vcombine.high %v1949_v36, %v1953_v47  ;;  %v14098_v32 = vcombine.low %v1949_v36, %v1953_v47 }
 0x475   : > { %8483 = vmatpush1.bf16.msra.mxu0 %v14040_v58  ;;  %8811 = vmatpush1.bf16.msra.mxu1 %v14042_v38  ;;  %v1956_v58 = vld [vmem:[%s16207_s21 + $0x12d0] sm:$0xff] }
 0x476   : > { %8484 = vmatprep.subr.bf16.mxu0 %v14049_v51  ;;  %8812 = vmatprep.subr.bf16.mxu1 %v14051_v60  ;;  %v1960_v38 = vld [vmem:[%s16207_s21 + $0x12f0] sm:$0xff]  ;;  %v1957_v51 = vld [vmem:[%s16207_s21 + $0x12d8] sm:$0xff] }
 0x477   : > { %v1961_v60 = vld [vmem:[%s16207_s21 + $0x12f8] sm:$0xff]  ;;  %v14105_v57 = vcombine.high %v1956_v58, %v1960_v38  ;;  %v14104_v35 = vcombine.low %v1956_v58, %v1960_v38 }
 0x478   : > { %v14107_v42 = vcombine.high %v1957_v51, %v1961_v60  ;;  %v14106_v21 = vcombine.low %v1957_v51, %v1961_v60 }
 0x479   : > { %8485 = vmatpush1.bf16.msra.mxu0 %v14048_v43  ;;  %8813 = vmatpush1.bf16.msra.mxu1 %v14050_v44  ;;  %v1964_v43 = vld [vmem:[%s16207_s21 + $0x1310] sm:$0xff] }
 0x47a   : > { %8486 = vmatprep.subr.bf16.mxu0 %v14057_v54  ;;  %8814 = vmatprep.subr.bf16.mxu1 %v14059_v31  ;;  %v1968_v44 = vld [vmem:[%s16207_s21 + $0x1330] sm:$0xff]  ;;  %v1965_v54 = vld [vmem:[%s16207_s21 + $0x1318] sm:$0xff] }
 0x47b   : > { %v1969_v31 = vld [vmem:[%s16207_s21 + $0x1338] sm:$0xff]  ;;  %v14113_v27 = vcombine.high %v1964_v43, %v1968_v44  ;;  %v14112_v46 = vcombine.low %v1964_v43, %v1968_v44 }
 0x47c   : > { %v14115_v28 = vcombine.high %v1965_v54, %v1969_v31  ;;  %v14114_v0 = vcombine.low %v1965_v54, %v1969_v31 }
 0x47d   : > { %8487 = vmatpush1.bf16.msra.mxu0 %v14056_v29  ;;  %8815 = vmatpush1.bf16.msra.mxu1 %v14058_v34  ;;  %v1972_v29 = vld [vmem:[%s16207_s21 + $0x1350] sm:$0xff] }
 0x47e   : > { %8488 = vmatprep.subr.bf16.mxu0 %v14065_v39  ;;  %8816 = vmatprep.subr.bf16.mxu1 %v14067_v40  ;;  %v1976_v34 = vld [vmem:[%s16207_s21 + $0x1370] sm:$0xff]  ;;  %v1973_v39 = vld [vmem:[%s16207_s21 + $0x1358] sm:$0xff] }
 0x47f   : > { %v1977_v40 = vld [vmem:[%s16207_s21 + $0x1378] sm:$0xff]  ;;  %v14121_v1 = vcombine.high %v1972_v29, %v1976_v34  ;;  %v14120_v56 = vcombine.low %v1972_v29, %v1976_v34 }
 0x480   : > { %v14123_v37 = vcombine.high %v1973_v39, %v1977_v40  ;;  %v14122_v2 = vcombine.low %v1973_v39, %v1977_v40  ;;  %v2028_v40 = vld [vmem:[%s16207_s21 + $0x1510] sm:$0xff] }
 0x481   : > { %8489 = vmatpush1.bf16.msra.mxu0 %v14064_v63  ;;  %8817 = vmatpush1.bf16.msra.mxu1 %v14066_v24  ;;  %v1980_v63 = vld [vmem:[%s16207_s21 + $0x1390] sm:$0xff] }
 0x482   : > { %8490 = vmatprep.subr.bf16.mxu0 %v14073_v53  ;;  %8818 = vmatprep.subr.bf16.mxu1 %v14075_v17  ;;  %v1984_v24 = vld [vmem:[%s16207_s21 + $0x13b0] sm:$0xff]  ;;  %v1981_v53 = vld [vmem:[%s16207_s21 + $0x1398] sm:$0xff] }
 0x483   : > { %v1985_v17 = vld [vmem:[%s16207_s21 + $0x13b8] sm:$0xff]  ;;  %v14129_v5 = vcombine.high %v1980_v63, %v1984_v24  ;;  %v14128_v13 = vcombine.low %v1980_v63, %v1984_v24 }
 0x484   : > { %v14131_v10 = vcombine.high %v1981_v53, %v1985_v17  ;;  %v14130_v20 = vcombine.low %v1981_v53, %v1985_v17  ;;  %v2036_v53 = vld [vmem:[%s16207_s21 + $0x1550] sm:$0xff] }
 0x485   : > { %8491 = vmatpush1.bf16.msra.mxu0 %v14072_v8  ;;  %8819 = vmatpush1.bf16.msra.mxu1 %v14074_v6  ;;  %v1988_v8 = vld [vmem:[%s16207_s21 + $0x13d0] sm:$0xff] }
 0x486   : > { %8492 = vmatprep.subr.bf16.mxu0 %v14081_v9  ;;  %8820 = vmatprep.subr.bf16.mxu1 %v14083_v52  ;;  %v1992_v6 = vld [vmem:[%s16207_s21 + $0x13f0] sm:$0xff]  ;;  %v1989_v9 = vld [vmem:[%s16207_s21 + $0x13d8] sm:$0xff] }
 0x487   : > { %v1993_v52 = vld [vmem:[%s16207_s21 + $0x13f8] sm:$0xff]  ;;  %v14137_v7 = vcombine.high %v1988_v8, %v1992_v6  ;;  %v14136_v14 = vcombine.low %v1988_v8, %v1992_v6  ;;  %v2040_v17 = vld [vmem:[%s16207_s21 + $0x1570] sm:$0xff] }
 0x488   : > { %v14139_v15 = vcombine.high %v1989_v9, %v1993_v52  ;;  %v14138_v33 = vcombine.low %v1989_v9, %v1993_v52  ;;  %v14185_v8 = vcombine.high %v2036_v53, %v2040_v17  ;;  %v2044_v9 = vld [vmem:[%s16207_s21 + $0x1590] sm:$0xff] }
 0x489   : > { %8493 = vmatpush1.bf16.msra.mxu0 %v14080_v4  ;;  %8821 = vmatpush1.bf16.msra.mxu1 %v14082_v59  ;;  %v1996_v4 = vld [vmem:[%s16207_s21 + $0x1410] sm:$0xff] }
 0x48a   : > { %8494 = vmatprep.subr.bf16.mxu0 %v14089_v23  ;;  %8822 = vmatprep.subr.bf16.mxu1 %v14091_v25  ;;  %v2000_v59 = vld [vmem:[%s16207_s21 + $0x1430] sm:$0xff]  ;;  %v1997_v23 = vld [vmem:[%s16207_s21 + $0x1418] sm:$0xff] }
 0x48b   : > { %v2001_v25 = vld [vmem:[%s16207_s21 + $0x1438] sm:$0xff]  ;;  %v14145_v36 = vcombine.high %v1996_v4, %v2000_v59  ;;  %v14144_v58 = vcombine.low %v1996_v4, %v2000_v59  ;;  %v2048_v52 = vld [vmem:[%s16207_s21 + $0x15b0] sm:$0xff] }
 0x48c   : > { %v14147_v47 = vcombine.high %v1997_v23, %v2001_v25  ;;  %v14146_v38 = vcombine.low %v1997_v23, %v2001_v25  ;;  %v14193_v4 = vcombine.high %v2044_v9, %v2048_v52  ;;  %v2052_v23 = vld [vmem:[%s16207_s21 + $0x15d0] sm:$0xff] }
 0x48d   : > { %8495 = vmatpush1.bf16.msra.mxu0 %v14088_v61  ;;  %8823 = vmatpush1.bf16.msra.mxu1 %v14090_v41  ;;  %v2004_v61 = vld [vmem:[%s16207_s21 + $0x1450] sm:$0xff] }
 0x48e   : > { %8496 = vmatprep.subr.bf16.mxu0 %v14097_v45  ;;  %8824 = vmatprep.subr.bf16.mxu1 %v14099_v49  ;;  %v2008_v41 = vld [vmem:[%s16207_s21 + $0x1470] sm:$0xff]  ;;  %v2005_v45 = vld [vmem:[%s16207_s21 + $0x1458] sm:$0xff] }
 0x48f   : > { %v2009_v49 = vld [vmem:[%s16207_s21 + $0x1478] sm:$0xff]  ;;  %v14153_v51 = vcombine.high %v2004_v61, %v2008_v41  ;;  %v14152_v43 = vcombine.low %v2004_v61, %v2008_v41  ;;  %v2056_v25 = vld [vmem:[%s16207_s21 + $0x15f0] sm:$0xff] }
 0x490   : > { %v14155_v60 = vcombine.high %v2005_v45, %v2009_v49  ;;  %v14154_v44 = vcombine.low %v2005_v45, %v2009_v49  ;;  %v14201_v61 = vcombine.high %v2052_v23, %v2056_v25  ;;  %v2060_v45 = vld [vmem:[%s16207_s21 + $0x1610] sm:$0xff] }
 0x491   : > { %8497 = vmatpush1.bf16.msra.mxu0 %v14096_v30  ;;  %8825 = vmatpush1.bf16.msra.mxu1 %v14098_v32  ;;  %v2012_v30 = vld [vmem:[%s16207_s21 + $0x1490] sm:$0xff] }
 0x492   : > { %8498 = vmatprep.subr.bf16.mxu0 %v14105_v57  ;;  %8826 = vmatprep.subr.bf16.mxu1 %v14107_v42  ;;  %v2016_v32 = vld [vmem:[%s16207_s21 + $0x14b0] sm:$0xff]  ;;  %v2013_v57 = vld [vmem:[%s16207_s21 + $0x1498] sm:$0xff] }
 0x493   : > { %v2017_v42 = vld [vmem:[%s16207_s21 + $0x14b8] sm:$0xff]  ;;  %v14161_v54 = vcombine.high %v2012_v30, %v2016_v32  ;;  %v2064_v49 = vld [vmem:[%s16207_s21 + $0x1630] sm:$0xff] }
 0x494   : > { %v14163_v31 = vcombine.high %v2013_v57, %v2017_v42  ;;  %v14162_v29 = vcombine.low %v2013_v57, %v2017_v42  ;;  %v2068_v57 = vld [vmem:[%s16207_s21 + $0x1650] sm:$0xff] }
 0x495   : > { %8499 = vmatpush1.bf16.msra.mxu0 %v14104_v35  ;;  %8827 = vmatpush1.bf16.msra.mxu1 %v14106_v21  ;;  %v2020_v35 = vld [vmem:[%s16207_s21 + $0x14d0] sm:$0xff] }
 0x496   : > { %8500 = vmatprep.subr.bf16.mxu0 %v14113_v27  ;;  %8828 = vmatprep.subr.bf16.mxu1 %v14115_v28  ;;  %v2024_v21 = vld [vmem:[%s16207_s21 + $0x14f0] sm:$0xff]  ;;  %v2021_v27 = vld [vmem:[%s16207_s21 + $0x14d8] sm:$0xff] }
 0x497   : > { %v2025_v28 = vld [vmem:[%s16207_s21 + $0x14f8] sm:$0xff]  ;;  %v14169_v34 = vcombine.high %v2020_v35, %v2024_v21  ;;  %v2072_v42 = vld [vmem:[%s16207_s21 + $0x1670] sm:$0xff] }
 0x498   : > { %v14171_v39 = vcombine.high %v2021_v27, %v2025_v28 }
 0x499   : > { %8501 = vmatpush1.bf16.msra.mxu0 %v14112_v46  ;;  %8829 = vmatpush1.bf16.msra.mxu1 %v14114_v0  ;;  %v2032_v46 = vld [vmem:[%s16207_s21 + $0x1530] sm:$0xff]  ;;  %v2029_v0 = vld [vmem:[%s16207_s21 + $0x1518] sm:$0xff] }
 0x49a   : > { %8502 = vmatprep.subr.bf16.mxu0 %v14121_v1  ;;  %8830 = vmatprep.subr.bf16.mxu1 %v14123_v37  ;;  %v2033_v1 = vld [vmem:[%s16207_s21 + $0x1538] sm:$0xff]  ;;  %v14168_v37 = vcombine.low %v2020_v35, %v2024_v21  ;;  %v14177_v63 = vcombine.high %v2028_v40, %v2032_v46  ;;  %v14217_v35 = vcombine.high %v2068_v57, %v2072_v42 }
 0x49b   : > { %v14179_v24 = vcombine.high %v2029_v0, %v2033_v1 }
 0x49d   : > { %8503 = vmatpush1.bf16.msra.mxu0 %v14120_v56  ;;  %8831 = vmatpush1.bf16.msra.mxu1 %v14122_v2  ;;  %v2037_v56 = vld [vmem:[%s16207_s21 + $0x1558] sm:$0xff] }
 0x49e   : > { %8504 = vmatprep.subr.bf16.mxu0 %v14129_v5  ;;  %8832 = vmatprep.subr.bf16.mxu1 %v14131_v10  ;;  %v2041_v2 = vld [vmem:[%s16207_s21 + $0x1578] sm:$0xff]  ;;  %v14176_v5 = vcombine.low %v2028_v40, %v2032_v46  ;;  %v14178_v10 = vcombine.low %v2029_v0, %v2033_v1  ;;  %v2084_v0 = vld [vmem:[%s16207_s21 + $0x16d0] sm:$0xff] }
 0x49f   : > { %v14187_v6 = vcombine.high %v2037_v56, %v2041_v2  ;;  %v2088_v1 = vld [vmem:[%s16207_s21 + $0x16f0] sm:$0xff] }
 0x4a1   : > { %8505 = vmatpush1.bf16.msra.mxu0 %v14128_v13  ;;  %8833 = vmatpush1.bf16.msra.mxu1 %v14130_v20  ;;  %v2045_v13 = vld [vmem:[%s16207_s21 + $0x1598] sm:$0xff] }
 0x4a2   : > { %8506 = vmatprep.subr.bf16.mxu0 %v14137_v7  ;;  %8834 = vmatprep.subr.bf16.mxu1 %v14139_v15  ;;  %v2049_v20 = vld [vmem:[%s16207_s21 + $0x15b8] sm:$0xff]  ;;  %v14184_v7 = vcombine.low %v2036_v53, %v2040_v17  ;;  %v14186_v15 = vcombine.low %v2037_v56, %v2041_v2  ;;  %v14233_v53 = vcombine.high %v2084_v0, %v2088_v1  ;;  %v2092_v56 = vld [vmem:[%s16207_s21 + $0x1710] sm:$0xff] }
 0x4a3   : > { %v14195_v59 = vcombine.high %v2045_v13, %v2049_v20  ;;  %v2096_v2 = vld [vmem:[%s16207_s21 + $0x1730] sm:$0xff] }
 0x4a5   : > { %8507 = vmatpush1.bf16.msra.mxu0 %v14136_v14  ;;  %8835 = vmatpush1.bf16.msra.mxu1 %v14138_v33  ;;  %v2053_v14 = vld [vmem:[%s16207_s21 + $0x15d8] sm:$0xff] }
 0x4a6   : > { %8517 = vmatprep.subr.bf16.mxu0 %v14145_v36  ;;  %8845 = vmatprep.subr.bf16.mxu1 %v14147_v47  ;;  %v2057_v33 = vld [vmem:[%s16207_s21 + $0x15f8] sm:$0xff]  ;;  %v14192_v36 = vcombine.low %v2044_v9, %v2048_v52  ;;  %v14194_v47 = vcombine.low %v2045_v13, %v2049_v20  ;;  %v14241_v9 = vcombine.high %v2092_v56, %v2096_v2  ;;  %v2100_v13 = vld [vmem:[%s16207_s21 + $0x1750] sm:$0xff] }
 0x4a7   : > { %v14203_v41 = vcombine.high %v2053_v14, %v2057_v33  ;;  %v2104_v20 = vld [vmem:[%s16207_s21 + $0x1770] sm:$0xff] }
 0x4a8   : > { %8509 = vmatmul.mubr.bf16.vlgmr.msra.gmra.mrb[4].mxu0 %v16822_v19  ;;  %8837 = vmatmul.mubr.bf16.vlgmr.msra.gmra.mrb[4].mxu1 %v16822_v19  ;;  %v14160_v19 = vcombine.low %v2012_v30, %v2016_v32  ;;  %v14209_v30 = vcombine.high %v2060_v45, %v2064_v49 }
 0x4a9   : > { %8518 = vmatpush1.bf16.msra.mxu0 %v14144_v58  ;;  %8846 = vmatpush1.bf16.msra.mxu1 %v14146_v38  ;;  %v2061_v58 = vld [vmem:[%s16207_s21 + $0x1618] sm:$0xff] }
 0x4aa   : > { %8519 = vmatprep.subr.bf16.mxu0 %v14153_v51  ;;  %8847 = vmatprep.subr.bf16.mxu1 %v14155_v60  ;;  %v2065_v38 = vld [vmem:[%s16207_s21 + $0x1638] sm:$0xff]  ;;  %v14200_v51 = vcombine.low %v2052_v23, %v2056_v25  ;;  %v14202_v60 = vcombine.low %v2053_v14, %v2057_v33  ;;  %v14249_v23 = vcombine.high %v2100_v13, %v2104_v20  ;;  %v2108_v14 = vld [vmem:[%s16207_s21 + $0x1790] sm:$0xff] }
 0x4ab   : > { %8549 = vmatprep.mubr.bf16.mxu0 %v16830_v48  ;;  %8877 = vmatprep.mubr.bf16.mxu1 %v16830_v48  ;;  %v14170_v48 = vcombine.low %v2021_v27, %v2025_v28  ;;  %v14211_v32 = vcombine.high %v2061_v58, %v2065_v38  ;;  %v2076_v27 = vld [vmem:[%s16207_s21 + $0x1690] sm:$0xff] }
 0x4ac   : > { %v2080_v28 = vld [vmem:[%s16207_s21 + $0x16b0] sm:$0xff] }
 0x4ad   : > { %8520 = vmatpush1.bf16.msra.mxu0 %v14152_v43  ;;  %8848 = vmatpush1.bf16.msra.mxu1 %v14154_v44  ;;  %v2069_v43 = vld [vmem:[%s16207_s21 + $0x1658] sm:$0xff]  ;;  %v14225_v40 = vcombine.high %v2076_v27, %v2080_v28  ;;  %v2112_v33 = vld [vmem:[%s16207_s21 + $0x17b0] sm:$0xff] }
 0x4ae   : > { %8521 = vmatprep.subr.bf16.mxu0 %v14161_v54  ;;  %8849 = vmatprep.subr.bf16.mxu1 %v14163_v31  ;;  %v2073_v44 = vld [vmem:[%s16207_s21 + $0x1678] sm:$0xff]  ;;  %v14208_v54 = vcombine.low %v2060_v45, %v2064_v49  ;;  %v14210_v31 = vcombine.low %v2061_v58, %v2065_v38  ;;  %v14257_v45 = vcombine.high %v2108_v14, %v2112_v33  ;;  %v2116_v58 = vld [vmem:[%s16207_s21 + $0x17d0] sm:$0xff] }
 0x4af   : > { %v14219_v21 = vcombine.high %v2069_v43, %v2073_v44  ;;  %v2120_v38 = vld [vmem:[%s16207_s21 + $0x17f0] sm:$0xff] }
 0x4b1   : > { %8522 = vmatpush1.bf16.msra.mxu0 %v14160_v19  ;;  %8850 = vmatpush1.bf16.msra.mxu1 %v14162_v29  ;;  %v2077_v19 = vld [vmem:[%s16207_s21 + $0x1698] sm:$0xff] }
 0x4b2   : > { %8523 = vmatprep.subr.bf16.mxu0 %v14169_v34  ;;  %8851 = vmatprep.subr.bf16.mxu1 %v14171_v39  ;;  %v2081_v29 = vld [vmem:[%s16207_s21 + $0x16b8] sm:$0xff]  ;;  %v14216_v34 = vcombine.low %v2068_v57, %v2072_v42  ;;  %v14218_v39 = vcombine.low %v2069_v43, %v2073_v44  ;;  %v14265_v57 = vcombine.high %v2116_v58, %v2120_v38  ;;  %v2124_v43 = vld [vmem:[%s16207_s21 + $0x1810] sm:$0xff] }
 0x4b3   : > { %v14227_v46 = vcombine.high %v2077_v19, %v2081_v29  ;;  %v2128_v44 = vld [vmem:[%s16207_s21 + $0x1830] sm:$0xff] }
 0x4b5   : > { %8524 = vmatpush1.bf16.msra.mxu0 %v14168_v37  ;;  %8852 = vmatpush1.bf16.msra.mxu1 %v14170_v48  ;;  %v2085_v37 = vld [vmem:[%s16207_s21 + $0x16d8] sm:$0xff] }
 0x4b6   : > { %8525 = vmatprep.subr.bf16.mxu0 %v14177_v63  ;;  %8853 = vmatprep.subr.bf16.mxu1 %v14179_v24  ;;  %v2089_v48 = vld [vmem:[%s16207_s21 + $0x16f8] sm:$0xff]  ;;  %v14224_v63 = vcombine.low %v2076_v27, %v2080_v28  ;;  %v14226_v24 = vcombine.low %v2077_v19, %v2081_v29  ;;  %v14273_v27 = vcombine.high %v2124_v43, %v2128_v44  ;;  %v2132_v19 = vld [vmem:[%s16207_s21 + $0x1850] sm:$0xff] }
 0x4b7   : > { %v14235_v17 = vcombine.high %v2085_v37, %v2089_v48  ;;  %v2136_v29 = vld [vmem:[%s16207_s21 + $0x1870] sm:$0xff] }
 0x4b9   : > { %8526 = vmatpush1.bf16.msra.mxu0 %v14176_v5  ;;  %8854 = vmatpush1.bf16.msra.mxu1 %v14178_v10  ;;  %v2093_v5 = vld [vmem:[%s16207_s21 + $0x1718] sm:$0xff] }
 0x4ba   : > { %8527 = vmatprep.subr.bf16.mxu0 %v14185_v8  ;;  %8855 = vmatprep.subr.bf16.mxu1 %v14187_v6  ;;  %v2097_v10 = vld [vmem:[%s16207_s21 + $0x1738] sm:$0xff]  ;;  %v14232_v8 = vcombine.low %v2084_v0, %v2088_v1  ;;  %v14234_v6 = vcombine.low %v2085_v37, %v2089_v48  ;;  %v14281_v0 = vcombine.high %v2132_v19, %v2136_v29  ;;  %v2140_v37 = vld [vmem:[%s16207_s21 + $0x1890] sm:$0xff] }
 0x4bb   : > { %v14243_v52 = vcombine.high %v2093_v5, %v2097_v10  ;;  %v2144_v48 = vld [vmem:[%s16207_s21 + $0x18b0] sm:$0xff] }
 0x4bd   : > { %8528 = vmatpush1.bf16.msra.mxu0 %v14184_v7  ;;  %8856 = vmatpush1.bf16.msra.mxu1 %v14186_v15  ;;  %v2101_v7 = vld [vmem:[%s16207_s21 + $0x1758] sm:$0xff] }
 0x4be   : > { %8529 = vmatprep.subr.bf16.mxu0 %v14193_v4  ;;  %8857 = vmatprep.subr.bf16.mxu1 %v14195_v59  ;;  %v2105_v15 = vld [vmem:[%s16207_s21 + $0x1778] sm:$0xff]  ;;  %v14240_v4 = vcombine.low %v2092_v56, %v2096_v2  ;;  %v14242_v59 = vcombine.low %v2093_v5, %v2097_v10  ;;  %v14289_v56 = vcombine.high %v2140_v37, %v2144_v48  ;;  %v2148_v5 = vld [vmem:[%s16207_s21 + $0x18d0] sm:$0xff] }
 0x4bf   : > { %v14251_v25 = vcombine.high %v2101_v7, %v2105_v15  ;;  %v2152_v10 = vld [vmem:[%s16207_s21 + $0x18f0] sm:$0xff] }
 0x4c1   : > { %8530 = vmatpush1.bf16.msra.mxu0 %v14192_v36  ;;  %8858 = vmatpush1.bf16.msra.mxu1 %v14194_v47  ;;  %v2109_v36 = vld [vmem:[%s16207_s21 + $0x1798] sm:$0xff] }
 0x4c2   : > { %8531 = vmatprep.subr.bf16.mxu0 %v14201_v61  ;;  %8859 = vmatprep.subr.bf16.mxu1 %v14203_v41  ;;  %v2113_v47 = vld [vmem:[%s16207_s21 + $0x17b8] sm:$0xff]  ;;  %v14248_v61 = vcombine.low %v2100_v13, %v2104_v20  ;;  %v14250_v41 = vcombine.low %v2101_v7, %v2105_v15  ;;  %v2156_v20 = vld [vmem:[%s16207_s21 + $0x1910] sm:$0xff] }
 0x4c3   : > { %v14259_v49 = vcombine.high %v2109_v36, %v2113_v47  ;;  %v2160_v7 = vld [vmem:[%s16207_s21 + $0x1930] sm:$0xff]  ;;  %v2157_v15 = vld [vmem:[%s16207_s21 + $0x1918] sm:$0xff] }
 0x4c5   : > { %8532 = vmatpush1.bf16.msra.mxu0 %v14200_v51  ;;  %8860 = vmatpush1.bf16.msra.mxu1 %v14202_v60  ;;  %v2117_v51 = vld [vmem:[%s16207_s21 + $0x17d8] sm:$0xff] }
 0x4c6   : > { %8533 = vmatprep.subr.bf16.mxu0 %v14209_v30  ;;  %8861 = vmatprep.subr.bf16.mxu1 %v14211_v32  ;;  %v2121_v60 = vld [vmem:[%s16207_s21 + $0x17f8] sm:$0xff]  ;;  %v14256_v30 = vcombine.low %v2108_v14, %v2112_v33  ;;  %v14258_v32 = vcombine.low %v2109_v36, %v2113_v47  ;;  %v2164_v14 = vld [vmem:[%s16207_s21 + $0x1950] sm:$0xff] }
 0x4c7   : > { %v14267_v42 = vcombine.high %v2117_v51, %v2121_v60  ;;  %v2168_v33 = vld [vmem:[%s16207_s21 + $0x1970] sm:$0xff]  ;;  %v2165_v36 = vld [vmem:[%s16207_s21 + $0x1958] sm:$0xff] }
 0x4c8   : > { %v2169_v47 = vld [vmem:[%s16207_s21 + $0x1978] sm:$0xff] }
 0x4c9   : > { %8534 = vmatpush1.bf16.msra.mxu0 %v14208_v54  ;;  %8862 = vmatpush1.bf16.msra.mxu1 %v14210_v31  ;;  %v2125_v54 = vld [vmem:[%s16207_s21 + $0x1818] sm:$0xff] }
 0x4ca   : > { %8535 = vmatprep.subr.bf16.mxu0 %v14217_v35  ;;  %8863 = vmatprep.subr.bf16.mxu1 %v14219_v21  ;;  %v2129_v31 = vld [vmem:[%s16207_s21 + $0x1838] sm:$0xff]  ;;  %v14264_v35 = vcombine.low %v2116_v58, %v2120_v38  ;;  %v14266_v21 = vcombine.low %v2117_v51, %v2121_v60  ;;  %v2172_v58 = vld [vmem:[%s16207_s21 + $0x1990] sm:$0xff] }
 0x4cb   : > { %v14275_v28 = vcombine.high %v2125_v54, %v2129_v31  ;;  %v2176_v38 = vld [vmem:[%s16207_s21 + $0x19b0] sm:$0xff]  ;;  %v2173_v51 = vld [vmem:[%s16207_s21 + $0x1998] sm:$0xff] }
 0x4cc   : > { %v2177_v60 = vld [vmem:[%s16207_s21 + $0x19b8] sm:$0xff] }
 0x4cd   : > { %8536 = vmatpush1.bf16.msra.mxu0 %v14216_v34  ;;  %8864 = vmatpush1.bf16.msra.mxu1 %v14218_v39  ;;  %v2133_v34 = vld [vmem:[%s16207_s21 + $0x1858] sm:$0xff] }
 0x4ce   : > { %8537 = vmatprep.subr.bf16.mxu0 %v14225_v40  ;;  %8865 = vmatprep.subr.bf16.mxu1 %v14227_v46  ;;  %v2137_v39 = vld [vmem:[%s16207_s21 + $0x1878] sm:$0xff]  ;;  %v14272_v40 = vcombine.low %v2124_v43, %v2128_v44  ;;  %v14274_v46 = vcombine.low %v2125_v54, %v2129_v31  ;;  %v2180_v43 = vld [vmem:[%s16207_s21 + $0x19d0] sm:$0xff] }
 0x4cf   : > { %v14283_v1 = vcombine.high %v2133_v34, %v2137_v39  ;;  %v2184_v44 = vld [vmem:[%s16207_s21 + $0x19f0] sm:$0xff]  ;;  %v2181_v54 = vld [vmem:[%s16207_s21 + $0x19d8] sm:$0xff] }
 0x4d0   : > { %v2185_v31 = vld [vmem:[%s16207_s21 + $0x19f8] sm:$0xff] }
 0x4d1   : > { %8538 = vmatpush1.bf16.msra.mxu0 %v14224_v63  ;;  %8866 = vmatpush1.bf16.msra.mxu1 %v14226_v24  ;;  %v2141_v63 = vld [vmem:[%s16207_s21 + $0x1898] sm:$0xff] }
 0x4d2   : > { %8539 = vmatprep.subr.bf16.mxu0 %v14233_v53  ;;  %8867 = vmatprep.subr.bf16.mxu1 %v14235_v17  ;;  %v2145_v24 = vld [vmem:[%s16207_s21 + $0x18b8] sm:$0xff]  ;;  %v14280_v53 = vcombine.low %v2132_v19, %v2136_v29  ;;  %v14282_v17 = vcombine.low %v2133_v34, %v2137_v39  ;;  %v2188_v19 = vld [vmem:[%s16207_s21 + $0x1a10] sm:$0xff] }
 0x4d3   : > { %v14291_v2 = vcombine.high %v2141_v63, %v2145_v24  ;;  %v2192_v29 = vld [vmem:[%s16207_s21 + $0x1a30] sm:$0xff]  ;;  %v2189_v34 = vld [vmem:[%s16207_s21 + $0x1a18] sm:$0xff] }
 0x4d4   : > { %v2193_v39 = vld [vmem:[%s16207_s21 + $0x1a38] sm:$0xff] }
 0x4d5   : > { %8540 = vmatpush1.bf16.msra.mxu0 %v14232_v8  ;;  %8868 = vmatpush1.bf16.msra.mxu1 %v14234_v6  ;;  %v2149_v8 = vld [vmem:[%s16207_s21 + $0x18d8] sm:$0xff] }
 0x4d6   : > { %8541 = vmatprep.subr.bf16.mxu0 %v14241_v9  ;;  %8869 = vmatprep.subr.bf16.mxu1 %v14243_v52  ;;  %v2153_v6 = vld [vmem:[%s16207_s21 + $0x18f8] sm:$0xff]  ;;  %v14290_v9 = vcombine.low %v2141_v63, %v2145_v24  ;;  %v14297_v52 = vcombine.high %v2148_v5, %v2152_v10 }
 0x4d7   : > { %v14299_v13 = vcombine.high %v2149_v8, %v2153_v6  ;;  %v2197_v63 = vld [vmem:[%s16207_s21 + $0x1a58] sm:$0xff] }
 0x4d8   : > { %v2201_v24 = vld [vmem:[%s16207_s21 + $0x1a78] sm:$0xff] }
 0x4d9   : > { %8542 = vmatpush1.bf16.msra.mxu0 %v14240_v4  ;;  %8870 = vmatpush1.bf16.msra.mxu1 %v14242_v59  ;;  %v2161_v4 = vld [vmem:[%s16207_s21 + $0x1938] sm:$0xff]  ;;  %v14296_v59 = vcombine.low %v2148_v5, %v2152_v10  ;;  %v2204_v5 = vld [vmem:[%s16207_s21 + $0x1a90] sm:$0xff] }
 0x4da   : > { %8543 = vmatprep.subr.bf16.mxu0 %v14249_v23  ;;  %8871 = vmatprep.subr.bf16.mxu1 %v14251_v25  ;;  %v14305_v23 = vcombine.high %v2156_v20, %v2160_v7  ;;  %v14307_v25 = vcombine.high %v2157_v15, %v2161_v4  ;;  %v2208_v10 = vld [vmem:[%s16207_s21 + $0x1ab0] sm:$0xff] }
 0x4dd   : > { %8544 = vmatpush1.bf16.msra.mxu0 %v14248_v61  ;;  %8872 = vmatpush1.bf16.msra.mxu1 %v14250_v41  ;;  %v14304_v61 = vcombine.low %v2156_v20, %v2160_v7  ;;  %v14306_v41 = vcombine.low %v2157_v15, %v2161_v4  ;;  %v2212_v20 = vld [vmem:[%s16207_s21 + $0x1ad0] sm:$0xff]  ;;  %v2213_v15 = vld [vmem:[%s16207_s21 + $0x1ad8] sm:$0xff] }
 0x4de   : > { %8545 = vmatprep.subr.bf16.mxu0 %v14257_v45  ;;  %8873 = vmatprep.subr.bf16.mxu1 %v14259_v49  ;;  %v14313_v45 = vcombine.high %v2164_v14, %v2168_v33  ;;  %v14315_v49 = vcombine.high %v2165_v36, %v2169_v47  ;;  %v2216_v7 = vld [vmem:[%s16207_s21 + $0x1af0] sm:$0xff]  ;;  %v2217_v4 = vld [vmem:[%s16207_s21 + $0x1af8] sm:$0xff] }
 0x4e1   : > { %8546 = vmatpush1.bf16.msra.mxu0 %v14256_v30  ;;  %8874 = vmatpush1.bf16.msra.mxu1 %v14258_v32  ;;  %v14312_v30 = vcombine.low %v2164_v14, %v2168_v33  ;;  %v14314_v32 = vcombine.low %v2165_v36, %v2169_v47  ;;  %v2220_v14 = vld [vmem:[%s16207_s21 + $0x1b10] sm:$0xff]  ;;  %v2221_v36 = vld [vmem:[%s16207_s21 + $0x1b18] sm:$0xff] }
 0x4e2   : > { %8547 = vmatprep.subr.bf16.mxu0 %v14265_v57  ;;  %8875 = vmatprep.subr.bf16.mxu1 %v14267_v42  ;;  %v14321_v57 = vcombine.high %v2172_v58, %v2176_v38  ;;  %v14323_v42 = vcombine.high %v2173_v51, %v2177_v60  ;;  %v2224_v33 = vld [vmem:[%s16207_s21 + $0x1b30] sm:$0xff]  ;;  %v2225_v47 = vld [vmem:[%s16207_s21 + $0x1b38] sm:$0xff] }
 0x4e5   : > { %8548 = vmatpush1.bf16.msra.mxu0 %v14264_v35  ;;  %8876 = vmatpush1.bf16.msra.mxu1 %v14266_v21  ;;  %v14320_v35 = vcombine.low %v2172_v58, %v2176_v38  ;;  %v14322_v21 = vcombine.low %v2173_v51, %v2177_v60  ;;  %v2228_v58 = vld [vmem:[%s16207_s21 + $0x1b50] sm:$0xff]  ;;  %v2229_v51 = vld [vmem:[%s16207_s21 + $0x1b58] sm:$0xff] }
 0x4e6   : > { %8558 = vmatprep.subr.bf16.mxu0 %v14273_v27  ;;  %8886 = vmatprep.subr.bf16.mxu1 %v14275_v28  ;;  %v14329_v27 = vcombine.high %v2180_v43, %v2184_v44  ;;  %v14331_v28 = vcombine.high %v2181_v54, %v2185_v31  ;;  %v2232_v38 = vld [vmem:[%s16207_s21 + $0x1b70] sm:$0xff]  ;;  %v2233_v60 = vld [vmem:[%s16207_s21 + $0x1b78] sm:$0xff] }
 0x4e8   : > { %8550 = vmatmul.mubr.bf16.vlgmr.msra.gmra.mrb[4].mxu0 %v16905_v16  ;;  %8878 = vmatmul.mubr.bf16.vlgmr.msra.gmra.mrb[4].mxu1 %v16905_v16  ;;  %v14288_v16 = vcombine.low %v2140_v37, %v2144_v48  ;;  %v2196_v37 = vld [vmem:[%s16207_s21 + $0x1a50] sm:$0xff] }
 0x4e9   : > { %8559 = vmatpush1.bf16.msra.mxu0 %v14272_v40  ;;  %8887 = vmatpush1.bf16.msra.mxu1 %v14274_v46  ;;  %v14328_v40 = vcombine.low %v2180_v43, %v2184_v44  ;;  %v14330_v46 = vcombine.low %v2181_v54, %v2185_v31  ;;  %v2200_v48 = vld [vmem:[%s16207_s21 + $0x1a70] sm:$0xff]  ;;  %v2237_v54 = vld [vmem:[%s16207_s21 + $0x1b98] sm:$0xff] }
 0x4ea   : > { %8560 = vmatprep.subr.bf16.mxu0 %v14281_v0  ;;  %8888 = vmatprep.subr.bf16.mxu1 %v14283_v1  ;;  %v14337_v0 = vcombine.high %v2188_v19, %v2192_v29  ;;  %v14339_v1 = vcombine.high %v2189_v34, %v2193_v39  ;;  %v2236_v43 = vld [vmem:[%s16207_s21 + $0x1b90] sm:$0xff]  ;;  %v2241_v31 = vld [vmem:[%s16207_s21 + $0x1bb8] sm:$0xff] }
 0x4eb   : > { %8590 = vmatprep.mubr.bf16.mxu0 %v16912_v50  ;;  %8918 = vmatprep.mubr.bf16.mxu1 %v16912_v50  ;;  %v14298_v50 = vcombine.low %v2149_v8, %v2153_v6  ;;  %v2205_v8 = vld [vmem:[%s16207_s21 + $0x1a98] sm:$0xff]  ;;  %v2240_v44 = vld [vmem:[%s16207_s21 + $0x1bb0] sm:$0xff] }
 0x4ec   : > { %v2209_v6 = vld [vmem:[%s16207_s21 + $0x1ab8] sm:$0xff] }
 0x4ed   : > { %8561 = vmatpush1.bf16.msra.mxu0 %v14280_v53  ;;  %8889 = vmatpush1.bf16.msra.mxu1 %v14282_v17  ;;  %v14336_v53 = vcombine.low %v2188_v19, %v2192_v29  ;;  %v14338_v17 = vcombine.low %v2189_v34, %v2193_v39  ;;  %v2244_v19 = vld [vmem:[%s16207_s21 + $0x1bd0] sm:$0xff]  ;;  %v2245_v34 = vld [vmem:[%s16207_s21 + $0x1bd8] sm:$0xff] }
 0x4ee   : > { %8562 = vmatprep.subr.bf16.mxu0 %v14289_v56  ;;  %8890 = vmatprep.subr.bf16.mxu1 %v14291_v2  ;;  %v14345_v56 = vcombine.high %v2196_v37, %v2200_v48  ;;  %v14347_v2 = vcombine.high %v2197_v63, %v2201_v24  ;;  %v2248_v29 = vld [vmem:[%s16207_s21 + $0x1bf0] sm:$0xff]  ;;  %v2249_v39 = vld [vmem:[%s16207_s21 + $0x1bf8] sm:$0xff] }
 0x4f1   : > { %8563 = vmatpush1.bf16.msra.mxu0 %v14288_v16  ;;  %8891 = vmatpush1.bf16.msra.mxu1 %v14290_v9  ;;  %v14344_v16 = vcombine.low %v2196_v37, %v2200_v48  ;;  %v14346_v9 = vcombine.low %v2197_v63, %v2201_v24  ;;  %v2252_v37 = vld [vmem:[%s16207_s21 + $0x1c10] sm:$0xff]  ;;  %v2253_v63 = vld [vmem:[%s16207_s21 + $0x1c18] sm:$0xff] }
 0x4f2   : > { %8564 = vmatprep.subr.bf16.mxu0 %v14297_v52  ;;  %8892 = vmatprep.subr.bf16.mxu1 %v14299_v13  ;;  %v14353_v52 = vcombine.high %v2204_v5, %v2208_v10  ;;  %v14355_v13 = vcombine.high %v2205_v8, %v2209_v6  ;;  %v2256_v48 = vld [vmem:[%s16207_s21 + $0x1c30] sm:$0xff]  ;;  %v2257_v24 = vld [vmem:[%s16207_s21 + $0x1c38] sm:$0xff] }
 0x4f5   : > { %8565 = vmatpush1.bf16.msra.mxu0 %v14296_v59  ;;  %8893 = vmatpush1.bf16.msra.mxu1 %v14298_v50  ;;  %v14352_v59 = vcombine.low %v2204_v5, %v2208_v10  ;;  %v14354_v50 = vcombine.low %v2205_v8, %v2209_v6  ;;  %v2260_v5 = vld [vmem:[%s16207_s21 + $0x1c50] sm:$0xff]  ;;  %v2261_v8 = vld [vmem:[%s16207_s21 + $0x1c58] sm:$0xff] }
 0x4f6   : > { %8566 = vmatprep.subr.bf16.mxu0 %v14305_v23  ;;  %8894 = vmatprep.subr.bf16.mxu1 %v14307_v25  ;;  %v14361_v23 = vcombine.high %v2212_v20, %v2216_v7  ;;  %v14363_v25 = vcombine.high %v2213_v15, %v2217_v4  ;;  %v2264_v10 = vld [vmem:[%s16207_s21 + $0x1c70] sm:$0xff]  ;;  %v2265_v6 = vld [vmem:[%s16207_s21 + $0x1c78] sm:$0xff] }
 0x4f9   : > { %8567 = vmatpush1.bf16.msra.mxu0 %v14304_v61  ;;  %8895 = vmatpush1.bf16.msra.mxu1 %v14306_v41  ;;  %v14360_v61 = vcombine.low %v2212_v20, %v2216_v7  ;;  %v14362_v41 = vcombine.low %v2213_v15, %v2217_v4  ;;  %v2268_v20 = vld [vmem:[%s16207_s21 + $0x1c90] sm:$0xff]  ;;  %v2269_v15 = vld [vmem:[%s16207_s21 + $0x1c98] sm:$0xff] }
 0x4fa   : > { %8568 = vmatprep.subr.bf16.mxu0 %v14313_v45  ;;  %8896 = vmatprep.subr.bf16.mxu1 %v14315_v49  ;;  %v14369_v45 = vcombine.high %v2220_v14, %v2224_v33  ;;  %v14371_v49 = vcombine.high %v2221_v36, %v2225_v47  ;;  %v2272_v7 = vld [vmem:[%s16207_s21 + $0x1cb0] sm:$0xff]  ;;  %v2273_v4 = vld [vmem:[%s16207_s21 + $0x1cb8] sm:$0xff] }
 0x4fd   : > { %8569 = vmatpush1.bf16.msra.mxu0 %v14312_v30  ;;  %8897 = vmatpush1.bf16.msra.mxu1 %v14314_v32  ;;  %v14368_v30 = vcombine.low %v2220_v14, %v2224_v33  ;;  %v14370_v32 = vcombine.low %v2221_v36, %v2225_v47  ;;  %v2276_v14 = vld [vmem:[%s16207_s21 + $0x1cd0] sm:$0xff]  ;;  %v2277_v36 = vld [vmem:[%s16207_s21 + $0x1cd8] sm:$0xff] }
 0x4fe   : > { %8570 = vmatprep.subr.bf16.mxu0 %v14321_v57  ;;  %8898 = vmatprep.subr.bf16.mxu1 %v14323_v42  ;;  %v14377_v57 = vcombine.high %v2228_v58, %v2232_v38  ;;  %v14379_v42 = vcombine.high %v2229_v51, %v2233_v60  ;;  %v2280_v33 = vld [vmem:[%s16207_s21 + $0x1cf0] sm:$0xff]  ;;  %v2281_v47 = vld [vmem:[%s16207_s21 + $0x1cf8] sm:$0xff] }
 0x501   : > { %8571 = vmatpush1.bf16.msra.mxu0 %v14320_v35  ;;  %8899 = vmatpush1.bf16.msra.mxu1 %v14322_v21  ;;  %v14376_v35 = vcombine.low %v2228_v58, %v2232_v38  ;;  %v14378_v21 = vcombine.low %v2229_v51, %v2233_v60  ;;  %v2288_v58 = vld [vmem:[%s16207_s21 + $0x1d30] sm:$0xff]  ;;  %v2285_v38 = vld [vmem:[%s16207_s21 + $0x1d18] sm:$0xff]  ;;  %v14424_v60 = vcombine.low %v2276_v14, %v2280_v33 }
 0x502   : > { %8572 = vmatprep.subr.bf16.mxu0 %v14329_v27  ;;  %8900 = vmatprep.subr.bf16.mxu1 %v14331_v28  ;;  %v14385_v27 = vcombine.high %v2236_v43, %v2240_v44  ;;  %v14387_v28 = vcombine.high %v2237_v54, %v2241_v31  ;;  %v2289_v51 = vld [vmem:[%s16207_s21 + $0x1d38] sm:$0xff] }
 0x505   : > { %8573 = vmatpush1.bf16.msra.mxu0 %v14328_v40  ;;  %8901 = vmatpush1.bf16.msra.mxu1 %v14330_v46  ;;  %v14384_v40 = vcombine.low %v2236_v43, %v2240_v44  ;;  %v14386_v46 = vcombine.low %v2237_v54, %v2241_v31  ;;  %v2293_v43 = vld [vmem:[%s16207_s21 + $0x1d58] sm:$0xff]  ;;  %v14434_v31 = vcombine.low %v2285_v38, %v2289_v51 }
 0x506   : > { %8574 = vmatprep.subr.bf16.mxu0 %v14337_v0  ;;  %8902 = vmatprep.subr.bf16.mxu1 %v14339_v1  ;;  %v14393_v0 = vcombine.high %v2244_v19, %v2248_v29  ;;  %v14395_v1 = vcombine.high %v2245_v34, %v2249_v39  ;;  %v2297_v44 = vld [vmem:[%s16207_s21 + $0x1d78] sm:$0xff] }
 0x509   : > { %8575 = vmatpush1.bf16.msra.mxu0 %v14336_v53  ;;  %8903 = vmatpush1.bf16.msra.mxu1 %v14338_v17  ;;  %v14392_v53 = vcombine.low %v2244_v19, %v2248_v29  ;;  %v14394_v17 = vcombine.low %v2245_v34, %v2249_v39  ;;  %v2301_v19 = vld [vmem:[%s16207_s21 + $0x1d98] sm:$0xff]  ;;  %v14442_v39 = vcombine.low %v2293_v43, %v2297_v44 }
 0x50a   : > { %8576 = vmatprep.subr.bf16.mxu0 %v14345_v56  ;;  %8904 = vmatprep.subr.bf16.mxu1 %v14347_v2  ;;  %v14401_v56 = vcombine.high %v2252_v37, %v2256_v48  ;;  %v14403_v2 = vcombine.high %v2253_v63, %v2257_v24  ;;  %v2305_v29 = vld [vmem:[%s16207_s21 + $0x1db8] sm:$0xff] }
 0x50d   : > { %8577 = vmatpush1.bf16.msra.mxu0 %v14344_v16  ;;  %8905 = vmatpush1.bf16.msra.mxu1 %v14346_v9  ;;  %v14400_v16 = vcombine.low %v2252_v37, %v2256_v48  ;;  %v14402_v9 = vcombine.low %v2253_v63, %v2257_v24  ;;  %v2309_v37 = vld [vmem:[%s16207_s21 + $0x1dd8] sm:$0xff]  ;;  %v14450_v24 = vcombine.low %v2301_v19, %v2305_v29 }
 0x50e   : > { %8578 = vmatprep.subr.bf16.mxu0 %v14353_v52  ;;  %8906 = vmatprep.subr.bf16.mxu1 %v14355_v13  ;;  %v14409_v52 = vcombine.high %v2260_v5, %v2264_v10  ;;  %v14411_v13 = vcombine.high %v2261_v8, %v2265_v6  ;;  %v2313_v48 = vld [vmem:[%s16207_s21 + $0x1df8] sm:$0xff] }
 0x511   : > { %8579 = vmatpush1.bf16.msra.mxu0 %v14352_v59  ;;  %8907 = vmatpush1.bf16.msra.mxu1 %v14354_v50  ;;  %v14408_v59 = vcombine.low %v2260_v5, %v2264_v10  ;;  %v14410_v50 = vcombine.low %v2261_v8, %v2265_v6  ;;  %v2317_v5 = vld [vmem:[%s16207_s21 + $0x1e18] sm:$0xff]  ;;  %v14458_v6 = vcombine.low %v2309_v37, %v2313_v48 }
 0x512   : > { %8580 = vmatprep.subr.bf16.mxu0 %v14361_v23  ;;  %8908 = vmatprep.subr.bf16.mxu1 %v14363_v25  ;;  %v14417_v23 = vcombine.high %v2268_v20, %v2272_v7  ;;  %v14419_v25 = vcombine.high %v2269_v15, %v2273_v4  ;;  %v2321_v10 = vld [vmem:[%s16207_s21 + $0x1e38] sm:$0xff] }
 0x515   : > { %8581 = vmatpush1.bf16.msra.mxu0 %v14360_v61  ;;  %8909 = vmatpush1.bf16.msra.mxu1 %v14362_v41  ;;  %v14418_v61 = vcombine.low %v2269_v15, %v2273_v4  ;;  %v14425_v41 = vcombine.high %v2276_v14, %v2280_v33  ;;  %v14466_v4 = vcombine.low %v2317_v5, %v2321_v10  ;;  %v2333_v14 = vld [vmem:[%s16207_s21 + $0x1e98] sm:$0xff] }
 0x516   : > { %8582 = vmatprep.subr.bf16.mxu0 %v14369_v45  ;;  %8910 = vmatprep.subr.bf16.mxu1 %v14371_v49  ;;  %v14427_v45 = vcombine.high %v2277_v36, %v2281_v47  ;;  %v2284_v49 = vld [vmem:[%s16207_s21 + $0x1d10] sm:$0xff]  ;;  %v2337_v33 = vld [vmem:[%s16207_s21 + $0x1eb8] sm:$0xff] }
 0x517   : > { %v14432_v54 = vcombine.low %v2284_v49, %v2288_v58 }
 0x519   : > { %8583 = vmatpush1.bf16.msra.mxu0 %v14368_v30  ;;  %8911 = vmatpush1.bf16.msra.mxu1 %v14370_v32  ;;  %v14433_v30 = vcombine.high %v2284_v49, %v2288_v58  ;;  %v14435_v32 = vcombine.high %v2285_v38, %v2289_v51  ;;  %v2341_v49 = vld [vmem:[%s16207_s21 + $0x1ed8] sm:$0xff]  ;;  %v14482_v51 = vcombine.low %v2333_v14, %v2337_v33 }
 0x51a   : > { %8584 = vmatprep.subr.bf16.mxu0 %v14377_v57  ;;  %8912 = vmatprep.subr.bf16.mxu1 %v14379_v42  ;;  %v2292_v57 = vld [vmem:[%s16207_s21 + $0x1d50] sm:$0xff]  ;;  %v2345_v58 = vld [vmem:[%s16207_s21 + $0x1ef8] sm:$0xff] }
 0x51b   : > { %v2296_v42 = vld [vmem:[%s16207_s21 + $0x1d70] sm:$0xff] }
 0x51c   : > { %v14440_v34 = vcombine.low %v2292_v57, %v2296_v42 }
 0x51d   : > { %8585 = vmatpush1.bf16.msra.mxu0 %v14376_v35  ;;  %8913 = vmatpush1.bf16.msra.mxu1 %v14378_v21  ;;  %v14441_v35 = vcombine.high %v2292_v57, %v2296_v42  ;;  %v14443_v21 = vcombine.high %v2293_v43, %v2297_v44  ;;  %v2349_v57 = vld [vmem:[%s16207_s21 + $0x1f18] sm:$0xff]  ;;  %v14490_v44 = vcombine.low %v2341_v49, %v2345_v58 }
 0x51e   : > { %8586 = vmatprep.subr.bf16.mxu0 %v14385_v27  ;;  %8914 = vmatprep.subr.bf16.mxu1 %v14387_v28  ;;  %v2300_v27 = vld [vmem:[%s16207_s21 + $0x1d90] sm:$0xff]  ;;  %v2353_v42 = vld [vmem:[%s16207_s21 + $0x1f38] sm:$0xff] }
 0x51f   : > { %v2304_v28 = vld [vmem:[%s16207_s21 + $0x1db0] sm:$0xff] }
 0x520   : > { %v14448_v63 = vcombine.low %v2300_v27, %v2304_v28 }
 0x521   : > { %8587 = vmatpush1.bf16.msra.mxu0 %v14384_v40  ;;  %8915 = vmatpush1.bf16.msra.mxu1 %v14386_v46  ;;  %v14449_v40 = vcombine.high %v2300_v27, %v2304_v28  ;;  %v14451_v46 = vcombine.high %v2301_v19, %v2305_v29  ;;  %v2357_v27 = vld [vmem:[%s16207_s21 + $0x1f58] sm:$0xff]  ;;  %v14498_v29 = vcombine.low %v2349_v57, %v2353_v42 }
 0x522   : > { %8588 = vmatprep.subr.bf16.mxu0 %v14393_v0  ;;  %8916 = vmatprep.subr.bf16.mxu1 %v14395_v1  ;;  %v2308_v0 = vld [vmem:[%s16207_s21 + $0x1dd0] sm:$0xff]  ;;  %v2361_v28 = vld [vmem:[%s16207_s21 + $0x1f78] sm:$0xff] }
 0x523   : > { %v2312_v1 = vld [vmem:[%s16207_s21 + $0x1df0] sm:$0xff] }
 0x524   : > { %v14456_v8 = vcombine.low %v2308_v0, %v2312_v1 }
 0x525   : > { %8589 = vmatpush1.bf16.msra.mxu0 %v14392_v53  ;;  %8917 = vmatpush1.bf16.msra.mxu1 %v14394_v17  ;;  %v14457_v53 = vcombine.high %v2308_v0, %v2312_v1  ;;  %v14459_v17 = vcombine.high %v2309_v37, %v2313_v48  ;;  %v2386_v0 = vsub.s32 1, %v16437_v55  ;;  %v2365_v1 = vld [vmem:[%s16207_s21 + $0x1f98] sm:$0xff]  ;;  %v17602_v48 = vld [vmem:[%s16213_s20] sm:$0xff] }
 0x526   : > { %8599 = vmatprep.subr.bf16.mxu0 %v14401_v56  ;;  %8927 = vmatprep.subr.bf16.mxu1 %v14403_v2  ;;  %v2316_v56 = vld [vmem:[%s16207_s21 + $0x1e10] sm:$0xff]  ;;  %v2369_v37 = vld [vmem:[%s16207_s21 + $0x1fb8] sm:$0xff] }
 0x527   : > { %v2320_v2 = vld [vmem:[%s16207_s21 + $0x1e30] sm:$0xff] }
 0x528   : > { %8591 = vmatmul.mubr.bf16.vlgmr.msra.gmra.mrb[4].mxu0 %v16980_v3  ;;  %8919 = vmatmul.mubr.bf16.vlgmr.msra.gmra.mrb[4].mxu1 %v16980_v3  ;;  %v14416_v3 = vcombine.low %v2268_v20, %v2272_v7  ;;  %v2325_v20 = vld [vmem:[%s16207_s21 + $0x1e58] sm:$0xff]  ;;  %v14464_v15 = vcombine.low %v2316_v56, %v2320_v2 }
 0x529   : > { %8600 = vmatpush1.bf16.msra.mxu0 %v14400_v16  ;;  %8928 = vmatpush1.bf16.msra.mxu1 %v14402_v9  ;;  %v14465_v16 = vcombine.high %v2316_v56, %v2320_v2  ;;  %v14467_v9 = vcombine.high %v2317_v5, %v2321_v10  ;;  %v2329_v7 = vld [vmem:[%s16207_s21 + $0x1e78] sm:$0xff]  ;;  %v2372_v56 = vld [vmem:[%s16207_s21 + $0x1fd0] sm:$0xff]  ;;  %v2387_v5 = vrot.slane %v17602_v48, %v2386_v0 }
 0x52a   : > { %8601 = vmatprep.subr.bf16.mxu0 %v14409_v52  ;;  %8929 = vmatprep.subr.bf16.mxu1 %v14411_v13  ;;  %v2324_v52 = vld [vmem:[%s16207_s21 + $0x1e50] sm:$0xff]  ;;  %v2373_v10 = vld [vmem:[%s16207_s21 + $0x1fd8] sm:$0xff] }
 0x52b   : > { %8631 = vmatprep.mubr.bf16.mxu0 %v16988_v11  ;;  %8959 = vmatprep.mubr.bf16.mxu1 %v16988_v11  ;;  %v14426_v11 = vcombine.low %v2277_v36, %v2281_v47  ;;  %v2328_v13 = vld [vmem:[%s16207_s21 + $0x1e70] sm:$0xff]  ;;  %v14474_v47 = vcombine.low %v2325_v20, %v2329_v7 }
 0x52c   : > { %v14472_v36 = vcombine.low %v2324_v52, %v2328_v13  ;;  %v2376_v2 = vld [vmem:[%s16207_s21 + $0x1ff0] sm:$0xff] }
 0x52d   : > { %8602 = vmatpush1.bf16.msra.mxu0 %v14408_v59  ;;  %8930 = vmatpush1.bf16.msra.mxu1 %v14410_v50  ;;  %v14473_v59 = vcombine.high %v2324_v52, %v2328_v13  ;;  %v14475_v50 = vcombine.high %v2325_v20, %v2329_v7  ;;  %v8986_v13 = vld [vmem:[%s16215_s10] sm:$0xff]  ;;  %v15315_v7 = vadd.f32 %v17294_v22, %v2387_v5 }
 0x52e   : > { %8603 = vmatprep.subr.bf16.mxu0 %v14417_v23  ;;  %8931 = vmatprep.subr.bf16.mxu1 %v14419_v25  ;;  %v2332_v23 = vld [vmem:[%s16207_s21 + $0x1e90] sm:$0xff] }
 0x52f   : > { %v2336_v25 = vld [vmem:[%s16207_s21 + $0x1eb0] sm:$0xff] }
 0x530   : > { %v14480_v38 = vcombine.low %v2332_v23, %v2336_v25  ;;  %v8990_v20 = vld [vmem:[%s16215_s10 + $0x20] sm:$0xff] }
 0x531   : > { %8604 = vmatpush1.bf16.msra.mxu0 %v14416_v3  ;;  %8932 = vmatpush1.bf16.msra.mxu1 %v14418_v61  ;;  %v14481_v3 = vcombine.high %v2332_v23, %v2336_v25  ;;  %v14483_v61 = vcombine.high %v2333_v14, %v2337_v33  ;;  %v14525_v23 = vcombine.high %v8986_v13, %v8990_v20  ;;  %v8969_v14 = vmax.f32 %v15315_v7, 0.0  ;;  %v8994_v33 = vld [vmem:[%s16215_s10 + $0x40] sm:$0xff] }
 0x532   : > { %8605 = vmatprep.subr.bf16.mxu0 %v14425_v41  ;;  %8933 = vmatprep.subr.bf16.mxu1 %v14427_v45  ;;  %v2340_v41 = vld [vmem:[%s16207_s21 + $0x1ed0] sm:$0xff]  ;;  %v14524_v22 = vcombine.low %v8986_v13, %v8990_v20 }
 0x533   : > { %v2344_v45 = vld [vmem:[%s16207_s21 + $0x1ef0] sm:$0xff] }
 0x534   : > { %v14488_v43 = vcombine.low %v2340_v41, %v2344_v45  ;;  %v9034_v5 = vld [vmem:[%s16215_s10 + $0x180] sm:$0xff] }
 0x535   : > { %8606 = vmatpush1.bf16.msra.mxu0 %v14424_v60  ;;  %8934 = vmatpush1.bf16.msra.mxu1 %v14426_v11  ;;  %v14489_v60 = vcombine.high %v2340_v41, %v2344_v45  ;;  %v14491_v11 = vcombine.high %v2341_v49, %v2345_v58  ;;  %v9002_v45 = vld [vmem:[%s16215_s10 + $0x80] sm:$0xff]  ;;  %v17622_v58 = vpack.c.bf16 %v8969_v14, %v8969_v14 }
 0x536   : > { %8607 = vmatprep.subr.bf16.mxu0 %v14433_v30  ;;  %8935 = vmatprep.subr.bf16.mxu1 %v14435_v32  ;;  %v2348_v30 = vld [vmem:[%s16207_s21 + $0x1f10] sm:$0xff] }
 0x537   : > { %v2352_v32 = vld [vmem:[%s16207_s21 + $0x1f30] sm:$0xff] }
 0x538   : > { %v14496_v19 = vcombine.low %v2348_v30, %v2352_v32  ;;  %v9006_v49 = vld [vmem:[%s16215_s10 + $0xa0] sm:$0xff] }
 0x539   : > { %8608 = vmatpush1.bf16.msra.mxu0 %v14432_v54  ;;  %8936 = vmatpush1.bf16.msra.mxu1 %v14434_v31  ;;  %v14497_v54 = vcombine.high %v2348_v30, %v2352_v32  ;;  %v14499_v31 = vcombine.high %v2349_v57, %v2353_v42  ;;  %v14541_v32 = vcombine.high %v9002_v45, %v9006_v49  ;;  %v9010_v42 = vld [vmem:[%s16215_s10 + $0xc0] sm:$0xff] }
 0x53a   : > { %8609 = vmatprep.subr.bf16.mxu0 %v14441_v35  ;;  %8937 = vmatprep.subr.bf16.mxu1 %v14443_v21  ;;  %v2356_v35 = vld [vmem:[%s16207_s21 + $0x1f50] sm:$0xff] }
 0x53b   : > { %v2360_v21 = vld [vmem:[%s16207_s21 + $0x1f70] sm:$0xff] }
 0x53c   : > { %v9042_v20 = vld [vmem:[%s16215_s10 + $0x1c0] sm:$0xff] }
 0x53d   : > { %8610 = vmatpush1.bf16.msra.mxu0 %v14440_v34  ;;  %8938 = vmatpush1.bf16.msra.mxu1 %v14442_v39  ;;  %v14505_v34 = vcombine.high %v2356_v35, %v2360_v21  ;;  %v14507_v39 = vcombine.high %v2357_v27, %v2361_v28  ;;  %v9046_v7 = vld [vmem:[%s16215_s10 + $0x1e0] sm:$0xff] }
 0x53e   : > { %8611 = vmatprep.subr.bf16.mxu0 %v14449_v40  ;;  %8939 = vmatprep.subr.bf16.mxu1 %v14451_v46  ;;  %v2364_v40 = vld [vmem:[%s16207_s21 + $0x1f90] sm:$0xff] }
 0x53f   : > { %v2368_v46 = vld [vmem:[%s16207_s21 + $0x1fb0] sm:$0xff] }
 0x540   : > { %v9050_v14 = vld [vmem:[%s16215_s10 + $0x200] sm:$0xff] }
 0x541   : > { %8612 = vmatpush1.bf16.msra.mxu0 %v14448_v63  ;;  %8940 = vmatpush1.bf16.msra.mxu1 %v14450_v24  ;;  %v14504_v63 = vcombine.low %v2356_v35, %v2360_v21  ;;  %v14506_v24 = vcombine.low %v2357_v27, %v2361_v28  ;;  %v9018_v27 = vld [vmem:[%s16215_s10 + $0x100] sm:$0xff] }
 0x542   : > { %8613 = vmatprep.subr.bf16.mxu0 %v14457_v53  ;;  %8941 = vmatprep.subr.bf16.mxu1 %v14459_v17  ;;  %v14513_v53 = vcombine.high %v2364_v40, %v2368_v46  ;;  %v14515_v17 = vcombine.high %v2365_v1, %v2369_v37  ;;  %v9022_v28 = vld [vmem:[%s16215_s10 + $0x120] sm:$0xff] }
 0x545   : > { %8614 = vmatpush1.bf16.msra.mxu0 %v14456_v8  ;;  %8942 = vmatpush1.bf16.msra.mxu1 %v14458_v6  ;;  %v2377_v8 = vld [vmem:[%s16207_s21 + $0x1ff8] sm:$0xff]  ;;  %v14512_v6 = vcombine.low %v2364_v40, %v2368_v46  ;;  %v14557_v40 = vcombine.high %v9018_v27, %v9022_v28 }
 0x546   : > { %8615 = vmatprep.subr.bf16.mxu0 %v14465_v16  ;;  %8943 = vmatprep.subr.bf16.mxu1 %v14467_v9  ;;  %v14514_v16 = vcombine.low %v2365_v1, %v2369_v37  ;;  %v14521_v9 = vcombine.high %v2372_v56, %v2376_v2  ;;  %v14523_v52 = vcombine.high %v2373_v10, %v2377_v8  ;;  %v9026_v1 = vld [vmem:[%s16215_s10 + $0x140] sm:$0xff] }
 0x547   : > { %v9030_v37 = vld [vmem:[%s16215_s10 + $0x160] sm:$0xff] }
 0x549   : > { %8616 = vmatpush1.bf16.msra.mxu0 %v14464_v15  ;;  %8944 = vmatpush1.bf16.msra.mxu1 %v14466_v4  ;;  %v8987_v15 = vld [vmem:[%s16215_s10 + $0x8] sm:$0xff] }
 0x54a   : > { %8617 = vmatprep.subr.bf16.mxu0 %v14473_v59  ;;  %8945 = vmatprep.subr.bf16.mxu1 %v14475_v50  ;;  %v8991_v4 = vld [vmem:[%s16215_s10 + $0x28] sm:$0xff]  ;;  %v14520_v59 = vcombine.low %v2372_v56, %v2376_v2  ;;  %v14522_v50 = vcombine.low %v2373_v10, %v2377_v8  ;;  %v14565_v56 = vcombine.high %v9026_v1, %v9030_v37  ;;  %v9038_v10 = vld [vmem:[%s16215_s10 + $0x1a0] sm:$0xff] }
 0x54b   : > { %v14527_v25 = vcombine.high %v8987_v15, %v8991_v4  ;;  %v9035_v8 = vld [vmem:[%s16215_s10 + $0x188] sm:$0xff] }
 0x54d   : > { %8618 = vmatpush1.bf16.msra.mxu0 %v14472_v36  ;;  %8946 = vmatpush1.bf16.msra.mxu1 %v14474_v47  ;;  %v8998_v36 = vld [vmem:[%s16215_s10 + $0x60] sm:$0xff]  ;;  %v8995_v47 = vld [vmem:[%s16215_s10 + $0x48] sm:$0xff] }
 0x54e   : > { %8619 = vmatprep.subr.bf16.mxu0 %v14481_v3  ;;  %8947 = vmatprep.subr.bf16.mxu1 %v14483_v61  ;;  %v8999_v3 = vld [vmem:[%s16215_s10 + $0x68] sm:$0xff]  ;;  %v14526_v61 = vcombine.low %v8987_v15, %v8991_v4  ;;  %v14533_v41 = vcombine.high %v8994_v33, %v8998_v36 }
 0x54f   : > { %v14534_v30 = vcombine.low %v8995_v47, %v8999_v3  ;;  %v9043_v15 = vld [vmem:[%s16215_s10 + $0x1c8] sm:$0xff] }
 0x550   : > { %v9047_v4 = vld [vmem:[%s16215_s10 + $0x1e8] sm:$0xff] }
 0x551   : > { %8620 = vmatpush1.bf16.msra.mxu0 %v14480_v38  ;;  %8948 = vmatpush1.bf16.msra.mxu1 %v14482_v51  ;;  %v14535_v38 = vcombine.high %v8995_v47, %v8999_v3  ;;  %v9003_v51 = vld [vmem:[%s16215_s10 + $0x88] sm:$0xff]  ;;  %v14580_v47 = vcombine.low %v9042_v20, %v9046_v7  ;;  %v14582_v3 = vcombine.low %v9043_v15, %v9047_v4 }
 0x552   : > { %8621 = vmatprep.subr.bf16.mxu0 %v14489_v60  ;;  %8949 = vmatprep.subr.bf16.mxu1 %v14491_v11  ;;  %v9007_v60 = vld [vmem:[%s16215_s10 + $0xa8] sm:$0xff]  ;;  %v14532_v11 = vcombine.low %v8994_v33, %v8998_v36  ;;  %v9054_v33 = vld [vmem:[%s16215_s10 + $0x220] sm:$0xff] }
 0x553   : > { %v14543_v57 = vcombine.high %v9003_v51, %v9007_v60  ;;  %v9051_v36 = vld [vmem:[%s16215_s10 + $0x208] sm:$0xff] }
 0x555   : > { %8622 = vmatpush1.bf16.msra.mxu0 %v14488_v43  ;;  %8950 = vmatpush1.bf16.msra.mxu1 %v14490_v44  ;;  %v9014_v43 = vld [vmem:[%s16215_s10 + $0xe0] sm:$0xff]  ;;  %v9011_v44 = vld [vmem:[%s16215_s10 + $0xc8] sm:$0xff] }
 0x556   : > { %8623 = vmatprep.subr.bf16.mxu0 %v14497_v54  ;;  %8951 = vmatprep.subr.bf16.mxu1 %v14499_v31  ;;  %v14540_v54 = vcombine.low %v9002_v45, %v9006_v49  ;;  %v14542_v31 = vcombine.low %v9003_v51, %v9007_v60  ;;  %v14549_v35 = vcombine.high %v9010_v42, %v9014_v43  ;;  %v9058_v45 = vld [vmem:[%s16215_s10 + $0x240] sm:$0xff]  ;;  %v9063_v51 = vld [vmem:[%s16215_s10 + $0x268] sm:$0xff] }
 0x557   : > { %v9062_v49 = vld [vmem:[%s16215_s10 + $0x260] sm:$0xff]  ;;  %v14588_v60 = vcombine.low %v9050_v14, %v9054_v33 }
 0x559   : > { %8624 = vmatpush1.bf16.msra.mxu0 %v14496_v19  ;;  %8952 = vmatpush1.bf16.msra.mxu1 %v14498_v29  ;;  %v9019_v19 = vld [vmem:[%s16215_s10 + $0x108] sm:$0xff] }
 0x55a   : > { %8625 = vmatprep.subr.bf16.mxu0 %v14505_v34  ;;  %8953 = vmatprep.subr.bf16.mxu1 %v14507_v39  ;;  %v9023_v29 = vld [vmem:[%s16215_s10 + $0x128] sm:$0xff]  ;;  %v14548_v34 = vcombine.low %v9010_v42, %v9014_v43  ;;  %v9070_v42 = vld [vmem:[%s16215_s10 + $0x2a0] sm:$0xff] }
 0x55b   : > { %v14559_v46 = vcombine.high %v9019_v19, %v9023_v29  ;;  %v9067_v43 = vld [vmem:[%s16215_s10 + $0x288] sm:$0xff] }
 0x55d   : > { %8626 = vmatpush1.bf16.msra.mxu0 %v14504_v63  ;;  %8954 = vmatpush1.bf16.msra.mxu1 %v14506_v24  ;;  %v9027_v63 = vld [vmem:[%s16215_s10 + $0x148] sm:$0xff] }
 0x55e   : > { %8627 = vmatprep.subr.bf16.mxu0 %v14513_v53  ;;  %8955 = vmatprep.subr.bf16.mxu1 %v14515_v17  ;;  %v9031_v24 = vld [vmem:[%s16215_s10 + $0x168] sm:$0xff]  ;;  %v14556_v53 = vcombine.low %v9018_v27, %v9022_v28  ;;  %v14558_v17 = vcombine.low %v9019_v19, %v9023_v29  ;;  %v9078_v27 = vld [vmem:[%s16215_s10 + $0x2e0] sm:$0xff] }
 0x55f   : > { %v14567_v2 = vcombine.high %v9027_v63, %v9031_v24  ;;  %v9075_v28 = vld [vmem:[%s16215_s10 + $0x2c8] sm:$0xff] }
 0x560   : > { %v9079_v19 = vld [vmem:[%s16215_s10 + $0x2e8] sm:$0xff] }
 0x561   : > { %8628 = vmatpush1.bf16.msra.mxu0 %v14512_v6  ;;  %8956 = vmatpush1.bf16.msra.mxu1 %v14514_v16  ;;  %v9039_v6 = vld [vmem:[%s16215_s10 + $0x1a8] sm:$0xff]  ;;  %v14564_v16 = vcombine.low %v9026_v1, %v9030_v37  ;;  %v9086_v1 = vld [vmem:[%s16215_s10 + $0x320] sm:$0xff] }
 0x562   : > { %8629 = vmatprep.subr.bf16.mxu0 %v14521_v9  ;;  %8957 = vmatprep.subr.bf16.mxu1 %v14523_v52  ;;  %v14566_v9 = vcombine.low %v9027_v63, %v9031_v24  ;;  %v14573_v52 = vcombine.high %v9034_v5, %v9038_v10  ;;  %v14575_v13 = vcombine.high %v9035_v8, %v9039_v6  ;;  %v9083_v37 = vld [vmem:[%s16215_s10 + $0x308] sm:$0xff] }
 0x563   : > { %v9087_v63 = vld [vmem:[%s16215_s10 + $0x328] sm:$0xff] }
 0x565   : > { %8630 = vmatpush1.bf16.msra.mxu0 %v14520_v59  ;;  %8958 = vmatpush1.bf16.msra.mxu1 %v14522_v50  ;;  %v14572_v59 = vcombine.low %v9034_v5, %v9038_v10  ;;  %v14574_v50 = vcombine.low %v9035_v8, %v9039_v6  ;;  %v9094_v5 = vld [vmem:[%s16215_s10 + $0x360] sm:$0xff]  ;;  %v9091_v10 = vld [vmem:[%s16215_s10 + $0x348] sm:$0xff] }
 0x566   : > { %12058 = vmatprep.subr.bf16.mxu0 %v14525_v23  ;;  %12222 = vmatprep.subr.bf16.mxu1 %v14527_v25  ;;  %v14581_v23 = vcombine.high %v9042_v20, %v9046_v7  ;;  %v14583_v25 = vcombine.high %v9043_v15, %v9047_v4  ;;  %v9095_v8 = vld [vmem:[%s16215_s10 + $0x368] sm:$0xff]  ;;  %v9098_v20 = vld [vmem:[%s16215_s10 + $0x380] sm:$0xff]  ;;  %v2394_v15 = vsub.s32 3, %v16437_v55 }
 0x567   : > { %v9102_v7 = vld [vmem:[%s16215_s10 + $0x3a0] sm:$0xff]  ;;  %v9099_v4 = vld [vmem:[%s16215_s10 + $0x388] sm:$0xff] }
 0x568   : > { %8632 = vmatmul.mubr.bf16.vlgmr.msra.gmra.mrb[4].mxu0 %v17056_v62  ;;  %8960 = vmatmul.mubr.bf16.vlgmr.msra.gmra.mrb[4].mxu1 %v17056_v62  ;;  %v9015_v62 = vld [vmem:[%s16215_s10 + $0xe8] sm:$0xff] }
 0x569   : > { %12059 = vmatpush1.bf16.msra.mxu0 %v14524_v22  ;;  %12090 = vmatprep.mubr.bf16.mxu0 %v17622_v58  ;;  %v14551_v21 = vcombine.high %v9011_v44, %v9015_v62  ;;  %v14550_v39 = vcombine.low %v9011_v44, %v9015_v62  ;;  %v9055_v22 = vld [vmem:[%s16215_s10 + $0x228] sm:$0xff]  ;;  %v14596_v62 = vcombine.low %v9058_v45, %v9062_v49 }
 0x56a   : > { %12223 = vmatpush1.bf16.msra.mxu1 %v14526_v61  ;;  %12254 = vmatprep.mubr.bf16.mxu1 %v17622_v58  ;;  %v14589_v61 = vcombine.high %v9050_v14, %v9054_v33  ;;  %v9071_v44 = vld [vmem:[%s16215_s10 + $0x2a8] sm:$0xff]  ;;  %v14637_v14 = vcombine.high %v9098_v20, %v9102_v7 }
 0x56b   : > { %12060 = vmatprep.subr.bf16.mxu0 %v14533_v41  ;;  %12224 = vmatprep.subr.bf16.mxu1 %v14535_v38  ;;  %v14591_v41 = vcombine.high %v9051_v36, %v9055_v22  ;;  %v9059_v38 = vld [vmem:[%s16215_s10 + $0x248] sm:$0xff] }
 0x56d   : > { %12061 = vmatpush1.bf16.msra.mxu0 %v14532_v11  ;;  %v14590_v11 = vcombine.low %v9051_v36, %v9055_v22  ;;  %v9106_v36 = vld [vmem:[%s16215_s10 + $0x3c0] sm:$0xff] }
 0x56e   : > { %12225 = vmatpush1.bf16.msra.mxu1 %v14534_v30  ;;  %12062 = vmatprep.subr.bf16.mxu0 %v14541_v32  ;;  %v14597_v30 = vcombine.high %v9058_v45, %v9062_v49  ;;  %v14599_v32 = vcombine.high %v9059_v38, %v9063_v51  ;;  %v9110_v22 = vld [vmem:[%s16215_s10 + $0x3e0] sm:$0xff] }
 0x56f   : > { %12226 = vmatprep.subr.bf16.mxu1 %v14543_v57  ;;  %v9066_v57 = vld [vmem:[%s16215_s10 + $0x280] sm:$0xff] }
 0x570   : > { %v14604_v29 = vcombine.low %v9066_v57, %v9070_v42 }
 0x571   : > { %12063 = vmatpush1.bf16.msra.mxu0 %v14540_v54  ;;  %v14598_v54 = vcombine.low %v9059_v38, %v9063_v51  ;;  %v14645_v38 = vcombine.high %v9106_v36, %v9110_v22 }
 0x572   : > { %12227 = vmatpush1.bf16.msra.mxu1 %v14542_v31  ;;  %12064 = vmatprep.subr.bf16.mxu0 %v14549_v35  ;;  %v14605_v31 = vcombine.high %v9066_v57, %v9070_v42  ;;  %v14607_v35 = vcombine.high %v9067_v43, %v9071_v44  ;;  %v9119_v57 = vld [vmem:[%s16215_s10 + $0x428] sm:$0xff]  ;;  %v14644_v42 = vcombine.low %v9106_v36, %v9110_v22 }
 0x573   : > { %12228 = vmatprep.subr.bf16.mxu1 %v14551_v21  ;;  %v9074_v21 = vld [vmem:[%s16215_s10 + $0x2c0] sm:$0xff]  ;;  %v9155_v36 = vld [vmem:[%s16215_s10 + $0x548] sm:$0xff] }
 0x574   : > { %v14612_v24 = vcombine.low %v9074_v21, %v9078_v27  ;;  %v9159_v22 = vld [vmem:[%s16215_s10 + $0x568] sm:$0xff] }
 0x575   : > { %12065 = vmatpush1.bf16.msra.mxu0 %v14548_v34  ;;  %v14606_v34 = vcombine.low %v9067_v43, %v9071_v44 }
 0x576   : > { %12229 = vmatpush1.bf16.msra.mxu1 %v14550_v39  ;;  %12066 = vmatprep.subr.bf16.mxu0 %v14557_v40  ;;  %v14613_v39 = vcombine.high %v9074_v21, %v9078_v27  ;;  %v14615_v40 = vcombine.high %v9075_v28, %v9079_v19  ;;  %v9123_v21 = vld [vmem:[%s16215_s10 + $0x448] sm:$0xff] }
 0x577   : > { %12230 = vmatprep.subr.bf16.mxu1 %v14559_v46  ;;  %v9082_v46 = vld [vmem:[%s16215_s10 + $0x300] sm:$0xff]  ;;  %v9127_v27 = vld [vmem:[%s16215_s10 + $0x468] sm:$0xff] }
 0x578   : > { %v14620_v6 = vcombine.low %v9082_v46, %v9086_v1 }
 0x579   : > { %12067 = vmatpush1.bf16.msra.mxu0 %v14556_v53  ;;  %v14614_v53 = vcombine.low %v9075_v28, %v9079_v19 }
 0x57a   : > { %12231 = vmatpush1.bf16.msra.mxu1 %v14558_v17  ;;  %12068 = vmatprep.subr.bf16.mxu0 %v14565_v56  ;;  %v14621_v17 = vcombine.high %v9082_v46, %v9086_v1  ;;  %v14623_v56 = vcombine.high %v9083_v37, %v9087_v63  ;;  %v14663_v46 = vcombine.high %v9123_v21, %v9127_v27  ;;  %v9131_v1 = vld [vmem:[%s16215_s10 + $0x488] sm:$0xff] }
 0x57b   : > { %12232 = vmatprep.subr.bf16.mxu1 %v14567_v2  ;;  %v9090_v2 = vld [vmem:[%s16215_s10 + $0x340] sm:$0xff] }
 0x57d   : > { %12069 = vmatpush1.bf16.msra.mxu0 %v14564_v16  ;;  %v2382_v16 = vsub.s32 0, %v16437_v55 }
 0x57e   : > { %12233 = vmatpush1.bf16.msra.mxu1 %v14566_v9  ;;  %12070 = vmatprep.subr.bf16.mxu0 %v14573_v52  ;;  %v14622_v9 = vcombine.low %v9083_v37, %v9087_v63  ;;  %v14629_v52 = vcombine.high %v9090_v2, %v9094_v5  ;;  %v9135_v37 = vld [vmem:[%s16215_s10 + $0x4a8] sm:$0xff] }
 0x57f   : > { %12234 = vmatprep.subr.bf16.mxu1 %v14575_v13  ;;  %v14631_v13 = vcombine.high %v9091_v10, %v9095_v8 }
 0x581   : > { %12071 = vmatpush1.bf16.msra.mxu0 %v14572_v59  ;;  %v9103_v59 = vld [vmem:[%s16215_s10 + $0x3a8] sm:$0xff] }
 0x582   : > { %12235 = vmatpush1.bf16.msra.mxu1 %v14574_v50  ;;  %12072 = vmatprep.subr.bf16.mxu0 %v14581_v23  ;;  %v14628_v50 = vcombine.low %v9090_v2, %v9094_v5  ;;  %v2383_v23 = vrot.slane %v17602_v48, %v2382_v16  ;;  %v14639_v33 = vcombine.high %v9099_v4, %v9103_v59  ;;  %v9142_v2 = vld [vmem:[%s16215_s10 + $0x4e0] sm:$0xff]  ;;  %v9139_v5 = vld [vmem:[%s16215_s10 + $0x4c8] sm:$0xff] }
 0x583   : > { %12236 = vmatprep.subr.bf16.mxu1 %v14583_v25  ;;  %v14630_v25 = vcombine.low %v9091_v10, %v9095_v8  ;;  %v14638_v49 = vcombine.low %v9099_v4, %v9103_v59  ;;  %v9143_v10 = vld [vmem:[%s16215_s10 + $0x4e8] sm:$0xff] }
 0x584   : > { %v15314_v45 = vadd.f32 %v17288_v18, %v2383_v23  ;;  %v9151_v4 = vld [vmem:[%s16215_s10 + $0x528] sm:$0xff] }
 0x585   : > { %12073 = vmatpush1.bf16.msra.mxu0 %v14580_v47  ;;  %v2395_v47 = vrot.slane %v17602_v48, %v2394_v15 }
 0x586   : > { %12237 = vmatpush1.bf16.msra.mxu1 %v14582_v3  ;;  %12074 = vmatprep.subr.bf16.mxu0 %v14589_v61  ;;  %v9107_v3 = vld [vmem:[%s16215_s10 + $0x3c8] sm:$0xff]  ;;  %v8968_v43 = vmax.f32 %v15314_v45, 0.0  ;;  %v9162_v45 = vld [vmem:[%s16215_s10 + $0x580] sm:$0xff] }
 0x587   : > { %12238 = vmatprep.subr.bf16.mxu1 %v14591_v41  ;;  %v9111_v61 = vld [vmem:[%s16215_s10 + $0x3e8] sm:$0xff]  ;;  %v14636_v41 = vcombine.low %v9098_v20, %v9102_v7  ;;  %v9150_v20 = vld [vmem:[%s16215_s10 + $0x520] sm:$0xff] }
 0x588   : > { %v14647_v51 = vcombine.high %v9107_v3, %v9111_v61  ;;  %v14646_v18 = vcombine.low %v9107_v3, %v9111_v61  ;;  %v17700_v28 = vpack.c.bf16 %v8968_v43, %v8968_v43  ;;  %v9147_v7 = vld [vmem:[%s16215_s10 + $0x508] sm:$0xff] }
 0x589   : > { %12075 = vmatpush1.bf16.msra.mxu0 %v14588_v60  ;;  %v9114_v60 = vld [vmem:[%s16215_s10 + $0x400] sm:$0xff]  ;;  %v14686_v3 = vcombine.low %v9147_v7, %v9151_v4  ;;  %v9171_v43 = vld [vmem:[%s16215_s10 + $0x5c8] sm:$0xff] }
 0x58a   : > { %12239 = vmatpush1.bf16.msra.mxu1 %v14590_v11  ;;  %12076 = vmatprep.subr.bf16.mxu0 %v14597_v30  ;;  %v9118_v11 = vld [vmem:[%s16215_s10 + $0x420] sm:$0xff]  ;;  %v15317_v30 = vadd.f32 %v17298_v26, %v2395_v47 }
 0x58b   : > { %12240 = vmatprep.subr.bf16.mxu1 %v14599_v32  ;;  %v9115_v32 = vld [vmem:[%s16215_s10 + $0x408] sm:$0xff]  ;;  %v14653_v44 = vcombine.high %v9114_v60, %v9118_v11  ;;  %v14652_v26 = vcombine.low %v9114_v60, %v9118_v11  ;;  %v14694_v11 = vcombine.low %v9155_v36, %v9159_v22 }
 0x58c   : > { %v14654_v19 = vcombine.low %v9115_v32, %v9119_v57 }
 0x58d   : > { %12077 = vmatpush1.bf16.msra.mxu0 %v14596_v62  ;;  %v14655_v62 = vcombine.high %v9115_v32, %v9119_v57  ;;  %v9170_v57 = vld [vmem:[%s16215_s10 + $0x5c0] sm:$0xff] }
 0x58e   : > { %12241 = vmatpush1.bf16.msra.mxu1 %v14598_v54  ;;  %12078 = vmatprep.subr.bf16.mxu0 %v14605_v31  ;;  %v8971_v54 = vmax.f32 %v15317_v30, 0.0  ;;  %v9122_v31 = vld [vmem:[%s16215_s10 + $0x440] sm:$0xff] }
 0x58f   : > { %12242 = vmatprep.subr.bf16.mxu1 %v14607_v35  ;;  %v9126_v35 = vld [vmem:[%s16215_s10 + $0x460] sm:$0xff] }
 0x590   : > { %v14660_v63 = vcombine.low %v9122_v31, %v9126_v35 }
 0x591   : > { %12079 = vmatpush1.bf16.msra.mxu0 %v14604_v29  ;;  %v14661_v29 = vcombine.high %v9122_v31, %v9126_v35  ;;  %v9178_v35 = vld [vmem:[%s16215_s10 + $0x600] sm:$0xff] }
 0x592   : > { %12243 = vmatpush1.bf16.msra.mxu1 %v14606_v34  ;;  %12080 = vmatprep.subr.bf16.mxu0 %v14613_v39  ;;  %v9130_v34 = vld [vmem:[%s16215_s10 + $0x480] sm:$0xff] }
 0x593   : > { %12244 = vmatprep.subr.bf16.mxu1 %v14615_v40  ;;  %v9134_v39 = vld [vmem:[%s16215_s10 + $0x4a0] sm:$0xff]  ;;  %v17704_v40 = vpack.c.bf16 %v8971_v54, %v8971_v54 }
 0x594   : > { %v14668_v8 = vcombine.low %v9130_v34, %v9134_v39 }
 0x595   : > { %12081 = vmatpush1.bf16.msra.mxu0 %v14612_v24  ;;  %v14662_v24 = vcombine.low %v9123_v21, %v9127_v27  ;;  %v9179_v21 = vld [vmem:[%s16215_s10 + $0x608] sm:$0xff] }
 0x596   : > { %12245 = vmatpush1.bf16.msra.mxu1 %v14614_v53  ;;  %12082 = vmatprep.subr.bf16.mxu0 %v14621_v17  ;;  %v14669_v53 = vcombine.high %v9130_v34, %v9134_v39  ;;  %v14671_v17 = vcombine.high %v9131_v1, %v9135_v37  ;;  %v9183_v27 = vld [vmem:[%s16215_s10 + $0x628] sm:$0xff] }
 0x597   : > { %12246 = vmatprep.subr.bf16.mxu1 %v14623_v56  ;;  %v9138_v56 = vld [vmem:[%s16215_s10 + $0x4c0] sm:$0xff]  ;;  %v14719_v39 = vcombine.high %v9179_v21, %v9183_v27 }
 0x598   : > { %v14676_v59 = vcombine.low %v9138_v56, %v9142_v2 }
 0x599   : > { %12083 = vmatpush1.bf16.msra.mxu0 %v14620_v6  ;;  %v14670_v6 = vcombine.low %v9131_v1, %v9135_v37  ;;  %v9190_v1 = vld [vmem:[%s16215_s10 + $0x660] sm:$0xff]  ;;  %v9187_v37 = vld [vmem:[%s16215_s10 + $0x648] sm:$0xff] }
 0x59a   : > { %12247 = vmatpush1.bf16.msra.mxu1 %v14622_v9  ;;  %12084 = vmatprep.subr.bf16.mxu0 %v14629_v52  ;;  %v14677_v9 = vcombine.high %v9138_v56, %v9142_v2  ;;  %v14679_v52 = vcombine.high %v9139_v5, %v9143_v10  ;;  %v9194_v2 = vld [vmem:[%s16215_s10 + $0x680] sm:$0xff] }
 0x59b   : > { %12248 = vmatprep.subr.bf16.mxu1 %v14631_v13  ;;  %v9146_v13 = vld [vmem:[%s16215_s10 + $0x500] sm:$0xff] }
 0x59c   : > { %v14685_v23 = vcombine.high %v9146_v13, %v9150_v20  ;;  %v14684_v47 = vcombine.low %v9146_v13, %v9150_v20  ;;  %v9202_v20 = vld [vmem:[%s16215_s10 + $0x6c0] sm:$0xff] }
 0x59d   : > { %12085 = vmatpush1.bf16.msra.mxu0 %v14628_v50  ;;  %v14678_v50 = vcombine.low %v9139_v5, %v9143_v10  ;;  %v9198_v5 = vld [vmem:[%s16215_s10 + $0x6a0] sm:$0xff]  ;;  %v9195_v10 = vld [vmem:[%s16215_s10 + $0x688] sm:$0xff] }
 0x59e   : > { %12249 = vmatpush1.bf16.msra.mxu1 %v14630_v25  ;;  %12086 = vmatprep.subr.bf16.mxu0 %v14637_v14  ;;  %v14687_v25 = vcombine.high %v9147_v7, %v9151_v4  ;;  %v9154_v14 = vld [vmem:[%s16215_s10 + $0x540] sm:$0xff]  ;;  %v9203_v4 = vld [vmem:[%s16215_s10 + $0x6c8] sm:$0xff] }
 0x59f   : > { %12250 = vmatprep.subr.bf16.mxu1 %v14639_v33  ;;  %v9158_v33 = vld [vmem:[%s16215_s10 + $0x560] sm:$0xff] }
 0x5a0   : > { %v14693_v61 = vcombine.high %v9154_v14, %v9158_v33  ;;  %v14692_v60 = vcombine.low %v9154_v14, %v9158_v33  ;;  %v9206_v7 = vld [vmem:[%s16215_s10 + $0x6e0] sm:$0xff] }
 0x5a1   : > { %12087 = vmatpush1.bf16.msra.mxu0 %v14636_v41  ;;  %v14695_v41 = vcombine.high %v9155_v36, %v9159_v22  ;;  %v9210_v33 = vld [vmem:[%s16215_s10 + $0x700] sm:$0xff]  ;;  %v9211_v22 = vld [vmem:[%s16215_s10 + $0x708] sm:$0xff] }
 0x5a2   : > { %12251 = vmatpush1.bf16.msra.mxu1 %v14638_v49  ;;  %12088 = vmatprep.subr.bf16.mxu0 %v14645_v38  ;;  %v9166_v49 = vld [vmem:[%s16215_s10 + $0x5a0] sm:$0xff]  ;;  %v9163_v38 = vld [vmem:[%s16215_s10 + $0x588] sm:$0xff] }
 0x5a3   : > { %12252 = vmatprep.subr.bf16.mxu1 %v14647_v51  ;;  %v9167_v51 = vld [vmem:[%s16215_s10 + $0x5a8] sm:$0xff]  ;;  %v14701_v30 = vcombine.high %v9162_v45, %v9166_v49  ;;  %v9214_v36 = vld [vmem:[%s16215_s10 + $0x720] sm:$0xff] }
 0x5a4   : > { %v14703_v32 = vcombine.high %v9163_v38, %v9167_v51 }
 0x5a5   : > { %12089 = vmatpush1.bf16.msra.mxu0 %v14644_v42  ;;  %v9174_v42 = vld [vmem:[%s16215_s10 + $0x5e0] sm:$0xff] }
 0x5a6   : > { %12253 = vmatpush1.bf16.msra.mxu1 %v14646_v18  ;;  %12099 = vmatprep.subr.bf16.mxu0 %v14653_v44  ;;  %v9175_v18 = vld [vmem:[%s16215_s10 + $0x5e8] sm:$0xff]  ;;  %v14700_v44 = vcombine.low %v9162_v45, %v9166_v49  ;;  %v14709_v54 = vcombine.high %v9170_v57, %v9174_v42  ;;  %v9218_v49 = vld [vmem:[%s16215_s10 + $0x740] sm:$0xff] }
 0x5a7   : > { %12263 = vmatprep.subr.bf16.mxu1 %v14655_v62  ;;  %v14702_v62 = vcombine.low %v9163_v38, %v9167_v51  ;;  %v14711_v31 = vcombine.high %v9171_v43, %v9175_v18  ;;  %v9222_v38 = vld [vmem:[%s16215_s10 + $0x760] sm:$0xff]  ;;  %v9219_v51 = vld [vmem:[%s16215_s10 + $0x748] sm:$0xff] }
 0x5a8   : > { %12091 = vmatmul.mubr.bf16.vlgmr.msra.gmra.mrb[8].mxu0 %v17700_v28 }
 0x5a9   : > { %12255 = vmatmul.mubr.bf16.vlgmr.msra.gmra.mrb[8].mxu1 %v17700_v28  ;;  %12100 = vmatpush1.bf16.msra.mxu0 %v14652_v26  ;;  %v9182_v26 = vld [vmem:[%s16215_s10 + $0x620] sm:$0xff] }
 0x5aa   : > { %12131 = vmatprep.mubr.bf16.mxu0 %v17704_v40  ;;  %12264 = vmatpush1.bf16.msra.mxu1 %v14654_v19  ;;  %v14708_v19 = vcombine.low %v9170_v57, %v9174_v42  ;;  %v14717_v34 = vcombine.high %v9178_v35, %v9182_v26  ;;  %v14757_v57 = vcombine.high %v9218_v49, %v9222_v38 }
 0x5ab   : > { %12295 = vmatprep.mubr.bf16.mxu1 %v17704_v40  ;;  %12101 = vmatprep.subr.bf16.mxu0 %v14661_v29  ;;  %v14710_v29 = vcombine.low %v9171_v43, %v9175_v18  ;;  %v9226_v43 = vld [vmem:[%s16215_s10 + $0x780] sm:$0xff] }
 0x5ac   : > { %12265 = vmatprep.subr.bf16.mxu1 %v14663_v46  ;;  %v9186_v46 = vld [vmem:[%s16215_s10 + $0x640] sm:$0xff] }
 0x5ad   : > { %12102 = vmatpush1.bf16.msra.mxu0 %v14660_v63  ;;  %v9191_v63 = vld [vmem:[%s16215_s10 + $0x668] sm:$0xff]  ;;  %v9230_v18 = vld [vmem:[%s16215_s10 + $0x7a0] sm:$0xff] }
 0x5ae   : > { %12266 = vmatpush1.bf16.msra.mxu1 %v14662_v24  ;;  %12103 = vmatprep.subr.bf16.mxu0 %v14669_v53  ;;  %v14716_v24 = vcombine.low %v9178_v35, %v9182_v26  ;;  %v14718_v53 = vcombine.low %v9179_v21, %v9183_v27  ;;  %v14727_v56 = vcombine.high %v9187_v37, %v9191_v63  ;;  %v9234_v27 = vld [vmem:[%s16215_s10 + $0x7c0] sm:$0xff] }
 0x5af   : > { %12267 = vmatprep.subr.bf16.mxu1 %v14671_v17  ;;  %v14725_v17 = vcombine.high %v9186_v46, %v9190_v1  ;;  %v14765_v26 = vcombine.high %v9226_v43, %v9230_v18 }
 0x5b1   : > { %12104 = vmatpush1.bf16.msra.mxu0 %v14668_v8  ;;  %v9199_v8 = vld [vmem:[%s16215_s10 + $0x6a8] sm:$0xff] }
 0x5b2   : > { %12268 = vmatpush1.bf16.msra.mxu1 %v14670_v6  ;;  %12105 = vmatprep.subr.bf16.mxu0 %v14677_v9  ;;  %v14724_v6 = vcombine.low %v9186_v46, %v9190_v1  ;;  %v14726_v9 = vcombine.low %v9187_v37, %v9191_v63  ;;  %v14735_v13 = vcombine.high %v9195_v10, %v9199_v8  ;;  %v9242_v63 = vld [vmem:[%s16215_s10 + $0x800] sm:$0xff] }
 0x5b3   : > { %12269 = vmatprep.subr.bf16.mxu1 %v14679_v52  ;;  %v14733_v52 = vcombine.high %v9194_v2, %v9198_v5 }
 0x5b5   : > { %12106 = vmatpush1.bf16.msra.mxu0 %v14676_v59  ;;  %v9207_v59 = vld [vmem:[%s16215_s10 + $0x6e8] sm:$0xff] }
 0x5b6   : > { %12270 = vmatpush1.bf16.msra.mxu1 %v14678_v50  ;;  %12107 = vmatprep.subr.bf16.mxu0 %v14685_v23  ;;  %v14732_v50 = vcombine.low %v9194_v2, %v9198_v5  ;;  %v14734_v23 = vcombine.low %v9195_v10, %v9199_v8  ;;  %v14743_v14 = vcombine.high %v9203_v4, %v9207_v59  ;;  %v9250_v8 = vld [vmem:[%s16215_s10 + $0x840] sm:$0xff] }
 0x5b7   : > { %12271 = vmatprep.subr.bf16.mxu1 %v14687_v25  ;;  %v14741_v25 = vcombine.high %v9202_v20, %v9206_v7 }
 0x5b9   : > { %12108 = vmatpush1.bf16.msra.mxu0 %v14684_v47  ;;  %v9215_v47 = vld [vmem:[%s16215_s10 + $0x728] sm:$0xff] }
 0x5ba   : > { %12272 = vmatpush1.bf16.msra.mxu1 %v14686_v3  ;;  %12109 = vmatprep.subr.bf16.mxu0 %v14693_v61  ;;  %v14740_v3 = vcombine.low %v9202_v20, %v9206_v7  ;;  %v14742_v61 = vcombine.low %v9203_v4, %v9207_v59  ;;  %v14751_v45 = vcombine.high %v9211_v22, %v9215_v47 }
 0x5bb   : > { %12273 = vmatprep.subr.bf16.mxu1 %v14695_v41  ;;  %v14749_v41 = vcombine.high %v9210_v33, %v9214_v36 }
 0x5bd   : > { %12110 = vmatpush1.bf16.msra.mxu0 %v14692_v60  ;;  %v9223_v60 = vld [vmem:[%s16215_s10 + $0x768] sm:$0xff] }
 0x5be   : > { %12274 = vmatpush1.bf16.msra.mxu1 %v14694_v11  ;;  %12111 = vmatprep.subr.bf16.mxu0 %v14701_v30  ;;  %v14748_v11 = vcombine.low %v9210_v33, %v9214_v36  ;;  %v2390_v30 = vsub.s32 2, %v16437_v55  ;;  %v14759_v42 = vcombine.high %v9219_v51, %v9223_v60  ;;  %v14758_v35 = vcombine.low %v9219_v51, %v9223_v60 }
 0x5bf   : > { %12275 = vmatprep.subr.bf16.mxu1 %v14703_v32  ;;  %v14750_v32 = vcombine.low %v9211_v22, %v9215_v47 }
 0x5c1   : > { %12112 = vmatpush1.bf16.msra.mxu0 %v14700_v44  ;;  %v9227_v44 = vld [vmem:[%s16215_s10 + $0x788] sm:$0xff] }
 0x5c2   : > { %12276 = vmatpush1.bf16.msra.mxu1 %v14702_v62  ;;  %12113 = vmatprep.subr.bf16.mxu0 %v14709_v54  ;;  %v9231_v62 = vld [vmem:[%s16215_s10 + $0x7a8] sm:$0xff]  ;;  %v14756_v54 = vcombine.low %v9218_v49, %v9222_v38 }
 0x5c3   : > { %12277 = vmatprep.subr.bf16.mxu1 %v14711_v31  ;;  %v2391_v31 = vrot.slane %v17602_v48, %v2390_v30  ;;  %v14767_v21 = vcombine.high %v9227_v44, %v9231_v62  ;;  %v14766_v48 = vcombine.low %v9227_v44, %v9231_v62 }
 0x5c5   : > { %12114 = vmatpush1.bf16.msra.mxu0 %v14708_v19  ;;  %v9238_v19 = vld [vmem:[%s16215_s10 + $0x7e0] sm:$0xff]  ;;  %v15316_v46 = vadd.f32 %v17292_v12, %v2391_v31 }
 0x5c6   : > { %12278 = vmatpush1.bf16.msra.mxu1 %v14710_v29  ;;  %12115 = vmatprep.subr.bf16.mxu0 %v14717_v34  ;;  %v9235_v29 = vld [vmem:[%s16215_s10 + $0x7c8] sm:$0xff]  ;;  %v14773_v1 = vcombine.high %v9234_v27, %v9238_v19  ;;  %v9286_v31 = vld [vmem:[%s16215_s10 + $0x960] sm:$0xff] }
 0x5c7   : > { %12279 = vmatprep.subr.bf16.mxu1 %v14719_v39  ;;  %v9239_v34 = vld [vmem:[%s16215_s10 + $0x7e8] sm:$0xff]  ;;  %v14764_v39 = vcombine.low %v9226_v43, %v9230_v18  ;;  %v8970_v2 = vmax.f32 %v15316_v46, 0.0 }
 0x5c8   : > { %v14775_v37 = vcombine.high %v9235_v29, %v9239_v34  ;;  %v14774_v12 = vcombine.low %v9235_v29, %v9239_v34  ;;  %v9290_v34 = vld [vmem:[%s16215_s10 + $0x980] sm:$0xff]  ;;  %v9291_v46 = vld [vmem:[%s16215_s10 + $0x988] sm:$0xff] }
 0x5c9   : > { %12116 = vmatpush1.bf16.msra.mxu0 %v14716_v24  ;;  %v9246_v24 = vld [vmem:[%s16215_s10 + $0x820] sm:$0xff]  ;;  %v17777_v20 = vpack.c.bf16 %v8970_v2, %v8970_v2  ;;  %v9303_v2 = vld [vmem:[%s16215_s10 + $0x9e8] sm:$0xff] }
 0x5ca   : > { %12280 = vmatpush1.bf16.msra.mxu1 %v14718_v53  ;;  %12117 = vmatprep.subr.bf16.mxu0 %v14725_v17  ;;  %v9243_v53 = vld [vmem:[%s16215_s10 + $0x808] sm:$0xff]  ;;  %v14781_v5 = vcombine.high %v9242_v63, %v9246_v24 }
 0x5cb   : > { %12281 = vmatprep.subr.bf16.mxu1 %v14727_v56  ;;  %v9247_v17 = vld [vmem:[%s16215_s10 + $0x828] sm:$0xff]  ;;  %v14772_v56 = vcombine.low %v9234_v27, %v9238_v19 }
 0x5cc   : > { %v14783_v10 = vcombine.high %v9243_v53, %v9247_v17  ;;  %v14782_v7 = vcombine.low %v9243_v53, %v9247_v17  ;;  %v9298_v53 = vld [vmem:[%s16215_s10 + $0x9c0] sm:$0xff] }
 0x5cd   : > { %12118 = vmatpush1.bf16.msra.mxu0 %v14724_v6  ;;  %v9254_v6 = vld [vmem:[%s16215_s10 + $0x860] sm:$0xff] }
 0x5ce   : > { %12282 = vmatpush1.bf16.msra.mxu1 %v14726_v9  ;;  %12119 = vmatprep.subr.bf16.mxu0 %v14733_v52  ;;  %v9251_v9 = vld [vmem:[%s16215_s10 + $0x848] sm:$0xff]  ;;  %v14789_v4 = vcombine.high %v9250_v8, %v9254_v6  ;;  %v14788_v33 = vcombine.low %v9250_v8, %v9254_v6  ;;  %v9302_v17 = vld [vmem:[%s16215_s10 + $0x9e0] sm:$0xff] }
 0x5cf   : > { %12283 = vmatprep.subr.bf16.mxu1 %v14735_v13  ;;  %v9255_v52 = vld [vmem:[%s16215_s10 + $0x868] sm:$0xff]  ;;  %v14780_v13 = vcombine.low %v9242_v63, %v9246_v24  ;;  %v9306_v6 = vld [vmem:[%s16215_s10 + $0xa00] sm:$0xff] }
 0x5d0   : > { %v14791_v59 = vcombine.high %v9251_v9, %v9255_v52  ;;  %v14790_v36 = vcombine.low %v9251_v9, %v9255_v52  ;;  %v9310_v9 = vld [vmem:[%s16215_s10 + $0xa20] sm:$0xff]  ;;  %v9307_v52 = vld [vmem:[%s16215_s10 + $0xa08] sm:$0xff] }
 0x5d1   : > { %12120 = vmatpush1.bf16.msra.mxu0 %v14732_v50  ;;  %v9258_v50 = vld [vmem:[%s16215_s10 + $0x880] sm:$0xff] }
 0x5d2   : > { %12284 = vmatpush1.bf16.msra.mxu1 %v14734_v23  ;;  %12121 = vmatprep.subr.bf16.mxu0 %v14741_v25  ;;  %v9262_v23 = vld [vmem:[%s16215_s10 + $0x8a0] sm:$0xff]  ;;  %v9259_v25 = vld [vmem:[%s16215_s10 + $0x888] sm:$0xff] }
 0x5d3   : > { %12285 = vmatprep.subr.bf16.mxu1 %v14743_v14  ;;  %v9263_v14 = vld [vmem:[%s16215_s10 + $0x8a8] sm:$0xff]  ;;  %v14797_v22 = vcombine.high %v9258_v50, %v9262_v23  ;;  %v14796_v49 = vcombine.low %v9258_v50, %v9262_v23  ;;  %v9314_v23 = vld [vmem:[%s16215_s10 + $0xa40] sm:$0xff] }
 0x5d4   : > { %v14799_v47 = vcombine.high %v9259_v25, %v9263_v14  ;;  %v14798_v38 = vcombine.low %v9259_v25, %v9263_v14  ;;  %v9318_v25 = vld [vmem:[%s16215_s10 + $0xa60] sm:$0xff]  ;;  %v9315_v14 = vld [vmem:[%s16215_s10 + $0xa48] sm:$0xff] }
 0x5d5   : > { %12122 = vmatpush1.bf16.msra.mxu0 %v14740_v3  ;;  %v9266_v3 = vld [vmem:[%s16215_s10 + $0x8c0] sm:$0xff] }
 0x5d6   : > { %12286 = vmatpush1.bf16.msra.mxu1 %v14742_v61  ;;  %12123 = vmatprep.subr.bf16.mxu0 %v14749_v41  ;;  %v9270_v61 = vld [vmem:[%s16215_s10 + $0x8e0] sm:$0xff]  ;;  %v9267_v41 = vld [vmem:[%s16215_s10 + $0x8c8] sm:$0xff] }
 0x5d7   : > { %12287 = vmatprep.subr.bf16.mxu1 %v14751_v45  ;;  %v9271_v45 = vld [vmem:[%s16215_s10 + $0x8e8] sm:$0xff]  ;;  %v14805_v51 = vcombine.high %v9266_v3, %v9270_v61  ;;  %v14804_v43 = vcombine.low %v9266_v3, %v9270_v61  ;;  %v9322_v61 = vld [vmem:[%s16215_s10 + $0xa80] sm:$0xff] }
 0x5d8   : > { %v14807_v60 = vcombine.high %v9267_v41, %v9271_v45  ;;  %v14806_v18 = vcombine.low %v9267_v41, %v9271_v45  ;;  %v9326_v41 = vld [vmem:[%s16215_s10 + $0xaa0] sm:$0xff]  ;;  %v9323_v45 = vld [vmem:[%s16215_s10 + $0xa88] sm:$0xff] }
 0x5d9   : > { %12124 = vmatpush1.bf16.msra.mxu0 %v14748_v11  ;;  %v9274_v11 = vld [vmem:[%s16215_s10 + $0x900] sm:$0xff] }
 0x5da   : > { %12288 = vmatpush1.bf16.msra.mxu1 %v14750_v32  ;;  %12125 = vmatprep.subr.bf16.mxu0 %v14757_v57  ;;  %v9278_v32 = vld [vmem:[%s16215_s10 + $0x920] sm:$0xff]  ;;  %v9275_v57 = vld [vmem:[%s16215_s10 + $0x908] sm:$0xff] }
 0x5db   : > { %12289 = vmatprep.subr.bf16.mxu1 %v14759_v42  ;;  %v9279_v42 = vld [vmem:[%s16215_s10 + $0x928] sm:$0xff]  ;;  %v14813_v44 = vcombine.high %v9274_v11, %v9278_v32 }
 0x5dc   : > { %v14815_v62 = vcombine.high %v9275_v57, %v9279_v42  ;;  %v14814_v27 = vcombine.low %v9275_v57, %v9279_v42  ;;  %v9334_v57 = vld [vmem:[%s16215_s10 + $0xae0] sm:$0xff]  ;;  %v9331_v42 = vld [vmem:[%s16215_s10 + $0xac8] sm:$0xff] }
 0x5dd   : > { %12126 = vmatpush1.bf16.msra.mxu0 %v14756_v54  ;;  %v9282_v54 = vld [vmem:[%s16215_s10 + $0x940] sm:$0xff] }
 0x5de   : > { %12290 = vmatpush1.bf16.msra.mxu1 %v14758_v35  ;;  %12127 = vmatprep.subr.bf16.mxu0 %v14765_v26  ;;  %v9283_v35 = vld [vmem:[%s16215_s10 + $0x948] sm:$0xff]  ;;  %v14821_v19 = vcombine.high %v9282_v54, %v9286_v31 }
 0x5df   : > { %12291 = vmatprep.subr.bf16.mxu1 %v14767_v21  ;;  %v9287_v26 = vld [vmem:[%s16215_s10 + $0x968] sm:$0xff]  ;;  %v14812_v21 = vcombine.low %v9274_v11, %v9278_v32  ;;  %v9330_v32 = vld [vmem:[%s16215_s10 + $0xac0] sm:$0xff] }
 0x5e0   : > { %v14823_v29 = vcombine.high %v9283_v35, %v9287_v26 }
 0x5e1   : > { %12128 = vmatpush1.bf16.msra.mxu0 %v14764_v39  ;;  %v9294_v39 = vld [vmem:[%s16215_s10 + $0x9a0] sm:$0xff] }
 0x5e2   : > { %12292 = vmatpush1.bf16.msra.mxu1 %v14766_v48  ;;  %12129 = vmatprep.subr.bf16.mxu0 %v14773_v1  ;;  %v9295_v48 = vld [vmem:[%s16215_s10 + $0x9a8] sm:$0xff]  ;;  %v14820_v1 = vcombine.low %v9282_v54, %v9286_v31  ;;  %v14829_v63 = vcombine.high %v9290_v34, %v9294_v39  ;;  %v9338_v31 = vld [vmem:[%s16215_s10 + $0xb00] sm:$0xff] }
 0x5e3   : > { %12293 = vmatprep.subr.bf16.mxu1 %v14775_v37  ;;  %v14822_v37 = vcombine.low %v9283_v35, %v9287_v26  ;;  %v14831_v24 = vcombine.high %v9291_v46, %v9295_v48  ;;  %v9342_v35 = vld [vmem:[%s16215_s10 + $0xb20] sm:$0xff]  ;;  %v9339_v26 = vld [vmem:[%s16215_s10 + $0xb08] sm:$0xff] }
 0x5e5   : > { %12130 = vmatpush1.bf16.msra.mxu0 %v14772_v56  ;;  %v9299_v56 = vld [vmem:[%s16215_s10 + $0x9c8] sm:$0xff] }
 0x5e6   : > { %12294 = vmatpush1.bf16.msra.mxu1 %v14774_v12  ;;  %12140 = vmatprep.subr.bf16.mxu0 %v14781_v5  ;;  %v14828_v12 = vcombine.low %v9290_v34, %v9294_v39  ;;  %v14830_v5 = vcombine.low %v9291_v46, %v9295_v48  ;;  %v14839_v8 = vcombine.high %v9299_v56, %v9303_v2  ;;  %v9346_v39 = vld [vmem:[%s16215_s10 + $0xb40] sm:$0xff]  ;;  %v9347_v48 = vld [vmem:[%s16215_s10 + $0xb48] sm:$0xff] }
 0x5e7   : > { %12304 = vmatprep.subr.bf16.mxu1 %v14783_v10  ;;  %v14837_v10 = vcombine.high %v9298_v53, %v9302_v17  ;;  %v9350_v46 = vld [vmem:[%s16215_s10 + $0xb60] sm:$0xff] }
 0x5e8   : > { %12132 = vmatmul.mubr.bf16.vlgmr.msra.gmra.mrb[8].mxu0 %v17777_v20 }
 0x5e9   : > { %12296 = vmatmul.mubr.bf16.vlgmr.msra.gmra.mrb[8].mxu1 %v17777_v20  ;;  %12141 = vmatpush1.bf16.msra.mxu0 %v14780_v13  ;;  %v9311_v13 = vld [vmem:[%s16215_s10 + $0xa28] sm:$0xff] }
 0x5ea   : > { %12305 = vmatpush1.bf16.msra.mxu1 %v14782_v7  ;;  %12142 = vmatprep.subr.bf16.mxu0 %v14789_v4  ;;  %v14836_v7 = vcombine.low %v9298_v53, %v9302_v17  ;;  %v14838_v4 = vcombine.low %v9299_v56, %v9303_v2  ;;  %v14847_v50 = vcombine.high %v9307_v52, %v9311_v13  ;;  %v9354_v17 = vld [vmem:[%s16215_s10 + $0xb80] sm:$0xff]  ;;  %v9355_v2 = vld [vmem:[%s16215_s10 + $0xb88] sm:$0xff] }
 0x5eb   : > { %12306 = vmatprep.subr.bf16.mxu1 %v14791_v59  ;;  %v14845_v59 = vcombine.high %v9306_v6, %v9310_v9  ;;  %v9358_v56 = vld [vmem:[%s16215_s10 + $0xba0] sm:$0xff] }
 0x5ed   : > { %12143 = vmatpush1.bf16.msra.mxu0 %v14788_v33  ;;  %v9319_v33 = vld [vmem:[%s16215_s10 + $0xa68] sm:$0xff] }
 0x5ee   : > { %12307 = vmatpush1.bf16.msra.mxu1 %v14790_v36  ;;  %12144 = vmatprep.subr.bf16.mxu0 %v14797_v22  ;;  %v14844_v36 = vcombine.low %v9306_v6, %v9310_v9  ;;  %v14846_v22 = vcombine.low %v9307_v52, %v9311_v13  ;;  %v14855_v3 = vcombine.high %v9315_v14, %v9319_v33  ;;  %v9362_v9 = vld [vmem:[%s16215_s10 + $0xbc0] sm:$0xff]  ;;  %v9363_v13 = vld [vmem:[%s16215_s10 + $0xbc8] sm:$0xff] }
 0x5ef   : > { %12308 = vmatprep.subr.bf16.mxu1 %v14799_v47  ;;  %v14853_v47 = vcombine.high %v9314_v23, %v9318_v25  ;;  %v9366_v52 = vld [vmem:[%s16215_s10 + $0xbe0] sm:$0xff] }
 0x5f1   : > { %12145 = vmatpush1.bf16.msra.mxu0 %v14796_v49  ;;  %v9327_v49 = vld [vmem:[%s16215_s10 + $0xaa8] sm:$0xff] }
 0x5f2   : > { %12309 = vmatpush1.bf16.msra.mxu1 %v14798_v38  ;;  %12146 = vmatprep.subr.bf16.mxu0 %v14805_v51  ;;  %v14852_v38 = vcombine.low %v9314_v23, %v9318_v25  ;;  %v14854_v51 = vcombine.low %v9315_v14, %v9319_v33  ;;  %v14863_v11 = vcombine.high %v9323_v45, %v9327_v49  ;;  %v9370_v25 = vld [vmem:[%s16215_s10 + $0xc00] sm:$0xff]  ;;  %v9371_v33 = vld [vmem:[%s16215_s10 + $0xc08] sm:$0xff] }
 0x5f3   : > { %12310 = vmatprep.subr.bf16.mxu1 %v14807_v60  ;;  %v14861_v60 = vcombine.high %v9322_v61, %v9326_v41  ;;  %v9374_v14 = vld [vmem:[%s16215_s10 + $0xc20] sm:$0xff] }
 0x5f5   : > { %12147 = vmatpush1.bf16.msra.mxu0 %v14804_v43  ;;  %v9335_v43 = vld [vmem:[%s16215_s10 + $0xae8] sm:$0xff] }
 0x5f6   : > { %12311 = vmatpush1.bf16.msra.mxu1 %v14806_v18  ;;  %12148 = vmatprep.subr.bf16.mxu0 %v14813_v44  ;;  %v14860_v18 = vcombine.low %v9322_v61, %v9326_v41  ;;  %v14862_v44 = vcombine.low %v9323_v45, %v9327_v49  ;;  %v14871_v54 = vcombine.high %v9331_v42, %v9335_v43  ;;  %v2398_v41 = vsub.s32 4, %v16437_v55 }
 0x5f7   : > { %12312 = vmatprep.subr.bf16.mxu1 %v14815_v62  ;;  %v14869_v62 = vcombine.high %v9330_v32, %v9334_v57  ;;  %v2402_v45 = vsub.s32 5, %v16437_v55  ;;  %v2410_v49 = vsub.s32 7, %v16437_v55 }
 0x5f9   : > { %12149 = vmatpush1.bf16.msra.mxu0 %v14812_v21  ;;  %v9343_v21 = vld [vmem:[%s16215_s10 + $0xb28] sm:$0xff] }
 0x5fa   : > { %12313 = vmatpush1.bf16.msra.mxu1 %v14814_v27  ;;  %12150 = vmatprep.subr.bf16.mxu0 %v14821_v19  ;;  %v14868_v27 = vcombine.low %v9330_v32, %v9334_v57  ;;  %v14870_v19 = vcombine.low %v9331_v42, %v9335_v43  ;;  %v14879_v34 = vcombine.high %v9339_v26, %v9343_v21 }
 0x5fb   : > { %12314 = vmatprep.subr.bf16.mxu1 %v14823_v29  ;;  %v14877_v29 = vcombine.high %v9338_v31, %v9342_v35 }
 0x5fd   : > { %12151 = vmatpush1.bf16.msra.mxu0 %v14820_v1  ;;  %v9351_v1 = vld [vmem:[%s16215_s10 + $0xb68] sm:$0xff] }
 0x5fe   : > { %12315 = vmatpush1.bf16.msra.mxu1 %v14822_v37  ;;  %12152 = vmatprep.subr.bf16.mxu0 %v14829_v63  ;;  %v14876_v37 = vcombine.low %v9338_v31, %v9342_v35  ;;  %v14878_v63 = vcombine.low %v9339_v26, %v9343_v21  ;;  %v14887_v53 = vcombine.high %v9347_v48, %v9351_v1 }
 0x5ff   : > { %12316 = vmatprep.subr.bf16.mxu1 %v14831_v24  ;;  %v14885_v24 = vcombine.high %v9346_v39, %v9350_v46 }
 0x601   : > { %12153 = vmatpush1.bf16.msra.mxu0 %v14828_v12  ;;  %v9359_v12 = vld [vmem:[%s16215_s10 + $0xba8] sm:$0xff] }
 0x602   : > { %12317 = vmatpush1.bf16.msra.mxu1 %v14830_v5  ;;  %12154 = vmatprep.subr.bf16.mxu0 %v14837_v10  ;;  %v14884_v5 = vcombine.low %v9346_v39, %v9350_v46  ;;  %v14886_v10 = vcombine.low %v9347_v48, %v9351_v1  ;;  %v14895_v6 = vcombine.high %v9355_v2, %v9359_v12  ;;  %v9379_v39 = vld [vmem:[%s16215_s10 + $0xc48] sm:$0xff] }
 0x603   : > { %12318 = vmatprep.subr.bf16.mxu1 %v14839_v8  ;;  %v14893_v8 = vcombine.high %v9354_v17, %v9358_v56  ;;  %v9383_v46 = vld [vmem:[%s16215_s10 + $0xc68] sm:$0xff]  ;;  %v14908_v1 = vcombine.low %v9370_v25, %v9374_v14 }
 0x605   : > { %12155 = vmatpush1.bf16.msra.mxu0 %v14836_v7  ;;  %v9367_v7 = vld [vmem:[%s16215_s10 + $0xbe8] sm:$0xff] }
 0x606   : > { %12319 = vmatpush1.bf16.msra.mxu1 %v14838_v4  ;;  %12156 = vmatprep.subr.bf16.mxu0 %v14845_v59  ;;  %v14892_v4 = vcombine.low %v9354_v17, %v9358_v56  ;;  %v14894_v59 = vcombine.low %v9355_v2, %v9359_v12  ;;  %v14903_v23 = vcombine.high %v9363_v13, %v9367_v7  ;;  %v9390_v56 = vld [vmem:[%s16215_s10 + $0xca0] sm:$0xff]  ;;  %v9387_v2 = vld [vmem:[%s16215_s10 + $0xc88] sm:$0xff] }
 0x607   : > { %12320 = vmatprep.subr.bf16.mxu1 %v14847_v50  ;;  %v14901_v50 = vcombine.high %v9362_v9, %v9366_v52  ;;  %v14919_v17 = vcombine.high %v9379_v39, %v9383_v46  ;;  %v9391_v12 = vld [vmem:[%s16215_s10 + $0xca8] sm:$0xff] }
 0x609   : > { %12157 = vmatpush1.bf16.msra.mxu0 %v14844_v36  ;;  %v9375_v36 = vld [vmem:[%s16215_s10 + $0xc28] sm:$0xff] }
 0x60a   : > { %12321 = vmatpush1.bf16.msra.mxu1 %v14846_v22  ;;  %12158 = vmatprep.subr.bf16.mxu0 %v14853_v47  ;;  %v14900_v22 = vcombine.low %v9362_v9, %v9366_v52  ;;  %v14902_v47 = vcombine.low %v9363_v13, %v9367_v7  ;;  %v14911_v61 = vcombine.high %v9371_v33, %v9375_v36  ;;  %v9394_v52 = vld [vmem:[%s16215_s10 + $0xcc0] sm:$0xff]  ;;  %v9395_v7 = vld [vmem:[%s16215_s10 + $0xcc8] sm:$0xff] }
 0x60b   : > { %12322 = vmatprep.subr.bf16.mxu1 %v14855_v3  ;;  %v14909_v3 = vcombine.high %v9370_v25, %v9374_v14  ;;  %v14927_v9 = vcombine.high %v9387_v2, %v9391_v12  ;;  %v9398_v13 = vld [vmem:[%s16215_s10 + $0xce0] sm:$0xff] }
 0x60c   : > { %v9402_v14 = vld [vmem:[%s16215_s10 + $0xd00] sm:$0xff] }
 0x60d   : > { %12159 = vmatpush1.bf16.msra.mxu0 %v14852_v38  ;;  %v17845_v38 = vld [vmem:[%s16213_s20] sm:$0xff] }
 0x60e   : > { %12323 = vmatpush1.bf16.msra.mxu1 %v14854_v51  ;;  %12160 = vmatprep.subr.bf16.mxu0 %v14861_v60  ;;  %v2399_v51 = vrot.slane %v17845_v38, %v2398_v41  ;;  %v2403_v60 = vrot.slane %v17845_v38, %v2402_v45 }
 0x60f   : > { %12324 = vmatprep.subr.bf16.mxu1 %v14863_v11  ;;  %v2411_v11 = vrot.slane %v17845_v38, %v2410_v49 }
 0x611   : > { %12161 = vmatpush1.bf16.msra.mxu0 %v14860_v18 }
 0x612   : > { %12325 = vmatpush1.bf16.msra.mxu1 %v14862_v44  ;;  %12162 = vmatprep.subr.bf16.mxu0 %v14869_v62 }
 0x613   : > { %12326 = vmatprep.subr.bf16.mxu1 %v14871_v54 }
 0x615   : > { %12163 = vmatpush1.bf16.msra.mxu0 %v14868_v27 }
 0x616   : > { %12327 = vmatpush1.bf16.msra.mxu1 %v14870_v19  ;;  %12164 = vmatprep.subr.bf16.mxu0 %v14877_v29  ;;  %v9378_v19 = vld [vmem:[%s16215_s10 + $0xc40] sm:$0xff] }
 0x617   : > { %12328 = vmatprep.subr.bf16.mxu1 %v14879_v34  ;;  %v9382_v34 = vld [vmem:[%s16215_s10 + $0xc60] sm:$0xff] }
 0x619   : > { %12165 = vmatpush1.bf16.msra.mxu0 %v14876_v37  ;;  %v14910_v37 = vcombine.low %v9371_v33, %v9375_v36  ;;  %v9406_v33 = vld [vmem:[%s16215_s10 + $0xd20] sm:$0xff]  ;;  %v9403_v36 = vld [vmem:[%s16215_s10 + $0xd08] sm:$0xff] }
 0x61a   : > { %12329 = vmatpush1.bf16.msra.mxu1 %v14878_v63  ;;  %12166 = vmatprep.subr.bf16.mxu0 %v14885_v24  ;;  %v9386_v24 = vld [vmem:[%s16215_s10 + $0xc80] sm:$0xff] }
 0x61b   : > { %12330 = vmatprep.subr.bf16.mxu1 %v14887_v53  ;;  %v14917_v53 = vcombine.high %v9378_v19, %v9382_v34 }
 0x61d   : > { %12167 = vmatpush1.bf16.msra.mxu0 %v14884_v5 }
 0x61e   : > { %12331 = vmatpush1.bf16.msra.mxu1 %v14886_v10  ;;  %12168 = vmatprep.subr.bf16.mxu0 %v14893_v8  ;;  %v14916_v10 = vcombine.low %v9378_v19, %v9382_v34  ;;  %v14918_v8 = vcombine.low %v9379_v39, %v9383_v46  ;;  %v9426_v34 = vld [vmem:[%s16215_s10 + $0xdc0] sm:$0xff]  ;;  %v9427_v46 = vld [vmem:[%s16215_s10 + $0xdc8] sm:$0xff] }
 0x61f   : > { %12332 = vmatprep.subr.bf16.mxu1 %v14895_v6  ;;  %v14925_v6 = vcombine.high %v9386_v24, %v9390_v56  ;;  %v9430_v39 = vld [vmem:[%s16215_s10 + $0xde0] sm:$0xff] }
 0x621   : > { %12169 = vmatpush1.bf16.msra.mxu0 %v14892_v4  ;;  %v9399_v4 = vld [vmem:[%s16215_s10 + $0xce8] sm:$0xff] }
 0x622   : > { %12333 = vmatpush1.bf16.msra.mxu1 %v14894_v59  ;;  %12170 = vmatprep.subr.bf16.mxu0 %v14901_v50  ;;  %v14924_v59 = vcombine.low %v9386_v24, %v9390_v56  ;;  %v14926_v50 = vcombine.low %v9387_v2, %v9391_v12  ;;  %v14935_v25 = vcombine.high %v9395_v7, %v9399_v4  ;;  %v9434_v56 = vld [vmem:[%s16215_s10 + $0xe00] sm:$0xff]  ;;  %v9435_v12 = vld [vmem:[%s16215_s10 + $0xe08] sm:$0xff] }
 0x623   : > { %12334 = vmatprep.subr.bf16.mxu1 %v14903_v23  ;;  %v14933_v23 = vcombine.high %v9394_v52, %v9398_v13  ;;  %v9438_v2 = vld [vmem:[%s16215_s10 + $0xe20] sm:$0xff] }
 0x625   : > { %12171 = vmatpush1.bf16.msra.mxu0 %v14900_v22  ;;  %v9407_v22 = vld [vmem:[%s16215_s10 + $0xd28] sm:$0xff] }
 0x626   : > { %12335 = vmatpush1.bf16.msra.mxu1 %v14902_v47  ;;  %12181 = vmatprep.subr.bf16.mxu0 %v14909_v3  ;;  %v14932_v47 = vcombine.low %v9394_v52, %v9398_v13  ;;  %v14934_v3 = vcombine.low %v9395_v7, %v9399_v4  ;;  %v9442_v13 = vld [vmem:[%s16215_s10 + $0xe40] sm:$0xff]  ;;  %v9443_v4 = vld [vmem:[%s16215_s10 + $0xe48] sm:$0xff] }
 0x627   : > { %12345 = vmatprep.subr.bf16.mxu1 %v14911_v61  ;;  %v14941_v61 = vcombine.high %v9402_v14, %v9406_v33  ;;  %v9446_v7 = vld [vmem:[%s16215_s10 + $0xe60] sm:$0xff] }
 0x63b   : > { %v8633_v32 = vpop.f32.mrb[4].mxu0  ;;  %v17856_v42 = vpop.f32.mrb[4].mxu1 }
 0x63c   : > { %v15318_v57 = vadd.f32 %v8633_v32, %v2399_v51  ;;  %v8635_v43 = vpop.f32.mrb[5].mxu0  ;;  %v8963_v44 = vpop.f32.mrb[5].mxu1  ;;  %v14943_v51 = vcombine.high %v9403_v36, %v9407_v22  ;;  %v9411_v32 = vld [vmem:[%s16215_s10 + $0xd48] sm:$0xff] }
 0x63d   : > { %v15319_v18 = vadd.f32 %v8635_v43, %v2403_v60  ;;  %v8637_v62 = vpop.f32.mrb[6].mxu0  ;;  %v15321_v31 = vadd.f32 %v8963_v44, %v2411_v11  ;;  %v8965_v35 = vpop.f32.mrb[6].mxu1  ;;  %v9410_v60 = vld [vmem:[%s16215_s10 + $0xd40] sm:$0xff]  ;;  %v14940_v43 = vcombine.low %v9402_v14, %v9406_v33 }
 0x63e   : > { %v8972_v54 = vmax.f32 %v15318_v57, 0.0  ;;  %v8638_v26 = vpop.f32.mrb[7].mxu0  ;;  %v8966_v27 = vpop.f32.mrb[7].mxu1  ;;  %v9414_v11 = vld [vmem:[%s16215_s10 + $0xd60] sm:$0xff]  ;;  %v9415_v57 = vld [vmem:[%s16215_s10 + $0xd68] sm:$0xff] }
 0x63f   : > { %v8973_v21 = vmax.f32 %v15319_v18, 0.0  ;;  %v8975_v29 = vmax.f32 %v15321_v31, 0.0  ;;  %v14942_v18 = vcombine.low %v9403_v36, %v9407_v22  ;;  %v14949_v44 = vcombine.high %v9410_v60, %v9414_v11  ;;  %v9422_v31 = vld [vmem:[%s16215_s10 + $0xda0] sm:$0xff]  ;;  %v9419_v35 = vld [vmem:[%s16215_s10 + $0xd88] sm:$0xff] }
 0x640   : > { %v17864_v63 = vpack.c.bf16 %v8972_v54, %v8972_v54  ;;  %v14951_v62 = vcombine.high %v9411_v32, %v9415_v57  ;;  %v9418_v54 = vld [vmem:[%s16215_s10 + $0xd80] sm:$0xff]  ;;  %v9423_v26 = vld [vmem:[%s16215_s10 + $0xda8] sm:$0xff]  ;;  %v14950_v27 = vcombine.low %v9411_v32, %v9415_v57 }
 0x641   : > { %v17862_v48 = vpack.c.bf16 %v8973_v21, %v8973_v21  ;;  %v17872_v5 = vpack.c.bf16 %v8975_v29, %v8975_v29  ;;  %v14948_v21 = vcombine.low %v9410_v60, %v9414_v11  ;;  %v14957_v19 = vcombine.high %v9418_v54, %v9422_v31  ;;  %v9450_v33 = vld [vmem:[%s16215_s10 + $0xe80] sm:$0xff]  ;;  %v9451_v22 = vld [vmem:[%s16215_s10 + $0xe88] sm:$0xff] }
 0x642   : > { %v14959_v29 = vcombine.high %v9419_v35, %v9423_v26  ;;  %v14958_v24 = vcombine.low %v9419_v35, %v9423_v26  ;;  %v9454_v36 = vld [vmem:[%s16215_s10 + $0xea0] sm:$0xff]  ;;  %v9459_v57 = vld [vmem:[%s16215_s10 + $0xec8] sm:$0xff] }
 0x643   : > { %12172 = vmatprep.mubr.bf16.mxu0 %v17862_v48  ;;  %12336 = vmatprep.mubr.bf16.mxu1 %v17862_v48  ;;  %v9458_v11 = vld [vmem:[%s16215_s10 + $0xec0] sm:$0xff]  ;;  %v9467_v26 = vld [vmem:[%s16215_s10 + $0xf08] sm:$0xff] }
 0x644   : > { %12173 = vmatmul.mubr.bf16.vlgmr.msra.gmra.mrb[8].mxu0 %v17864_v63  ;;  %12337 = vmatmul.mubr.bf16.vlgmr.msra.gmra.mrb[8].mxu1 %v17864_v63  ;;  %v9462_v32 = vld [vmem:[%s16215_s10 + $0xee0] sm:$0xff] }
 0x645   : > { %12182 = vmatpush1.bf16.msra.mxu0 %v14908_v1  ;;  %12346 = vmatpush1.bf16.msra.mxu1 %v14910_v37  ;;  %v9431_v1 = vld [vmem:[%s16215_s10 + $0xde8] sm:$0xff]  ;;  %v14956_v37 = vcombine.low %v9418_v54, %v9422_v31  ;;  %v9466_v31 = vld [vmem:[%s16215_s10 + $0xf00] sm:$0xff] }
 0x646   : > { %12213 = vmatprep.mubr.bf16.mxu0 %v17872_v5  ;;  %12377 = vmatprep.mubr.bf16.mxu1 %v17872_v5  ;;  %v9470_v35 = vld [vmem:[%s16215_s10 + $0xf20] sm:$0xff] }
 0x647   : > { %12183 = vmatprep.subr.bf16.mxu0 %v14917_v53  ;;  %12347 = vmatprep.subr.bf16.mxu1 %v14919_v17  ;;  %v14965_v53 = vcombine.high %v9426_v34, %v9430_v39  ;;  %v14967_v17 = vcombine.high %v9427_v46, %v9431_v1 }
 0x649   : > { %12184 = vmatpush1.bf16.msra.mxu0 %v14916_v10  ;;  %12348 = vmatpush1.bf16.msra.mxu1 %v14918_v8  ;;  %v9439_v10 = vld [vmem:[%s16215_s10 + $0xe28] sm:$0xff]  ;;  %v14964_v8 = vcombine.low %v9426_v34, %v9430_v39  ;;  %v9474_v39 = vld [vmem:[%s16215_s10 + $0xf40] sm:$0xff] }
 0x64a   : > { %12185 = vmatprep.subr.bf16.mxu0 %v14925_v6  ;;  %12349 = vmatprep.subr.bf16.mxu1 %v14927_v9  ;;  %v14966_v6 = vcombine.low %v9427_v46, %v9431_v1  ;;  %v14973_v9 = vcombine.high %v9434_v56, %v9438_v2  ;;  %v14975_v52 = vcombine.high %v9435_v12, %v9439_v10  ;;  %v9478_v46 = vld [vmem:[%s16215_s10 + $0xf60] sm:$0xff]  ;;  %v9475_v1 = vld [vmem:[%s16215_s10 + $0xf48] sm:$0xff] }
 0x64d   : > { %12186 = vmatpush1.bf16.msra.mxu0 %v14924_v59  ;;  %12350 = vmatpush1.bf16.msra.mxu1 %v14926_v50  ;;  %v9447_v59 = vld [vmem:[%s16215_s10 + $0xe68] sm:$0xff]  ;;  %v14972_v50 = vcombine.low %v9434_v56, %v9438_v2  ;;  %v15013_v56 = vcombine.high %v9474_v39, %v9478_v46 }
 0x64e   : > { %12187 = vmatprep.subr.bf16.mxu0 %v14933_v23  ;;  %12351 = vmatprep.subr.bf16.mxu1 %v14935_v25  ;;  %v14974_v23 = vcombine.low %v9435_v12, %v9439_v10  ;;  %v14981_v25 = vcombine.high %v9442_v13, %v9446_v7  ;;  %v14983_v14 = vcombine.high %v9443_v4, %v9447_v59  ;;  %v9482_v12 = vld [vmem:[%s16215_s10 + $0xf80] sm:$0xff] }
 0x64f   : > { %v9486_v10 = vld [vmem:[%s16215_s10 + $0xfa0] sm:$0xff] }
 0x651   : > { %12188 = vmatpush1.bf16.msra.mxu0 %v14932_v47  ;;  %12352 = vmatpush1.bf16.msra.mxu1 %v14934_v3  ;;  %v9455_v47 = vld [vmem:[%s16215_s10 + $0xea8] sm:$0xff]  ;;  %v14980_v3 = vcombine.low %v9442_v13, %v9446_v7  ;;  %v15021_v7 = vcombine.high %v9482_v12, %v9486_v10 }
 0x652   : > { %12189 = vmatprep.subr.bf16.mxu0 %v14941_v61  ;;  %12353 = vmatprep.subr.bf16.mxu1 %v14943_v51  ;;  %v14982_v61 = vcombine.low %v9443_v4, %v9447_v59  ;;  %v14989_v51 = vcombine.high %v9450_v33, %v9454_v36  ;;  %v14991_v60 = vcombine.high %v9451_v22, %v9455_v47  ;;  %v9490_v59 = vld [vmem:[%s16215_s10 + $0xfc0] sm:$0xff] }
 0x655   : > { %12190 = vmatpush1.bf16.msra.mxu0 %v14940_v43  ;;  %12354 = vmatpush1.bf16.msra.mxu1 %v14942_v18  ;;  %v9463_v43 = vld [vmem:[%s16215_s10 + $0xee8] sm:$0xff]  ;;  %v14988_v18 = vcombine.low %v9450_v33, %v9454_v36 }
 0x656   : > { %12191 = vmatprep.subr.bf16.mxu0 %v14949_v44  ;;  %12355 = vmatprep.subr.bf16.mxu1 %v14951_v62  ;;  %v14990_v44 = vcombine.low %v9451_v22, %v9455_v47  ;;  %v14997_v62 = vcombine.high %v9458_v11, %v9462_v32  ;;  %v14999_v54 = vcombine.high %v9459_v57, %v9463_v43  ;;  %v8988_v47 = vld [vmem:[%s16215_s10 + $0x10] sm:$0xff] }
 0x659   : > { %12192 = vmatpush1.bf16.msra.mxu0 %v14948_v21  ;;  %12356 = vmatpush1.bf16.msra.mxu1 %v14950_v27  ;;  %v9471_v21 = vld [vmem:[%s16215_s10 + $0xf28] sm:$0xff]  ;;  %v14996_v27 = vcombine.low %v9458_v11, %v9462_v32 }
 0x65a   : > { %12193 = vmatprep.subr.bf16.mxu0 %v14957_v19  ;;  %12357 = vmatprep.subr.bf16.mxu1 %v14959_v29  ;;  %v14998_v19 = vcombine.low %v9459_v57, %v9463_v43  ;;  %v15005_v29 = vcombine.high %v9466_v31, %v9470_v35  ;;  %v15007_v34 = vcombine.high %v9467_v26, %v9471_v21  ;;  %v8996_v43 = vld [vmem:[%s16215_s10 + $0x50] sm:$0xff] }
 0x65d   : > { %12194 = vmatpush1.bf16.msra.mxu0 %v14956_v37  ;;  %12358 = vmatpush1.bf16.msra.mxu1 %v14958_v24  ;;  %v9479_v37 = vld [vmem:[%s16215_s10 + $0xf68] sm:$0xff]  ;;  %v15004_v24 = vcombine.low %v9466_v31, %v9470_v35 }
 0x65e   : > { %12195 = vmatprep.subr.bf16.mxu0 %v14965_v53  ;;  %12359 = vmatprep.subr.bf16.mxu1 %v14967_v17  ;;  %v15006_v53 = vcombine.low %v9467_v26, %v9471_v21  ;;  %v2406_v17 = vsub.s32 6, %v16437_v55  ;;  %v15015_v2 = vcombine.high %v9475_v1, %v9479_v37 }
 0x660   : > { %v2407_v13 = vrot.slane %v17845_v38, %v2406_v17 }
 0x661   : > { %12196 = vmatpush1.bf16.msra.mxu0 %v14964_v8  ;;  %12360 = vmatpush1.bf16.msra.mxu1 %v14966_v6  ;;  %v9483_v8 = vld [vmem:[%s16215_s10 + $0xf88] sm:$0xff] }
 0x662   : > { %12197 = vmatprep.subr.bf16.mxu0 %v14973_v9  ;;  %12361 = vmatprep.subr.bf16.mxu1 %v14975_v52  ;;  %v9487_v6 = vld [vmem:[%s16215_s10 + $0xfa8] sm:$0xff]  ;;  %v15012_v9 = vcombine.low %v9474_v39, %v9478_v46  ;;  %v15014_v52 = vcombine.low %v9475_v1, %v9479_v37  ;;  %v15320_v36 = vadd.f32 %v17856_v42, %v2407_v13  ;;  %v9025_v13 = vld [vmem:[%s16215_s10 + $0x138] sm:$0xff] }
 0x663   : > { %v15023_v4 = vcombine.high %v9483_v8, %v9487_v6  ;;  %v15022_v33 = vcombine.low %v9483_v8, %v9487_v6  ;;  %v9020_v6 = vld [vmem:[%s16215_s10 + $0x110] sm:$0xff] }
 0x664   : > { %v8974_v32 = vmax.f32 %v15320_v36, 0.0 }
 0x665   : > { %12198 = vmatpush1.bf16.msra.mxu0 %v14972_v50  ;;  %12362 = vmatpush1.bf16.msra.mxu1 %v14974_v23  ;;  %v9494_v50 = vld [vmem:[%s16215_s10 + $0xfe0] sm:$0xff]  ;;  %v9491_v23 = vld [vmem:[%s16215_s10 + $0xfc8] sm:$0xff] }
 0x666   : > { %12199 = vmatprep.subr.bf16.mxu0 %v14981_v25  ;;  %12363 = vmatprep.subr.bf16.mxu1 %v14983_v14  ;;  %v9495_v25 = vld [vmem:[%s16215_s10 + $0xfe8] sm:$0xff]  ;;  %v15020_v14 = vcombine.low %v9482_v12, %v9486_v10  ;;  %v15029_v38 = vcombine.high %v9490_v59, %v9494_v50  ;;  %v17943_v31 = vpack.c.bf16 %v8974_v32, %v8974_v32 }
 0x667   : > { %v15031_v22 = vcombine.high %v9491_v23, %v9495_v25  ;;  %v15030_v11 = vcombine.low %v9491_v23, %v9495_v25  ;;  %v9028_v23 = vld [vmem:[%s16215_s10 + $0x150] sm:$0xff] }
 0x668   : > { %v9032_v25 = vld [vmem:[%s16215_s10 + $0x170] sm:$0xff] }
 0x669   : > { %12200 = vmatpush1.bf16.msra.mxu0 %v14980_v3  ;;  %12364 = vmatpush1.bf16.msra.mxu1 %v14982_v61  ;;  %v8992_v3 = vld [vmem:[%s16215_s10 + $0x30] sm:$0xff]  ;;  %v8989_v61 = vld [vmem:[%s16215_s10 + $0x18] sm:$0xff] }
 0x66a   : > { %12201 = vmatprep.subr.bf16.mxu0 %v14989_v51  ;;  %12365 = vmatprep.subr.bf16.mxu1 %v14991_v60  ;;  %v8993_v51 = vld [vmem:[%s16215_s10 + $0x38] sm:$0xff]  ;;  %v15028_v60 = vcombine.low %v9490_v59, %v9494_v50  ;;  %v14529_v42 = vcombine.high %v8988_v47, %v8992_v3 }
 0x66b   : > { %v14531_v57 = vcombine.high %v8989_v61, %v8993_v51  ;;  %v14530_v35 = vcombine.low %v8989_v61, %v8993_v51  ;;  %v9040_v61 = vld [vmem:[%s16215_s10 + $0x1b0] sm:$0xff]  ;;  %v9037_v51 = vld [vmem:[%s16215_s10 + $0x198] sm:$0xff] }
 0x66d   : > { %12202 = vmatpush1.bf16.msra.mxu0 %v14988_v18  ;;  %12366 = vmatpush1.bf16.msra.mxu1 %v14990_v44  ;;  %v9000_v18 = vld [vmem:[%s16215_s10 + $0x70] sm:$0xff]  ;;  %v8997_v44 = vld [vmem:[%s16215_s10 + $0x58] sm:$0xff] }
 0x66e   : > { %12203 = vmatprep.subr.bf16.mxu0 %v14997_v62  ;;  %12367 = vmatprep.subr.bf16.mxu1 %v14999_v54  ;;  %v9001_v62 = vld [vmem:[%s16215_s10 + $0x78] sm:$0xff]  ;;  %v14528_v54 = vcombine.low %v8988_v47, %v8992_v3  ;;  %v14537_v26 = vcombine.high %v8996_v43, %v9000_v18  ;;  %v14536_v39 = vcombine.low %v8996_v43, %v9000_v18  ;;  %v9036_v3 = vld [vmem:[%s16215_s10 + $0x190] sm:$0xff] }
 0x66f   : > { %v14539_v21 = vcombine.high %v8997_v44, %v9001_v62  ;;  %v14538_v46 = vcombine.low %v8997_v44, %v9001_v62  ;;  %v9044_v43 = vld [vmem:[%s16215_s10 + $0x1d0] sm:$0xff]  ;;  %v9045_v44 = vld [vmem:[%s16215_s10 + $0x1d8] sm:$0xff] }
 0x670   : > { %v9048_v18 = vld [vmem:[%s16215_s10 + $0x1f0] sm:$0xff]  ;;  %v9049_v62 = vld [vmem:[%s16215_s10 + $0x1f8] sm:$0xff] }
 0x671   : > { %12204 = vmatpush1.bf16.msra.mxu0 %v14996_v27  ;;  %12368 = vmatpush1.bf16.msra.mxu1 %v14998_v19  ;;  %v9004_v27 = vld [vmem:[%s16215_s10 + $0x90] sm:$0xff] }
 0x672   : > { %12205 = vmatprep.subr.bf16.mxu0 %v15005_v29  ;;  %12369 = vmatprep.subr.bf16.mxu1 %v15007_v34  ;;  %v9008_v19 = vld [vmem:[%s16215_s10 + $0xb0] sm:$0xff]  ;;  %v9005_v29 = vld [vmem:[%s16215_s10 + $0x98] sm:$0xff] }
 0x673   : > { %v9009_v34 = vld [vmem:[%s16215_s10 + $0xb8] sm:$0xff]  ;;  %v14545_v1 = vcombine.high %v9004_v27, %v9008_v19  ;;  %v14544_v12 = vcombine.low %v9004_v27, %v9008_v19  ;;  %v9052_v27 = vld [vmem:[%s16215_s10 + $0x210] sm:$0xff] }
 0x674   : > { %v14547_v37 = vcombine.high %v9005_v29, %v9009_v34  ;;  %v14546_v10 = vcombine.low %v9005_v29, %v9009_v34  ;;  %v9056_v19 = vld [vmem:[%s16215_s10 + $0x230] sm:$0xff]  ;;  %v9053_v29 = vld [vmem:[%s16215_s10 + $0x218] sm:$0xff] }
 0x675   : > { %12206 = vmatpush1.bf16.msra.mxu0 %v15004_v24  ;;  %12370 = vmatpush1.bf16.msra.mxu1 %v15006_v53  ;;  %v9012_v24 = vld [vmem:[%s16215_s10 + $0xd0] sm:$0xff]  ;;  %v9057_v34 = vld [vmem:[%s16215_s10 + $0x238] sm:$0xff] }
 0x676   : > { %12207 = vmatprep.subr.bf16.mxu0 %v15013_v56  ;;  %12371 = vmatprep.subr.bf16.mxu1 %v15015_v2  ;;  %v9016_v53 = vld [vmem:[%s16215_s10 + $0xf0] sm:$0xff]  ;;  %v9013_v56 = vld [vmem:[%s16215_s10 + $0xd8] sm:$0xff] }
 0x677   : > { %v9017_v2 = vld [vmem:[%s16215_s10 + $0xf8] sm:$0xff] }
 0x678   : > { %v14555_v8 = vcombine.high %v9013_v56, %v9017_v2 }
 0x679   : > { %12208 = vmatpush1.bf16.msra.mxu0 %v15012_v9  ;;  %12372 = vmatpush1.bf16.msra.mxu1 %v15014_v52  ;;  %v9024_v9 = vld [vmem:[%s16215_s10 + $0x130] sm:$0xff]  ;;  %v9021_v52 = vld [vmem:[%s16215_s10 + $0x118] sm:$0xff] }
 0x67a   : > { %12209 = vmatprep.subr.bf16.mxu0 %v15021_v7  ;;  %12373 = vmatprep.subr.bf16.mxu1 %v15023_v4  ;;  %v14552_v7 = vcombine.low %v9012_v24, %v9016_v53  ;;  %v14554_v4 = vcombine.low %v9013_v56, %v9017_v2  ;;  %v14561_v59 = vcombine.high %v9020_v6, %v9024_v9  ;;  %v9061_v56 = vld [vmem:[%s16215_s10 + $0x258] sm:$0xff] }
 0x67b   : > { %v14563_v50 = vcombine.high %v9021_v52, %v9025_v13  ;;  %v14560_v36 = vcombine.low %v9020_v6, %v9024_v9  ;;  %v9065_v2 = vld [vmem:[%s16215_s10 + $0x278] sm:$0xff]  ;;  %v9068_v6 = vld [vmem:[%s16215_s10 + $0x290] sm:$0xff] }
 0x67c   : > { %v9072_v9 = vld [vmem:[%s16215_s10 + $0x2b0] sm:$0xff] }
 0x67d   : > { %12210 = vmatpush1.bf16.msra.mxu0 %v15020_v14  ;;  %12374 = vmatpush1.bf16.msra.mxu1 %v15022_v33  ;;  %v9029_v14 = vld [vmem:[%s16215_s10 + $0x158] sm:$0xff] }
 0x67e   : > { %12211 = vmatprep.subr.bf16.mxu0 %v15029_v38  ;;  %12375 = vmatprep.subr.bf16.mxu1 %v15031_v22  ;;  %v9033_v33 = vld [vmem:[%s16215_s10 + $0x178] sm:$0xff]  ;;  %v14562_v38 = vcombine.low %v9021_v52, %v9025_v13  ;;  %v14569_v22 = vcombine.high %v9028_v23, %v9032_v25 }
 0x67f   : > { %v14571_v47 = vcombine.high %v9029_v14, %v9033_v33  ;;  %v14570_v32 = vcombine.low %v9029_v14, %v9033_v33  ;;  %v9069_v52 = vld [vmem:[%s16215_s10 + $0x298] sm:$0xff] }
 0x680   : > { %v9073_v13 = vld [vmem:[%s16215_s10 + $0x2b8] sm:$0xff] }
 0x681   : > { %12212 = vmatpush1.bf16.msra.mxu0 %v15028_v60  ;;  %12376 = vmatpush1.bf16.msra.mxu1 %v15030_v11  ;;  %v9041_v60 = vld [vmem:[%s16215_s10 + $0x1b8] sm:$0xff]  ;;  %v14568_v11 = vcombine.low %v9028_v23, %v9032_v25  ;;  %v9076_v23 = vld [vmem:[%s16215_s10 + $0x2d0] sm:$0xff] }
 0x682   : > { %12386 = vmatprep.subr.bf16.mxu0 %v14529_v42  ;;  %12550 = vmatprep.subr.bf16.mxu1 %v14531_v57  ;;  %v14577_v42 = vcombine.high %v9036_v3, %v9040_v61  ;;  %v14579_v57 = vcombine.high %v9037_v51, %v9041_v60  ;;  %v9080_v25 = vld [vmem:[%s16215_s10 + $0x2f0] sm:$0xff]  ;;  %v9077_v14 = vld [vmem:[%s16215_s10 + $0x2d8] sm:$0xff] }
 0x683   : > { %v9081_v33 = vld [vmem:[%s16215_s10 + $0x2f8] sm:$0xff] }
 0x684   : > { %12214 = vmatmul.mubr.bf16.vlgmr.msra.gmra.mrb[8].mxu0 %v17943_v31  ;;  %12378 = vmatmul.mubr.bf16.vlgmr.msra.gmra.mrb[8].mxu1 %v17943_v31 }
 0x685   : > { %12387 = vmatpush1.bf16.msra.mxu0 %v14528_v54  ;;  %12418 = vmatprep.mubr.bf16.mxu0 %v17622_v58  ;;  %v14576_v54 = vcombine.low %v9036_v3, %v9040_v61  ;;  %v9084_v3 = vld [vmem:[%s16215_s10 + $0x310] sm:$0xff] }
 0x686   : > { %12551 = vmatpush1.bf16.msra.mxu1 %v14530_v35  ;;  %12582 = vmatprep.mubr.bf16.mxu1 %v17622_v58  ;;  %v14553_v58 = vcombine.high %v9012_v24, %v9016_v53  ;;  %v14578_v35 = vcombine.low %v9037_v51, %v9041_v60  ;;  %v9060_v24 = vld [vmem:[%s16215_s10 + $0x250] sm:$0xff]  ;;  %v9085_v51 = vld [vmem:[%s16215_s10 + $0x318] sm:$0xff] }
 0x687   : > { %12388 = vmatprep.subr.bf16.mxu0 %v14537_v26  ;;  %12552 = vmatprep.subr.bf16.mxu1 %v14539_v21  ;;  %v14585_v26 = vcombine.high %v9044_v43, %v9048_v18  ;;  %v14587_v21 = vcombine.high %v9045_v44, %v9049_v62  ;;  %v9064_v53 = vld [vmem:[%s16215_s10 + $0x270] sm:$0xff]  ;;  %v9089_v60 = vld [vmem:[%s16215_s10 + $0x338] sm:$0xff] }
 0x688   : > { %v9088_v61 = vld [vmem:[%s16215_s10 + $0x330] sm:$0xff] }
 0x689   : > { %12389 = vmatpush1.bf16.msra.mxu0 %v14536_v39  ;;  %v14584_v39 = vcombine.low %v9044_v43, %v9048_v18  ;;  %v9092_v43 = vld [vmem:[%s16215_s10 + $0x350] sm:$0xff] }
 0x68a   : > { %12553 = vmatpush1.bf16.msra.mxu1 %v14538_v46  ;;  %12390 = vmatprep.subr.bf16.mxu0 %v14545_v1  ;;  %v14586_v46 = vcombine.low %v9045_v44, %v9049_v62  ;;  %v14593_v1 = vcombine.high %v9052_v27, %v9056_v19  ;;  %v9096_v18 = vld [vmem:[%s16215_s10 + $0x370] sm:$0xff]  ;;  %v9093_v44 = vld [vmem:[%s16215_s10 + $0x358] sm:$0xff] }
 0x68b   : > { %12554 = vmatprep.subr.bf16.mxu1 %v14547_v37  ;;  %v14595_v37 = vcombine.high %v9053_v29, %v9057_v34  ;;  %v9097_v62 = vld [vmem:[%s16215_s10 + $0x378] sm:$0xff] }
 0x68d   : > { %12391 = vmatpush1.bf16.msra.mxu0 %v14544_v12  ;;  %v14592_v12 = vcombine.low %v9052_v27, %v9056_v19  ;;  %v9100_v27 = vld [vmem:[%s16215_s10 + $0x390] sm:$0xff] }
 0x68e   : > { %12555 = vmatpush1.bf16.msra.mxu1 %v14546_v10  ;;  %12392 = vmatprep.subr.bf16.mxu0 %v14553_v58  ;;  %v14594_v10 = vcombine.low %v9053_v29, %v9057_v34  ;;  %v14601_v58 = vcombine.high %v9060_v24, %v9064_v53  ;;  %v9104_v19 = vld [vmem:[%s16215_s10 + $0x3b0] sm:$0xff]  ;;  %v9101_v29 = vld [vmem:[%s16215_s10 + $0x398] sm:$0xff] }
 0x68f   : > { %12556 = vmatprep.subr.bf16.mxu1 %v14555_v8  ;;  %v14603_v8 = vcombine.high %v9061_v56, %v9065_v2  ;;  %v9105_v34 = vld [vmem:[%s16215_s10 + $0x3b8] sm:$0xff] }
 0x691   : > { %12393 = vmatpush1.bf16.msra.mxu0 %v14552_v7  ;;  %v14600_v7 = vcombine.low %v9060_v24, %v9064_v53  ;;  %v9108_v24 = vld [vmem:[%s16215_s10 + $0x3d0] sm:$0xff] }
 0x692   : > { %12557 = vmatpush1.bf16.msra.mxu1 %v14554_v4  ;;  %12394 = vmatprep.subr.bf16.mxu0 %v14561_v59  ;;  %v14602_v4 = vcombine.low %v9061_v56, %v9065_v2  ;;  %v14609_v59 = vcombine.high %v9068_v6, %v9072_v9  ;;  %v9112_v53 = vld [vmem:[%s16215_s10 + $0x3f0] sm:$0xff]  ;;  %v9109_v56 = vld [vmem:[%s16215_s10 + $0x3d8] sm:$0xff] }
 0x693   : > { %12558 = vmatprep.subr.bf16.mxu1 %v14563_v50  ;;  %v14611_v50 = vcombine.high %v9069_v52, %v9073_v13  ;;  %v9113_v2 = vld [vmem:[%s16215_s10 + $0x3f8] sm:$0xff] }
 0x695   : > { %12395 = vmatpush1.bf16.msra.mxu0 %v14560_v36  ;;  %v14608_v36 = vcombine.low %v9068_v6, %v9072_v9  ;;  %v9116_v6 = vld [vmem:[%s16215_s10 + $0x410] sm:$0xff] }
 0x696   : > { %12559 = vmatpush1.bf16.msra.mxu1 %v14562_v38  ;;  %12396 = vmatprep.subr.bf16.mxu0 %v14569_v22  ;;  %v14610_v38 = vcombine.low %v9069_v52, %v9073_v13  ;;  %v14617_v22 = vcombine.high %v9076_v23, %v9080_v25  ;;  %v9120_v9 = vld [vmem:[%s16215_s10 + $0x430] sm:$0xff]  ;;  %v9117_v52 = vld [vmem:[%s16215_s10 + $0x418] sm:$0xff] }
 0x697   : > { %12560 = vmatprep.subr.bf16.mxu1 %v14571_v47  ;;  %v14619_v47 = vcombine.high %v9077_v14, %v9081_v33  ;;  %v9121_v13 = vld [vmem:[%s16215_s10 + $0x438] sm:$0xff] }
 0x699   : > { %12397 = vmatpush1.bf16.msra.mxu0 %v14568_v11  ;;  %v14616_v11 = vcombine.low %v9076_v23, %v9080_v25  ;;  %v9124_v23 = vld [vmem:[%s16215_s10 + $0x450] sm:$0xff] }
 0x69a   : > { %12561 = vmatpush1.bf16.msra.mxu1 %v14570_v32  ;;  %12398 = vmatprep.subr.bf16.mxu0 %v14577_v42  ;;  %v14618_v32 = vcombine.low %v9077_v14, %v9081_v33  ;;  %v14625_v42 = vcombine.high %v9084_v3, %v9088_v61  ;;  %v9128_v25 = vld [vmem:[%s16215_s10 + $0x470] sm:$0xff]  ;;  %v14656_v14 = vcombine.low %v9116_v6, %v9120_v9  ;;  %v9125_v33 = vld [vmem:[%s16215_s10 + $0x458] sm:$0xff] }
 0x69b   : > { %12562 = vmatprep.subr.bf16.mxu1 %v14579_v57  ;;  %v14627_v57 = vcombine.high %v9085_v51, %v9089_v60 }
 0x69d   : > { %12399 = vmatpush1.bf16.msra.mxu0 %v14576_v54  ;;  %v14624_v54 = vcombine.low %v9084_v3, %v9088_v61  ;;  %v9136_v3 = vld [vmem:[%s16215_s10 + $0x4b0] sm:$0xff] }
 0x69e   : > { %12563 = vmatpush1.bf16.msra.mxu1 %v14578_v35  ;;  %12400 = vmatprep.subr.bf16.mxu0 %v14585_v26  ;;  %v14626_v35 = vcombine.low %v9085_v51, %v9089_v60  ;;  %v14633_v26 = vcombine.high %v9092_v43, %v9096_v18  ;;  %v9133_v51 = vld [vmem:[%s16215_s10 + $0x498] sm:$0xff] }
 0x69f   : > { %12564 = vmatprep.subr.bf16.mxu1 %v14587_v21  ;;  %v14635_v21 = vcombine.high %v9093_v44, %v9097_v62  ;;  %v9137_v60 = vld [vmem:[%s16215_s10 + $0x4b8] sm:$0xff] }
 0x6a1   : > { %12401 = vmatpush1.bf16.msra.mxu0 %v14584_v39  ;;  %v14632_v39 = vcombine.low %v9092_v43, %v9096_v18  ;;  %v9140_v43 = vld [vmem:[%s16215_s10 + $0x4d0] sm:$0xff] }
 0x6a2   : > { %12565 = vmatpush1.bf16.msra.mxu1 %v14586_v46  ;;  %12402 = vmatprep.subr.bf16.mxu0 %v14593_v1  ;;  %v14634_v46 = vcombine.low %v9093_v44, %v9097_v62  ;;  %v14641_v1 = vcombine.high %v9100_v27, %v9104_v19  ;;  %v9144_v18 = vld [vmem:[%s16215_s10 + $0x4f0] sm:$0xff]  ;;  %v9141_v44 = vld [vmem:[%s16215_s10 + $0x4d8] sm:$0xff] }
 0x6a3   : > { %12566 = vmatprep.subr.bf16.mxu1 %v14595_v37  ;;  %v14643_v37 = vcombine.high %v9101_v29, %v9105_v34 }
 0x6a5   : > { %12403 = vmatpush1.bf16.msra.mxu0 %v14592_v12  ;;  %v14640_v12 = vcombine.low %v9100_v27, %v9104_v19  ;;  %v9149_v27 = vld [vmem:[%s16215_s10 + $0x518] sm:$0xff] }
 0x6a6   : > { %12567 = vmatpush1.bf16.msra.mxu1 %v14594_v10  ;;  %12404 = vmatprep.subr.bf16.mxu0 %v14601_v58  ;;  %v14642_v10 = vcombine.low %v9101_v29, %v9105_v34  ;;  %v14649_v58 = vcombine.high %v9108_v24, %v9112_v53  ;;  %v9153_v19 = vld [vmem:[%s16215_s10 + $0x538] sm:$0xff]  ;;  %v14680_v29 = vcombine.low %v9140_v43, %v9144_v18 }
 0x6a7   : > { %12568 = vmatprep.subr.bf16.mxu1 %v14603_v8  ;;  %v14651_v8 = vcombine.high %v9109_v56, %v9113_v2 }
 0x6a9   : > { %12405 = vmatpush1.bf16.msra.mxu0 %v14600_v7  ;;  %v14648_v7 = vcombine.low %v9108_v24, %v9112_v53  ;;  %v9157_v24 = vld [vmem:[%s16215_s10 + $0x558] sm:$0xff] }
 0x6aa   : > { %12569 = vmatpush1.bf16.msra.mxu1 %v14602_v4  ;;  %12406 = vmatprep.subr.bf16.mxu0 %v14609_v59  ;;  %v14650_v4 = vcombine.low %v9109_v56, %v9113_v2  ;;  %v14657_v59 = vcombine.high %v9116_v6, %v9120_v9  ;;  %v9161_v53 = vld [vmem:[%s16215_s10 + $0x578] sm:$0xff]  ;;  %v14690_v2 = vcombine.low %v9149_v27, %v9153_v19 }
 0x6ab   : > { %12570 = vmatprep.subr.bf16.mxu1 %v14611_v50  ;;  %v14659_v50 = vcombine.high %v9117_v52, %v9121_v13  ;;  %v9165_v6 = vld [vmem:[%s16215_s10 + $0x598] sm:$0xff] }
 0x6ac   : > { %v9169_v9 = vld [vmem:[%s16215_s10 + $0x5b8] sm:$0xff] }
 0x6ad   : > { %12407 = vmatpush1.bf16.msra.mxu0 %v14608_v36  ;;  %v9129_v36 = vld [vmem:[%s16215_s10 + $0x478] sm:$0xff] }
 0x6ae   : > { %12571 = vmatpush1.bf16.msra.mxu1 %v14610_v38  ;;  %12408 = vmatprep.subr.bf16.mxu0 %v14617_v22  ;;  %v14658_v38 = vcombine.low %v9117_v52, %v9121_v13  ;;  %v14665_v22 = vcombine.high %v9124_v23, %v9128_v25  ;;  %v14667_v61 = vcombine.high %v9125_v33, %v9129_v36 }
 0x6af   : > { %12572 = vmatprep.subr.bf16.mxu1 %v14619_v47  ;;  %v9132_v47 = vld [vmem:[%s16215_s10 + $0x490] sm:$0xff]  ;;  %v14698_v13 = vcombine.low %v9157_v24, %v9161_v53 }
 0x6b0   : > { %v14672_v62 = vcombine.low %v9132_v47, %v9136_v3 }
 0x6b1   : > { %12409 = vmatpush1.bf16.msra.mxu0 %v14616_v11  ;;  %v14664_v11 = vcombine.low %v9124_v23, %v9128_v25  ;;  %v9173_v23 = vld [vmem:[%s16215_s10 + $0x5d8] sm:$0xff] }
 0x6b2   : > { %12573 = vmatpush1.bf16.msra.mxu1 %v14618_v32  ;;  %12410 = vmatprep.subr.bf16.mxu0 %v14625_v42  ;;  %v14666_v32 = vcombine.low %v9125_v33, %v9129_v36  ;;  %v14673_v42 = vcombine.high %v9132_v47, %v9136_v3  ;;  %v9177_v25 = vld [vmem:[%s16215_s10 + $0x5f8] sm:$0xff]  ;;  %v14706_v33 = vcombine.low %v9165_v6, %v9169_v9  ;;  %v9184_v47 = vld [vmem:[%s16215_s10 + $0x630] sm:$0xff] }
 0x6b3   : > { %12574 = vmatprep.subr.bf16.mxu1 %v14627_v57  ;;  %v14675_v57 = vcombine.high %v9133_v51, %v9137_v60  ;;  %v9181_v3 = vld [vmem:[%s16215_s10 + $0x618] sm:$0xff] }
 0x6b5   : > { %12411 = vmatpush1.bf16.msra.mxu0 %v14624_v54  ;;  %v14674_v54 = vcombine.low %v9133_v51, %v9137_v60  ;;  %v14714_v60 = vcombine.low %v9173_v23, %v9177_v25 }
 0x6b6   : > { %12575 = vmatpush1.bf16.msra.mxu1 %v14626_v35  ;;  %12412 = vmatprep.subr.bf16.mxu0 %v14633_v26  ;;  %v14681_v35 = vcombine.high %v9140_v43, %v9144_v18  ;;  %v9148_v26 = vld [vmem:[%s16215_s10 + $0x510] sm:$0xff]  ;;  %v9189_v43 = vld [vmem:[%s16215_s10 + $0x658] sm:$0xff] }
 0x6b7   : > { %12576 = vmatprep.subr.bf16.mxu1 %v14635_v21  ;;  %v9152_v21 = vld [vmem:[%s16215_s10 + $0x530] sm:$0xff]  ;;  %v9193_v18 = vld [vmem:[%s16215_s10 + $0x678] sm:$0xff] }
 0x6b8   : > { %v14688_v56 = vcombine.low %v9148_v26, %v9152_v21 }
 0x6b9   : > { %12413 = vmatpush1.bf16.msra.mxu0 %v14632_v39  ;;  %v14689_v39 = vcombine.high %v9148_v26, %v9152_v21  ;;  %v9197_v26 = vld [vmem:[%s16215_s10 + $0x698] sm:$0xff] }
 0x6ba   : > { %12577 = vmatpush1.bf16.msra.mxu1 %v14634_v46  ;;  %12414 = vmatprep.subr.bf16.mxu0 %v14641_v1  ;;  %v14691_v46 = vcombine.high %v9149_v27, %v9153_v19  ;;  %v9156_v1 = vld [vmem:[%s16215_s10 + $0x550] sm:$0xff]  ;;  %v9201_v21 = vld [vmem:[%s16215_s10 + $0x6b8] sm:$0xff]  ;;  %v14730_v19 = vcombine.low %v9189_v43, %v9193_v18 }
 0x6bb   : > { %12578 = vmatprep.subr.bf16.mxu1 %v14643_v37  ;;  %v9160_v37 = vld [vmem:[%s16215_s10 + $0x570] sm:$0xff] }
 0x6bc   : > { %v14696_v52 = vcombine.low %v9156_v1, %v9160_v37 }
 0x6bd   : > { %12415 = vmatpush1.bf16.msra.mxu0 %v14640_v12  ;;  %v14697_v12 = vcombine.high %v9156_v1, %v9160_v37  ;;  %v9205_v1 = vld [vmem:[%s16215_s10 + $0x6d8] sm:$0xff] }
 0x6be   : > { %12579 = vmatpush1.bf16.msra.mxu1 %v14642_v10  ;;  %12416 = vmatprep.subr.bf16.mxu0 %v14649_v58  ;;  %v14699_v10 = vcombine.high %v9157_v24, %v9161_v53  ;;  %v9164_v58 = vld [vmem:[%s16215_s10 + $0x590] sm:$0xff]  ;;  %v9209_v37 = vld [vmem:[%s16215_s10 + $0x6f8] sm:$0xff]  ;;  %v14738_v53 = vcombine.low %v9197_v26, %v9201_v21 }
 0x6bf   : > { %12580 = vmatprep.subr.bf16.mxu1 %v14651_v8  ;;  %v9168_v8 = vld [vmem:[%s16215_s10 + $0x5b0] sm:$0xff] }
 0x6c1   : > { %12417 = vmatpush1.bf16.msra.mxu0 %v14648_v7  ;;  %v14705_v7 = vcombine.high %v9164_v58, %v9168_v8 }
 0x6c2   : > { %12581 = vmatpush1.bf16.msra.mxu1 %v14650_v4  ;;  %12427 = vmatprep.subr.bf16.mxu0 %v14657_v59  ;;  %v14707_v4 = vcombine.high %v9165_v6, %v9169_v9  ;;  %v9172_v59 = vld [vmem:[%s16215_s10 + $0x5d0] sm:$0xff]  ;;  %v14746_v9 = vcombine.low %v9205_v1, %v9209_v37 }
 0x6c3   : > { %12591 = vmatprep.subr.bf16.mxu1 %v14659_v50  ;;  %v9176_v50 = vld [vmem:[%s16215_s10 + $0x5f0] sm:$0xff] }
 0x6c4   : > { %12419 = vmatmul.mubr.bf16.vlgmr.msra.gmra.mrb[12].mxu0 %v17700_v28  ;;  %v14713_v36 = vcombine.high %v9172_v59, %v9176_v50  ;;  %v14712_v51 = vcombine.low %v9172_v59, %v9176_v50  ;;  %v9221_v59 = vld [vmem:[%s16215_s10 + $0x758] sm:$0xff] }
 0x6c5   : > { %12583 = vmatmul.mubr.bf16.vlgmr.msra.gmra.mrb[12].mxu1 %v17700_v28  ;;  %12428 = vmatpush1.bf16.msra.mxu0 %v14656_v14  ;;  %v9145_v28 = vld [vmem:[%s16215_s10 + $0x4f8] sm:$0xff]  ;;  %v14704_v14 = vcombine.low %v9164_v58, %v9168_v8 }
 0x6c6   : > { %12459 = vmatprep.mubr.bf16.mxu0 %v17704_v40  ;;  %12592 = vmatpush1.bf16.msra.mxu1 %v14658_v38  ;;  %v14682_v34 = vcombine.low %v9141_v44, %v9145_v28  ;;  %v14715_v38 = vcombine.high %v9173_v23, %v9177_v25  ;;  %v9213_v58 = vld [vmem:[%s16215_s10 + $0x718] sm:$0xff] }
 0x6c7   : > { %12623 = vmatprep.mubr.bf16.mxu1 %v17704_v40  ;;  %12429 = vmatprep.subr.bf16.mxu0 %v14665_v22  ;;  %v14683_v40 = vcombine.high %v9141_v44, %v9145_v28  ;;  %v9180_v22 = vld [vmem:[%s16215_s10 + $0x610] sm:$0xff]  ;;  %v9217_v8 = vld [vmem:[%s16215_s10 + $0x738] sm:$0xff] }
 0x6c8   : > { %12593 = vmatprep.subr.bf16.mxu1 %v14667_v61  ;;  %v9185_v61 = vld [vmem:[%s16215_s10 + $0x638] sm:$0xff]  ;;  %v14720_v44 = vcombine.low %v9180_v22, %v9184_v47  ;;  %v14754_v25 = vcombine.low %v9213_v58, %v9217_v8 }
 0x6c9   : > { %12430 = vmatpush1.bf16.msra.mxu0 %v14664_v11  ;;  %v14721_v11 = vcombine.high %v9180_v22, %v9184_v47  ;;  %v14722_v28 = vcombine.low %v9181_v3, %v9185_v61  ;;  %v9225_v50 = vld [vmem:[%s16215_s10 + $0x778] sm:$0xff] }
 0x6ca   : > { %12594 = vmatpush1.bf16.msra.mxu1 %v14666_v32  ;;  %12431 = vmatprep.subr.bf16.mxu0 %v14673_v42  ;;  %v14723_v32 = vcombine.high %v9181_v3, %v9185_v61  ;;  %v9188_v42 = vld [vmem:[%s16215_s10 + $0x650] sm:$0xff]  ;;  %v9229_v22 = vld [vmem:[%s16215_s10 + $0x798] sm:$0xff]  ;;  %v14762_v61 = vcombine.low %v9221_v59, %v9225_v50 }
 0x6cb   : > { %12595 = vmatprep.subr.bf16.mxu1 %v14675_v57  ;;  %v9192_v57 = vld [vmem:[%s16215_s10 + $0x670] sm:$0xff]  ;;  %v9233_v47 = vld [vmem:[%s16215_s10 + $0x7b8] sm:$0xff] }
 0x6cc   : > { %v14728_v27 = vcombine.low %v9188_v42, %v9192_v57 }
 0x6cd   : > { %12432 = vmatpush1.bf16.msra.mxu0 %v14672_v62  ;;  %v14729_v62 = vcombine.high %v9188_v42, %v9192_v57  ;;  %v9237_v42 = vld [vmem:[%s16215_s10 + $0x7d8] sm:$0xff] }
 0x6ce   : > { %12596 = vmatpush1.bf16.msra.mxu1 %v14674_v54  ;;  %12433 = vmatprep.subr.bf16.mxu0 %v14681_v35  ;;  %v14731_v54 = vcombine.high %v9189_v43, %v9193_v18  ;;  %v9196_v35 = vld [vmem:[%s16215_s10 + $0x690] sm:$0xff]  ;;  %v9241_v57 = vld [vmem:[%s16215_s10 + $0x7f8] sm:$0xff]  ;;  %v14770_v18 = vcombine.low %v9229_v22, %v9233_v47 }
 0x6cf   : > { %12597 = vmatprep.subr.bf16.mxu1 %v14683_v40  ;;  %v9200_v40 = vld [vmem:[%s16215_s10 + $0x6b0] sm:$0xff] }
 0x6d0   : > { %v14736_v24 = vcombine.low %v9196_v35, %v9200_v40 }
 0x6d1   : > { %12434 = vmatpush1.bf16.msra.mxu0 %v14680_v29  ;;  %v14737_v29 = vcombine.high %v9196_v35, %v9200_v40  ;;  %v9245_v35 = vld [vmem:[%s16215_s10 + $0x818] sm:$0xff] }
 0x6d2   : > { %12598 = vmatpush1.bf16.msra.mxu1 %v14682_v34  ;;  %12435 = vmatprep.subr.bf16.mxu0 %v14689_v39  ;;  %v14739_v34 = vcombine.high %v9197_v26, %v9201_v21  ;;  %v9204_v39 = vld [vmem:[%s16215_s10 + $0x6d0] sm:$0xff]  ;;  %v9249_v40 = vld [vmem:[%s16215_s10 + $0x838] sm:$0xff]  ;;  %v14778_v21 = vcombine.low %v9237_v42, %v9241_v57 }
 0x6d3   : > { %12599 = vmatprep.subr.bf16.mxu1 %v14691_v46  ;;  %v9208_v46 = vld [vmem:[%s16215_s10 + $0x6f0] sm:$0xff] }
 0x6d4   : > { %v14744_v6 = vcombine.low %v9204_v39, %v9208_v46 }
 0x6d5   : > { %12436 = vmatpush1.bf16.msra.mxu0 %v14688_v56  ;;  %v14745_v56 = vcombine.high %v9204_v39, %v9208_v46  ;;  %v9253_v46 = vld [vmem:[%s16215_s10 + $0x858] sm:$0xff] }
 0x6d6   : > { %12600 = vmatpush1.bf16.msra.mxu1 %v14690_v2  ;;  %12437 = vmatprep.subr.bf16.mxu0 %v14697_v12  ;;  %v14747_v2 = vcombine.high %v9205_v1, %v9209_v37  ;;  %v9212_v12 = vld [vmem:[%s16215_s10 + $0x710] sm:$0xff]  ;;  %v9257_v1 = vld [vmem:[%s16215_s10 + $0x878] sm:$0xff]  ;;  %v14786_v37 = vcombine.low %v9245_v35, %v9249_v40 }
 0x6d7   : > { %12601 = vmatprep.subr.bf16.mxu1 %v14699_v10  ;;  %v9216_v10 = vld [vmem:[%s16215_s10 + $0x730] sm:$0xff] }
 0x6d8   : > { %v14752_v23 = vcombine.low %v9212_v12, %v9216_v10 }
 0x6d9   : > { %12438 = vmatpush1.bf16.msra.mxu0 %v14696_v52  ;;  %v14753_v52 = vcombine.high %v9212_v12, %v9216_v10  ;;  %v9261_v12 = vld [vmem:[%s16215_s10 + $0x898] sm:$0xff] }
 0x6da   : > { %12602 = vmatpush1.bf16.msra.mxu1 %v14698_v13  ;;  %12439 = vmatprep.subr.bf16.mxu0 %v14705_v7  ;;  %v14755_v13 = vcombine.high %v9213_v58, %v9217_v8  ;;  %v9220_v7 = vld [vmem:[%s16215_s10 + $0x750] sm:$0xff]  ;;  %v9265_v10 = vld [vmem:[%s16215_s10 + $0x8b8] sm:$0xff]  ;;  %v14794_v8 = vcombine.low %v9253_v46, %v9257_v1 }
 0x6db   : > { %12603 = vmatprep.subr.bf16.mxu1 %v14707_v4  ;;  %v9224_v4 = vld [vmem:[%s16215_s10 + $0x770] sm:$0xff] }
 0x6dc   : > { %v14760_v3 = vcombine.low %v9220_v7, %v9224_v4 }
 0x6dd   : > { %12440 = vmatpush1.bf16.msra.mxu0 %v14704_v14  ;;  %v14761_v14 = vcombine.high %v9220_v7, %v9224_v4  ;;  %v9269_v7 = vld [vmem:[%s16215_s10 + $0x8d8] sm:$0xff] }
 0x6de   : > { %12604 = vmatpush1.bf16.msra.mxu1 %v14706_v33  ;;  %12441 = vmatprep.subr.bf16.mxu0 %v14713_v36  ;;  %v14763_v33 = vcombine.high %v9221_v59, %v9225_v50  ;;  %v9228_v36 = vld [vmem:[%s16215_s10 + $0x790] sm:$0xff]  ;;  %v14802_v59 = vcombine.low %v9261_v12, %v9265_v10 }
 0x6df   : > { %12605 = vmatprep.subr.bf16.mxu1 %v14715_v38  ;;  %v9232_v38 = vld [vmem:[%s16215_s10 + $0x7b0] sm:$0xff] }
 0x6e0   : > { %v14768_v43 = vcombine.low %v9228_v36, %v9232_v38 }
 0x6e1   : > { %12442 = vmatpush1.bf16.msra.mxu0 %v14712_v51  ;;  %v14769_v51 = vcombine.high %v9228_v36, %v9232_v38 }
 0x6e2   : > { %12606 = vmatpush1.bf16.msra.mxu1 %v14714_v60  ;;  %12443 = vmatprep.subr.bf16.mxu0 %v14721_v11  ;;  %v14771_v60 = vcombine.high %v9229_v22, %v9233_v47  ;;  %v9236_v11 = vld [vmem:[%s16215_s10 + $0x7d0] sm:$0xff] }
 0x6e3   : > { %12607 = vmatprep.subr.bf16.mxu1 %v14723_v32  ;;  %v9240_v32 = vld [vmem:[%s16215_s10 + $0x7f0] sm:$0xff] }
 0x6e4   : > { %v14776_v26 = vcombine.low %v9236_v11, %v9240_v32 }
 0x6e5   : > { %12444 = vmatpush1.bf16.msra.mxu0 %v14720_v44  ;;  %v14777_v44 = vcombine.high %v9236_v11, %v9240_v32 }
 0x6e6   : > { %12608 = vmatpush1.bf16.msra.mxu1 %v14722_v28  ;;  %12445 = vmatprep.subr.bf16.mxu0 %v14729_v62  ;;  %v14779_v28 = vcombine.high %v9237_v42, %v9241_v57  ;;  %v9244_v62 = vld [vmem:[%s16215_s10 + $0x810] sm:$0xff] }
 0x6e7   : > { %12609 = vmatprep.subr.bf16.mxu1 %v14731_v54  ;;  %v9248_v54 = vld [vmem:[%s16215_s10 + $0x830] sm:$0xff] }
 0x6e8   : > { %v14784_v39 = vcombine.low %v9244_v62, %v9248_v54 }
 0x6e9   : > { %12446 = vmatpush1.bf16.msra.mxu0 %v14728_v27  ;;  %v14785_v27 = vcombine.high %v9244_v62, %v9248_v54 }
 0x6ea   : > { %12610 = vmatpush1.bf16.msra.mxu1 %v14730_v19  ;;  %12447 = vmatprep.subr.bf16.mxu0 %v14737_v29  ;;  %v14787_v19 = vcombine.high %v9245_v35, %v9249_v40  ;;  %v9252_v29 = vld [vmem:[%s16215_s10 + $0x850] sm:$0xff] }
 0x6eb   : > { %12611 = vmatprep.subr.bf16.mxu1 %v14739_v34  ;;  %v9256_v34 = vld [vmem:[%s16215_s10 + $0x870] sm:$0xff] }
 0x6ec   : > { %v14792_v58 = vcombine.low %v9252_v29, %v9256_v34 }
 0x6ed   : > { %12448 = vmatpush1.bf16.msra.mxu0 %v14736_v24  ;;  %v14793_v24 = vcombine.high %v9252_v29, %v9256_v34 }
 0x6ee   : > { %12612 = vmatpush1.bf16.msra.mxu1 %v14738_v53  ;;  %12449 = vmatprep.subr.bf16.mxu0 %v14745_v56  ;;  %v9260_v53 = vld [vmem:[%s16215_s10 + $0x890] sm:$0xff] }
 0x6ef   : > { %12613 = vmatprep.subr.bf16.mxu1 %v14747_v2  ;;  %v9264_v56 = vld [vmem:[%s16215_s10 + $0x8b0] sm:$0xff]  ;;  %v14795_v2 = vcombine.high %v9253_v46, %v9257_v1 }
 0x6f0   : > { %v14800_v4 = vcombine.low %v9260_v53, %v9264_v56  ;;  %v9308_v1 = vld [vmem:[%s16215_s10 + $0xa10] sm:$0xff] }
 0x6f1   : > { %12450 = vmatpush1.bf16.msra.mxu0 %v14744_v6  ;;  %v14801_v6 = vcombine.high %v9260_v53, %v9264_v56  ;;  %v9313_v53 = vld [vmem:[%s16215_s10 + $0xa38] sm:$0xff] }
 0x6f2   : > { %12614 = vmatpush1.bf16.msra.mxu1 %v14746_v9  ;;  %12451 = vmatprep.subr.bf16.mxu0 %v14753_v52  ;;  %v14803_v9 = vcombine.high %v9261_v12, %v9265_v10  ;;  %v9268_v52 = vld [vmem:[%s16215_s10 + $0x8d0] sm:$0xff] }
 0x6f3   : > { %12615 = vmatprep.subr.bf16.mxu1 %v14755_v13  ;;  %v9272_v13 = vld [vmem:[%s16215_s10 + $0x8f0] sm:$0xff] }
 0x6f4   : > { %v14809_v50 = vcombine.high %v9268_v52, %v9272_v13  ;;  %v14808_v36 = vcombine.low %v9268_v52, %v9272_v13 }
 0x6f5   : > { %12452 = vmatpush1.bf16.msra.mxu0 %v14752_v23  ;;  %v9276_v23 = vld [vmem:[%s16215_s10 + $0x910] sm:$0xff] }
 0x6f6   : > { %12616 = vmatpush1.bf16.msra.mxu1 %v14754_v25  ;;  %12453 = vmatprep.subr.bf16.mxu0 %v14761_v14  ;;  %v9280_v25 = vld [vmem:[%s16215_s10 + $0x930] sm:$0xff]  ;;  %v9277_v14 = vld [vmem:[%s16215_s10 + $0x918] sm:$0xff] }
 0x6f7   : > { %12617 = vmatprep.subr.bf16.mxu1 %v14763_v33  ;;  %v9281_v33 = vld [vmem:[%s16215_s10 + $0x938] sm:$0xff]  ;;  %v14817_v22 = vcombine.high %v9276_v23, %v9280_v25  ;;  %v14816_v11 = vcombine.low %v9276_v23, %v9280_v25 }
 0x6f8   : > { %v14819_v47 = vcombine.high %v9277_v14, %v9281_v33  ;;  %v14818_v32 = vcombine.low %v9277_v14, %v9281_v33 }
 0x6f9   : > { %12454 = vmatpush1.bf16.msra.mxu0 %v14760_v3  ;;  %v9284_v3 = vld [vmem:[%s16215_s10 + $0x950] sm:$0xff] }
 0x6fa   : > { %12618 = vmatpush1.bf16.msra.mxu1 %v14762_v61  ;;  %12455 = vmatprep.subr.bf16.mxu0 %v14769_v51  ;;  %v9288_v61 = vld [vmem:[%s16215_s10 + $0x970] sm:$0xff]  ;;  %v9285_v51 = vld [vmem:[%s16215_s10 + $0x958] sm:$0xff] }
 0x6fb   : > { %12619 = vmatprep.subr.bf16.mxu1 %v14771_v60  ;;  %v9289_v60 = vld [vmem:[%s16215_s10 + $0x978] sm:$0xff]  ;;  %v14825_v42 = vcombine.high %v9284_v3, %v9288_v61  ;;  %v14824_v62 = vcombine.low %v9284_v3, %v9288_v61 }
 0x6fc   : > { %v14827_v57 = vcombine.high %v9285_v51, %v9289_v60  ;;  %v14826_v54 = vcombine.low %v9285_v51, %v9289_v60 }
 0x6fd   : > { %12456 = vmatpush1.bf16.msra.mxu0 %v14768_v43  ;;  %v9292_v43 = vld [vmem:[%s16215_s10 + $0x990] sm:$0xff] }
 0x6fe   : > { %12620 = vmatpush1.bf16.msra.mxu1 %v14770_v18  ;;  %12457 = vmatprep.subr.bf16.mxu0 %v14777_v44  ;;  %v9296_v18 = vld [vmem:[%s16215_s10 + $0x9b0] sm:$0xff]  ;;  %v9293_v44 = vld [vmem:[%s16215_s10 + $0x998] sm:$0xff] }
 0x6ff   : > { %12621 = vmatprep.subr.bf16.mxu1 %v14779_v28  ;;  %v9297_v28 = vld [vmem:[%s16215_s10 + $0x9b8] sm:$0xff]  ;;  %v14833_v35 = vcombine.high %v9292_v43, %v9296_v18  ;;  %v14832_v29 = vcombine.low %v9292_v43, %v9296_v18 }
 0x700   : > { %v14835_v40 = vcombine.high %v9293_v44, %v9297_v28  ;;  %v14834_v34 = vcombine.low %v9293_v44, %v9297_v28 }
 0x701   : > { %12458 = vmatpush1.bf16.msra.mxu0 %v14776_v26  ;;  %v9300_v26 = vld [vmem:[%s16215_s10 + $0x9d0] sm:$0xff] }
 0x702   : > { %12622 = vmatpush1.bf16.msra.mxu1 %v14778_v21  ;;  %12468 = vmatprep.subr.bf16.mxu0 %v14785_v27  ;;  %v9304_v21 = vld [vmem:[%s16215_s10 + $0x9f0] sm:$0xff]  ;;  %v9301_v27 = vld [vmem:[%s16215_s10 + $0x9d8] sm:$0xff] }
 0x703   : > { %12632 = vmatprep.subr.bf16.mxu1 %v14787_v19  ;;  %v9305_v19 = vld [vmem:[%s16215_s10 + $0x9f8] sm:$0xff]  ;;  %v14840_v56 = vcombine.low %v9300_v26, %v9304_v21 }
 0x704   : > { %12460 = vmatmul.mubr.bf16.vlgmr.msra.gmra.mrb[12].mxu0 %v17777_v20  ;;  %v14843_v46 = vcombine.high %v9301_v27, %v9305_v19 }
 0x705   : > { %12624 = vmatmul.mubr.bf16.vlgmr.msra.gmra.mrb[12].mxu1 %v17777_v20  ;;  %12469 = vmatpush1.bf16.msra.mxu0 %v14784_v39  ;;  %v9273_v20 = vld [vmem:[%s16215_s10 + $0x8f8] sm:$0xff]  ;;  %v14841_v39 = vcombine.high %v9300_v26, %v9304_v21 }
 0x706   : > { %12500 = vmatprep.mubr.bf16.mxu0 %v17862_v48  ;;  %12633 = vmatpush1.bf16.msra.mxu1 %v14786_v37  ;;  %v14810_v38 = vcombine.low %v9269_v7, %v9273_v20  ;;  %v9312_v37 = vld [vmem:[%s16215_s10 + $0xa30] sm:$0xff] }
 0x707   : > { %12664 = vmatprep.mubr.bf16.mxu1 %v17862_v48  ;;  %12470 = vmatprep.subr.bf16.mxu0 %v14793_v24  ;;  %v14811_v48 = vcombine.high %v9269_v7, %v9273_v20  ;;  %v9309_v24 = vld [vmem:[%s16215_s10 + $0xa18] sm:$0xff]  ;;  %v14849_v12 = vcombine.high %v9308_v1, %v9312_v37  ;;  %v14848_v52 = vcombine.low %v9308_v1, %v9312_v37 }
 0x708   : > { %12634 = vmatprep.subr.bf16.mxu1 %v14795_v2  ;;  %v14842_v2 = vcombine.low %v9301_v27, %v9305_v19  ;;  %v14851_v10 = vcombine.high %v9309_v24, %v9313_v53  ;;  %v14850_v13 = vcombine.low %v9309_v24, %v9313_v53 }
 0x709   : > { %12471 = vmatpush1.bf16.msra.mxu0 %v14792_v58  ;;  %v9316_v58 = vld [vmem:[%s16215_s10 + $0xa50] sm:$0xff] }
 0x70a   : > { %12635 = vmatpush1.bf16.msra.mxu1 %v14794_v8  ;;  %12472 = vmatprep.subr.bf16.mxu0 %v14801_v6  ;;  %v9320_v8 = vld [vmem:[%s16215_s10 + $0xa70] sm:$0xff]  ;;  %v9317_v6 = vld [vmem:[%s16215_s10 + $0xa58] sm:$0xff] }
 0x70b   : > { %12636 = vmatprep.subr.bf16.mxu1 %v14803_v9  ;;  %v9321_v9 = vld [vmem:[%s16215_s10 + $0xa78] sm:$0xff]  ;;  %v14857_v7 = vcombine.high %v9316_v58, %v9320_v8  ;;  %v14856_v23 = vcombine.low %v9316_v58, %v9320_v8 }
 0x70c   : > { %v14859_v20 = vcombine.high %v9317_v6, %v9321_v9  ;;  %v14858_v25 = vcombine.low %v9317_v6, %v9321_v9 }
 0x70d   : > { %12473 = vmatpush1.bf16.msra.mxu0 %v14800_v4  ;;  %v9324_v4 = vld [vmem:[%s16215_s10 + $0xa90] sm:$0xff] }
 0x70e   : > { %12637 = vmatpush1.bf16.msra.mxu1 %v14802_v59  ;;  %12474 = vmatprep.subr.bf16.mxu0 %v14809_v50  ;;  %v9328_v59 = vld [vmem:[%s16215_s10 + $0xab0] sm:$0xff]  ;;  %v9325_v50 = vld [vmem:[%s16215_s10 + $0xa98] sm:$0xff] }
 0x70f   : > { %12638 = vmatprep.subr.bf16.mxu1 %v14811_v48  ;;  %v9329_v48 = vld [vmem:[%s16215_s10 + $0xab8] sm:$0xff]  ;;  %v14865_v14 = vcombine.high %v9324_v4, %v9328_v59  ;;  %v14864_v3 = vcombine.low %v9324_v4, %v9328_v59 }
 0x710   : > { %v14867_v33 = vcombine.high %v9325_v50, %v9329_v48  ;;  %v14866_v61 = vcombine.low %v9325_v50, %v9329_v48 }
 0x711   : > { %12475 = vmatpush1.bf16.msra.mxu0 %v14808_v36  ;;  %v9332_v36 = vld [vmem:[%s16215_s10 + $0xad0] sm:$0xff] }
 0x712   : > { %12639 = vmatpush1.bf16.msra.mxu1 %v14810_v38  ;;  %12476 = vmatprep.subr.bf16.mxu0 %v14817_v22  ;;  %v9336_v38 = vld [vmem:[%s16215_s10 + $0xaf0] sm:$0xff]  ;;  %v9333_v22 = vld [vmem:[%s16215_s10 + $0xad8] sm:$0xff] }
 0x713   : > { %12640 = vmatprep.subr.bf16.mxu1 %v14819_v47  ;;  %v9337_v47 = vld [vmem:[%s16215_s10 + $0xaf8] sm:$0xff]  ;;  %v14873_v51 = vcombine.high %v9332_v36, %v9336_v38  ;;  %v14872_v43 = vcombine.low %v9332_v36, %v9336_v38 }
 0x714   : > { %v14875_v60 = vcombine.high %v9333_v22, %v9337_v47  ;;  %v14874_v18 = vcombine.low %v9333_v22, %v9337_v47  ;;  %v9385_v36 = vld [vmem:[%s16215_s10 + $0xc78] sm:$0xff]  ;;  %v9388_v47 = vld [vmem:[%s16215_s10 + $0xc90] sm:$0xff] }
 0x715   : > { %12477 = vmatpush1.bf16.msra.mxu0 %v14816_v11  ;;  %v9340_v11 = vld [vmem:[%s16215_s10 + $0xb10] sm:$0xff] }
 0x716   : > { %12641 = vmatpush1.bf16.msra.mxu1 %v14818_v32  ;;  %12478 = vmatprep.subr.bf16.mxu0 %v14825_v42  ;;  %v9344_v32 = vld [vmem:[%s16215_s10 + $0xb30] sm:$0xff]  ;;  %v9341_v42 = vld [vmem:[%s16215_s10 + $0xb18] sm:$0xff] }
 0x717   : > { %12642 = vmatprep.subr.bf16.mxu1 %v14827_v57  ;;  %v9345_v57 = vld [vmem:[%s16215_s10 + $0xb38] sm:$0xff]  ;;  %v14881_v44 = vcombine.high %v9340_v11, %v9344_v32  ;;  %v14880_v26 = vcombine.low %v9340_v11, %v9344_v32 }
 0x718   : > { %v14883_v28 = vcombine.high %v9341_v42, %v9345_v57  ;;  %v14882_v21 = vcombine.low %v9341_v42, %v9345_v57 }
 0x719   : > { %12479 = vmatpush1.bf16.msra.mxu0 %v14824_v62  ;;  %v9348_v62 = vld [vmem:[%s16215_s10 + $0xb50] sm:$0xff] }
 0x71a   : > { %12643 = vmatpush1.bf16.msra.mxu1 %v14826_v54  ;;  %12480 = vmatprep.subr.bf16.mxu0 %v14833_v35  ;;  %v9352_v54 = vld [vmem:[%s16215_s10 + $0xb70] sm:$0xff]  ;;  %v9349_v35 = vld [vmem:[%s16215_s10 + $0xb58] sm:$0xff] }
 0x71b   : > { %12644 = vmatprep.subr.bf16.mxu1 %v14835_v40  ;;  %v9353_v40 = vld [vmem:[%s16215_s10 + $0xb78] sm:$0xff]  ;;  %v14889_v27 = vcombine.high %v9348_v62, %v9352_v54  ;;  %v14888_v1 = vcombine.low %v9348_v62, %v9352_v54 }
 0x71c   : > { %v14891_v19 = vcombine.high %v9349_v35, %v9353_v40  ;;  %v14890_v37 = vcombine.low %v9349_v35, %v9353_v40  ;;  %v9404_v35 = vld [vmem:[%s16215_s10 + $0xd10] sm:$0xff] }
 0x71d   : > { %12481 = vmatpush1.bf16.msra.mxu0 %v14832_v29  ;;  %v9356_v29 = vld [vmem:[%s16215_s10 + $0xb90] sm:$0xff] }
 0x71e   : > { %12645 = vmatpush1.bf16.msra.mxu1 %v14834_v34  ;;  %12482 = vmatprep.subr.bf16.mxu0 %v14841_v39  ;;  %v9360_v34 = vld [vmem:[%s16215_s10 + $0xbb0] sm:$0xff]  ;;  %v9357_v39 = vld [vmem:[%s16215_s10 + $0xb98] sm:$0xff] }
 0x71f   : > { %12646 = vmatprep.subr.bf16.mxu1 %v14843_v46  ;;  %v9361_v46 = vld [vmem:[%s16215_s10 + $0xbb8] sm:$0xff]  ;;  %v14897_v24 = vcombine.high %v9356_v29, %v9360_v34  ;;  %v14896_v58 = vcombine.low %v9356_v29, %v9360_v34  ;;  %v9408_v40 = vld [vmem:[%s16215_s10 + $0xd30] sm:$0xff] }
 0x720   : > { %v14899_v53 = vcombine.high %v9357_v39, %v9361_v46  ;;  %v14898_v8 = vcombine.low %v9357_v39, %v9361_v46  ;;  %v14945_v29 = vcombine.high %v9404_v35, %v9408_v40  ;;  %v15898_v39 = vmov 1983009808  }
 0x721   : > { %12483 = vmatpush1.bf16.msra.mxu0 %v14840_v56  ;;  %v9364_v56 = vld [vmem:[%s16215_s10 + $0xbd0] sm:$0xff]  ;;  %v12725_v46 = vunpack.c.l.s4 %v15898_v39  ;;  %v9449_v39 = vld [vmem:[%s16215_s10 + $0xe78] sm:$0xff] }
 0x722   : > { %12647 = vmatpush1.bf16.msra.mxu1 %v14842_v2  ;;  %12484 = vmatprep.subr.bf16.mxu0 %v14849_v12  ;;  %v9368_v2 = vld [vmem:[%s16215_s10 + $0xbf0] sm:$0xff]  ;;  %v9365_v12 = vld [vmem:[%s16215_s10 + $0xbd8] sm:$0xff] }
 0x723   : > { %12648 = vmatprep.subr.bf16.mxu1 %v14851_v10  ;;  %v9369_v10 = vld [vmem:[%s16215_s10 + $0xbf8] sm:$0xff]  ;;  %v14905_v6 = vcombine.high %v9364_v56, %v9368_v2  ;;  %v14904_v4 = vcombine.low %v9364_v56, %v9368_v2  ;;  %v14944_v56 = vcombine.low %v9404_v35, %v9408_v40 }
 0x724   : > { %v14907_v9 = vcombine.high %v9365_v12, %v9369_v10  ;;  %v14906_v59 = vcombine.low %v9365_v12, %v9369_v10  ;;  %v12726_v10 = vunpack.c.0.s8 %v12725_v46 }
 0x725   : > { %12485 = vmatpush1.bf16.msra.mxu0 %v14848_v52  ;;  %v9372_v52 = vld [vmem:[%s16215_s10 + $0xc10] sm:$0xff] }
 0x726   : > { %12649 = vmatpush1.bf16.msra.mxu1 %v14850_v13  ;;  %12486 = vmatprep.subr.bf16.mxu0 %v14857_v7  ;;  %v9376_v13 = vld [vmem:[%s16215_s10 + $0xc30] sm:$0xff]  ;;  %v9373_v7 = vld [vmem:[%s16215_s10 + $0xc18] sm:$0xff] }
 0x727   : > { %12650 = vmatprep.subr.bf16.mxu1 %v14859_v20  ;;  %v9377_v20 = vld [vmem:[%s16215_s10 + $0xc38] sm:$0xff]  ;;  %v14913_v50 = vcombine.high %v9372_v52, %v9376_v13 }
 0x728   : > { %v14915_v48 = vcombine.high %v9373_v7, %v9377_v20  ;;  %v14914_v38 = vcombine.low %v9373_v7, %v9377_v20 }
 0x729   : > { %12487 = vmatpush1.bf16.msra.mxu0 %v14856_v23  ;;  %v9380_v23 = vld [vmem:[%s16215_s10 + $0xc50] sm:$0xff] }
 0x72a   : > { %12651 = vmatpush1.bf16.msra.mxu1 %v14858_v25  ;;  %12488 = vmatprep.subr.bf16.mxu0 %v14865_v14  ;;  %v9384_v25 = vld [vmem:[%s16215_s10 + $0xc70] sm:$0xff]  ;;  %v14912_v14 = vcombine.low %v9372_v52, %v9376_v13  ;;  %v9425_v52 = vld [vmem:[%s16215_s10 + $0xdb8] sm:$0xff] }
 0x72b   : > { %12652 = vmatprep.subr.bf16.mxu1 %v14867_v33  ;;  %v9381_v33 = vld [vmem:[%s16215_s10 + $0xc58] sm:$0xff]  ;;  %v14921_v22 = vcombine.high %v9380_v23, %v9384_v25  ;;  %v14920_v11 = vcombine.low %v9380_v23, %v9384_v25  ;;  %v9428_v23 = vld [vmem:[%s16215_s10 + $0xdd0] sm:$0xff] }
 0x72c   : > { %v14922_v32 = vcombine.low %v9381_v33, %v9385_v36  ;;  %v9432_v25 = vld [vmem:[%s16215_s10 + $0xdf0] sm:$0xff] }
 0x72d   : > { %12489 = vmatpush1.bf16.msra.mxu0 %v14864_v3  ;;  %v9392_v3 = vld [vmem:[%s16215_s10 + $0xcb0] sm:$0xff]  ;;  %v14968_v35 = vcombine.low %v9428_v23, %v9432_v25 }
 0x72e   : > { %12653 = vmatpush1.bf16.msra.mxu1 %v14866_v61  ;;  %12490 = vmatprep.subr.bf16.mxu0 %v14873_v51  ;;  %v14923_v61 = vcombine.high %v9381_v33, %v9385_v36  ;;  %v9389_v51 = vld [vmem:[%s16215_s10 + $0xc98] sm:$0xff]  ;;  %v14929_v42 = vcombine.high %v9388_v47, %v9392_v3 }
 0x72f   : > { %12654 = vmatprep.subr.bf16.mxu1 %v14875_v60  ;;  %v9393_v60 = vld [vmem:[%s16215_s10 + $0xcb8] sm:$0xff] }
 0x730   : > { %v14931_v57 = vcombine.high %v9389_v51, %v9393_v60  ;;  %v14930_v62 = vcombine.low %v9389_v51, %v9393_v60  ;;  %v9429_v36 = vld [vmem:[%s16215_s10 + $0xdd8] sm:$0xff] }
 0x731   : > { %12491 = vmatpush1.bf16.msra.mxu0 %v14872_v43  ;;  %v9396_v43 = vld [vmem:[%s16215_s10 + $0xcd0] sm:$0xff] }
 0x732   : > { %12655 = vmatpush1.bf16.msra.mxu1 %v14874_v18  ;;  %12492 = vmatprep.subr.bf16.mxu0 %v14881_v44  ;;  %v9400_v18 = vld [vmem:[%s16215_s10 + $0xcf0] sm:$0xff]  ;;  %v9397_v44 = vld [vmem:[%s16215_s10 + $0xcd8] sm:$0xff] }
 0x733   : > { %12656 = vmatprep.subr.bf16.mxu1 %v14883_v28  ;;  %v14928_v28 = vcombine.low %v9388_v47, %v9392_v3  ;;  %v14937_v54 = vcombine.high %v9396_v43, %v9400_v18 }
 0x735   : > { %12493 = vmatpush1.bf16.msra.mxu0 %v14880_v26  ;;  %v9405_v26 = vld [vmem:[%s16215_s10 + $0xd18] sm:$0xff] }
 0x736   : > { %12657 = vmatpush1.bf16.msra.mxu1 %v14882_v21  ;;  %12494 = vmatprep.subr.bf16.mxu0 %v14889_v27  ;;  %v9409_v21 = vld [vmem:[%s16215_s10 + $0xd38] sm:$0xff]  ;;  %v14936_v27 = vcombine.low %v9396_v43, %v9400_v18 }
 0x737   : > { %12658 = vmatprep.subr.bf16.mxu1 %v14891_v19  ;;  %v14947_v34 = vcombine.high %v9405_v26, %v9409_v21  ;;  %v14946_v2 = vcombine.low %v9405_v26, %v9409_v21 }
 0x739   : > { %12495 = vmatpush1.bf16.msra.mxu0 %v14888_v1  ;;  %v9412_v1 = vld [vmem:[%s16215_s10 + $0xd50] sm:$0xff] }
 0x73a   : > { %12659 = vmatpush1.bf16.msra.mxu1 %v14890_v37  ;;  %12496 = vmatprep.subr.bf16.mxu0 %v14897_v24  ;;  %v9416_v37 = vld [vmem:[%s16215_s10 + $0xd70] sm:$0xff]  ;;  %v9413_v24 = vld [vmem:[%s16215_s10 + $0xd58] sm:$0xff] }
 0x73b   : > { %12660 = vmatprep.subr.bf16.mxu1 %v14899_v53  ;;  %v9417_v53 = vld [vmem:[%s16215_s10 + $0xd78] sm:$0xff]  ;;  %v14953_v12 = vcombine.high %v9412_v1, %v9416_v37  ;;  %v14952_v13 = vcombine.low %v9412_v1, %v9416_v37 }
 0x73c   : > { %v14954_v7 = vcombine.low %v9413_v24, %v9417_v53 }
 0x73d   : > { %12497 = vmatpush1.bf16.msra.mxu0 %v14896_v58  ;;  %v14955_v58 = vcombine.high %v9413_v24, %v9417_v53  ;;  %v9452_v53 = vld [vmem:[%s16215_s10 + $0xe90] sm:$0xff] }
 0x73e   : > { %12661 = vmatpush1.bf16.msra.mxu1 %v14898_v8  ;;  %12498 = vmatprep.subr.bf16.mxu0 %v14905_v6  ;;  %v9420_v8 = vld [vmem:[%s16215_s10 + $0xd90] sm:$0xff] }
 0x73f   : > { %12662 = vmatprep.subr.bf16.mxu1 %v14907_v9  ;;  %v9424_v6 = vld [vmem:[%s16215_s10 + $0xdb0] sm:$0xff]  ;;  %v9421_v9 = vld [vmem:[%s16215_s10 + $0xd98] sm:$0xff] }
 0x740   : > { %v14961_v20 = vcombine.high %v9420_v8, %v9424_v6  ;;  %v14960_v51 = vcombine.low %v9420_v8, %v9424_v6 }
 0x741   : > { %12499 = vmatpush1.bf16.msra.mxu0 %v14904_v4 }
 0x742   : > { %12663 = vmatpush1.bf16.msra.mxu1 %v14906_v59  ;;  %12509 = vmatprep.subr.bf16.mxu0 %v14913_v50  ;;  %v18174_v50 = vsub.s32 %v12726_v10, %v16437_v55 }
 0x743   : > { %12673 = vmatprep.subr.bf16.mxu1 %v14915_v48  ;;  %v14963_v48 = vcombine.high %v9421_v9, %v9425_v52 }
 0x744   : > { %12501 = vmatmul.mubr.bf16.vlgmr.msra.gmra.mrb[12].mxu0 %v17864_v63 }
 0x745   : > { %12665 = vmatmul.mubr.bf16.vlgmr.msra.gmra.mrb[12].mxu1 %v17864_v63  ;;  %12510 = vmatpush1.bf16.msra.mxu0 %v14912_v14  ;;  %v9401_v63 = vld [vmem:[%s16215_s10 + $0xcf8] sm:$0xff] }
 0x746   : > { %12541 = vmatprep.mubr.bf16.mxu0 %v17872_v5  ;;  %12674 = vmatpush1.bf16.msra.mxu1 %v14914_v38  ;;  %v14938_v19 = vcombine.low %v9397_v44, %v9401_v63  ;;  %v9433_v38 = vld [vmem:[%s16215_s10 + $0xdf8] sm:$0xff] }
 0x747   : > { %12705 = vmatprep.mubr.bf16.mxu1 %v17872_v5  ;;  %12511 = vmatprep.subr.bf16.mxu0 %v14921_v22  ;;  %v14939_v5 = vcombine.high %v9397_v44, %v9401_v63  ;;  %v14971_v18 = vcombine.high %v9429_v36, %v9433_v38  ;;  %v9436_v44 = vld [vmem:[%s16215_s10 + $0xe10] sm:$0xff]  ;;  %v14970_v40 = vcombine.low %v9429_v36, %v9433_v38 }
 0x748   : > { %12675 = vmatprep.subr.bf16.mxu1 %v14923_v61  ;;  %v9440_v63 = vld [vmem:[%s16215_s10 + $0xe30] sm:$0xff] }
 0x749   : > { %12512 = vmatpush1.bf16.msra.mxu0 %v14920_v11  ;;  %v14977_v26 = vcombine.high %v9436_v44, %v9440_v63  ;;  %v14976_v46 = vcombine.low %v9436_v44, %v9440_v63  ;;  %v9485_v44 = vld [vmem:[%s16215_s10 + $0xf98] sm:$0xff] }
 0x74a   : > { %12676 = vmatpush1.bf16.msra.mxu1 %v14922_v32  ;;  %12513 = vmatprep.subr.bf16.mxu0 %v14929_v42  ;;  %v14962_v32 = vcombine.low %v9421_v9, %v9425_v52  ;;  %v14969_v42 = vcombine.high %v9428_v23, %v9432_v25  ;;  %v9460_v9 = vld [vmem:[%s16215_s10 + $0xed0] sm:$0xff]  ;;  %v9489_v63 = vld [vmem:[%s16215_s10 + $0xfb8] sm:$0xff] }
 0x74b   : > { %12677 = vmatprep.subr.bf16.mxu1 %v14931_v57  ;;  %v9464_v52 = vld [vmem:[%s16215_s10 + $0xef0] sm:$0xff] }
 0x74c   : > { %v9468_v23 = vld [vmem:[%s16215_s10 + $0xf10] sm:$0xff]  ;;  %v15000_v36 = vcombine.low %v9460_v9, %v9464_v52 }
 0x74d   : > { %12514 = vmatpush1.bf16.msra.mxu0 %v14928_v28  ;;  %v8976_v28 = vld [vmem:[#allocation3] sm:$0xff]  ;;  %v9472_v25 = vld [vmem:[%s16215_s10 + $0xf30] sm:$0xff] }
 0x74e   : > { %12678 = vmatpush1.bf16.msra.mxu1 %v14930_v62  ;;  %12515 = vmatprep.subr.bf16.mxu0 %v14937_v54  ;;  %v9437_v62 = vld [vmem:[%s16215_s10 + $0xe18] sm:$0xff] }
 0x74f   : > { %12679 = vmatprep.subr.bf16.mxu1 %v14939_v5  ;;  %v9441_v54 = vld [vmem:[%s16215_s10 + $0xe38] sm:$0xff] }
 0x750   : > { %v14978_v1 = vcombine.low %v9437_v62, %v9441_v54 }
 0x751   : > { %12516 = vmatpush1.bf16.msra.mxu0 %v14936_v27  ;;  %v14979_v27 = vcombine.high %v9437_v62, %v9441_v54 }
 0x752   : > { %12680 = vmatpush1.bf16.msra.mxu1 %v14938_v19  ;;  %12517 = vmatprep.subr.bf16.mxu0 %v14945_v29  ;;  %v9444_v19 = vld [vmem:[%s16215_s10 + $0xe50] sm:$0xff] }
 0x753   : > { %12681 = vmatprep.subr.bf16.mxu1 %v14947_v34  ;;  %v9448_v29 = vld [vmem:[%s16215_s10 + $0xe70] sm:$0xff]  ;;  %v9445_v34 = vld [vmem:[%s16215_s10 + $0xe58] sm:$0xff] }
 0x754   : > { %v14985_v37 = vcombine.high %v9444_v19, %v9448_v29  ;;  %v14987_v24 = vcombine.high %v9445_v34, %v9449_v39  ;;  %v14984_v10 = vcombine.low %v9444_v19, %v9448_v29  ;;  %v15026_v19 = vcombine.low %v9485_v44, %v9489_v63 }
 0x755   : > { %12518 = vmatpush1.bf16.msra.mxu0 %v14944_v56  ;;  %v9456_v56 = vld [vmem:[%s16215_s10 + $0xeb0] sm:$0xff] }
 0x756   : > { %12682 = vmatpush1.bf16.msra.mxu1 %v14946_v2  ;;  %12519 = vmatprep.subr.bf16.mxu0 %v14953_v12  ;;  %v9453_v2 = vld [vmem:[%s16215_s10 + $0xe98] sm:$0xff]  ;;  %v14993_v8 = vcombine.high %v9452_v53, %v9456_v56 }
 0x757   : > { %v12215_v4 = vpop.f32.mrb[8].mxu0  ;;  %v12379_v59 = vpop.f32.mrb[8].mxu1  ;;  %12683 = vmatprep.subr.bf16.mxu1 %v14955_v58  ;;  %v9457_v12 = vld [vmem:[%s16215_s10 + $0xeb8] sm:$0xff]  ;;  %v14986_v58 = vcombine.low %v9445_v34, %v9449_v39 }
 0x758   : > { %v12217_v14 = vpop.f32.mrb[9].mxu0  ;;  %v12381_v33 = vpop.f32.mrb[9].mxu1  ;;  %v14995_v6 = vcombine.high %v9453_v2, %v9457_v12 }
 0x759   : > { %v12722_v22 = vcombine.low %v12215_v4, %v12217_v14  ;;  %v12723_v47 = vcombine.low %v12379_v59, %v12381_v33  ;;  %v12219_v3 = vpop.f32.mrb[10].mxu0  ;;  %v12383_v61 = vpop.f32.mrb[10].mxu1  ;;  %12520 = vmatpush1.bf16.msra.mxu0 %v14952_v13  ;;  %v9461_v13 = vld [vmem:[%s16215_s10 + $0xed8] sm:$0xff]  ;;  %v14994_v4 = vcombine.low %v9453_v2, %v9457_v12  ;;  %v15001_v59 = vcombine.high %v9460_v9, %v9464_v52  ;;  %v8977_v52 = vld [vmem:[#allocation3 + $0x8] sm:$0xff] }
 0x75a   : > { %12684 = vmatpush1.bf16.msra.mxu1 %v14954_v7  ;;  %v12220_v60 = vpop.f32.mrb[11].mxu0  ;;  %v12384_v11 = vpop.f32.mrb[11].mxu1  ;;  %12521 = vmatprep.subr.bf16.mxu0 %v14961_v20  ;;  %v9465_v7 = vld [vmem:[%s16215_s10 + $0xef8] sm:$0xff]  ;;  %v14992_v20 = vcombine.low %v9452_v53, %v9456_v56  ;;  %v9476_v3 = vld [vmem:[%s16215_s10 + $0xf50] sm:$0xff] }
 0x75b   : > { %v12730_v57 = vrot.slane %v12722_v22, %v18174_v50  ;;  %v12737_v43 = vrot.slane %v12723_v47, %v18174_v50  ;;  %12685 = vmatprep.subr.bf16.mxu1 %v14963_v48  ;;  %v15003_v48 = vcombine.high %v9461_v13, %v9465_v7  ;;  %v9469_v14 = vld [vmem:[%s16215_s10 + $0xf18] sm:$0xff]  ;;  %v15002_v38 = vcombine.low %v9461_v13, %v9465_v7  ;;  %v9480_v61 = vld [vmem:[%s16215_s10 + $0xf70] sm:$0xff] }
 0x75c   : > { %v9473_v33 = vld [vmem:[%s16215_s10 + $0xf38] sm:$0xff]  ;;  %v15009_v22 = vcombine.high %v9468_v23, %v9472_v25  ;;  %v15008_v11 = vcombine.low %v9468_v23, %v9472_v25  ;;  %v12890_v23 = vld [vmem:[#allocation13 + $0x180] sm:$0xff] (!%p15036_p8)  ;;  %v12891_v25 = vld [vmem:[#allocation13 + $0x188] sm:$0xff] (!%p15036_p8) }
 0x75d   : > { %v12738_v5 = vcombine.low %v12730_v57, %v12737_v43  ;;  %12522 = vmatpush1.bf16.msra.mxu0 %v14960_v51  ;;  %v15011_v47 = vcombine.high %v9469_v14, %v9473_v33  ;;  %v9477_v51 = vld [vmem:[%s16215_s10 + $0xf58] sm:$0xff]  ;;  %v9484_v43 = vld [vmem:[%s16215_s10 + $0xf90] sm:$0xff] }
 0x75e   : > { %12686 = vmatpush1.bf16.msra.mxu1 %v14962_v32  ;;  %12523 = vmatprep.subr.bf16.mxu0 %v14969_v42  ;;  %v9481_v60 = vld [vmem:[%s16215_s10 + $0xf78] sm:$0xff]  ;;  %v15010_v32 = vcombine.low %v9469_v14, %v9473_v33  ;;  %v15017_v42 = vcombine.high %v9476_v3, %v9480_v61  ;;  %v15218_v33 = vpack.c.bf16 (!%p15036_p8), %v12891_v25, %v12890_v23  ;;  %v12869_v23 = vld [vmem:[#allocation13 + $0xd8] sm:$0xff] (!%p15036_p8) }
 0x75f   : > { %v12758_v21 = vadd.f32 %v12738_v5, %v8976_v28  ;;  %12687 = vmatprep.subr.bf16.mxu1 %v14971_v18  ;;  %v15019_v57 = vcombine.high %v9477_v51, %v9481_v60  ;;  %v9488_v18 = vld [vmem:[%s16215_s10 + $0xfb0] sm:$0xff]  ;;  %v15016_v28 = vcombine.low %v9476_v3, %v9480_v61  ;;  %v15018_v62 = vcombine.low %v9477_v51, %v9481_v60  ;;  %v12861_v3 = vld [vmem:[#allocation13 + $0x98] sm:$0xff] (!%p15036_p8)  ;;  %v12844_v61 = vld [vmem:[#allocation13 + $0x10] sm:$0xff] (!%p15036_p8) }
 0x760   : > { %v15025_v54 = vcombine.high %v9484_v43, %v9488_v18  ;;  %v15027_v5 = vcombine.high %v9485_v44, %v9489_v63  ;;  %v12845_v51 = vld [vmem:[#allocation13 + $0x18] sm:$0xff] (!%p15036_p8)  ;;  %v12862_v44 = vld [vmem:[#allocation13 + $0xa0] sm:$0xff] (!%p15036_p8)  ;;  %v12863_v63 = vld [vmem:[#allocation13 + $0xa8] sm:$0xff] (!%p15036_p8) }
 0x761   : > { %12760 = vst [vmem:[#allocation3] sm:$0xff] %v12758_v21  ;;  %12524 = vmatpush1.bf16.msra.mxu0 %v14968_v35  ;;  %v9492_v35 = vld [vmem:[%s16215_s10 + $0xfd0] sm:$0xff]  ;;  %v9497_v21 = vld [vmem:[%s16215_s10 + $0xff8] sm:$0xff] }
 0x762   : > { %12688 = vmatpush1.bf16.msra.mxu1 %v14970_v40  ;;  %12525 = vmatprep.subr.bf16.mxu0 %v14977_v26  ;;  %v9496_v40 = vld [vmem:[%s16215_s10 + $0xff0] sm:$0xff]  ;;  %v9493_v26 = vld [vmem:[%s16215_s10 + $0xfd8] sm:$0xff] }
 0x763   : > { %12689 = vmatprep.subr.bf16.mxu1 %v14979_v27  ;;  %v15024_v27 = vcombine.low %v9484_v43, %v9488_v18  ;;  %v15033_v29 = vcombine.high %v9492_v35, %v9496_v40  ;;  %v15035_v34 = vcombine.high %v9493_v26, %v9497_v21  ;;  %v15032_v39 = vcombine.low %v9492_v35, %v9496_v40  ;;  %v12877_v18 = vld [vmem:[#allocation13 + $0x118] sm:$0xff] (!%p15036_p8)  ;;  %v12894_v35 = vld [vmem:[#allocation13 + $0x1a0] sm:$0xff] (!%p15036_p8)  ;;  %v12895_v40 = vld [vmem:[#allocation13 + $0x1a8] sm:$0xff] (!%p15036_p8) }
 0x764   : > { %v12900_v25 = vld [vmem:[#allocation13 + $0x1d0] sm:$0xff] (!%p15036_p8) }
 0x765   : > { %12526 = vmatpush1.bf16.msra.mxu0 %v14976_v46  ;;  %v15034_v46 = vcombine.low %v9493_v26, %v9497_v21  ;;  %v12878_v26 = vld [vmem:[#allocation13 + $0x120] sm:$0xff] (!%p15036_p8)  ;;  %v12879_v21 = vld [vmem:[#allocation13 + $0x128] sm:$0xff] (!%p15036_p8) }
 0x766   : > { %12690 = vmatpush1.bf16.msra.mxu1 %v14978_v1  ;;  %12527 = vmatprep.subr.bf16.mxu0 %v14985_v37 }
 0x767   : > { %12691 = vmatprep.subr.bf16.mxu1 %v14987_v24 }
 0x769   : > { %12528 = vmatpush1.bf16.msra.mxu0 %v14984_v10 }
 0x76a   : > { %12692 = vmatpush1.bf16.msra.mxu1 %v14986_v58  ;;  %12529 = vmatprep.subr.bf16.mxu0 %v14993_v8 }
 0x76b   : > { %12693 = vmatprep.subr.bf16.mxu1 %v14995_v6 }
 0x76d   : > { %12530 = vmatpush1.bf16.msra.mxu0 %v14992_v20  ;;  %v12859_v20 = vld [vmem:[#allocation13 + $0x88] sm:$0xff] (!%p15036_p8) }
 0x76e   : > { %12694 = vmatpush1.bf16.msra.mxu1 %v14994_v4  ;;  %12531 = vmatprep.subr.bf16.mxu0 %v15001_v59  ;;  %v12842_v4 = vld [vmem:[#allocation13] sm:$0xff] (!%p15036_p8) }
 0x76f   : > { %12695 = vmatprep.subr.bf16.mxu1 %v15003_v48  ;;  %v12843_v48 = vld [vmem:[#allocation13 + $0x8] sm:$0xff] (!%p15036_p8) }
 0x770   : > { %v15188_v14 = vpack.c.bf16 (!%p15036_p8), %v12843_v48, %v12842_v4  ;;  %v12868_v48 = vld [vmem:[#allocation13 + $0xd0] sm:$0xff] (!%p15036_p8) }
 0x771   : > { %12532 = vmatpush1.bf16.msra.mxu0 %v15000_v36  ;;  %v12874_v36 = vld [vmem:[#allocation13 + $0x100] sm:$0xff] (!%p15036_p8) }
 0x772   : > { %12696 = vmatpush1.bf16.msra.mxu1 %v15002_v38  ;;  %12533 = vmatprep.subr.bf16.mxu0 %v15009_v22  ;;  %v12875_v38 = vld [vmem:[#allocation13 + $0x108] sm:$0xff] (!%p15036_p8)  ;;  %v12860_v22 = vld [vmem:[#allocation13 + $0x90] sm:$0xff] (!%p15036_p8) }
 0x773   : > { %12697 = vmatprep.subr.bf16.mxu1 %v15011_v47  ;;  %v15220_v47 = vpack.c.bf16 (!%p15036_p8), %v12875_v38, %v12874_v36  ;;  %v15190_v60 = vpack.c.bf16 (!%p15036_p8), %v12861_v3, %v12860_v22  ;;  %v15206_v38 = vpack.c.bf16 (!%p15036_p8), %v12869_v23, %v12868_v48  ;;  %v12852_v22 = vld [vmem:[#allocation13 + $0x50] sm:$0xff] (!%p15036_p8) }
 0x774   : > { %v12884_v3 = vld [vmem:[#allocation13 + $0x150] sm:$0xff] (!%p15036_p8) }
 0x775   : > { %12534 = vmatpush1.bf16.msra.mxu0 %v15008_v11  ;;  %v15192_v11 = vpack.c.bf16 (!%p15036_p8), %v12845_v51, %v12844_v61  ;;  %v12885_v51 = vld [vmem:[#allocation13 + $0x158] sm:$0xff] (!%p15036_p8) }
 0x776   : > { %12698 = vmatpush1.bf16.msra.mxu1 %v15010_v32  ;;  %12535 = vmatprep.subr.bf16.mxu0 %v15017_v42  ;;  %v12892_v32 = vld [vmem:[#allocation13 + $0x190] sm:$0xff] (!%p15036_p8)  ;;  %v12893_v42 = vld [vmem:[#allocation13 + $0x198] sm:$0xff] (!%p15036_p8) }
 0x777   : > { %12699 = vmatprep.subr.bf16.mxu1 %v15019_v57  ;;  %v12876_v57 = vld [vmem:[#allocation13 + $0x110] sm:$0xff] (!%p15036_p8)  ;;  %v15222_v43 = vpack.c.bf16 (!%p15036_p8), %v12893_v42, %v12892_v32  ;;  %v12902_v32 = vld [vmem:[#allocation13 + $0x1e0] sm:$0xff] (!%p15036_p8)  ;;  %v12903_v42 = vld [vmem:[#allocation13 + $0x1e8] sm:$0xff] (!%p15036_p8) }
 0x779   : > { %12536 = vmatpush1.bf16.msra.mxu0 %v15016_v28  ;;  %v15224_v28 = vpack.c.bf16 (!%p15036_p8), %v12877_v18, %v12876_v57  ;;  %v15240_v18 = vpack.c.bf16 (!%p15036_p8), %v12885_v51, %v12884_v3 }
 0x77a   : > { %12700 = vmatpush1.bf16.msra.mxu1 %v15018_v62  ;;  %12537 = vmatprep.subr.bf16.mxu0 %v15025_v54  ;;  %v15194_v62 = vpack.c.bf16 (!%p15036_p8), %v12863_v63, %v12862_v44  ;;  %v12846_v54 = vld [vmem:[#allocation13 + $0x20] sm:$0xff] (!%p15036_p8)  ;;  %v12855_v63 = vld [vmem:[#allocation13 + $0x68] sm:$0xff] (!%p15036_p8) }
 0x77b   : > { %12701 = vmatprep.subr.bf16.mxu1 %v15027_v5  ;;  %v12847_v5 = vld [vmem:[#allocation13 + $0x28] sm:$0xff] (!%p15036_p8) }
 0x77d   : > { %12538 = vmatpush1.bf16.msra.mxu0 %v15024_v27  ;;  %v15196_v27 = vpack.c.bf16 (!%p15036_p8), %v12847_v5, %v12846_v54  ;;  %v15242_v54 = vpack.c.bf16 (!%p15036_p8), %v12903_v42, %v12902_v32  ;;  %v12887_v5 = vld [vmem:[#allocation13 + $0x168] sm:$0xff] (!%p15036_p8)  ;;  %v12957_v32 = vld [vmem:[#allocation13 + $0x398] sm:$0xff] (!%p15036_p8) }
 0x77e   : > { %12702 = vmatpush1.bf16.msra.mxu1 %v15026_v19  ;;  %12539 = vmatprep.subr.bf16.mxu0 %v15033_v29  ;;  %v15226_v19 = vpack.c.bf16 (!%p15036_p8), %v12895_v40, %v12894_v35  ;;  %v12864_v29 = vld [vmem:[#allocation13 + $0xb0] sm:$0xff] (!%p15036_p8)  ;;  %v12873_v40 = vld [vmem:[#allocation13 + $0xf8] sm:$0xff] (!%p15036_p8) }
 0x77f   : > { %12703 = vmatprep.subr.bf16.mxu1 %v15035_v34  ;;  %v12865_v34 = vld [vmem:[#allocation13 + $0xb8] sm:$0xff] (!%p15036_p8)  ;;  %v12872_v35 = vld [vmem:[#allocation13 + $0xf0] sm:$0xff] (!%p15036_p8) }
 0x781   : > { %12540 = vmatpush1.bf16.msra.mxu0 %v15032_v39  ;;  %v12848_v39 = vld [vmem:[#allocation13 + $0x30] sm:$0xff] (!%p15036_p8) }
 0x782   : > { %12704 = vmatpush1.bf16.msra.mxu1 %v15034_v46  ;;  %v15228_v46 = vpack.c.bf16 (!%p15036_p8), %v12879_v21, %v12878_v26 }
 0x783   : > { %15219 = vmatprep.subr.bf16.mxu1 (!%p15036_p8), %v15218_v33 }
 0x784   : > { %12542 = vmatmul.mubr.bf16.vlgmr.msra.gmra.mrb[12].mxu0 %v17943_v31 }
 0x785   : > { %12706 = vmatmul.mubr.bf16.vlgmr.msra.gmra.mrb[12].mxu1 %v17943_v31  ;;  %v12858_v31 = vld [vmem:[#allocation13 + $0x80] sm:$0xff] (!%p15036_p8) }
 0x786   : > { %v15186_v59 = vpack.c.bf16 (!%p15036_p8), %v12859_v20, %v12858_v31  ;;  %15221 = vmatpush3.bf16.msra.mxu1 (!%p15036_p8), %v15220_v47  ;;  %v12851_v31 = vld [vmem:[#allocation13 + $0x48] sm:$0xff] (!%p15036_p8)  ;;  %v12882_v20 = vld [vmem:[#allocation13 + $0x140] sm:$0xff] (!%p15036_p8)  ;;  %v12853_v47 = vld [vmem:[#allocation13 + $0x58] sm:$0xff] (!%p15036_p8) }
 0x787   : > { %15223 = vmatprep.subr.bf16.mxu1 (!%p15036_p8), %v15222_v43  ;;  %v15208_v57 = vpack.c.bf16 (!%p15036_p8), %v12853_v47, %v12852_v22  ;;  %v12854_v43 = vld [vmem:[#allocation13 + $0x60] sm:$0xff] (!%p15036_p8)  ;;  %v12939_v22 = vld [vmem:[#allocation13 + $0x308] sm:$0xff] (!%p15036_p8) }
 0x788   : > { %15187 = vmatprep.subr.bf16.mxu0 (!%p15036_p8), %v15186_v59  ;;  %v12883_v59 = vld [vmem:[#allocation13 + $0x148] sm:$0xff] (!%p15036_p8) }
 0x789   : > { %15189 = vmatpush3.bf16.msra.mxu0 (!%p15036_p8), %v15188_v14  ;;  %v12901_v14 = vld [vmem:[#allocation13 + $0x1d8] sm:$0xff] (!%p15036_p8)  ;;  %v15236_v36 = vpack.c.bf16 (!%p15036_p8), %v12883_v59, %v12882_v20 }
 0x78a   : > { %15191 = vmatprep.subr.bf16.mxu0 (!%p15036_p8), %v15190_v60  ;;  %15225 = vmatpush3.bf16.msra.mxu1 (!%p15036_p8), %v15224_v28  ;;  %v15238_v61 = vpack.c.bf16 (!%p15036_p8), %v12901_v14, %v12900_v25  ;;  %v12870_v60 = vld [vmem:[#allocation13 + $0xe0] sm:$0xff] (!%p15036_p8) }
 0x78b   : > { %15227 = vmatprep.subr.bf16.mxu1 (!%p15036_p8), %v15226_v19  ;;  %v12886_v28 = vld [vmem:[#allocation13 + $0x160] sm:$0xff] (!%p15036_p8)  ;;  %v12904_v19 = vld [vmem:[#allocation13 + $0x1f0] sm:$0xff] (!%p15036_p8) }
 0x78d   : > { %15193 = vmatpush3.bf16.msra.mxu0 (!%p15036_p8), %v15192_v11  ;;  %v12871_v11 = vld [vmem:[#allocation13 + $0xe8] sm:$0xff] (!%p15036_p8) }
 0x78e   : > { %15195 = vmatprep.subr.bf16.mxu0 (!%p15036_p8), %v15194_v62  ;;  %15229 = vmatpush3.bf16.msra.mxu1 (!%p15036_p8), %v15228_v46  ;;  %v15210_v44 = vpack.c.bf16 (!%p15036_p8), %v12871_v11, %v12870_v60  ;;  %v12768_v62 = vld [vmem:[#allocation12] sm:$0xff] (!%p15036_p8)  ;;  %v12856_v46 = vld [vmem:[#allocation13 + $0x70] sm:$0xff] (!%p15036_p8) }
 0x78f   : > { %v12773_v26 = vrot.slane (!%p15036_p8), %v12768_v62, %v2382_v16  ;;  %v12777_v21 = vrot.slane (!%p15036_p8), %v12768_v62, %v2386_v0  ;;  %v15214_v16 = vpack.c.bf16 (!%p15036_p8), %v12873_v40, %v12872_v35  ;;  %v12956_v11 = vld [vmem:[#allocation13 + $0x390] sm:$0xff] (!%p15036_p8) }
 0x791   : > { %15197 = vmatpush3.bf16.msra.mxu0 (!%p15036_p8), %v15196_v27  ;;  %v12781_v27 = vrot.slane (!%p15036_p8), %v12768_v62, %v2390_v30 }
 0x857   : > { %v12543_v1 = vpop.f32.mrb[12].mxu0 }
 0x858   : > { %v12707_v37 = vpop.f32.mrb[12].mxu1  ;;  %v12545_v24 = vpop.f32.mrb[13].mxu0 }
 0x859   : > { %v12739_v53 = vcombine.low %v12543_v1, %v12545_v24  ;;  %v12709_v56 = vpop.f32.mrb[13].mxu1  ;;  %v12547_v2 = vpop.f32.mrb[14].mxu0  ;;  %v15198_v1 = vpack.c.bf16 (!%p15036_p8), %v12865_v34, %v12864_v29  ;;  %v12896_v24 = vld [vmem:[#allocation13 + $0x1b0] sm:$0xff] (!%p15036_p8)  ;;  %v12905_v29 = vld [vmem:[#allocation13 + $0x1f8] sm:$0xff] (!%p15036_p8)  ;;  %v12785_v34 = vrot.slane (!%p15036_p8), %v12768_v62, %v2394_v15 }
 0x85a   : > { %v12740_v12 = vcombine.low %v12707_v37, %v12709_v56  ;;  %v12711_v10 = vpop.f32.mrb[14].mxu1  ;;  %v12548_v58 = vpop.f32.mrb[15].mxu0  ;;  %v12849_v37 = vld [vmem:[#allocation13 + $0x38] sm:$0xff] (!%p15036_p8)  ;;  %v12880_v2 = vld [vmem:[#allocation13 + $0x130] sm:$0xff] (!%p15036_p8)  ;;  %v15246_v0 = vpack.c.bf16 (!%p15036_p8), %v12905_v29, %v12904_v19  ;;  %v12910_v19 = vld [vmem:[#allocation13 + $0x220] sm:$0xff] (!%p15036_p8) }
 0x85b   : > { %v12747_v8 = vrot.slane %v12739_v53, %v18174_v50  ;;  %v12712_v6 = vpop.f32.mrb[15].mxu1  ;;  %v12897_v53 = vld [vmem:[#allocation13 + $0x1b8] sm:$0xff] (!%p15036_p8)  ;;  %v12866_v10 = vld [vmem:[#allocation13 + $0xc0] sm:$0xff] (!%p15036_p8)  ;;  %v12867_v58 = vld [vmem:[#allocation13 + $0xc8] sm:$0xff] (!%p15036_p8)  ;;  %15199 = vmatprep.subr.bf16.mxu0 (!%p15036_p8), %v15198_v1 }
 0x85c   : > { %v12754_v9 = vrot.slane %v12740_v12, %v18174_v50  ;;  %12765 = sbr.rel (%p15036_p8) target bundleno = 2730 (0xaaa), region = 84  ;;  %v15230_v56 = vpack.c.bf16 (!%p15036_p8), %v12897_v53, %v12896_v24  ;;  %v12881_v12 = vld [vmem:[#allocation13 + $0x138] sm:$0xff] (!%p15036_p8)  ;;  %v12898_v6 = vld [vmem:[#allocation13 + $0x1c0] sm:$0xff] (!%p15036_p8)  ;;  %v15244_v24 = vpack.c.bf16 (!%p15036_p8), %v12887_v5, %v12886_v28  ;;  %v12888_v53 = vld [vmem:[#allocation13 + $0x170] sm:$0xff] (!%p15036_p8) }
 0x85d   : > { %v12857_v1 = vld [vmem:[#allocation13 + $0x78] sm:$0xff] (!%p15036_p8)  ;;  %v12927_v28 = vld [vmem:[#allocation13 + $0x2a8] sm:$0xff] (!%p15036_p8) }
 0x85e   : > { %v12755_v13 = vcombine.low %v12747_v8, %v12754_v9  ;;  %v15200_v8 = vpack.c.bf16 (!%p15036_p8), %v12849_v37, %v12848_v39  ;;  %v12899_v9 = vld [vmem:[#allocation13 + $0x1c8] sm:$0xff] (!%p15036_p8)  ;;  %15231 = vmatprep.subr.bf16.mxu1 (!%p15036_p8), %v15230_v56  ;;  %v15212_v39 = vpack.c.bf16 (!%p15036_p8), %v12855_v63, %v12854_v43  ;;  %v12802_v37 = vcombine.low (!%p15036_p8), %v12773_v26, %v12777_v21  ;;  %v12909_v43 = vld [vmem:[#allocation13 + $0x218] sm:$0xff] (!%p15036_p8)  ;;  %v12926_v63 = vld [vmem:[#allocation13 + $0x2a0] sm:$0xff] (!%p15036_p8) }
 0x85f   : > { %v15234_v4 = vpack.c.bf16 (!%p15036_p8), %v12899_v9, %v12898_v6  ;;  %v12803_v56 = vcombine.low (!%p15036_p8), %v12781_v27, %v12785_v34  ;;  %v12955_v6 = vld [vmem:[#allocation13 + $0x388] sm:$0xff] (!%p15036_p8)  ;;  %v12766_v9 = vld [vmem:[#allocation3] sm:$0xff] (!%p15036_p8)  ;;  %v12958_v26 = vld [vmem:[#allocation13 + $0x3a0] sm:$0xff] (!%p15036_p8)  ;;  %v15258_v27 = vpack.c.bf16 (!%p15036_p8), %v12927_v28, %v12926_v63 }
 0x860   : > { %v12759_v7 = vadd.f32 %v12755_v13, %v8977_v52  ;;  %v15232_v52 = vpack.c.bf16 (!%p15036_p8), %v12881_v12, %v12880_v2  ;;  %v15202_v13 = vpack.c.bf16 (!%p15036_p8), %v12867_v58, %v12866_v10  ;;  %15201 = vmatpush3.bf16.msra.mxu0 (!%p15036_p8), %v15200_v8  ;;  %v12889_v2 = vld [vmem:[#allocation13 + $0x178] sm:$0xff] (!%p15036_p8)  ;;  %v12810_v30 = vrot.slane (!%p15036_p8), %v12802_v37, %v18174_v50  ;;  %v12922_v12 = vld [vmem:[#allocation13 + $0x280] sm:$0xff] (!%p15036_p8)  ;;  %v12923_v10 = vld [vmem:[#allocation13 + $0x288] sm:$0xff] (!%p15036_p8) }
 0x861   : > { %v15216_v58 = vpack.c.bf16 (!%p15036_p8), %v12857_v1, %v12856_v46  ;;  %v12817_v15 = vrot.slane (!%p15036_p8), %v12803_v56, %v18174_v50  ;;  %v12954_v8 = vld [vmem:[#allocation13 + $0x380] sm:$0xff] (!%p15036_p8)  ;;  %v15248_v20 = vpack.c.bf16 (!%p15036_p8), %v12889_v2, %v12888_v53  ;;  %v15250_v59 = vpack.c.bf16 (!%p15036_p8), %v12923_v10, %v12922_v12  ;;  %v12941_v5 = vld [vmem:[#allocation13 + $0x318] sm:$0xff] (!%p15036_p8)  ;;  %v12959_v21 = vld [vmem:[#allocation13 + $0x3a8] sm:$0xff] (!%p15036_p8) }
 0x862   : > { %12761 = vst [vmem:[#allocation3 + $0x8] sm:$0xff] %v12759_v7  ;;  %v12850_v7 = vld [vmem:[#allocation13 + $0x40] sm:$0xff] (!%p15036_p8)  ;;  %15233 = vmatpush3.bf16.msra.mxu1 (!%p15036_p8), %v15232_v52  ;;  %15203 = vmatprep.subr.bf16.mxu0 (!%p15036_p8), %v15202_v13  ;;  %v12789_v52 = vrot.slane (!%p15036_p8), %v12768_v62, %v2398_v41  ;;  %v12793_v13 = vrot.slane (!%p15036_p8), %v12768_v62, %v2402_v45  ;;  %v12911_v29 = vld [vmem:[#allocation13 + $0x228] sm:$0xff] (!%p15036_p8)  ;;  %v12929_v46 = vld [vmem:[#allocation13 + $0x2b8] sm:$0xff] (!%p15036_p8) }
 0x863   : > { %v15204_v33 = vpack.c.bf16 %v12851_v31, %v12850_v7  ;;  %15235 = vmatprep.subr.bf16.mxu1 %v15234_v4  ;;  %v12797_v7 = vrot.slane %v12768_v62, %v2406_v17  ;;  %v12801_v31 = vrot.slane %v12768_v62, %v2410_v49  ;;  %v12818_v4 = vcombine.low %v12810_v30, %v12817_v15  ;;  %v12906_v45 = vld [vmem:[#allocation13 + $0x200] sm:$0xff]  ;;  %v12924_v17 = vld [vmem:[#allocation13 + $0x290] sm:$0xff]  ;;  %v12961_v2 = vld [vmem:[#allocation13 + $0x3b8] sm:$0xff] }
 0x864   : > { %v15282_v48 = vpack.c.bf16 %v12955_v6, %v12954_v8  ;;  %v12819_v25 = vcombine.low %v12789_v52, %v12793_v13  ;;  %v15286_v62 = vpack.c.bf16 %v12957_v32, %v12956_v11  ;;  %v15290_v37 = vpack.c.bf16 %v12959_v21, %v12958_v26  ;;  %v12912_v12 = vld [vmem:[#allocation13 + $0x230] sm:$0xff]  ;;  %v12913_v10 = vld [vmem:[#allocation13 + $0x238] sm:$0xff]  ;;  %v12930_v8 = vld [vmem:[#allocation13 + $0x2c0] sm:$0xff] }
 0x865   : > { %15205 = vmatpush3.bf16.msra.mxu0 %v15204_v33  ;;  %v12838_v23 = vadd.f32 %v12818_v4, %v12766_v9  ;;  %v12820_v41 = vcombine.low %v12797_v7, %v12801_v31  ;;  %v12907_v33 = vld [vmem:[#allocation13 + $0x208] sm:$0xff]  ;;  %v15260_v56 = vpack.c.bf16 %v12911_v29, %v12910_v19  ;;  %v12944_v52 = vld [vmem:[#allocation13 + $0x330] sm:$0xff]  ;;  %v12945_v13 = vld [vmem:[#allocation13 + $0x338] sm:$0xff] }
 0x866   : > { %15237 = vmatpush3.bf16.msra.mxu1 %v15236_v36  ;;  %15207 = vmatprep.subr.bf16.mxu0 %v15206_v38  ;;  %v12925_v36 = vld [vmem:[#allocation13 + $0x298] sm:$0xff]  ;;  %v12938_v38 = vld [vmem:[#allocation13 + $0x300] sm:$0xff]  ;;  %v12827_v47 = vrot.slane %v12819_v25, %v18174_v50  ;;  %v15252_v60 = vpack.c.bf16 %v12907_v33, %v12906_v45  ;;  %v12931_v6 = vld [vmem:[#allocation13 + $0x2c8] sm:$0xff]  ;;  %v15296_v45 = vpack.c.bf16 %v12945_v13, %v12944_v52 }
 0x867   : > { %15239 = vmatprep.subr.bf16.mxu1 %v15238_v61  ;;  %v12840_v14 = vmax.f32 %v12838_v23, 0.0  ;;  %v12834_v3 = vrot.slane %v12820_v41, %v18174_v50  ;;  %v15254_v42 = vpack.c.bf16 %v12925_v36, %v12924_v17  ;;  %v12962_v4 = vld [vmem:[#allocation13 + $0x3c0] sm:$0xff]  ;;  %v12915_v25 = vld [vmem:[#allocation13 + $0x248] sm:$0xff]  ;;  %v12932_v33 = vld [vmem:[#allocation13 + $0x2d0] sm:$0xff] }
 0x868   : > { %v12914_v23 = vld [vmem:[#allocation13 + $0x240] sm:$0xff]  ;;  %v12947_v36 = vld [vmem:[#allocation13 + $0x348] sm:$0xff]  ;;  %v12968_v29 = vld [vmem:[#allocation13 + $0x3f0] sm:$0xff] }
 0x869   : > { %15209 = vmatpush3.bf16.msra.mxu0 %v15208_v57  ;;  %v12986_v55 = vrot.slane %v12840_v14, %v18174_v50  ;;  %v12979_v49 = vcombine.high %v12840_v14, %v12840_v14  ;;  %v12908_v57 = vld [vmem:[#allocation13 + $0x210] sm:$0xff]  ;;  %v12835_v35 = vcombine.low %v12827_v47, %v12834_v3  ;;  %v12767_v1 = vld [vmem:[#allocation3 + $0x8] sm:$0xff]  ;;  %v12965_v3 = vld [vmem:[#allocation13 + $0x3d8] sm:$0xff] }
 0x86a   : > { %15241 = vmatpush3.bf16.msra.mxu1 %v15240_v18  ;;  %15211 = vmatprep.subr.bf16.mxu0 %v15210_v44  ;;  %v15284_v44 = vpack.c.bf16 %v12939_v22, %v12938_v38  ;;  %v15256_v40 = vpack.c.bf16 %v12909_v43, %v12908_v57  ;;  %v12946_v17 = vld [vmem:[#allocation13 + $0x340] sm:$0xff]  ;;  %v15268_v22 = vpack.c.bf16 %v12915_v25, %v12914_v23  ;;  %v12964_v47 = vld [vmem:[#allocation13 + $0x3d0] sm:$0xff]  ;;  %v12935_v32 = vld [vmem:[#allocation13 + $0x2e8] sm:$0xff] }
 0x86b   : > { %15243 = vmatprep.subr.bf16.mxu1 %v15242_v54  ;;  %v12994_v61 = vcombine.high %v12986_v55, %v12986_v55  ;;  %v12993_v51 = vrot.slane %v12979_v49, %v18174_v50  ;;  %v12940_v54 = vld [vmem:[#allocation13 + $0x310] sm:$0xff]  ;;  %v12839_v53 = vadd.f32 %v12835_v35, %v12767_v1  ;;  %v12934_v11 = vld [vmem:[#allocation13 + $0x2e0] sm:$0xff]  ;;  %v12949_v43 = vld [vmem:[#allocation13 + $0x358] sm:$0xff] }
 0x86c   : > { %v15288_v34 = vpack.c.bf16 %v12941_v5, %v12940_v54  ;;  %v12948_v57 = vld [vmem:[#allocation13 + $0x350] sm:$0xff]  ;;  %v12967_v63 = vld [vmem:[#allocation13 + $0x3e8] sm:$0xff]  ;;  %v15274_v28 = vpack.c.bf16 %v12935_v32, %v12934_v11  ;;  %v12950_v21 = vld [vmem:[#allocation13 + $0x360] sm:$0xff] }
 0x86d   : > { %15213 = vmatpush3.bf16.msra.mxu0 %v15212_v39  ;;  %13085 = vmatprep.mubr.f32.mxu0 %v12994_v61  ;;  %v12995_v18 = vcombine.high %v12993_v51, %v12993_v51  ;;  %v12928_v39 = vld [vmem:[#allocation13 + $0x2b0] sm:$0xff]  ;;  %v12919_v54 = vld [vmem:[#allocation13 + $0x268] sm:$0xff]  ;;  %v15304_v5 = vpack.c.bf16 %v12949_v43, %v12948_v57  ;;  %v12921_v1 = vld [vmem:[#allocation13 + $0x278] sm:$0xff] }
 0x86e   : > { %15245 = vmatpush3.bf16.msra.mxu1 %v15244_v24  ;;  %15215 = vmatprep.subr.bf16.mxu0 %v15214_v16  ;;  %v12942_v24 = vld [vmem:[#allocation13 + $0x320] sm:$0xff]  ;;  %v12943_v16 = vld [vmem:[#allocation13 + $0x328] sm:$0xff]  ;;  %v15262_v30 = vpack.c.bf16 %v12929_v46, %v12928_v39  ;;  %v12936_v35 = vld [vmem:[#allocation13 + $0x2f0] sm:$0xff] }
 0x86f   : > { %15247 = vmatprep.subr.bf16.mxu1 %v15246_v0  ;;  %13155 = vmatprep.mubr.f32.mxu1 %v12995_v18  ;;  %v12960_v0 = vld [vmem:[#allocation13 + $0x3b0] sm:$0xff]  ;;  %v15292_v15 = vpack.c.bf16 %v12943_v16, %v12942_v24 }
 0x870   : > { %v15294_v9 = vpack.c.bf16 %v12961_v2, %v12960_v0  ;;  %v12920_v46 = vld [vmem:[#allocation13 + $0x270] sm:$0xff] }
 0x871   : > { %15217 = vmatpush3.bf16.msra.mxu0 %v15216_v58  ;;  %v12841_v58 = vmax.f32 %v12839_v53, 0.0  ;;  %v12952_v16 = vld [vmem:[#allocation13 + $0x370] sm:$0xff]  ;;  %v12953_v53 = vld [vmem:[#allocation13 + $0x378] sm:$0xff] }
 0x872   : > { %15249 = vmatpush3.bf16.msra.mxu1 %v15248_v20  ;;  %15251 = vmatprep.subr.bf16.mxu0 %v15250_v59  ;;  %v15264_v20 = vpack.c.bf16 %v12913_v10, %v12912_v12  ;;  %v12963_v59 = vld [vmem:[#allocation13 + $0x3c8] sm:$0xff]  ;;  %v15312_v0 = vpack.c.bf16 %v12953_v53, %v12952_v16 }
 0x873   : > { %15283 = vmatprep.subr.bf16.mxu1 %v15282_v48  ;;  %v18242_v7 = vrot.slane %v12841_v58, %v18174_v50  ;;  %v12996_v31 = vcombine.high %v12841_v58, %v12841_v58  ;;  %v15266_v48 = vpack.c.bf16 %v12931_v6, %v12930_v8  ;;  %v15298_v49 = vpack.c.bf16 %v12963_v59, %v12962_v4 }
 0x874   : > { %13086 = vmatmul.mubr.f32.vlgmr.msra.gmra.mrb[0].mxu0 %v12986_v55  ;;  %v12933_v55 = vld [vmem:[#allocation13 + $0x2d8] sm:$0xff] }
 0x875   : > { %15253 = vmatpush3.bf16.msra.mxu0 %v15252_v60  ;;  %13156 = vmatmul.mubr.f32.vlgmr.msra.gmra.mrb[0].mxu1 %v12993_v51  ;;  %v13011_v41 = vcombine.high %v18242_v7, %v18242_v7  ;;  %v18247_v14 = vrot.slane %v12996_v31, %v18174_v50  ;;  %v15270_v61 = vpack.c.bf16 %v12933_v55, %v12932_v33  ;;  %v12916_v50 = vld [vmem:[#allocation13 + $0x250] sm:$0xff]  ;;  %v12917_v51 = vld [vmem:[#allocation13 + $0x258] sm:$0xff] }
 0x876   : > { %15255 = vmatprep.subr.bf16.mxu0 %v15254_v42  ;;  %15285 = vmatpush3.bf16.msra.mxu1 %v15284_v44  ;;  %v15300_v60 = vpack.c.bf16 %v12947_v36, %v12946_v17  ;;  %v15302_v42 = vpack.c.bf16 %v12965_v3, %v12964_v47  ;;  %v15272_v18 = vpack.c.bf16 %v12917_v51, %v12916_v50  ;;  %v12966_v44 = vld [vmem:[#allocation13 + $0x3e0] sm:$0xff] }
 0x877   : > { %15287 = vmatprep.subr.bf16.mxu1 %v15286_v62  ;;  %13225 = vmatprep.mubr.f32.mxu0 %v13011_v41  ;;  %v13012_v38 = vcombine.high %v18247_v14, %v18247_v14  ;;  %v12918_v62 = vld [vmem:[#allocation13 + $0x260] sm:$0xff]  ;;  %v15306_v26 = vpack.c.bf16 %v12967_v63, %v12966_v44 }
 0x878   : > { %v15276_v19 = vpack.c.bf16 %v12919_v54, %v12918_v62 }
 0x879   : > { %15257 = vmatpush3.bf16.msra.mxu0 %v15256_v40  ;;  %13295 = vmatprep.mubr.f32.mxu1 %v13012_v38  ;;  %v12937_v40 = vld [vmem:[#allocation13 + $0x2f8] sm:$0xff] }
 0x87a   : > { %15259 = vmatprep.subr.bf16.mxu0 %v15258_v27  ;;  %15289 = vmatpush3.bf16.msra.mxu1 %v15288_v34  ;;  %v12951_v27 = vld [vmem:[#allocation13 + $0x368] sm:$0xff]  ;;  %v12969_v34 = vld [vmem:[#allocation13 + $0x3f8] sm:$0xff]  ;;  %v15278_v39 = vpack.c.bf16 %v12937_v40, %v12936_v35 }
 0x87b   : > { %15291 = vmatprep.subr.bf16.mxu1 %v15290_v37  ;;  %v15308_v37 = vpack.c.bf16 %v12951_v27, %v12950_v21  ;;  %v15310_v24 = vpack.c.bf16 %v12969_v34, %v12968_v29 }
 0x87d   : > { %15261 = vmatpush3.bf16.msra.mxu0 %v15260_v56  ;;  %v15280_v56 = vpack.c.bf16 %v12921_v1, %v12920_v46 }
 0x87e   : > { %15263 = vmatprep.subr.bf16.mxu0 %v15262_v30  ;;  %15293 = vmatpush3.bf16.msra.mxu1 %v15292_v15  ;;  %v15037_v30 = vld [vmem:[#allocation15] ss:$0 sm:$0xff] }
 0x87f   : > { %15295 = vmatprep.subr.bf16.mxu1 %v15294_v9 }
 0x881   : > { %15265 = vmatpush3.bf16.msra.mxu0 %v15264_v20 }
 0x882   : > { %15267 = vmatprep.subr.bf16.mxu0 %v15266_v48  ;;  %15297 = vmatpush3.bf16.msra.mxu1 %v15296_v45 }
 0x883   : > { %15299 = vmatprep.subr.bf16.mxu1 %v15298_v49 }
 0x885   : > { %15269 = vmatpush3.bf16.msra.mxu0 %v15268_v22 }
 0x886   : > { %15271 = vmatprep.subr.bf16.mxu0 %v15270_v61  ;;  %15301 = vmatpush3.bf16.msra.mxu1 %v15300_v60 }
 0x887   : > { %15303 = vmatprep.subr.bf16.mxu1 %v15302_v42 }
 0x889   : > { %15273 = vmatpush3.bf16.msra.mxu0 %v15272_v18 }
 0x88a   : > { %15275 = vmatprep.subr.bf16.mxu0 %v15274_v28  ;;  %15305 = vmatpush3.bf16.msra.mxu1 %v15304_v5 }
 0x88b   : > { %15307 = vmatprep.subr.bf16.mxu1 %v15306_v26 }
 0x88d   : > { %15277 = vmatpush3.bf16.msra.mxu0 %v15276_v19 }
 0x88e   : > { %15279 = vmatprep.subr.bf16.mxu0 %v15278_v39  ;;  %15309 = vmatpush3.bf16.msra.mxu1 %v15308_v37 }
 0x88f   : > { %15311 = vmatprep.subr.bf16.mxu1 %v15310_v24 }
 0x891   : > { %15281 = vmatpush3.bf16.msra.mxu0 %v15280_v56 }
 0x892   : > { %15313 = vmatpush3.bf16.msra.mxu1 %v15312_v0 }
 0x894   : > { %13226 = vmatmul.mubr.f32.vlgmr.msra.gmra.mrb[2].mxu0 %v18242_v7 }
 0x895   : > { %13296 = vmatmul.mubr.f32.vlgmr.msra.gmra.mrb[2].mxu1 %v18247_v14 }
 0x947   : > { %v15078_v2 = vpop.f32.mrb[0].mxu0 }
 0x948   : > { %v15079_v12 = vpop.f32.mrb[1].mxu0  ;;  %v15113_v58 = vpop.f32.mrb[0].mxu1 }
 0x949   : > { %v15080_v10 = vadd.f32 %v15079_v12, %v15078_v2  ;;  %v15114_v15 = vpop.f32.mrb[1].mxu1 }
 0x94a   : > { %v15115_v6 = vadd.f32 %v15114_v15, %v15113_v58 }
 0x94b   : > { %v13088_v8 = vadd.f32 %v15080_v10, %v15037_v30 }
 0x94d   : > { %v13158_v9 = vadd.f32 %v15115_v6, %v13088_v8 }
 0x967   : > { %v15148_v52 = vpop.f32.mrb[2].mxu0 }
 0x968   : > { %v15149_v13 = vpop.f32.mrb[3].mxu0  ;;  %v15183_v20 = vpop.f32.mrb[2].mxu1 }
 0x969   : > { %v15150_v31 = vadd.f32 %v15149_v13, %v15148_v52  ;;  %v15184_v4 = vpop.f32.mrb[3].mxu1 }
 0x96a   : > { %v15185_v48 = vadd.f32 %v15184_v4, %v15183_v20 }
 0x96b   : > { %v13228_v59 = vadd.f32 %v15150_v31, %v13158_v9 }
 0x96d   : > { %v13298_v7 = vadd.f32 %v15185_v48, %v13228_v59 }
 0x96f   : > { %v13302_v23 = vsel %vm13301_vm1, %v13298_v7, -inf }
 0x970   : > { %13303 = vmax.xlane.f32.xlu0 %v13302_v23 }
 0x9fd   : > { %v13304_v25 = vpop.xlane.xlu0 %13303 }
 0x9fe   : > { %v13305_v41 = vsub.f32 %v13298_v7, %v13304_v25 }
 0xa00   : > { %v13306_v14 = vmul.f32 1.442695, %v13305_v41 }
 0xa02   : > { %15593 = vpow2.f32 %v13306_v14 }
 0xa0c   : > { %v15594_v45 = vpop.eup %15593 }
 0xa0d   : > { %v13308_v33 = vsel %vm13301_vm1, %v15594_v45, 0.0 }
 0xa0e   : > { %13309 = vadd.xlane.f32.xlu0 %v13308_v33 }
 0xa9b   : > { %v13310_v55 = vpop.xlane.xlu0 %13309 }
 0xa9c   : > { %15595 = vrcp.f32 %v13310_v55 }
 0xaa6   : > { %v15596_v49 = vpop.eup %15595 }
 0xaa7   : > { %v13312_v17 = vmul.f32 %v15596_v49, %v15594_v45 }
 0xaa9   : > { %13313 = vst [vmem:[#allocation16] sm:$0x3] %v13312_v17 }
 0xaaa PF: > { %p15540_p2 = scmp.eq.s32.totalorder %s15959_s28, 1  ;;  %s15899_s29 = smov [#allocation16]  }
 0xaab   : > { %s13321_s16 = sshll.u32 %s15899_s29, 4  ;;  %s13322_s16 = int_to_ptr.vmem [resolvable:$true] %s13321_s16 }
 0xaac   : > { %s15799_s8 = scalar_lea.vmem %s13322_s16, 32  ;;  %p15806_p10 = scmp.lt.s32.totalorder %s13322_s16, %s13322_s16 }
 0xaad   : > { %p15800_p11 = scmp.ne.s32.totalorder %s13322_s16, %s15799_s8  ;;  %p15807_p1 = scmp.lt.s32.totalorder %s15799_s8, %s15799_s8 }
 0xaaf   : > { %p15801_p4 = pnand %p15800_p11, %p15540_p2  ;;  %p15808_p12 = por %p15807_p1, %p15806_p10 }
 0xab1   : > { %p15802_p5 = pneg %p15801_p4 }
 0xab3   : > { %p15809_p0 = pnand %p15808_p12, %p15802_p5 }
 0xab5   : > { %15812 = shalt.err (!%p15809_p0)
}
 0xab6   : > { %s18345_s1 = sld [smem:[#allocation29_spill]] }
 0xabc   : > { %s15813_s13 = scalar_lea.hbm %s18345_s1, 32 }
 0xabd   : > { %p15814_p9 = scmp.ne.s32.totalorder %s18345_s1, %s15813_s13  ;;  %p15819_p13 = scmp.lt.u32.totalorder %s15813_s13, %s18345_s1 }
 0xabf   : > { %p15815_p3 = pnand %p15814_p9, %p15540_p2 }
 0xac1   : > { %p15816_p7 = pneg %p15815_p3 }
 0xac3   : > { %p15821_p6 = pnand %p15819_p13, %p15816_p7 }
 0xac5   : > { %15824 = shalt.err (!%p15821_p6)
}
 0xac6   : > { %15505 = dma.vmem_to_hbm [thread:$0]  (%p15540_p2), %s13322_s16, 32, %s18345_s1, [#allocation6]  }
 0xac7   : > { %15862 = dma.done.wait (%p15540_p2), [#allocation6], 32  }
 0xac8   : > { %15864 = vsyncadd (%p15540_p2), [#allocation6], 4294967264 }
 0xac9 PF: > { %s18346_s27 = sld [smem:[#allocation24_spill]]  ;;  %s18347_s26 = sld [smem:[#allocation23_spill]] }
 0xaca   : > { %s18348_s11 = sld [smem:[#allocation25_spill]]  ;;  %s18349_s24 = smov %s15871_s25 }
 0xacf   : > { %p23_p8 = scmp.ge.s32.totalorder %s18346_s27, 4   ;;  %s18350_s25 = smov %s18347_s26 }
 0xad0   : > { %s18351_s26 = smov %s18348_s11 }
 0xad1   :  { %25 = sbr.rel (!%p23_p8) target bundleno = 13 (0xd), region = 134 }
 0xad8   :  { %13334 = vsyncpa [#allocation5], 1 }
 0xad9   :  { %13336 = vsyncpa [#allocation5 + $0x1], 1 }
 0xada   :  { %13337 = vsyncpa [#allocation8], 1 }
 0xadb   :  { %13339 = vsyncpa [#allocation8 + $0x1], 1 }
 0xadc   :  { %13340 = vsyncpa [#allocation11], 1 }
 0xadd   :  { %13342 = vsyncpa [#allocation11 + $0x1], 1 }
 0xade   :  { %13343 = vsyncpa [#allocation14], 1 }
 0xadf   :  { %13344 = vsyncpa [#allocation6], 1 }
 0xae0   :  { %13346 = vsyncpa [#allocation6 + $0x1], 1 }

</bundles_post_ra>
